<compile_context>
chip_gen: v7x
topology: tpu7x:2x2x1
jax: 0.10.0
libtpu: 0.0.40
codegen_flags: <defaults>
</compile_context>

<pallas_src>
import functools

import numpy as np
import jax
import jax.numpy as jnp
from jax.experimental import pallas as pl
from jax.experimental.pallas import tpu as pltpu

# ---- module hyper-parameters (match SSIM.__init__ defaults) -----------------
WIN_SIZE = 11          # odd already, no +1 adjustment
SIGMA = 1.5
K1 = 0.01
K2 = 0.03
GAUSSIAN_WEIGHTS = True
USE_SAMPLE_COVARIANCE = True
PAD = (WIN_SIZE - 1) // 2
RGB_WEIGHTS = np.array([0.299, 0.587, 0.114], dtype=np.float32)


def _create_window(win_size=WIN_SIZE, sigma=SIGMA, gaussian_weights=GAUSSIAN_WEIGHTS):
    """Deterministic re-implementation of SSIM._create_window (numpy, 2D)."""
    if gaussian_weights:
        truncate = 3.5
        radius = int(truncate * sigma + 0.5)          # = 5 -> 11x11 kernel
        coords = np.arange(-radius, radius + 1, dtype=np.float32)
        x, y = np.meshgrid(coords, coords, indexing="ij")
        kernel = np.exp(-((x ** 2 + y ** 2) / (2.0 * sigma ** 2)))
        kernel = kernel / kernel.sum()
        if kernel.shape[0] < win_size:
            p = (win_size - kernel.shape[0]) // 2
            kernel = np.pad(kernel, ((p, p), (p, p)))
        elif kernel.shape[0] > win_size:
            off = (kernel.shape[0] - win_size) // 2
            kernel = kernel[off:off + win_size, off:off + win_size]
    else:
        kernel = np.ones((win_size, win_size), dtype=np.float32)
        kernel = kernel / kernel.sum()
    return kernel.astype(np.float32)


def _create_window_1d(win_size=WIN_SIZE, sigma=SIGMA, gaussian_weights=GAUSSIAN_WEIGHTS):
    """1D taps g such that outer(g, g) == _create_window() (separable window)."""
    if gaussian_weights:
        truncate = 3.5
        radius = int(truncate * sigma + 0.5)
        coords = np.arange(-radius, radius + 1, dtype=np.float32)
        g = np.exp(-(coords ** 2) / (2.0 * sigma ** 2))
        g = g / g.sum()
        if g.shape[0] < win_size:
            p = (win_size - g.shape[0]) // 2
            g = np.pad(g, (p, p))
        elif g.shape[0] > win_size:
            off = (g.shape[0] - win_size) // 2
            g = g[off:off + win_size]
    else:
        g = np.ones((win_size,), dtype=np.float32) / float(win_size)
    return g.astype(np.float32)


_WINDOW = _create_window()       # (11, 11) float32 "buffer" (used by reference)
_G1D = _create_window_1d()       # (11,) separable taps (used by the kernel)
assert np.allclose(np.outer(_G1D, _G1D), _WINDOW, atol=1e-6)


def _to_grayscale(x):
    """(B, C, H, W) -> (B, H, W), mirroring SSIM._to_grayscale."""
    c = x.shape[1]
    if c == 3:
        w = jnp.asarray(RGB_WEIGHTS).reshape(1, 3, 1, 1)
        return (x * w).sum(axis=1)
    elif c == 1:
        return x[:, 0]
    else:
        return x.mean(axis=1)


def _round_up(n, m):
    return ((n + m - 1) // m) * m


def _banded_matrices(h, hp_in, wp_in, w_out):
    """Banded matrices for the separable correlation done as MXU matmuls.

    Gh (h, hp_in):   out = Gh @ z      (vertical / sublane pass)
    Gw (wp_in, w_out): out = z @ Gw    (horizontal / lane pass)
    """
    g = _G1D
    ws = g.shape[0]
    gh = np.zeros((h, hp_in), np.float32)
    for i in range(h):
        gh[i, i:i + ws] = g
    gw = np.zeros((wp_in, w_out), np.float32)
    for j in range(w_out):
        lim = min(ws, wp_in - j)
        if lim > 0:
            gw[j:j + lim, j] = g[:lim]
    return gh, gw


# ----------------------------- Pallas kernel ---------------------------------
def _ssim_kernel(pad, hv, wv, use_mxu,
                 c_ref, gh_ref, gw_ref, x_ref, y_ref, s_ref, sum_ref):
    # c_ref   : (2,)                SMEM   [C1, C2]
    # gh_ref  : (H, Hp_in)          VMEM   banded vertical Gaussian taps
    # gw_ref  : (Wp_in, W_out)      VMEM   banded horizontal Gaussian taps
    # x_ref   : (1, Hp_in, Wp_in)   VMEM   padded grayscale img1 (one batch elem)
    # y_ref   : (1, Hp_in, Wp_in)   VMEM   padded grayscale img2
    # s_ref   : (1, H, W_out)       VMEM   full SSIM map (lane-dense)
    # sum_ref : (1, 1, W_out)       VMEM   per-batch column sums over valid region
    x = x_ref[0]
    y = y_ref[0]
    c1 = c_ref[0]
    c2 = c_ref[1]

    hp_in = x_ref.shape[1]
    h_out = s_ref.shape[1]
    w_out = s_ref.shape[2]

    if use_mxu:
        # ---- separable 11x11 Gaussian correlation on the MXU ----------------
        gh = gh_ref[...]
        gw = gw_ref[...]
        # Horizontal (lane) pass: one matmul over the 5 row-stacked statistics.
        m = jnp.concatenate([x, y, x * x, y * y, x * y], axis=0)   # (5*Hp, Wp)
        mh = jnp.dot(m, gw, preferred_element_type=jnp.float32,
                     precision=jax.lax.Precision.HIGHEST)          # (5*Hp, Wout)
        # Vertical (sublane) pass: 5 small matmuls (sublane-aligned slices).
        u = [jnp.dot(gh, mh[i * hp_in:(i + 1) * hp_in, :],
                     preferred_element_type=jnp.float32,
                     precision=jax.lax.Precision.HIGHEST)
             for i in range(5)]                                    # 5 x (H, Wout)
        ux, uy, uxx, uyy, uxy = u
    else:
        # ---- separable VPU fallback: 11 + 11 taps instead of 121 ------------
        g = [float(v) for v in _G1D]

        def corr(z):
            zv = g[0] * z[0:h_out, :]
            for t in range(1, WIN_SIZE):
                zv = zv + g[t] * z[t:t + h_out, :]
            zh = g[0] * zv[:, 0:w_out]
            for t in range(1, WIN_SIZE):
                zh = zh + g[t] * zv[:, t:t + w_out]
            return zh

        ux, uy = corr(x), corr(y)
        uxx, uyy, uxy = corr(x * x), corr(y * y), corr(x * y)

    if USE_SAMPLE_COVARIANCE:
        cov_norm = jnp.float32((WIN_SIZE * WIN_SIZE) / (WIN_SIZE * WIN_SIZE - 1.0))
    else:
        cov_norm = jnp.float32(1.0)

    vx = cov_norm * (uxx - ux * ux)
    vy = cov_norm * (uyy - uy * uy)
    vxy = cov_norm * (uxy - ux * uy)

    a1 = 2.0 * ux * uy + c1
    a2 = 2.0 * vxy + c2
    b1 = ux * ux + uy * uy + c1
    b2 = vx + vy + c2
    s = (a1 * a2) / (b1 * b2)            # wo_light=False (default) path

    s_ref[0] = s                         # lane-dense store (W_out % 128 == 0)

    # Per-batch partial sums over the valid (cropped) region.  Only a sublane
    # reduction here; the wrapper finishes the tiny cross-lane/batch sum.
    rows = jax.lax.broadcasted_iota(jnp.int32, (h_out, w_out), 0)
    cols = jax.lax.broadcasted_iota(jnp.int32, (h_out, w_out), 1)
    valid = ((rows >= pad) & (rows < pad + hv) &
             (cols >= pad) & (cols < pad + wv))
    masked = jnp.where(valid, s, jnp.float32(0.0))
    sum_ref[0] = jnp.sum(masked, axis=0, keepdims=True)   # (1, W_out)


# ------------------------------- wrapper --------------------------------------
def ssim(img1, img2, full=False):
    """Equivalent of SSIM.forward(img1, img2) with default data_range/wo_light."""
    if img1.shape != img2.shape:
        raise ValueError("inputs must have the same shape")
    gray1 = _to_grayscale(img1.astype(jnp.float32))   # (B, H, W)
    gray2 = _to_grayscale(img2.astype(jnp.float32))
    B, H, W = gray1.shape
    pad = PAD
    hv, wv = H - 2 * pad, W - 2 * pad                  # valid region after crop

    # data_range inference hoisted out of the kernel (PyTorch: gray1.max()<=1.1).
    data_range = jnp.where(jnp.max(gray1) <= 1.1,
                           jnp.float32(1.0), jnp.float32(255.0))
    c_params = jnp.stack([(K1 * data_range) ** 2,
                          (K2 * data_range) ** 2]).astype(jnp.float32)   # (2,)

    # Reflect pad (conv "SAME" emulation), then zero-pad to TPU-friendly sizes:
    #   sublanes -> multiple of 8, lanes -> multiple of 128 (lane-dense).
    hp, wp = H + 2 * pad, W + 2 * pad
    hp_in = _round_up(hp, 8)
    w_out = _round_up(W, 128)                          # lane-dense output width
    wp_in = _round_up(w_out + WIN_SIZE - 1, 128)       # enough cols for all taps

    def prep(g):
        g = jnp.pad(g, ((0, 0), (pad, pad), (pad, pad)), mode="reflect")
        return jnp.pad(g, ((0, 0), (0, hp_in - hp), (0, wp_in - wp)))

    x = prep(gray1)
    y = prep(gray2)
    gh_np, gw_np = _banded_matrices(H, hp_in, wp_in, w_out)
    gh_j = jnp.asarray(gh_np)
    gw_j = jnp.asarray(gw_np)

    def _run(use_mxu):
        kernel = functools.partial(_ssim_kernel, pad, hv, wv, use_mxu)
        out = pl.pallas_call(
            kernel,
            grid=(B,),
            out_shape=(
                jax.ShapeDtypeStruct((B, H, w_out), jnp.float32),
                jax.ShapeDtypeStruct((B, 1, w_out), jnp.float32),
            ),
            in_specs=[
                pl.BlockSpec(memory_space=pltpu.MemorySpace.SMEM),        # C1, C2
                pl.BlockSpec((H, hp_in), lambda b: (0, 0)),               # Gh
                pl.BlockSpec((wp_in, w_out), lambda b: (0, 0)),           # Gw
                pl.BlockSpec((1, hp_in, wp_in), lambda b: (b, 0, 0)),     # img1
                pl.BlockSpec((1, hp_in, wp_in), lambda b: (b, 0, 0)),     # img2
            ],
            out_specs=(
                pl.BlockSpec((1, H, w_out), lambda b: (b, 0, 0)),         # SSIM map
                pl.BlockSpec((1, 1, w_out), lambda b: (b, 0, 0)),         # col sums
            ),
            compiler_params=pltpu.CompilerParams(
                dimension_semantics=("parallel",),      # batch axis -> both TCs on v7x
                vmem_limit_bytes=32 * 1024 * 1024,
            ),
        )(c_params, gh_j, gw_j, x, y)
        return jax.block_until_ready(out)

    try:
        s_map, sums = _run(True)        # MXU banded-matmul path
    except Exception:                   # lowering rejected -> separable VPU path
        s_map, sums = _run(False)

    mssim = jnp.sum(sums) / jnp.float32(B * hv * wv)
    if full:
        s_valid = s_map[:, pad:pad + hv, pad:pad + wv]
        return mssim, s_valid
    return mssim


# -------------------------- pure-JAX reference --------------------------------
def _ssim_ref(img1, img2):
    gray1 = _to_grayscale(img1.astype(jnp.float32))[:, None]
    gray2 = _to_grayscale(img2.astype(jnp.float32))[:, None]
    data_range = jnp.where(gray1.max() <= 1.1, 1.0, 255.0)
    C1 = (K1 * data_range) ** 2
    C2 = (K2 * data_range) ** 2
    pad = PAD
    g1p = jnp.pad(gray1, ((0, 0), (0, 0), (pad, pad), (pad, pad)), mode="reflect")
    g2p = jnp.pad(gray2, ((0, 0), (0, 0), (pad, pad), (pad, pad)), mode="reflect")
    win = jnp.asarray(_WINDOW)[None, None]
    conv = lambda z: jax.lax.conv_general_dilated(
        z, win, (1, 1), "VALID", precision=jax.lax.Precision.HIGHEST)
    cov_norm = (WIN_SIZE * WIN_SIZE) / (WIN_SIZE * WIN_SIZE - 1.0)
    ux, uy = conv(g1p), conv(g2p)
    uxx, uyy, uxy = conv(g1p * g1p), conv(g2p * g2p), conv(g1p * g2p)
    vx = cov_norm * (uxx - ux * ux)
    vy = cov_norm * (uyy - uy * uy)
    vxy = cov_norm * (uxy - ux * uy)
    A1 = 2 * ux * uy + C1
    A2 = 2 * vxy + C2
    B1 = ux ** 2 + uy ** 2 + C1
    B2 = vx + vy + C2
    S = A1 * A2 / (B1 * B2)
    S_valid = S[:, :, pad:-pad, pad:-pad]
    return S_valid.mean(), S_valid[:, 0]


if __name__ == "__main__":
    key = jax.random.PRNGKey(0)
    k1, k2 = jax.random.split(key)
    shape = (2, 3, 16, 16)   # batch=2, RGB, 16x16 spatial
    img1 = jax.random.uniform(k1, shape, dtype=jnp.float32)
    img2 = jnp.clip(
        img1 + 0.05 * jax.random.normal(k2, shape, dtype=jnp.float32), 0.0, 1.0
    )

    mssim, s_map = ssim(img1, img2, full=True)
    mssim = jax.block_until_ready(mssim)
    s_map = jax.block_until_ready(s_map)

    ref_mssim, ref_map = _ssim_ref(img1, img2)
    ref_mssim = jax.block_until_ready(ref_mssim)

    assert np.isfinite(float(mssim))
    assert s_map.shape == (2, 6, 6)
    np.testing.assert_allclose(float(mssim), float(ref_mssim), rtol=1e-4, atol=1e-5)
    np.testing.assert_allclose(np.asarray(s_map), np.asarray(ref_map),
                               rtol=2e-3, atol=1e-4)
    print("KERNEL_OK")
</pallas_src>

<mosaic_0001>
module attributes {stable_mosaic.version = 11 : i64} {
  func.func @_ssim_kernel(%arg0: i32, %arg1: memref<2xf32, #tpu.memory_space<smem>>, %arg2: memref<16x32xf32, #tpu.memory_space<vmem>>, %arg3: memref<256x128xf32, #tpu.memory_space<vmem>>, %arg4: memref<1x32x256xf32, #tpu.memory_space<vmem>>, %arg5: memref<1x32x256xf32, #tpu.memory_space<vmem>>, %arg6: memref<1x16x128xf32, #tpu.memory_space<vmem>>, %arg7: memref<1x1x128xf32, #tpu.memory_space<vmem>>) attributes {dimension_semantics = [#tpu.dimension_semantics<parallel>], iteration_bounds = array<i64: 2>, scalar_prefetch = 0 : i64, scratch_operands = 0 : i64, tpu.core_type = #tpu.core_type<tc>, window_params = [{transform_indices = @transform_0, window_bounds = array<i64: 2>}, {pipeline_mode = #tpu.pipeline_mode<synchronous>, transform_indices = @transform_1, window_bounds = array<i64: 16, 32>}, {pipeline_mode = #tpu.pipeline_mode<synchronous>, transform_indices = @transform_2, window_bounds = array<i64: 256, 128>}, {transform_indices = @transform_3, window_bounds = array<i64: 1, 32, 256>}, {transform_indices = @transform_4, window_bounds = array<i64: 1, 32, 256>}, {transform_indices = @transform_5, window_bounds = array<i64: 1, 16, 128>}, {transform_indices = @transform_6, window_bounds = array<i64: 1, 1, 128>}]} {
    %c0 = arith.constant 0 : index
    %c0_0 = arith.constant 0 : index
    %c0_1 = arith.constant 0 : index
    %0 = vector.load %arg4[%c0, %c0_0, %c0_1] : memref<1x32x256xf32, #tpu.memory_space<vmem>>, vector<1x32x256xf32>
    %1 = vector.shape_cast %0 : vector<1x32x256xf32> to vector<32x256xf32>
    %c0_2 = arith.constant 0 : index
    %c0_3 = arith.constant 0 : index
    %c0_4 = arith.constant 0 : index
    %2 = vector.load %arg5[%c0_2, %c0_3, %c0_4] : memref<1x32x256xf32, #tpu.memory_space<vmem>>, vector<1x32x256xf32>
    %3 = vector.shape_cast %2 : vector<1x32x256xf32> to vector<32x256xf32>
    %c0_5 = arith.constant 0 : index
    %4 = memref.load %arg1[%c0_5] : memref<2xf32, #tpu.memory_space<smem>>
    %c1 = arith.constant 1 : index
    %5 = memref.load %arg1[%c1] : memref<2xf32, #tpu.memory_space<smem>>
    %c0_6 = arith.constant 0 : index
    %c0_7 = arith.constant 0 : index
    %6 = vector.load %arg2[%c0_6, %c0_7] : memref<16x32xf32, #tpu.memory_space<vmem>>, vector<16x32xf32>
    %c0_8 = arith.constant 0 : index
    %c0_9 = arith.constant 0 : index
    %7 = vector.load %arg3[%c0_8, %c0_9] : memref<256x128xf32, #tpu.memory_space<vmem>>, vector<256x128xf32>
    %8 = arith.mulf %1, %1 : vector<32x256xf32>
    %9 = arith.mulf %3, %3 : vector<32x256xf32>
    %10 = arith.mulf %1, %3 : vector<32x256xf32>
    %11 = tpu.concatenate %1, %3, %8, %9, %10 in 0 : vector<32x256xf32>, vector<32x256xf32>, vector<32x256xf32>, vector<32x256xf32>, vector<32x256xf32> -> vector<160x256xf32>
    %cst = arith.constant dense<0.000000e+00> : vector<160x128xf32>
    %12 = tpu.matmul %11, %7, %cst {dimension_numbers = #tpu.dot_dimension_numbers<[1], [0], [0], [1], [0, 0, 1, 1], [], []>, precision = #tpu.contract_precision<fp32>} : vector<160x256xf32>, vector<256x128xf32>, vector<160x128xf32> -> vector<160x128xf32>
    %13 = vector.extract_strided_slice %12 {offsets = [0, 0], sizes = [32, 128], strides = [1, 1]} : vector<160x128xf32> to vector<32x128xf32>
    %cst_10 = arith.constant dense<0.000000e+00> : vector<16x128xf32>
    %14 = tpu.matmul %6, %13, %cst_10 {dimension_numbers = #tpu.dot_dimension_numbers<[1], [0], [0], [1], [0, 0, 1, 1], [], []>, precision = #tpu.contract_precision<fp32>} : vector<16x32xf32>, vector<32x128xf32>, vector<16x128xf32> -> vector<16x128xf32>
    %15 = vector.extract_strided_slice %12 {offsets = [32, 0], sizes = [32, 128], strides = [1, 1]} : vector<160x128xf32> to vector<32x128xf32>
    %cst_11 = arith.constant dense<0.000000e+00> : vector<16x128xf32>
    %16 = tpu.matmul %6, %15, %cst_11 {dimension_numbers = #tpu.dot_dimension_numbers<[1], [0], [0], [1], [0, 0, 1, 1], [], []>, precision = #tpu.contract_precision<fp32>} : vector<16x32xf32>, vector<32x128xf32>, vector<16x128xf32> -> vector<16x128xf32>
    %17 = vector.extract_strided_slice %12 {offsets = [64, 0], sizes = [32, 128], strides = [1, 1]} : vector<160x128xf32> to vector<32x128xf32>
    %cst_12 = arith.constant dense<0.000000e+00> : vector<16x128xf32>
    %18 = tpu.matmul %6, %17, %cst_12 {dimension_numbers = #tpu.dot_dimension_numbers<[1], [0], [0], [1], [0, 0, 1, 1], [], []>, precision = #tpu.contract_precision<fp32>} : vector<16x32xf32>, vector<32x128xf32>, vector<16x128xf32> -> vector<16x128xf32>
    %19 = vector.extract_strided_slice %12 {offsets = [96, 0], sizes = [32, 128], strides = [1, 1]} : vector<160x128xf32> to vector<32x128xf32>
    %cst_13 = arith.constant dense<0.000000e+00> : vector<16x128xf32>
    %20 = tpu.matmul %6, %19, %cst_13 {dimension_numbers = #tpu.dot_dimension_numbers<[1], [0], [0], [1], [0, 0, 1, 1], [], []>, precision = #tpu.contract_precision<fp32>} : vector<16x32xf32>, vector<32x128xf32>, vector<16x128xf32> -> vector<16x128xf32>
    %21 = vector.extract_strided_slice %12 {offsets = [128, 0], sizes = [32, 128], strides = [1, 1]} : vector<160x128xf32> to vector<32x128xf32>
    %cst_14 = arith.constant dense<0.000000e+00> : vector<16x128xf32>
    %22 = tpu.matmul %6, %21, %cst_14 {dimension_numbers = #tpu.dot_dimension_numbers<[1], [0], [0], [1], [0, 0, 1, 1], [], []>, precision = #tpu.contract_precision<fp32>} : vector<16x32xf32>, vector<32x128xf32>, vector<16x128xf32> -> vector<16x128xf32>
    %23 = arith.mulf %14, %14 : vector<16x128xf32>
    %24 = arith.subf %18, %23 : vector<16x128xf32>
    %cst_15 = arith.constant 1.00833333 : f32
    %25 = vector.broadcast %cst_15 : f32 to vector<16x128xf32>
    %26 = arith.mulf %25, %24 : vector<16x128xf32>
    %27 = arith.mulf %16, %16 : vector<16x128xf32>
    %28 = arith.subf %20, %27 : vector<16x128xf32>
    %cst_16 = arith.constant 1.00833333 : f32
    %29 = vector.broadcast %cst_16 : f32 to vector<16x128xf32>
    %30 = arith.mulf %29, %28 : vector<16x128xf32>
    %31 = arith.mulf %14, %16 : vector<16x128xf32>
    %32 = arith.subf %22, %31 : vector<16x128xf32>
    %cst_17 = arith.constant 1.00833333 : f32
    %33 = vector.broadcast %cst_17 : f32 to vector<16x128xf32>
    %34 = arith.mulf %33, %32 : vector<16x128xf32>
    %cst_18 = arith.constant 2.000000e+00 : f32
    %35 = vector.broadcast %cst_18 : f32 to vector<16x128xf32>
    %36 = arith.mulf %35, %14 : vector<16x128xf32>
    %37 = arith.mulf %36, %16 : vector<16x128xf32>
    %38 = vector.broadcast %4 : f32 to vector<16x128xf32>
    %39 = arith.addf %37, %38 : vector<16x128xf32>
    %cst_19 = arith.constant 2.000000e+00 : f32
    %40 = vector.broadcast %cst_19 : f32 to vector<16x128xf32>
    %41 = arith.mulf %40, %34 : vector<16x128xf32>
    %42 = vector.broadcast %5 : f32 to vector<16x128xf32>
    %43 = arith.addf %41, %42 : vector<16x128xf32>
    %44 = arith.mulf %14, %14 : vector<16x128xf32>
    %45 = arith.mulf %16, %16 : vector<16x128xf32>
    %46 = arith.addf %44, %45 : vector<16x128xf32>
    %47 = vector.broadcast %4 : f32 to vector<16x128xf32>
    %48 = arith.addf %46, %47 : vector<16x128xf32>
    %49 = arith.addf %26, %30 : vector<16x128xf32>
    %50 = vector.broadcast %5 : f32 to vector<16x128xf32>
    %51 = arith.addf %49, %50 : vector<16x128xf32>
    %52 = arith.mulf %39, %43 : vector<16x128xf32>
    %53 = arith.mulf %48, %51 : vector<16x128xf32>
    %54 = arith.divf %52, %53 : vector<16x128xf32>
    %c0_20 = arith.constant 0 : index
    %c0_21 = arith.constant 0 : index
    %c0_22 = arith.constant 0 : index
    %55 = vector.load %arg6[%c0_20, %c0_21, %c0_22] : memref<1x16x128xf32, #tpu.memory_space<vmem>>, vector<1x16x128xf32>
    %56 = vector.shape_cast %55 : vector<1x16x128xf32> to vector<16x128xf32>
    %57 = vector.shape_cast %54 : vector<16x128xf32> to vector<1x16x128xf32>
    tpu.vector_store %arg6[%c0_20, %c0_21, %c0_22], %57 {strides = array<i32>} : memref<1x16x128xf32, #tpu.memory_space<vmem>>, vector<1x16x128xf32>,
    %58 = tpu.iota {dimensions = array<i32: 0>} : vector<16x128xi32>
    %59 = tpu.iota {dimensions = array<i32: 1>} : vector<16x128xi32>
    %c5_i32 = arith.constant 5 : i32
    %60 = vector.broadcast %c5_i32 : i32 to vector<16x128xi32>
    %61 = arith.cmpi sge, %58, %60 : vector<16x128xi32>
    %c11_i32 = arith.constant 11 : i32
    %62 = vector.broadcast %c11_i32 : i32 to vector<16x128xi32>
    %63 = arith.cmpi slt, %58, %62 : vector<16x128xi32>
    %64 = arith.andi %61, %63 : vector<16x128xi1>
    %c5_i32_23 = arith.constant 5 : i32
    %65 = vector.broadcast %c5_i32_23 : i32 to vector<16x128xi32>
    %66 = arith.cmpi sge, %59, %65 : vector<16x128xi32>
    %67 = arith.andi %64, %66 : vector<16x128xi1>
    %c11_i32_24 = arith.constant 11 : i32
    %68 = vector.broadcast %c11_i32_24 : i32 to vector<16x128xi32>
    %69 = arith.cmpi slt, %59, %68 : vector<16x128xi32>
    %70 = arith.andi %67, %69 : vector<16x128xi1>
    %cst_25 = arith.constant 0.000000e+00 : f32
    %71 = vector.broadcast %cst_25 : f32 to vector<16x128xf32>
    %72 = arith.select %70, %54, %71 : vector<16x128xi1>, vector<16x128xf32>
    %cst_26 = arith.constant dense<0.000000e+00> : vector<128xf32>
    %73 = vector.multi_reduction <add>, %72, %cst_26 [0] : vector<16x128xf32> to vector<128xf32>
    %74 = vector.shape_cast %73 : vector<128xf32> to vector<1x128xf32>
    %c0_27 = arith.constant 0 : index
    %c0_28 = arith.constant 0 : index
    %c0_29 = arith.constant 0 : index
    %75 = vector.load %arg7[%c0_27, %c0_28, %c0_29] : memref<1x1x128xf32, #tpu.memory_space<vmem>>, vector<1x1x128xf32>
    %76 = vector.shape_cast %75 : vector<1x1x128xf32> to vector<1x128xf32>
    %77 = vector.shape_cast %74 : vector<1x128xf32> to vector<1x1x128xf32>
    tpu.vector_store %arg7[%c0_27, %c0_28, %c0_29], %77 {strides = array<i32>} : memref<1x1x128xf32, #tpu.memory_space<vmem>>, vector<1x1x128xf32>,
    return
  }
  func.func @transform_0(%arg0: i32) -> i32 {
    %c0_i32 = arith.constant 0 : i32
    %c0_i32_0 = arith.constant 0 : i32
    return %c0_i32 : i32
  }
  func.func @transform_1(%arg0: i32) -> (i32, i32) {
    %c0_i32 = arith.constant 0 : i32
    %c0_i32_0 = arith.constant 0 : i32
    %c0_i32_1 = arith.constant 0 : i32
    return %c0_i32, %c0_i32_0 : i32, i32
  }
  func.func @transform_2(%arg0: i32) -> (i32, i32) {
    %c0_i32 = arith.constant 0 : i32
    %c0_i32_0 = arith.constant 0 : i32
    %c0_i32_1 = arith.constant 0 : i32
    return %c0_i32, %c0_i32_0 : i32, i32
  }
  func.func @transform_3(%arg0: i32) -> (i32, i32, i32) {
    %c0_i32 = arith.constant 0 : i32
    %c0_i32_0 = arith.constant 0 : i32
    %c0_i32_1 = arith.constant 0 : i32
    return %arg0, %c0_i32, %c0_i32_0 : i32, i32, i32
  }
  func.func @transform_4(%arg0: i32) -> (i32, i32, i32) {
    %c0_i32 = arith.constant 0 : i32
    %c0_i32_0 = arith.constant 0 : i32
    %c0_i32_1 = arith.constant 0 : i32
    return %arg0, %c0_i32, %c0_i32_0 : i32, i32, i32
  }
  func.func @transform_5(%arg0: i32) -> (i32, i32, i32) {
    %c0_i32 = arith.constant 0 : i32
    %c0_i32_0 = arith.constant 0 : i32
    %c0_i32_1 = arith.constant 0 : i32
    return %arg0, %c0_i32, %c0_i32_0 : i32, i32, i32
  }
  func.func @transform_6(%arg0: i32) -> (i32, i32, i32) {
    %c0_i32 = arith.constant 0 : i32
    %c0_i32_0 = arith.constant 0 : i32
    %c0_i32_1 = arith.constant 0 : i32
    return %arg0, %c0_i32, %c0_i32_0 : i32, i32, i32
  }
}

module attributes {stable_mosaic.version = 11 : i64} {
  func.func @_ssim_kernel(%arg0: i32, %arg1: memref<2xf32, #tpu.memory_space<smem>>, %arg2: memref<16x32xf32, #tpu.memory_space<vmem>>, %arg3: memref<256x128xf32, #tpu.memory_space<vmem>>, %arg4: memref<1x32x256xf32, #tpu.memory_space<vmem>>, %arg5: memref<1x32x256xf32, #tpu.memory_space<vmem>>, %arg6: memref<1x16x128xf32, #tpu.memory_space<vmem>>, %arg7: memref<1x1x128xf32, #tpu.memory_space<vmem>>) attributes {dimension_semantics = [#tpu.dimension_semantics<parallel>], iteration_bounds = array<i64: 2>, scalar_prefetch = 0 : i64, scratch_operands = 0 : i64, tpu.core_type = #tpu.core_type<tc>, window_params = [{transform_indices = @transform_0, window_bounds = array<i64: 2>}, {pipeline_mode = #tpu.pipeline_mode<synchronous>, transform_indices = @transform_1, window_bounds = array<i64: 16, 32>}, {pipeline_mode = #tpu.pipeline_mode<synchronous>, transform_indices = @transform_2, window_bounds = array<i64: 256, 128>}, {transform_indices = @transform_3, window_bounds = array<i64: 1, 32, 256>}, {transform_indices = @transform_4, window_bounds = array<i64: 1, 32, 256>}, {transform_indices = @transform_5, window_bounds = array<i64: 1, 16, 128>}, {transform_indices = @transform_6, window_bounds = array<i64: 1, 1, 128>}]} {
    %c0 = arith.constant 0 : index
    %c0_0 = arith.constant 0 : index
    %c0_1 = arith.constant 0 : index
    %0 = vector.load %arg4[%c0, %c0_0, %c0_1] : memref<1x32x256xf32, #tpu.memory_space<vmem>>, vector<1x32x256xf32>
    %1 = vector.shape_cast %0 : vector<1x32x256xf32> to vector<32x256xf32>
    %c0_2 = arith.constant 0 : index
    %c0_3 = arith.constant 0 : index
    %c0_4 = arith.constant 0 : index
    %2 = vector.load %arg5[%c0_2, %c0_3, %c0_4] : memref<1x32x256xf32, #tpu.memory_space<vmem>>, vector<1x32x256xf32>
    %3 = vector.shape_cast %2 : vector<1x32x256xf32> to vector<32x256xf32>
    %c0_5 = arith.constant 0 : index
    %4 = memref.load %arg1[%c0_5] : memref<2xf32, #tpu.memory_space<smem>>
    %c1 = arith.constant 1 : index
    %5 = memref.load %arg1[%c1] : memref<2xf32, #tpu.memory_space<smem>>
    %6 = vector.extract_strided_slice %1 {offsets = [0, 0], sizes = [16, 256], strides = [1, 1]} : vector<32x256xf32> to vector<16x256xf32>
    %cst = arith.constant 0.00102838036 : f32
    %7 = vector.broadcast %cst : f32 to vector<16x256xf32>
    %8 = arith.mulf %7, %6 : vector<16x256xf32>
    %9 = vector.extract_strided_slice %1 {offsets = [1, 0], sizes = [16, 256], strides = [1, 1]} : vector<32x256xf32> to vector<16x256xf32>
    %cst_6 = arith.constant 0.00759875868 : f32
    %10 = vector.broadcast %cst_6 : f32 to vector<16x256xf32>
    %11 = arith.mulf %10, %9 : vector<16x256xf32>
    %12 = arith.addf %8, %11 : vector<16x256xf32>
    %13 = vector.extract_strided_slice %1 {offsets = [2, 0], sizes = [16, 256], strides = [1, 1]} : vector<32x256xf32> to vector<16x256xf32>
    %cst_7 = arith.constant 0.0360007733 : f32
    %14 = vector.broadcast %cst_7 : f32 to vector<16x256xf32>
    %15 = arith.mulf %14, %13 : vector<16x256xf32>
    %16 = arith.addf %12, %15 : vector<16x256xf32>
    %17 = vector.extract_strided_slice %1 {offsets = [3, 0], sizes = [16, 256], strides = [1, 1]} : vector<32x256xf32> to vector<16x256xf32>
    %cst_8 = arith.constant 0.109360702 : f32
    %18 = vector.broadcast %cst_8 : f32 to vector<16x256xf32>
    %19 = arith.mulf %18, %17 : vector<16x256xf32>
    %20 = arith.addf %16, %19 : vector<16x256xf32>
    %21 = vector.extract_strided_slice %1 {offsets = [4, 0], sizes = [16, 256], strides = [1, 1]} : vector<32x256xf32> to vector<16x256xf32>
    %cst_9 = arith.constant 0.213005543 : f32
    %22 = vector.broadcast %cst_9 : f32 to vector<16x256xf32>
    %23 = arith.mulf %22, %21 : vector<16x256xf32>
    %24 = arith.addf %20, %23 : vector<16x256xf32>
    %25 = vector.extract_strided_slice %1 {offsets = [5, 0], sizes = [16, 256], strides = [1, 1]} : vector<32x256xf32> to vector<16x256xf32>
    %cst_10 = arith.constant 0.266011745 : f32
    %26 = vector.broadcast %cst_10 : f32 to vector<16x256xf32>
    %27 = arith.mulf %26, %25 : vector<16x256xf32>
    %28 = arith.addf %24, %27 : vector<16x256xf32>
    %29 = vector.extract_strided_slice %1 {offsets = [6, 0], sizes = [16, 256], strides = [1, 1]} : vector<32x256xf32> to vector<16x256xf32>
    %cst_11 = arith.constant 0.213005543 : f32
    %30 = vector.broadcast %cst_11 : f32 to vector<16x256xf32>
    %31 = arith.mulf %30, %29 : vector<16x256xf32>
    %32 = arith.addf %28, %31 : vector<16x256xf32>
    %33 = vector.extract_strided_slice %1 {offsets = [7, 0], sizes = [16, 256], strides = [1, 1]} : vector<32x256xf32> to vector<16x256xf32>
    %cst_12 = arith.constant 0.109360702 : f32
    %34 = vector.broadcast %cst_12 : f32 to vector<16x256xf32>
    %35 = arith.mulf %34, %33 : vector<16x256xf32>
    %36 = arith.addf %32, %35 : vector<16x256xf32>
    %37 = vector.extract_strided_slice %1 {offsets = [8, 0], sizes = [16, 256], strides = [1, 1]} : vector<32x256xf32> to vector<16x256xf32>
    %cst_13 = arith.constant 0.0360007733 : f32
    %38 = vector.broadcast %cst_13 : f32 to vector<16x256xf32>
    %39 = arith.mulf %38, %37 : vector<16x256xf32>
    %40 = arith.addf %36, %39 : vector<16x256xf32>
    %41 = vector.extract_strided_slice %1 {offsets = [9, 0], sizes = [16, 256], strides = [1, 1]} : vector<32x256xf32> to vector<16x256xf32>
    %cst_14 = arith.constant 0.00759875868 : f32
    %42 = vector.broadcast %cst_14 : f32 to vector<16x256xf32>
    %43 = arith.mulf %42, %41 : vector<16x256xf32>
    %44 = arith.addf %40, %43 : vector<16x256xf32>
    %45 = vector.extract_strided_slice %1 {offsets = [10, 0], sizes = [16, 256], strides = [1, 1]} : vector<32x256xf32> to vector<16x256xf32>
    %cst_15 = arith.constant 0.00102838036 : f32
    %46 = vector.broadcast %cst_15 : f32 to vector<16x256xf32>
    %47 = arith.mulf %46, %45 : vector<16x256xf32>
    %48 = arith.addf %44, %47 : vector<16x256xf32>
    %49 = vector.extract_strided_slice %48 {offsets = [0, 0], sizes = [16, 128], strides = [1, 1]} : vector<16x256xf32> to vector<16x128xf32>
    %cst_16 = arith.constant 0.00102838036 : f32
    %50 = vector.broadcast %cst_16 : f32 to vector<16x128xf32>
    %51 = arith.mulf %50, %49 : vector<16x128xf32>
    %52 = vector.extract_strided_slice %48 {offsets = [0, 1], sizes = [16, 128], strides = [1, 1]} : vector<16x256xf32> to vector<16x128xf32>
    %cst_17 = arith.constant 0.00759875868 : f32
    %53 = vector.broadcast %cst_17 : f32 to vector<16x128xf32>
    %54 = arith.mulf %53, %52 : vector<16x128xf32>
    %55 = arith.addf %51, %54 : vector<16x128xf32>
    %56 = vector.extract_strided_slice %48 {offsets = [0, 2], sizes = [16, 128], strides = [1, 1]} : vector<16x256xf32> to vector<16x128xf32>
    %cst_18 = arith.constant 0.0360007733 : f32
    %57 = vector.broadcast %cst_18 : f32 to vector<16x128xf32>
    %58 = arith.mulf %57, %56 : vector<16x128xf32>
    %59 = arith.addf %55, %58 : vector<16x128xf32>
    %60 = vector.extract_strided_slice %48 {offsets = [0, 3], sizes = [16, 128], strides = [1, 1]} : vector<16x256xf32> to vector<16x128xf32>
    %cst_19 = arith.constant 0.109360702 : f32
    %61 = vector.broadcast %cst_19 : f32 to vector<16x128xf32>
    %62 = arith.mulf %61, %60 : vector<16x128xf32>
    %63 = arith.addf %59, %62 : vector<16x128xf32>
    %64 = vector.extract_strided_slice %48 {offsets = [0, 4], sizes = [16, 128], strides = [1, 1]} : vector<16x256xf32> to vector<16x128xf32>
    %cst_20 = arith.constant 0.213005543 : f32
    %65 = vector.broadcast %cst_20 : f32 to vector<16x128xf32>
    %66 = arith.mulf %65, %64 : vector<16x128xf32>
    %67 = arith.addf %63, %66 : vector<16x128xf32>
    %68 = vector.extract_strided_slice %48 {offsets = [0, 5], sizes = [16, 128], strides = [1, 1]} : vector<16x256xf32> to vector<16x128xf32>
    %cst_21 = arith.constant 0.266011745 : f32
    %69 = vector.broadcast %cst_21 : f32 to vector<16x128xf32>
    %70 = arith.mulf %69, %68 : vector<16x128xf32>
    %71 = arith.addf %67, %70 : vector<16x128xf32>
    %72 = vector.extract_strided_slice %48 {offsets = [0, 6], sizes = [16, 128], strides = [1, 1]} : vector<16x256xf32> to vector<16x128xf32>
    %cst_22 = arith.constant 0.213005543 : f32
    %73 = vector.broadcast %cst_22 : f32 to vector<16x128xf32>
    %74 = arith.mulf %73, %72 : vector<16x128xf32>
    %75 = arith.addf %71, %74 : vector<16x128xf32>
    %76 = vector.extract_strided_slice %48 {offsets = [0, 7], sizes = [16, 128], strides = [1, 1]} : vector<16x256xf32> to vector<16x128xf32>
    %cst_23 = arith.constant 0.109360702 : f32
    %77 = vector.broadcast %cst_23 : f32 to vector<16x128xf32>
    %78 = arith.mulf %77, %76 : vector<16x128xf32>
    %79 = arith.addf %75, %78 : vector<16x128xf32>
    %80 = vector.extract_strided_slice %48 {offsets = [0, 8], sizes = [16, 128], strides = [1, 1]} : vector<16x256xf32> to vector<16x128xf32>
    %cst_24 = arith.constant 0.0360007733 : f32
    %81 = vector.broadcast %cst_24 : f32 to vector<16x128xf32>
    %82 = arith.mulf %81, %80 : vector<16x128xf32>
    %83 = arith.addf %79, %82 : vector<16x128xf32>
    %84 = vector.extract_strided_slice %48 {offsets = [0, 9], sizes = [16, 128], strides = [1, 1]} : vector<16x256xf32> to vector<16x128xf32>
    %cst_25 = arith.constant 0.00759875868 : f32
    %85 = vector.broadcast %cst_25 : f32 to vector<16x128xf32>
    %86 = arith.mulf %85, %84 : vector<16x128xf32>
    %87 = arith.addf %83, %86 : vector<16x128xf32>
    %88 = vector.extract_strided_slice %48 {offsets = [0, 10], sizes = [16, 128], strides = [1, 1]} : vector<16x256xf32> to vector<16x128xf32>
    %cst_26 = arith.constant 0.00102838036 : f32
    %89 = vector.broadcast %cst_26 : f32 to vector<16x128xf32>
    %90 = arith.mulf %89, %88 : vector<16x128xf32>
    %91 = arith.addf %87, %90 : vector<16x128xf32>
    %92 = vector.extract_strided_slice %3 {offsets = [0, 0], sizes = [16, 256], strides = [1, 1]} : vector<32x256xf32> to vector<16x256xf32>
    %cst_27 = arith.constant 0.00102838036 : f32
    %93 = vector.broadcast %cst_27 : f32 to vector<16x256xf32>
    %94 = arith.mulf %93, %92 : vector<16x256xf32>
    %95 = vector.extract_strided_slice %3 {offsets = [1, 0], sizes = [16, 256], strides = [1, 1]} : vector<32x256xf32> to vector<16x256xf32>
    %cst_28 = arith.constant 0.00759875868 : f32
    %96 = vector.broadcast %cst_28 : f32 to vector<16x256xf32>
    %97 = arith.mulf %96, %95 : vector<16x256xf32>
    %98 = arith.addf %94, %97 : vector<16x256xf32>
    %99 = vector.extract_strided_slice %3 {offsets = [2, 0], sizes = [16, 256], strides = [1, 1]} : vector<32x256xf32> to vector<16x256xf32>
    %cst_29 = arith.constant 0.0360007733 : f32
    %100 = vector.broadcast %cst_29 : f32 to vector<16x256xf32>
    %101 = arith.mulf %100, %99 : vector<16x256xf32>
    %102 = arith.addf %98, %101 : vector<16x256xf32>
    %103 = vector.extract_strided_slice %3 {offsets = [3, 0], sizes = [16, 256], strides = [1, 1]} : vector<32x256xf32> to vector<16x256xf32>
    %cst_30 = arith.constant 0.109360702 : f32
    %104 = vector.broadcast %cst_30 : f32 to vector<16x256xf32>
    %105 = arith.mulf %104, %103 : vector<16x256xf32>
    %106 = arith.addf %102, %105 : vector<16x256xf32>
    %107 = vector.extract_strided_slice %3 {offsets = [4, 0], sizes = [16, 256], strides = [1, 1]} : vector<32x256xf32> to vector<16x256xf32>
    %cst_31 = arith.constant 0.213005543 : f32
    %108 = vector.broadcast %cst_31 : f32 to vector<16x256xf32>
    %109 = arith.mulf %108, %107 : vector<16x256xf32>
    %110 = arith.addf %106, %109 : vector<16x256xf32>
    %111 = vector.extract_strided_slice %3 {offsets = [5, 0], sizes = [16, 256], strides = [1, 1]} : vector<32x256xf32> to vector<16x256xf32>
    %cst_32 = arith.constant 0.266011745 : f32
    %112 = vector.broadcast %cst_32 : f32 to vector<16x256xf32>
    %113 = arith.mulf %112, %111 : vector<16x256xf32>
    %114 = arith.addf %110, %113 : vector<16x256xf32>
    %115 = vector.extract_strided_slice %3 {offsets = [6, 0], sizes = [16, 256], strides = [1, 1]} : vector<32x256xf32> to vector<16x256xf32>
    %cst_33 = arith.constant 0.213005543 : f32
    %116 = vector.broadcast %cst_33 : f32 to vector<16x256xf32>
    %117 = arith.mulf %116, %115 : vector<16x256xf32>
    %118 = arith.addf %114, %117 : vector<16x256xf32>
    %119 = vector.extract_strided_slice %3 {offsets = [7, 0], sizes = [16, 256], strides = [1, 1]} : vector<32x256xf32> to vector<16x256xf32>
    %cst_34 = arith.constant 0.109360702 : f32
    %120 = vector.broadcast %cst_34 : f32 to vector<16x256xf32>
    %121 = arith.mulf %120, %119 : vector<16x256xf32>
    %122 = arith.addf %118, %121 : vector<16x256xf32>
    %123 = vector.extract_strided_slice %3 {offsets = [8, 0], sizes = [16, 256], strides = [1, 1]} : vector<32x256xf32> to vector<16x256xf32>
    %cst_35 = arith.constant 0.0360007733 : f32
    %124 = vector.broadcast %cst_35 : f32 to vector<16x256xf32>
    %125 = arith.mulf %124, %123 : vector<16x256xf32>
    %126 = arith.addf %122, %125 : vector<16x256xf32>
    %127 = vector.extract_strided_slice %3 {offsets = [9, 0], sizes = [16, 256], strides = [1, 1]} : vector<32x256xf32> to vector<16x256xf32>
    %cst_36 = arith.constant 0.00759875868 : f32
    %128 = vector.broadcast %cst_36 : f32 to vector<16x256xf32>
    %129 = arith.mulf %128, %127 : vector<16x256xf32>
    %130 = arith.addf %126, %129 : vector<16x256xf32>
    %131 = vector.extract_strided_slice %3 {offsets = [10, 0], sizes = [16, 256], strides = [1, 1]} : vector<32x256xf32> to vector<16x256xf32>
    %cst_37 = arith.constant 0.00102838036 : f32
    %132 = vector.broadcast %cst_37 : f32 to vector<16x256xf32>
    %133 = arith.mulf %132, %131 : vector<16x256xf32>
    %134 = arith.addf %130, %133 : vector<16x256xf32>
    %135 = vector.extract_strided_slice %134 {offsets = [0, 0], sizes = [16, 128], strides = [1, 1]} : vector<16x256xf32> to vector<16x128xf32>
    %cst_38 = arith.constant 0.00102838036 : f32
    %136 = vector.broadcast %cst_38 : f32 to vector<16x128xf32>
    %137 = arith.mulf %136, %135 : vector<16x128xf32>
    %138 = vector.extract_strided_slice %134 {offsets = [0, 1], sizes = [16, 128], strides = [1, 1]} : vector<16x256xf32> to vector<16x128xf32>
    %cst_39 = arith.constant 0.00759875868 : f32
    %139 = vector.broadcast %cst_39 : f32 to vector<16x128xf32>
    %140 = arith.mulf %139, %138 : vector<16x128xf32>
    %141 = arith.addf %137, %140 : vector<16x128xf32>
    %142 = vector.extract_strided_slice %134 {offsets = [0, 2], sizes = [16, 128], strides = [1, 1]} : vector<16x256xf32> to vector<16x128xf32>
    %cst_40 = arith.constant 0.0360007733 : f32
    %143 = vector.broadcast %cst_40 : f32 to vector<16x128xf32>
    %144 = arith.mulf %143, %142 : vector<16x128xf32>
    %145 = arith.addf %141, %144 : vector<16x128xf32>
    %146 = vector.extract_strided_slice %134 {offsets = [0, 3], sizes = [16, 128], strides = [1, 1]} : vector<16x256xf32> to vector<16x128xf32>
    %cst_41 = arith.constant 0.109360702 : f32
    %147 = vector.broadcast %cst_41 : f32 to vector<16x128xf32>
    %148 = arith.mulf %147, %146 : vector<16x128xf32>
    %149 = arith.addf %145, %148 : vector<16x128xf32>
    %150 = vector.extract_strided_slice %134 {offsets = [0, 4], sizes = [16, 128], strides = [1, 1]} : vector<16x256xf32> to vector<16x128xf32>
    %cst_42 = arith.constant 0.213005543 : f32
    %151 = vector.broadcast %cst_42 : f32 to vector<16x128xf32>
    %152 = arith.mulf %151, %150 : vector<16x128xf32>
    %153 = arith.addf %149, %152 : vector<16x128xf32>
    %154 = vector.extract_strided_slice %134 {offsets = [0, 5], sizes = [16, 128], strides = [1, 1]} : vector<16x256xf32> to vector<16x128xf32>
    %cst_43 = arith.constant 0.266011745 : f32
    %155 = vector.broadcast %cst_43 : f32 to vector<16x128xf32>
    %156 = arith.mulf %155, %154 : vector<16x128xf32>
    %157 = arith.addf %153, %156 : vector<16x128xf32>
    %158 = vector.extract_strided_slice %134 {offsets = [0, 6], sizes = [16, 128], strides = [1, 1]} : vector<16x256xf32> to vector<16x128xf32>
    %cst_44 = arith.constant 0.213005543 : f32
    %159 = vector.broadcast %cst_44 : f32 to vector<16x128xf32>
    %160 = arith.mulf %159, %158 : vector<16x128xf32>
    %161 = arith.addf %157, %160 : vector<16x128xf32>
    %162 = vector.extract_strided_slice %134 {offsets = [0, 7], sizes = [16, 128], strides = [1, 1]} : vector<16x256xf32> to vector<16x128xf32>
    %cst_45 = arith.constant 0.109360702 : f32
    %163 = vector.broadcast %cst_45 : f32 to vector<16x128xf32>
    %164 = arith.mulf %163, %162 : vector<16x128xf32>
    %165 = arith.addf %161, %164 : vector<16x128xf32>
    %166 = vector.extract_strided_slice %134 {offsets = [0, 8], sizes = [16, 128], strides = [1, 1]} : vector<16x256xf32> to vector<16x128xf32>
    %cst_46 = arith.constant 0.0360007733 : f32
    %167 = vector.broadcast %cst_46 : f32 to vector<16x128xf32>
    %168 = arith.mulf %167, %166 : vector<16x128xf32>
    %169 = arith.addf %165, %168 : vector<16x128xf32>
    %170 = vector.extract_strided_slice %134 {offsets = [0, 9], sizes = [16, 128], strides = [1, 1]} : vector<16x256xf32> to vector<16x128xf32>
    %cst_47 = arith.constant 0.00759875868 : f32
    %171 = vector.broadcast %cst_47 : f32 to vector<16x128xf32>
    %172 = arith.mulf %171, %170 : vector<16x128xf32>
    %173 = arith.addf %169, %172 : vector<16x128xf32>
    %174 = vector.extract_strided_slice %134 {offsets = [0, 10], sizes = [16, 128], strides = [1, 1]} : vector<16x256xf32> to vector<16x128xf32>
    %cst_48 = arith.constant 0.00102838036 : f32
    %175 = vector.broadcast %cst_48 : f32 to vector<16x128xf32>
    %176 = arith.mulf %175, %174 : vector<16x128xf32>
    %177 = arith.addf %173, %176 : vector<16x128xf32>
    %178 = arith.mulf %1, %1 : vector<32x256xf32>
    %179 = vector.extract_strided_slice %178 {offsets = [0, 0], sizes = [16, 256], strides = [1, 1]} : vector<32x256xf32> to vector<16x256xf32>
    %cst_49 = arith.constant 0.00102838036 : f32
    %180 = vector.broadcast %cst_49 : f32 to vector<16x256xf32>
    %181 = arith.mulf %180, %179 : vector<16x256xf32>
    %182 = vector.extract_strided_slice %178 {offsets = [1, 0], sizes = [16, 256], strides = [1, 1]} : vector<32x256xf32> to vector<16x256xf32>
    %cst_50 = arith.constant 0.00759875868 : f32
    %183 = vector.broadcast %cst_50 : f32 to vector<16x256xf32>
    %184 = arith.mulf %183, %182 : vector<16x256xf32>
    %185 = arith.addf %181, %184 : vector<16x256xf32>
    %186 = vector.extract_strided_slice %178 {offsets = [2, 0], sizes = [16, 256], strides = [1, 1]} : vector<32x256xf32> to vector<16x256xf32>
    %cst_51 = arith.constant 0.0360007733 : f32
    %187 = vector.broadcast %cst_51 : f32 to vector<16x256xf32>
    %188 = arith.mulf %187, %186 : vector<16x256xf32>
    %189 = arith.addf %185, %188 : vector<16x256xf32>
    %190 = vector.extract_strided_slice %178 {offsets = [3, 0], sizes = [16, 256], strides = [1, 1]} : vector<32x256xf32> to vector<16x256xf32>
    %cst_52 = arith.constant 0.109360702 : f32
    %191 = vector.broadcast %cst_52 : f32 to vector<16x256xf32>
    %192 = arith.mulf %191, %190 : vector<16x256xf32>
    %193 = arith.addf %189, %192 : vector<16x256xf32>
    %194 = vector.extract_strided_slice %178 {offsets = [4, 0], sizes = [16, 256], strides = [1, 1]} : vector<32x256xf32> to vector<16x256xf32>
    %cst_53 = arith.constant 0.213005543 : f32
    %195 = vector.broadcast %cst_53 : f32 to vector<16x256xf32>
    %196 = arith.mulf %195, %194 : vector<16x256xf32>
    %197 = arith.addf %193, %196 : vector<16x256xf32>
    %198 = vector.extract_strided_slice %178 {offsets = [5, 0], sizes = [16, 256], strides = [1, 1]} : vector<32x256xf32> to vector<16x256xf32>
    %cst_54 = arith.constant 0.266011745 : f32
    %199 = vector.broadcast %cst_54 : f32 to vector<16x256xf32>
    %200 = arith.mulf %199, %198 : vector<16x256xf32>
    %201 = arith.addf %197, %200 : vector<16x256xf32>
    %202 = vector.extract_strided_slice %178 {offsets = [6, 0], sizes = [16, 256], strides = [1, 1]} : vector<32x256xf32> to vector<16x256xf32>
    %cst_55 = arith.constant 0.213005543 : f32
    %203 = vector.broadcast %cst_55 : f32 to vector<16x256xf32>
    %204 = arith.mulf %203, %202 : vector<16x256xf32>
    %205 = arith.addf %201, %204 : vector<16x256xf32>
    %206 = vector.extract_strided_slice %178 {offsets = [7, 0], sizes = [16, 256], strides = [1, 1]} : vector<32x256xf32> to vector<16x256xf32>
    %cst_56 = arith.constant 0.109360702 : f32
    %207 = vector.broadcast %cst_56 : f32 to vector<16x256xf32>
    %208 = arith.mulf %207, %206 : vector<16x256xf32>
    %209 = arith.addf %205, %208 : vector<16x256xf32>
    %210 = vector.extract_strided_slice %178 {offsets = [8, 0], sizes = [16, 256], strides = [1, 1]} : vector<32x256xf32> to vector<16x256xf32>
    %cst_57 = arith.constant 0.0360007733 : f32
    %211 = vector.broadcast %cst_57 : f32 to vector<16x256xf32>
    %212 = arith.mulf %211, %210 : vector<16x256xf32>
    %213 = arith.addf %209, %212 : vector<16x256xf32>
    %214 = vector.extract_strided_slice %178 {offsets = [9, 0], sizes = [16, 256], strides = [1, 1]} : vector<32x256xf32> to vector<16x256xf32>
    %cst_58 = arith.constant 0.00759875868 : f32
    %215 = vector.broadcast %cst_58 : f32 to vector<16x256xf32>
    %216 = arith.mulf %215, %214 : vector<16x256xf32>
    %217 = arith.addf %213, %216 : vector<16x256xf32>
    %218 = vector.extract_strided_slice %178 {offsets = [10, 0], sizes = [16, 256], strides = [1, 1]} : vector<32x256xf32> to vector<16x256xf32>
    %cst_59 = arith.constant 0.00102838036 : f32
    %219 = vector.broadcast %cst_59 : f32 to vector<16x256xf32>
    %220 = arith.mulf %219, %218 : vector<16x256xf32>
    %221 = arith.addf %217, %220 : vector<16x256xf32>
    %222 = vector.extract_strided_slice %221 {offsets = [0, 0], sizes = [16, 128], strides = [1, 1]} : vector<16x256xf32> to vector<16x128xf32>
    %cst_60 = arith.constant 0.00102838036 : f32
    %223 = vector.broadcast %cst_60 : f32 to vector<16x128xf32>
    %224 = arith.mulf %223, %222 : vector<16x128xf32>
    %225 = vector.extract_strided_slice %221 {offsets = [0, 1], sizes = [16, 128], strides = [1, 1]} : vector<16x256xf32> to vector<16x128xf32>
    %cst_61 = arith.constant 0.00759875868 : f32
    %226 = vector.broadcast %cst_61 : f32 to vector<16x128xf32>
    %227 = arith.mulf %226, %225 : vector<16x128xf32>
    %228 = arith.addf %224, %227 : vector<16x128xf32>
    %229 = vector.extract_strided_slice %221 {offsets = [0, 2], sizes = [16, 128], strides = [1, 1]} : vector<16x256xf32> to vector<16x128xf32>
    %cst_62 = arith.constant 0.0360007733 : f32
    %230 = vector.broadcast %cst_62 : f32 to vector<16x128xf32>
    %231 = arith.mulf %230, %229 : vector<16x128xf32>
    %232 = arith.addf %228, %231 : vector<16x128xf32>
    %233 = vector.extract_strided_slice %221 {offsets = [0, 3], sizes = [16, 128], strides = [1, 1]} : vector<16x256xf32> to vector<16x128xf32>
    %cst_63 = arith.constant 0.109360702 : f32
    %234 = vector.broadcast %cst_63 : f32 to vector<16x128xf32>
    %235 = arith.mulf %234, %233 : vector<16x128xf32>
    %236 = arith.addf %232, %235 : vector<16x128xf32>
    %237 = vector.extract_strided_slice %221 {offsets = [0, 4], sizes = [16, 128], strides = [1, 1]} : vector<16x256xf32> to vector<16x128xf32>
    %cst_64 = arith.constant 0.213005543 : f32
    %238 = vector.broadcast %cst_64 : f32 to vector<16x128xf32>
    %239 = arith.mulf %238, %237 : vector<16x128xf32>
    %240 = arith.addf %236, %239 : vector<16x128xf32>
    %241 = vector.extract_strided_slice %221 {offsets = [0, 5], sizes = [16, 128], strides = [1, 1]} : vector<16x256xf32> to vector<16x128xf32>
    %cst_65 = arith.constant 0.266011745 : f32
    %242 = vector.broadcast %cst_65 : f32 to vector<16x128xf32>
    %243 = arith.mulf %242, %241 : vector<16x128xf32>
    %244 = arith.addf %240, %243 : vector<16x128xf32>
    %245 = vector.extract_strided_slice %221 {offsets = [0, 6], sizes = [16, 128], strides = [1, 1]} : vector<16x256xf32> to vector<16x128xf32>
    %cst_66 = arith.constant 0.213005543 : f32
    %246 = vector.broadcast %cst_66 : f32 to vector<16x128xf32>
    %247 = arith.mulf %246, %245 : vector<16x128xf32>
    %248 = arith.addf %244, %247 : vector<16x128xf32>
    %249 = vector.extract_strided_slice %221 {offsets = [0, 7], sizes = [16, 128], strides = [1, 1]} : vector<16x256xf32> to vector<16x128xf32>
    %cst_67 = arith.constant 0.109360702 : f32
    %250 = vector.broadcast %cst_67 : f32 to vector<16x128xf32>
    %251 = arith.mulf %250, %249 : vector<16x128xf32>
    %252 = arith.addf %248, %251 : vector<16x128xf32>
    %253 = vector.extract_strided_slice %221 {offsets = [0, 8], sizes = [16, 128], strides = [1, 1]} : vector<16x256xf32> to vector<16x128xf32>
    %cst_68 = arith.constant 0.0360007733 : f32
    %254 = vector.broadcast %cst_68 : f32 to vector<16x128xf32>
    %255 = arith.mulf %254, %253 : vector<16x128xf32>
    %256 = arith.addf %252, %255 : vector<16x128xf32>
    %257 = vector.extract_strided_slice %221 {offsets = [0, 9], sizes = [16, 128], strides = [1, 1]} : vector<16x256xf32> to vector<16x128xf32>
    %cst_69 = arith.constant 0.00759875868 : f32
    %258 = vector.broadcast %cst_69 : f32 to vector<16x128xf32>
    %259 = arith.mulf %258, %257 : vector<16x128xf32>
    %260 = arith.addf %256, %259 : vector<16x128xf32>
    %261 = vector.extract_strided_slice %221 {offsets = [0, 10], sizes = [16, 128], strides = [1, 1]} : vector<16x256xf32> to vector<16x128xf32>
    %cst_70 = arith.constant 0.00102838036 : f32
    %262 = vector.broadcast %cst_70 : f32 to vector<16x128xf32>
    %263 = arith.mulf %262, %261 : vector<16x128xf32>
    %264 = arith.addf %260, %263 : vector<16x128xf32>
    %265 = arith.mulf %3, %3 : vector<32x256xf32>
    %266 = vector.extract_strided_slice %265 {offsets = [0, 0], sizes = [16, 256], strides = [1, 1]} : vector<32x256xf32> to vector<16x256xf32>
    %cst_71 = arith.constant 0.00102838036 : f32
    %267 = vector.broadcast %cst_71 : f32 to vector<16x256xf32>
    %268 = arith.mulf %267, %266 : vector<16x256xf32>
    %269 = vector.extract_strided_slice %265 {offsets = [1, 0], sizes = [16, 256], strides = [1, 1]} : vector<32x256xf32> to vector<16x256xf32>
    %cst_72 = arith.constant 0.00759875868 : f32
    %270 = vector.broadcast %cst_72 : f32 to vector<16x256xf32>
    %271 = arith.mulf %270, %269 : vector<16x256xf32>
    %272 = arith.addf %268, %271 : vector<16x256xf32>
    %273 = vector.extract_strided_slice %265 {offsets = [2, 0], sizes = [16, 256], strides = [1, 1]} : vector<32x256xf32> to vector<16x256xf32>
    %cst_73 = arith.constant 0.0360007733 : f32
    %274 = vector.broadcast %cst_73 : f32 to vector<16x256xf32>
    %275 = arith.mulf %274, %273 : vector<16x256xf32>
    %276 = arith.addf %272, %275 : vector<16x256xf32>
    %277 = vector.extract_strided_slice %265 {offsets = [3, 0], sizes = [16, 256], strides = [1, 1]} : vector<32x256xf32> to vector<16x256xf32>
    %cst_74 = arith.constant 0.109360702 : f32
    %278 = vector.broadcast %cst_74 : f32 to vector<16x256xf32>
    %279 = arith.mulf %278, %277 : vector<16x256xf32>
    %280 = arith.addf %276, %279 : vector<16x256xf32>
    %281 = vector.extract_strided_slice %265 {offsets = [4, 0], sizes = [16, 256], strides = [1, 1]} : vector<32x256xf32> to vector<16x256xf32>
    %cst_75 = arith.constant 0.213005543 : f32
    %282 = vector.broadcast %cst_75 : f32 to vector<16x256xf32>
    %283 = arith.mulf %282, %281 : vector<16x256xf32>
    %284 = arith.addf %280, %283 : vector<16x256xf32>
    %285 = vector.extract_strided_slice %265 {offsets = [5, 0], sizes = [16, 256], strides = [1, 1]} : vector<32x256xf32> to vector<16x256xf32>
    %cst_76 = arith.constant 0.266011745 : f32
    %286 = vector.broadcast %cst_76 : f32 to vector<16x256xf32>
    %287 = arith.mulf %286, %285 : vector<16x256xf32>
    %288 = arith.addf %284, %287 : vector<16x256xf32>
    %289 = vector.extract_strided_slice %265 {offsets = [6, 0], sizes = [16, 256], strides = [1, 1]} : vector<32x256xf32> to vector<16x256xf32>
    %cst_77 = arith.constant 0.213005543 : f32
    %290 = vector.broadcast %cst_77 : f32 to vector<16x256xf32>
    %291 = arith.mulf %290, %289 : vector<16x256xf32>
    %292 = arith.addf %288, %291 : vector<16x256xf32>
    %293 = vector.extract_strided_slice %265 {offsets = [7, 0], sizes = [16, 256], strides = [1, 1]} : vector<32x256xf32> to vector<16x256xf32>
    %cst_78 = arith.constant 0.109360702 : f32
    %294 = vector.broadcast %cst_78 : f32 to vector<16x256xf32>
    %295 = arith.mulf %294, %293 : vector<16x256xf32>
    %296 = arith.addf %292, %295 : vector<16x256xf32>
    %297 = vector.extract_strided_slice %265 {offsets = [8, 0], sizes = [16, 256], strides = [1, 1]} : vector<32x256xf32> to vector<16x256xf32>
    %cst_79 = arith.constant 0.0360007733 : f32
    %298 = vector.broadcast %cst_79 : f32 to vector<16x256xf32>
    %299 = arith.mulf %298, %297 : vector<16x256xf32>
    %300 = arith.addf %296, %299 : vector<16x256xf32>
    %301 = vector.extract_strided_slice %265 {offsets = [9, 0], sizes = [16, 256], strides = [1, 1]} : vector<32x256xf32> to vector<16x256xf32>
    %cst_80 = arith.constant 0.00759875868 : f32
    %302 = vector.broadcast %cst_80 : f32 to vector<16x256xf32>
    %303 = arith.mulf %302, %301 : vector<16x256xf32>
    %304 = arith.addf %300, %303 : vector<16x256xf32>
    %305 = vector.extract_strided_slice %265 {offsets = [10, 0], sizes = [16, 256], strides = [1, 1]} : vector<32x256xf32> to vector<16x256xf32>
    %cst_81 = arith.constant 0.00102838036 : f32
    %306 = vector.broadcast %cst_81 : f32 to vector<16x256xf32>
    %307 = arith.mulf %306, %305 : vector<16x256xf32>
    %308 = arith.addf %304, %307 : vector<16x256xf32>
    %309 = vector.extract_strided_slice %308 {offsets = [0, 0], sizes = [16, 128], strides = [1, 1]} : vector<16x256xf32> to vector<16x128xf32>
    %cst_82 = arith.constant 0.00102838036 : f32
    %310 = vector.broadcast %cst_82 : f32 to vector<16x128xf32>
    %311 = arith.mulf %310, %309 : vector<16x128xf32>
    %312 = vector.extract_strided_slice %308 {offsets = [0, 1], sizes = [16, 128], strides = [1, 1]} : vector<16x256xf32> to vector<16x128xf32>
    %cst_83 = arith.constant 0.00759875868 : f32
    %313 = vector.broadcast %cst_83 : f32 to vector<16x128xf32>
    %314 = arith.mulf %313, %312 : vector<16x128xf32>
    %315 = arith.addf %311, %314 : vector<16x128xf32>
    %316 = vector.extract_strided_slice %308 {offsets = [0, 2], sizes = [16, 128], strides = [1, 1]} : vector<16x256xf32> to vector<16x128xf32>
    %cst_84 = arith.constant 0.0360007733 : f32
    %317 = vector.broadcast %cst_84 : f32 to vector<16x128xf32>
    %318 = arith.mulf %317, %316 : vector<16x128xf32>
    %319 = arith.addf %315, %318 : vector<16x128xf32>
    %320 = vector.extract_strided_slice %308 {offsets = [0, 3], sizes = [16, 128], strides = [1, 1]} : vector<16x256xf32> to vector<16x128xf32>
    %cst_85 = arith.constant 0.109360702 : f32
    %321 = vector.broadcast %cst_85 : f32 to vector<16x128xf32>
    %322 = arith.mulf %321, %320 : vector<16x128xf32>
    %323 = arith.addf %319, %322 : vector<16x128xf32>
    %324 = vector.extract_strided_slice %308 {offsets = [0, 4], sizes = [16, 128], strides = [1, 1]} : vector<16x256xf32> to vector<16x128xf32>
    %cst_86 = arith.constant 0.213005543 : f32
    %325 = vector.broadcast %cst_86 : f32 to vector<16x128xf32>
    %326 = arith.mulf %325, %324 : vector<16x128xf32>
    %327 = arith.addf %323, %326 : vector<16x128xf32>
    %328 = vector.extract_strided_slice %308 {offsets = [0, 5], sizes = [16, 128], strides = [1, 1]} : vector<16x256xf32> to vector<16x128xf32>
    %cst_87 = arith.constant 0.266011745 : f32
    %329 = vector.broadcast %cst_87 : f32 to vector<16x128xf32>
    %330 = arith.mulf %329, %328 : vector<16x128xf32>
    %331 = arith.addf %327, %330 : vector<16x128xf32>
    %332 = vector.extract_strided_slice %308 {offsets = [0, 6], sizes = [16, 128], strides = [1, 1]} : vector<16x256xf32> to vector<16x128xf32>
    %cst_88 = arith.constant 0.213005543 : f32
    %333 = vector.broadcast %cst_88 : f32 to vector<16x128xf32>
    %334 = arith.mulf %333, %332 : vector<16x128xf32>
    %335 = arith.addf %331, %334 : vector<16x128xf32>
    %336 = vector.extract_strided_slice %308 {offsets = [0, 7], sizes = [16, 128], strides = [1, 1]} : vector<16x256xf32> to vector<16x128xf32>
    %cst_89 = arith.constant 0.109360702 : f32
    %337 = vector.broadcast %cst_89 : f32 to vector<16x128xf32>
    %338 = arith.mulf %337, %336 : vector<16x128xf32>
    %339 = arith.addf %335, %338 : vector<16x128xf32>
    %340 = vector.extract_strided_slice %308 {offsets = [0, 8], sizes = [16, 128], strides = [1, 1]} : vector<16x256xf32> to vector<16x128xf32>
    %cst_90 = arith.constant 0.0360007733 : f32
    %341 = vector.broadcast %cst_90 : f32 to vector<16x128xf32>
    %342 = arith.mulf %341, %340 : vector<16x128xf32>
    %343 = arith.addf %339, %342 : vector<16x128xf32>
    %344 = vector.extract_strided_slice %308 {offsets = [0, 9], sizes = [16, 128], strides = [1, 1]} : vector<16x256xf32> to vector<16x128xf32>
    %cst_91 = arith.constant 0.00759875868 : f32
    %345 = vector.broadcast %cst_91 : f32 to vector<16x128xf32>
    %346 = arith.mulf %345, %344 : vector<16x128xf32>
    %347 = arith.addf %343, %346 : vector<16x128xf32>
    %348 = vector.extract_strided_slice %308 {offsets = [0, 10], sizes = [16, 128], strides = [1, 1]} : vector<16x256xf32> to vector<16x128xf32>
    %cst_92 = arith.constant 0.00102838036 : f32
    %349 = vector.broadcast %cst_92 : f32 to vector<16x128xf32>
    %350 = arith.mulf %349, %348 : vector<16x128xf32>
    %351 = arith.addf %347, %350 : vector<16x128xf32>
    %352 = arith.mulf %1, %3 : vector<32x256xf32>
    %353 = vector.extract_strided_slice %352 {offsets = [0, 0], sizes = [16, 256], strides = [1, 1]} : vector<32x256xf32> to vector<16x256xf32>
    %cst_93 = arith.constant 0.00102838036 : f32
    %354 = vector.broadcast %cst_93 : f32 to vector<16x256xf32>
    %355 = arith.mulf %354, %353 : vector<16x256xf32>
    %356 = vector.extract_strided_slice %352 {offsets = [1, 0], sizes = [16, 256], strides = [1, 1]} : vector<32x256xf32> to vector<16x256xf32>
    %cst_94 = arith.constant 0.00759875868 : f32
    %357 = vector.broadcast %cst_94 : f32 to vector<16x256xf32>
    %358 = arith.mulf %357, %356 : vector<16x256xf32>
    %359 = arith.addf %355, %358 : vector<16x256xf32>
    %360 = vector.extract_strided_slice %352 {offsets = [2, 0], sizes = [16, 256], strides = [1, 1]} : vector<32x256xf32> to vector<16x256xf32>
    %cst_95 = arith.constant 0.0360007733 : f32
    %361 = vector.broadcast %cst_95 : f32 to vector<16x256xf32>
    %362 = arith.mulf %361, %360 : vector<16x256xf32>
    %363 = arith.addf %359, %362 : vector<16x256xf32>
    %364 = vector.extract_strided_slice %352 {offsets = [3, 0], sizes = [16, 256], strides = [1, 1]} : vector<32x256xf32> to vector<16x256xf32>
    %cst_96 = arith.constant 0.109360702 : f32
    %365 = vector.broadcast %cst_96 : f32 to vector<16x256xf32>
    %366 = arith.mulf %365, %364 : vector<16x256xf32>
    %367 = arith.addf %363, %366 : vector<16x256xf32>
    %368 = vector.extract_strided_slice %352 {offsets = [4, 0], sizes = [16, 256], strides = [1, 1]} : vector<32x256xf32> to vector<16x256xf32>
    %cst_97 = arith.constant 0.213005543 : f32
    %369 = vector.broadcast %cst_97 : f32 to vector<16x256xf32>
    %370 = arith.mulf %369, %368 : vector<16x256xf32>
    %371 = arith.addf %367, %370 : vector<16x256xf32>
    %372 = vector.extract_strided_slice %352 {offsets = [5, 0], sizes = [16, 256], strides = [1, 1]} : vector<32x256xf32> to vector<16x256xf32>
    %cst_98 = arith.constant 0.266011745 : f32
    %373 = vector.broadcast %cst_98 : f32 to vector<16x256xf32>
    %374 = arith.mulf %373, %372 : vector<16x256xf32>
    %375 = arith.addf %371, %374 : vector<16x256xf32>
    %376 = vector.extract_strided_slice %352 {offsets = [6, 0], sizes = [16, 256], strides = [1, 1]} : vector<32x256xf32> to vector<16x256xf32>
    %cst_99 = arith.constant 0.213005543 : f32
    %377 = vector.broadcast %cst_99 : f32 to vector<16x256xf32>
    %378 = arith.mulf %377, %376 : vector<16x256xf32>
    %379 = arith.addf %375, %378 : vector<16x256xf32>
    %380 = vector.extract_strided_slice %352 {offsets = [7, 0], sizes = [16, 256], strides = [1, 1]} : vector<32x256xf32> to vector<16x256xf32>
    %cst_100 = arith.constant 0.109360702 : f32
    %381 = vector.broadcast %cst_100 : f32 to vector<16x256xf32>
    %382 = arith.mulf %381, %380 : vector<16x256xf32>
    %383 = arith.addf %379, %382 : vector<16x256xf32>
    %384 = vector.extract_strided_slice %352 {offsets = [8, 0], sizes = [16, 256], strides = [1, 1]} : vector<32x256xf32> to vector<16x256xf32>
    %cst_101 = arith.constant 0.0360007733 : f32
    %385 = vector.broadcast %cst_101 : f32 to vector<16x256xf32>
    %386 = arith.mulf %385, %384 : vector<16x256xf32>
    %387 = arith.addf %383, %386 : vector<16x256xf32>
    %388 = vector.extract_strided_slice %352 {offsets = [9, 0], sizes = [16, 256], strides = [1, 1]} : vector<32x256xf32> to vector<16x256xf32>
    %cst_102 = arith.constant 0.00759875868 : f32
    %389 = vector.broadcast %cst_102 : f32 to vector<16x256xf32>
    %390 = arith.mulf %389, %388 : vector<16x256xf32>
    %391 = arith.addf %387, %390 : vector<16x256xf32>
    %392 = vector.extract_strided_slice %352 {offsets = [10, 0], sizes = [16, 256], strides = [1, 1]} : vector<32x256xf32> to vector<16x256xf32>
    %cst_103 = arith.constant 0.00102838036 : f32
    %393 = vector.broadcast %cst_103 : f32 to vector<16x256xf32>
    %394 = arith.mulf %393, %392 : vector<16x256xf32>
    %395 = arith.addf %391, %394 : vector<16x256xf32>
    %396 = vector.extract_strided_slice %395 {offsets = [0, 0], sizes = [16, 128], strides = [1, 1]} : vector<16x256xf32> to vector<16x128xf32>
    %cst_104 = arith.constant 0.00102838036 : f32
    %397 = vector.broadcast %cst_104 : f32 to vector<16x128xf32>
    %398 = arith.mulf %397, %396 : vector<16x128xf32>
    %399 = vector.extract_strided_slice %395 {offsets = [0, 1], sizes = [16, 128], strides = [1, 1]} : vector<16x256xf32> to vector<16x128xf32>
    %cst_105 = arith.constant 0.00759875868 : f32
    %400 = vector.broadcast %cst_105 : f32 to vector<16x128xf32>
    %401 = arith.mulf %400, %399 : vector<16x128xf32>
    %402 = arith.addf %398, %401 : vector<16x128xf32>
    %403 = vector.extract_strided_slice %395 {offsets = [0, 2], sizes = [16, 128], strides = [1, 1]} : vector<16x256xf32> to vector<16x128xf32>
    %cst_106 = arith.constant 0.0360007733 : f32
    %404 = vector.broadcast %cst_106 : f32 to vector<16x128xf32>
    %405 = arith.mulf %404, %403 : vector<16x128xf32>
    %406 = arith.addf %402, %405 : vector<16x128xf32>
    %407 = vector.extract_strided_slice %395 {offsets = [0, 3], sizes = [16, 128], strides = [1, 1]} : vector<16x256xf32> to vector<16x128xf32>
    %cst_107 = arith.constant 0.109360702 : f32
    %408 = vector.broadcast %cst_107 : f32 to vector<16x128xf32>
    %409 = arith.mulf %408, %407 : vector<16x128xf32>
    %410 = arith.addf %406, %409 : vector<16x128xf32>
    %411 = vector.extract_strided_slice %395 {offsets = [0, 4], sizes = [16, 128], strides = [1, 1]} : vector<16x256xf32> to vector<16x128xf32>
    %cst_108 = arith.constant 0.213005543 : f32
    %412 = vector.broadcast %cst_108 : f32 to vector<16x128xf32>
    %413 = arith.mulf %412, %411 : vector<16x128xf32>
    %414 = arith.addf %410, %413 : vector<16x128xf32>
    %415 = vector.extract_strided_slice %395 {offsets = [0, 5], sizes = [16, 128], strides = [1, 1]} : vector<16x256xf32> to vector<16x128xf32>
    %cst_109 = arith.constant 0.266011745 : f32
    %416 = vector.broadcast %cst_109 : f32 to vector<16x128xf32>
    %417 = arith.mulf %416, %415 : vector<16x128xf32>
    %418 = arith.addf %414, %417 : vector<16x128xf32>
    %419 = vector.extract_strided_slice %395 {offsets = [0, 6], sizes = [16, 128], strides = [1, 1]} : vector<16x256xf32> to vector<16x128xf32>
    %cst_110 = arith.constant 0.213005543 : f32
    %420 = vector.broadcast %cst_110 : f32 to vector<16x128xf32>
    %421 = arith.mulf %420, %419 : vector<16x128xf32>
    %422 = arith.addf %418, %421 : vector<16x128xf32>
    %423 = vector.extract_strided_slice %395 {offsets = [0, 7], sizes = [16, 128], strides = [1, 1]} : vector<16x256xf32> to vector<16x128xf32>
    %cst_111 = arith.constant 0.109360702 : f32
    %424 = vector.broadcast %cst_111 : f32 to vector<16x128xf32>
    %425 = arith.mulf %424, %423 : vector<16x128xf32>
    %426 = arith.addf %422, %425 : vector<16x128xf32>
    %427 = vector.extract_strided_slice %395 {offsets = [0, 8], sizes = [16, 128], strides = [1, 1]} : vector<16x256xf32> to vector<16x128xf32>
    %cst_112 = arith.constant 0.0360007733 : f32
    %428 = vector.broadcast %cst_112 : f32 to vector<16x128xf32>
    %429 = arith.mulf %428, %427 : vector<16x128xf32>
    %430 = arith.addf %426, %429 : vector<16x128xf32>
    %431 = vector.extract_strided_slice %395 {offsets = [0, 9], sizes = [16, 128], strides = [1, 1]} : vector<16x256xf32> to vector<16x128xf32>
    %cst_113 = arith.constant 0.00759875868 : f32
    %432 = vector.broadcast %cst_113 : f32 to vector<16x128xf32>
    %433 = arith.mulf %432, %431 : vector<16x128xf32>
    %434 = arith.addf %430, %433 : vector<16x128xf32>
    %435 = vector.extract_strided_slice %395 {offsets = [0, 10], sizes = [16, 128], strides = [1, 1]} : vector<16x256xf32> to vector<16x128xf32>
    %cst_114 = arith.constant 0.00102838036 : f32
    %436 = vector.broadcast %cst_114 : f32 to vector<16x128xf32>
    %437 = arith.mulf %436, %435 : vector<16x128xf32>
    %438 = arith.addf %434, %437 : vector<16x128xf32>
    %439 = arith.mulf %91, %91 : vector<16x128xf32>
    %440 = arith.subf %264, %439 : vector<16x128xf32>
    %cst_115 = arith.constant 1.00833333 : f32
    %441 = vector.broadcast %cst_115 : f32 to vector<16x128xf32>
    %442 = arith.mulf %441, %440 : vector<16x128xf32>
    %443 = arith.mulf %177, %177 : vector<16x128xf32>
    %444 = arith.subf %351, %443 : vector<16x128xf32>
    %cst_116 = arith.constant 1.00833333 : f32
    %445 = vector.broadcast %cst_116 : f32 to vector<16x128xf32>
    %446 = arith.mulf %445, %444 : vector<16x128xf32>
    %447 = arith.mulf %91, %177 : vector<16x128xf32>
    %448 = arith.subf %438, %447 : vector<16x128xf32>
    %cst_117 = arith.constant 1.00833333 : f32
    %449 = vector.broadcast %cst_117 : f32 to vector<16x128xf32>
    %450 = arith.mulf %449, %448 : vector<16x128xf32>
    %cst_118 = arith.constant 2.000000e+00 : f32
    %451 = vector.broadcast %cst_118 : f32 to vector<16x128xf32>
    %452 = arith.mulf %451, %91 : vector<16x128xf32>
    %453 = arith.mulf %452, %177 : vector<16x128xf32>
    %454 = vector.broadcast %4 : f32 to vector<16x128xf32>
    %455 = arith.addf %453, %454 : vector<16x128xf32>
    %cst_119 = arith.constant 2.000000e+00 : f32
    %456 = vector.broadcast %cst_119 : f32 to vector<16x128xf32>
    %457 = arith.mulf %456, %450 : vector<16x128xf32>
    %458 = vector.broadcast %5 : f32 to vector<16x128xf32>
    %459 = arith.addf %457, %458 : vector<16x128xf32>
    %460 = arith.mulf %91, %91 : vector<16x128xf32>
    %461 = arith.mulf %177, %177 : vector<16x128xf32>
    %462 = arith.addf %460, %461 : vector<16x128xf32>
    %463 = vector.broadcast %4 : f32 to vector<16x128xf32>
    %464 = arith.addf %462, %463 : vector<16x128xf32>
    %465 = arith.addf %442, %446 : vector<16x128xf32>
    %466 = vector.broadcast %5 : f32 to vector<16x128xf32>
    %467 = arith.addf %465, %466 : vector<16x128xf32>
    %468 = arith.mulf %455, %459 : vector<16x128xf32>
    %469 = arith.mulf %464, %467 : vector<16x128xf32>
    %470 = arith.divf %468, %469 : vector<16x128xf32>
    %c0_120 = arith.constant 0 : index
    %c0_121 = arith.constant 0 : index
    %c0_122 = arith.constant 0 : index
    %471 = vector.load %arg6[%c0_120, %c0_121, %c0_122] : memref<1x16x128xf32, #tpu.memory_space<vmem>>, vector<1x16x128xf32>
    %472 = vector.shape_cast %471 : vector<1x16x128xf32> to vector<16x128xf32>
    %473 = vector.shape_cast %470 : vector<16x128xf32> to vector<1x16x128xf32>
    tpu.vector_store %arg6[%c0_120, %c0_121, %c0_122], %473 {strides = array<i32>} : memref<1x16x128xf32, #tpu.memory_space<vmem>>, vector<1x16x128xf32>,
    %474 = tpu.iota {dimensions = array<i32: 0>} : vector<16x128xi32>
    %475 = tpu.iota {dimensions = array<i32: 1>} : vector<16x128xi32>
    %c5_i32 = arith.constant 5 : i32
    %476 = vector.broadcast %c5_i32 : i32 to vector<16x128xi32>
    %477 = arith.cmpi sge, %474, %476 : vector<16x128xi32>
    %c11_i32 = arith.constant 11 : i32
    %478 = vector.broadcast %c11_i32 : i32 to vector<16x128xi32>
    %479 = arith.cmpi slt, %474, %478 : vector<16x128xi32>
    %480 = arith.andi %477, %479 : vector<16x128xi1>
    %c5_i32_123 = arith.constant 5 : i32
    %481 = vector.broadcast %c5_i32_123 : i32 to vector<16x128xi32>
    %482 = arith.cmpi sge, %475, %481 : vector<16x128xi32>
    %483 = arith.andi %480, %482 : vector<16x128xi1>
    %c11_i32_124 = arith.constant 11 : i32
    %484 = vector.broadcast %c11_i32_124 : i32 to vector<16x128xi32>
    %485 = arith.cmpi slt, %475, %484 : vector<16x128xi32>
    %486 = arith.andi %483, %485 : vector<16x128xi1>
    %cst_125 = arith.constant 0.000000e+00 : f32
    %487 = vector.broadcast %cst_125 : f32 to vector<16x128xf32>
    %488 = arith.select %486, %470, %487 : vector<16x128xi1>, vector<16x128xf32>
    %cst_126 = arith.constant dense<0.000000e+00> : vector<128xf32>
    %489 = vector.multi_reduction <add>, %488, %cst_126 [0] : vector<16x128xf32> to vector<128xf32>
    %490 = vector.shape_cast %489 : vector<128xf32> to vector<1x128xf32>
    %c0_127 = arith.constant 0 : index
    %c0_128 = arith.constant 0 : index
    %c0_129 = arith.constant 0 : index
    %491 = vector.load %arg7[%c0_127, %c0_128, %c0_129] : memref<1x1x128xf32, #tpu.memory_space<vmem>>, vector<1x1x128xf32>
    %492 = vector.shape_cast %491 : vector<1x1x128xf32> to vector<1x128xf32>
    %493 = vector.shape_cast %490 : vector<1x128xf32> to vector<1x1x128xf32>
    tpu.vector_store %arg7[%c0_127, %c0_128, %c0_129], %493 {strides = array<i32>} : memref<1x1x128xf32, #tpu.memory_space<vmem>>, vector<1x1x128xf32>,
    return
  }
  func.func @transform_0(%arg0: i32) -> i32 {
    %c0_i32 = arith.constant 0 : i32
    %c0_i32_0 = arith.constant 0 : i32
    return %c0_i32 : i32
  }
  func.func @transform_1(%arg0: i32) -> (i32, i32) {
    %c0_i32 = arith.constant 0 : i32
    %c0_i32_0 = arith.constant 0 : i32
    %c0_i32_1 = arith.constant 0 : i32
    return %c0_i32, %c0_i32_0 : i32, i32
  }
  func.func @transform_2(%arg0: i32) -> (i32, i32) {
    %c0_i32 = arith.constant 0 : i32
    %c0_i32_0 = arith.constant 0 : i32
    %c0_i32_1 = arith.constant 0 : i32
    return %c0_i32, %c0_i32_0 : i32, i32
  }
  func.func @transform_3(%arg0: i32) -> (i32, i32, i32) {
    %c0_i32 = arith.constant 0 : i32
    %c0_i32_0 = arith.constant 0 : i32
    %c0_i32_1 = arith.constant 0 : i32
    return %arg0, %c0_i32, %c0_i32_0 : i32, i32, i32
  }
  func.func @transform_4(%arg0: i32) -> (i32, i32, i32) {
    %c0_i32 = arith.constant 0 : i32
    %c0_i32_0 = arith.constant 0 : i32
    %c0_i32_1 = arith.constant 0 : i32
    return %arg0, %c0_i32, %c0_i32_0 : i32, i32, i32
  }
  func.func @transform_5(%arg0: i32) -> (i32, i32, i32) {
    %c0_i32 = arith.constant 0 : i32
    %c0_i32_0 = arith.constant 0 : i32
    %c0_i32_1 = arith.constant 0 : i32
    return %arg0, %c0_i32, %c0_i32_0 : i32, i32, i32
  }
  func.func @transform_6(%arg0: i32) -> (i32, i32, i32) {
    %c0_i32 = arith.constant 0 : i32
    %c0_i32_0 = arith.constant 0 : i32
    %c0_i32_1 = arith.constant 0 : i32
    return %arg0, %c0_i32, %c0_i32_0 : i32, i32, i32
  }
}

</mosaic_0001>

<bundles_post_ra>
// kernel: tpu_custom_call.1
= control target key start
LH: loop header
LB: loop body
LE: loop exit
PB: predicated region body
PF: predicated region fallthrough
CT: control target
= control target key end

     0   :  { %s9261_s0 = inlined_call_operand.hbm [shape: f32[2], index: 0, kind: input, shape index: {}]   ;;  %s9262_s1 = inlined_call_operand.hbm [shape: f32[16,32], index: 1, kind: input, shape index: {}]   ;;  %s9263_s2 = inlined_call_operand.hbm [shape: f32[256,128], index: 2, kind: input, shape index: {}]   ;;  %s9264_s3 = inlined_call_operand.hbm [shape: f32[2,32,256], index: 3, kind: input, shape index: {}]   ;;  %s9265_s4 = inlined_call_operand.hbm [shape: f32[2,32,256], index: 4, kind: input, shape index: {}]   ;;  %s9266_s5 = inlined_call_operand.hbm [shape: f32[2,16,128], index: 5, kind: output, shape index: {0}]   ;;  %s9267_s6 = inlined_call_operand.hbm [shape: f32[2,1,128], index: 6, kind: output, shape index: {1}]  }
   0x1   :  { %9545 = sst [smem:[#allocation113_spill]] %s9262_s1 }
   0x2   :  { %9546 = sst [smem:[#allocation114_spill]] %s9264_s3 }
   0x3   :  { %12 = vsyncpa [#allocation5], 0 }
   0x4   :  { %13 = vsyncpa [#allocation3], 0 }
   0x5   :  { %14 = vsyncpa [#allocation8], 0 }
   0x6   :  { %15 = vsyncpa [#allocation4], 0 }
   0x7   :  { %17 = vsyncpa [#allocation4 + $0x1], 0 }
   0x8   :  { %18 = vsyncpa [#allocation13], 0 }
   0x9   :  { %20 = vsyncpa [#allocation13 + $0x1], 0  ;;  %s6970_s21 = smov 0   ;;  %s6972_s22 = smov 0  }
   0xa   :  { %s6974_s23 = smov 0   ;;  %s6976_s24 = smov 0  }
   0xb LB: > { %9547 = sst [smem:[#allocation20_spill]] %s6915_s23  ;;  %s6991_s25 = sadd.s32 4294967295, %s6919_s24   ;;  %s6919_s24 = sphi %s6976_s24, %s9965_s24   ;;  %s6915_s23 = sphi %s6974_s23, %s9967_s23   ;;  %s6911_s22 = sphi %s6972_s22, %s9969_s22   ;;  %s6907_s21 = sphi %s6970_s21, %s9968_s21  }
   0xc   : > { %s5263_s26 = sadd.s32 4294967294, %s6919_s24   ;;  %s6995_s27 = sadd.s32 1, %s6919_s24  }
   0xd   : > { %9548 = sst [smem:[#allocation21_spill]] %s6995_s27  ;;  %s96_s28 = sadd.s32 1, %s6915_s23 }
   0xe   : > { %s93_s29 = ssub.s32 %s6919_s24, %s6995_s27  ;;  %p103_p0 = scmp.ne.s32.totalorder %s6915_s23, %s6911_s22 }
   0xf   : > { %p94_p1 = scmp.eq.s32.totalorder %s93_s29, 0  ;;  %p104_p2 = scmp.eq.s32.totalorder %s6919_s24, 0 }
  0x10   : > { %p109_p3 = scmp.ne.s32.totalorder %s6911_s22, %s6907_s21  ;;  %p9268_p4 = scmp.eq.s32.totalorder %s6991_s25, 0 }
  0x11   : > { %s7007_s30 = scalar_select %p94_p1, %s6915_s23, %s96_s28  }
  0x12   : > { %p7009_p5 = por %p104_p2, %p103_p0  ;;  %p7015_p6 = por %p9268_p4, %p109_p3 }
  0x13   : > { %9549 = sst [smem:[#allocation22_spill]] %s7007_s30  ;;  %p159_p7 = scmp.eq.s32.totalorder %s6991_s25, 1 }
  0x14   : > { %s9550_s7 = scalar_select %p7009_p5, 1, 0 }
  0x15   : > { %s9551_s8 = scalar_select %p7015_p6, 1, 0 }
  0x16   : > { %p165_p8 = scmp.eq.s32.totalorder %s5263_s26, 1  ;;  %p5264_p9 = scmp.ge.s32.totalorder %s6919_s24, 1 }
  0x17   : > { %p198_p10 = scmp.lt.s32.totalorder %s6919_s24, 3  ;;  %p7022_p11 = por %p159_p7, %p103_p0 }
  0x18   : > { %p7026_p12 = por %p165_p8, %p109_p3  ;;  %s6921_s12 = smov [#allocation6]  }
  0x19   : > { %s9552_s9 = scalar_select %p7022_p11, 1, 0 }
  0x1a   : > { %s9553_s10 = scalar_select %p7026_p12, 1, 0 }
  0x1b   : > { %p7030_p13 = pnand %p5264_p9, %p198_p10  ;;  %s219_s13 = sshll.u32 %s6921_s12, 4  ;;  %s220_s13 = int_to_ptr.vmem [resolvable:$true] %s219_s13 }
  0x1c   : > { %9554 = sst [smem:[#allocation23_spill]] %s9553_s10  ;;  %s246_s15 = sand.u32 1, %s6919_s24  }
  0x1d   : > { %s9555_s11 = scalar_select %p7030_p13, 1, 0 }
  0x1e   : > { %p6602_p1 = pneg %p7030_p13  ;;  %s9557_s1 = sld [smem:[#allocation113_spill]] }
  0x20   : > { %p7038_p2 = pnand %p6602_p1, %p9268_p4 }
  0x22   : > { %s9556_s14 = scalar_select %p7038_p2, 1, 0 }
  0x23   : > { %p7053_p8 = pneg %p7038_p2 }
  0x24   : > { %s6680_s18 = scalar_lea.hbm %s9557_s1, 256 }
  0x25   : > { %p6681_p7 = scmp.ne.s32.totalorder %s9557_s1, %s6680_s18  ;;  %p6687_p1 = scmp.lt.u32.totalorder %s6680_s18, %s9557_s1 }
  0x27   : > { %p6683_p9 = pnand %p7053_p8, %p6681_p7 }
  0x29   : > { %p6684_p10 = pneg %p6683_p9 }
  0x2b   : > { %p6689_p0 = pnand %p6687_p1, %p6684_p10 }
  0x2d   : > { %6692 = shalt.err (!%p6689_p0)
}
  0x2e   : > { %s6693_s12 = scalar_lea.vmem %s220_s13, 256  ;;  %p6701_p11 = scmp.lt.s32.totalorder %s220_s13, %s220_s13 }
  0x2f   : > { %p6694_p4 = scmp.ne.s32.totalorder %s220_s13, %s6693_s12  ;;  %p6702_p6 = scmp.lt.s32.totalorder %s6693_s12, %s6693_s12 }
  0x31   : > { %p6696_p3 = pnand %p6694_p4, %p7053_p8  ;;  %p6703_p13 = por %p6702_p6, %p6701_p11 }
  0x33   : > { %p6697_p12 = pneg %p6696_p3 }
  0x35   : > { %p6704_p5 = pnand %p6703_p13, %p6697_p12 }
  0x37   : > { %6707 = shalt.err (!%p6704_p5)
}
  0x38   : > { %s9275_s16 = smov 128   ;;  %s9276_s17 = smov 8  }
  0x39   : > { %6608 = dma.hbm_to_vmem [thread:$0]  (!%p7038_p2), %s9557_s1, 256, %s220_s13, [#allocation3], %s9275_s16, %s9275_s16, %s9276_s17  }
  0x3a   : > { %p9559_p4 = scmp.ne.s32.totalorder %s9550_s7, 0  ;;  %p9560_p6 = scmp.lt.s32.totalorder %s6919_s24, 2 }
  0x3b   : > { %s248_s28 = sand.u32 1, %s6915_s23   ;;  %s9279_s12 = sshll.u32 %s6919_s24, 10 }
  0x3c   : > { %p7076_p11 = pnand %p9560_p6, %p9559_p4  ;;  %s7081_s29 = sshll.u32 %s248_s28, 6 }
  0x3d   : > { %s9562_s3 = sld [smem:[#allocation114_spill]]  ;;  %s250_s7 = scalar_lea.vmem [#allocation9], %s7081_s29 }
  0x3e   : > { %s9561_s20 = scalar_select %p7076_p11, 1, 0 }
  0x3f   : > { %s257_s13 = sshll.u32 %s250_s7, 4  ;;  %s7094_s18 = scalar_lea.sflag [#allocation3], %s246_s15  ;;  %s7092_s13 = int_to_ptr.vmem [resolvable:$true] %s257_s13 }
  0x40   : > { %p9283_p12 = pneg %p7076_p11 }
  0x43   : > { %s7089_s10 = scalar_lea.hbm %s9562_s3, %s9279_s12  ;;  %s6713_s28 = scalar_lea.hbm %s9562_s3, 2048 }
  0x44   : > { %s6708_s19 = scalar_lea.hbm %s7089_s10, 1024  ;;  %p6714_p3 = scmp.lt.u32.totalorder %s7089_s10, %s9562_s3 }
  0x45   : > { %p6709_p5 = scmp.ne.s32.totalorder %s7089_s10, %s6708_s19  ;;  %p6715_p7 = scmp.lt.u32.totalorder %s6713_s28, %s6708_s19 }
  0x46   : > { %p6717_p10 = scmp.lt.u32.totalorder %s6708_s19, %s7089_s10 }
  0x47   : > { %p6711_p13 = pnand %p9283_p12, %p6709_p5  ;;  %p6716_p9 = por %p6715_p7, %p6714_p3 }
  0x49   : > { %p6712_p0 = pneg %p6711_p13  ;;  %p6718_p1 = por %p6717_p10, %p6716_p9 }
  0x4b   : > { %p6719_p4 = pnand %p6718_p1, %p6712_p0 }
  0x4d   : > { %6722 = shalt.err (!%p6719_p4)
}
  0x4e   : > { %s6723_s15 = scalar_lea.vmem %s7092_s13, 1024  ;;  %s6924_s7 = smov [#allocation9]  }
  0x4f   : > { %p6724_p6 = scmp.ne.s32.totalorder %s7092_s13, %s6723_s15  ;;  %s6728_s27 = sshll.u32 %s6924_s7, 4  ;;  %s6729_s27 = int_to_ptr.vmem [resolvable:$false] %s6728_s27 }
  0x50   : > { %s6730_s16 = scalar_lea.vmem %s6729_s27, 2048  ;;  %p6731_p2 = scmp.lt.s32.totalorder %s7092_s13, %s6729_s27 }
  0x51   : > { %p6726_p5 = pnand %p6724_p6, %p9283_p12  ;;  %p6732_p3 = scmp.lt.s32.totalorder %s6730_s16, %s6723_s15 }
  0x53   : > { %p6727_p13 = pneg %p6726_p5  ;;  %p6733_p7 = por %p6732_p3, %p6731_p2 }
  0x55   : > { %p6734_p9 = pnand %p6733_p7, %p6727_p13 }
  0x57   : > { %6737 = shalt.err (!%p6734_p9)
}
  0x58   : > { %s9280_s17 = smov 256   ;;  %s9281_s19 = smov 16  }
  0x59   : > { %6615 = dma.hbm_to_vmem [thread:$0]  (!%p7076_p11), %s7089_s10, 1024, %s7092_s13, %s7094_s18, %s9280_s17, %s9280_s17, %s9281_s19  }
  0x5a   : > { %s6738_s7 = scalar_lea.hbm %s9261_s0, 16 }
  0x5b   : > { %p6739_p2 = scmp.ne.s32.totalorder %s9261_s0, %s6738_s7  ;;  %p6745_p1 = scmp.lt.u32.totalorder %s6738_s7, %s9261_s0 }
  0x5d   : > { %p6741_p0 = pnand %p6739_p2, %p7053_p8 }
  0x5f   : > { %p6742_p10 = pneg %p6741_p0 }
  0x61   : > { %p6747_p4 = pnand %p6745_p1, %p6742_p10 }
  0x63   : > { %6750 = shalt.err (!%p6747_p4)
}
  0x64   : > { %s6927_s1 = smov [#allocation2]   ;;  %p9563_p6 = scmp.ne.s32.totalorder %s9556_s14, 0 }
  0x65   : > { %s6928_s30 = smov [#allocation7]   ;;  %s9564_s15 = sshll.u32 %s6919_s24, 10 }
  0x66   : > { %6605 = dma.hbm_to_smem (!%p9563_p6), %s9261_s0, 16, %s6927_s1, [#allocation5]  }
  0x67   : > { %s232_s28 = sshll.u32 %s6928_s30, 4  ;;  %s7146_s12 = scalar_lea.hbm %s9265_s4, %s9564_s15  ;;  %s233_s28 = int_to_ptr.vmem [resolvable:$true] %s232_s28 }
  0x68   : > { %s271_s7 = scalar_lea.vmem [#allocation10], %s7081_s29  ;;  %s6751_s23 = scalar_lea.hbm %s9263_s2, 4096 }
  0x69   : > { %s278_s16 = sshll.u32 %s271_s7, 4  ;;  %p6752_p5 = scmp.ne.s32.totalorder %s9263_s2, %s6751_s23  ;;  %s7170_s16 = int_to_ptr.vmem [resolvable:$true] %s278_s16 }
  0x6a   : > { %p6758_p7 = scmp.lt.u32.totalorder %s6751_s23, %s9263_s2 }
  0x6b   : > { %p6754_p13 = pnand %p6752_p5, %p7053_p8 }
  0x6d   : > { %p6755_p3 = pneg %p6754_p13 }
  0x6f   : > { %p6760_p9 = pnand %p6758_p7, %p6755_p3 }
  0x71   : > { %6763 = shalt.err (!%p6760_p9)
}
  0x72   : > { %s6764_s17 = scalar_lea.vmem %s233_s28, 4096  ;;  %p6772_p1 = scmp.lt.s32.totalorder %s233_s28, %s233_s28 }
  0x73   : > { %p6765_p2 = scmp.ne.s32.totalorder %s233_s28, %s6764_s17  ;;  %p6773_p4 = scmp.lt.s32.totalorder %s6764_s17, %s6764_s17 }
  0x75   : > { %p6767_p0 = pnand %p6765_p2, %p7053_p8  ;;  %p6774_p12 = por %p6773_p4, %p6772_p1 }
  0x77   : > { %p6768_p10 = pneg %p6767_p0 }
  0x79   : > { %p6775_p11 = pnand %p6774_p12, %p6768_p10 }
  0x7b   : > { %6778 = shalt.err (!%p6775_p11)
}
  0x7c   : > { %s9565_s3 = smov 8   ;;  %s9566_s29 = smov 128  }
  0x7d   : > { %6611 = dma.hbm_to_vmem [thread:$0]  (!%p9563_p6), %s9263_s2, 4096, %s233_s28, [#allocation8], %s9566_s29, %s9566_s29, %s9565_s3  }
  0x7e   : > { %s6779_s26 = scalar_lea.hbm %s7146_s12, 1024  ;;  %p9567_p12 = scmp.ne.s32.totalorder %s9561_s20, 0 }
  0x7f   : > { %p6780_p8 = scmp.ne.s32.totalorder %s7146_s12, %s6779_s26  ;;  %s6784_s27 = scalar_lea.hbm %s9265_s4, 2048 }
  0x80   : > { %p9568_p11 = pneg %p9567_p12  ;;  %p6785_p3 = scmp.lt.u32.totalorder %s7146_s12, %s9265_s4 }
  0x81   : > { %p6786_p7 = scmp.lt.u32.totalorder %s6784_s27, %s6779_s26  ;;  %p6788_p2 = scmp.lt.u32.totalorder %s6779_s26, %s7146_s12 }
  0x82   : > { %p6782_p5 = pnand %p6780_p8, %p9568_p11 }
  0x83   : > { %p6787_p9 = por %p6786_p7, %p6785_p3 }
  0x84   : > { %p6783_p13 = pneg %p6782_p5 }
  0x85   : > { %p6789_p6 = por %p6788_p2, %p6787_p9 }
  0x87   : > { %p6790_p0 = pnand %p6789_p6, %p6783_p13 }
  0x89   : > { %6793 = shalt.err (!%p6790_p0)
}
  0x8a   : > { %s6794_s28 = scalar_lea.vmem %s7170_s16, 1024  ;;  %p9569_p1 = pmov %p9568_p11 }
  0x8b   : > { %p6795_p10 = scmp.ne.s32.totalorder %s7170_s16, %s6794_s28  ;;  %s6929_s13 = smov [#allocation10]  }
  0x8c   : > { %s6799_s1 = sshll.u32 %s6929_s13, 4  ;;  %s6800_s1 = int_to_ptr.vmem [resolvable:$false] %s6799_s1 }
  0x8d   : > { %p6797_p4 = pnand %p6795_p10, %p9569_p1  ;;  %s6801_s30 = scalar_lea.vmem %s6800_s1, 2048 }
  0x8e   : > { %p6802_p11 = scmp.lt.s32.totalorder %s7170_s16, %s6800_s1  ;;  %p6803_p5 = scmp.lt.s32.totalorder %s6801_s30, %s6794_s28 }
  0x8f   : > { %p6798_p8 = pneg %p6797_p4 }
  0x90   : > { %p6804_p3 = por %p6803_p5, %p6802_p11 }
  0x92   : > { %p6805_p7 = pnand %p6804_p3, %p6798_p8 }
  0x94   : > { %6808 = shalt.err (!%p6805_p7)
}
  0x95   : > { %s9570_s17 = smov 16   ;;  %s9571_s3 = smov 256  }
  0x96   : > { %6618 = dma.hbm_to_vmem [thread:$0]  (!%p9567_p12), %s7146_s12, 1024, %s7170_s16, %s7094_s18, %s9571_s3, %s9571_s3, %s9570_s17  }
  0x97   : > { %p9572_p13 = scmp.ne.s32.totalorder %s9555_s11, 0 }
  0x99   : > { %290 = sbr.rel (%p9572_p13) target bundleno = 1305 (0x519), region = 40 }
  0xa0   : > { %p9573_p9 = scmp.eq.s32.totalorder %s6991_s25, 0 }
  0xa2   : > { %6882 = dma.done.wait (%p9573_p9), [#allocation5], 16   ;;  %p9574_p2 = pmov %p9573_p9 }
  0xa4   : > { %6884 = vsyncadd (%p9574_p2), [#allocation5], 4294967280  ;;  %p9575_p6 = pmov %p9574_p2 }
  0xa5   : > { %p9576_p0 = pmov %p9574_p2 }
  0xa6   : > { %6886 = dma.done.wait (%p9575_p6), [#allocation3], 256  }
  0xa7   : > { %6888 = vsyncadd (%p9576_p0), [#allocation3], 4294967040  ;;  %p9577_p10 = pmov %p9576_p0 }
  0xa8   : > { %p9578_p12 = pmov %p9576_p0 }
  0xa9   : > { %6890 = dma.done.wait (%p9577_p10), [#allocation8], 4096  }
  0xaa   : > { %6892 = vsyncadd (%p9578_p12), [#allocation8], 4294963200  ;;  %s304_s11 = sand.u32 1, %s6991_s25   ;;  %s7215_s20 = sand.u32 1, %s6911_s22  }
  0xab   : > { %s5279_s18 = sshll.u32 %s7215_s20, 6  ;;  %s305_s12 = scalar_lea.sflag [#allocation3], %s304_s11 }
  0xac   : > { %s7218_s16 = scalar_lea.vmem [#allocation9], %s5279_s18  ;;  %p9579_p1 = scmp.ne.s32.totalorder %s9551_s8, 0 }
  0xae   : > { %6894 = dma.done.wait (%p9579_p1), %s305_s12, 2048  }
  0xaf   : > { %6896 = vsyncadd (%p9579_p1), %s305_s12, 4294965248  ;;  %s7224_s29 = scalar_lea.vmem [#allocation10], %s5279_s18 }
  0xb0   : > { %322 = sfence }
  0xb1   : > { %v7226_v0 = vld [vmem:[#allocation7] sm:$0xff]  ;;  %v7228_v1 = vld [vmem:[#allocation7 + $0x8] sm:$0xff]  ;;  %v7230_v2 = vld [vmem:[#allocation7 + $0x10] sm:$0xff]  ;;  %v9326_v3 = vmov 0.0|0.0   ;;  %vm2358_vm0 = vcmask 261120   ;;  %s5282_s8 = sld [smem:[#allocation2 + $0x1]] }
  0xb2   : > { %5850 = vmatprep.subr.bf16.mxu0 %v9326_v3  ;;  %v9323_v4 = vand.u32 4294901760, %v7226_v0  ;;  %v9320_v5 = vand.u32 4294901760, %v7228_v1  ;;  %v7235_v6 = vld [vmem:[#allocation7 + $0x18] sm:$0xff]  ;;  %v9306_v7 = vand.u32 4294901760, %v7230_v2  ;;  %v7238_v8 = vld [vmem:[#allocation7 + $0x20] sm:$0xff]  ;;  %v7240_v9 = vld [vmem:[#allocation7 + $0x28] sm:$0xff]  ;;  %5802 = vmatprep.subr.bf16.mxu1 %v9326_v3 }
  0xb3   : > { %9580 = vst [vmem:[#allocation24_spill] sm:$0xff] %v7240_v9  ;;  %v9304_v10 = vand.u32 4294901760, %v7235_v6  ;;  %v9301_v11 = vand.u32 4294901760, %v7238_v8  ;;  %v9299_v12 = vand.u32 4294901760, %v7240_v9  ;;  %v7246_v13 = vld [vmem:[#allocation7 + $0x30] sm:$0xff]  ;;  %v7248_v14 = vld [vmem:[#allocation7 + $0x38] sm:$0xff] }
  0xb4   : > { %9581 = vst [vmem:[#allocation25_spill] sm:$0xff] %v7246_v13  ;;  %9582 = vst [vmem:[#allocation26_spill] sm:$0xff] %v7248_v14  ;;  %v7253_v15 = vsub.f32 %v7226_v0, %v9323_v4  ;;  %v7258_v16 = vsub.f32 %v7228_v1, %v9320_v5  ;;  %v7263_v17 = vsub.f32 %v7230_v2, %v9306_v7  ;;  %v9298_v18 = vand.u32 4294901760, %v7246_v13  ;;  %v7318_v39 = vld [vmem:[#allocation7 + $0x40] sm:$0xff]  ;;  %v7320_v40 = vld [vmem:[#allocation7 + $0x48] sm:$0xff]  ;;  %s372_s19 = sld [smem:[#allocation2]] }
  0xb5   : > { %v7269_v19 = vsub.f32 %v7235_v6, %v9304_v10  ;;  %v7274_v20 = vsub.f32 %v7238_v8, %v9301_v11  ;;  %v7279_v21 = vsub.f32 %v7240_v9, %v9299_v12  ;;  %v9297_v22 = vand.u32 4294901760, %v7248_v14  ;;  %v7322_v44 = vld [vmem:[#allocation7 + $0x50] sm:$0xff]  ;;  %v7327_v47 = vld [vmem:[#allocation7 + $0x58] sm:$0xff]  ;;  %v7329_v48 = vld [vmem:[#allocation7 + $0x60] sm:$0xff]  ;;  %s5281_s23 = sshll.u32 %s7215_s20, 4  ;;  %s5291_s26 = sshll.u32 %s6991_s25, 8 }
  0xb6   : > { %9583 = vst [vmem:[#allocation27_spill] sm:$0xff] %v7253_v15  ;;  %9584 = vst [vmem:[#allocation28_spill] sm:$0xff] %v7258_v16  ;;  %v9296_v23 = vand.u32 4294901760, %v7253_v15  ;;  %v9294_v24 = vand.u32 4294901760, %v7258_v16  ;;  %v9293_v25 = vand.u32 4294901760, %v7263_v17  ;;  %v7288_v26 = vsub.f32 %v7246_v13, %v9298_v18  ;;  %v7333_v53 = vld [vmem:[#allocation7 + $0x68] sm:$0xff]  ;;  %s9184_s10 = scalar_lea.hbm %s9266_s5, %s5291_s26 }
  0xb7   : > { %9585 = vst [vmem:[#allocation29_spill] sm:$0xff] %v7263_v17  ;;  %9586 = vst [vmem:[#allocation30_spill] sm:$0xff] %v7269_v19  ;;  %v9292_v27 = vand.u32 4294901760, %v7269_v19  ;;  %v9289_v28 = vand.u32 4294901760, %v7274_v20  ;;  %v9288_v29 = vand.u32 4294901760, %v7279_v21  ;;  %v7296_v30 = vsub.f32 %v7248_v14, %v9297_v22  ;;  %v7335_v54 = vld [vmem:[#allocation7 + $0x70] sm:$0xff] }
  0xb8   : > { %9587 = vst [vmem:[#allocation31_spill] sm:$0xff] %v7274_v20  ;;  %9588 = vst [vmem:[#allocation32_spill] sm:$0xff] %v7279_v21  ;;  %v833_v31 = vsub.f32 %v7253_v15, %v9296_v23  ;;  %v840_v32 = vsub.f32 %v7258_v16, %v9294_v24  ;;  %v847_v33 = vsub.f32 %v7263_v17, %v9293_v25  ;;  %v9287_v34 = vand.u32 4294901760, %v7288_v26  ;;  %v7353_v63 = vld [vmem:[#allocation7 + $0x78] sm:$0xff]  ;;  %v7413_v18 = vld [vmem:[#allocation7 + $0x90] sm:$0xff]  ;;  %s349_s14 = scalar_lea.vmem [#allocation11], %s5281_s23 }
  0xb9   : > { %9589 = vst [vmem:[#allocation33_spill] sm:$0xff] %v7288_v26  ;;  %9590 = vst [vmem:[#allocation34_spill] sm:$0xff] %v7296_v30  ;;  %v854_v35 = vsub.f32 %v7269_v19, %v9292_v27  ;;  %v861_v36 = vsub.f32 %v7274_v20, %v9289_v28  ;;  %v868_v37 = vsub.f32 %v7279_v21, %v9288_v29  ;;  %v9286_v38 = vand.u32 4294901760, %v7296_v30  ;;  %v7537_v13 = vld [vmem:[#allocation7 + $0xe0] sm:$0xff]  ;;  %v7574_v9 = vld [vmem:[#allocation7 + $0xf8] sm:$0xff]  ;;  %s5098_s15 = sshll.u32 %s349_s14, 4  ;;  %s9186_s15 = int_to_ptr.vmem [resolvable:$true] %s5098_s15 }
  0xba   : > { %v834_v41 = vand.u32 4294901760, %v833_v31  ;;  %v841_v42 = vand.u32 4294901760, %v840_v32  ;;  %v848_v43 = vand.u32 4294901760, %v847_v33  ;;  %v875_v46 = vsub.f32 %v7288_v26, %v9287_v34  ;;  %9599 = vst [vmem:[#allocation43_spill] sm:$0xff] %v7413_v18  ;;  %9633 = vst [vmem:[#allocation69_spill] sm:$0xff] %v7574_v9  ;;  %s5081_s28 = scalar_lea.sflag [#allocation4], %s7215_s20 }
  0xbb   : > { %v855_v45 = vand.u32 4294901760, %v854_v35  ;;  %v862_v50 = vand.u32 4294901760, %v861_v36  ;;  %v9319_v51 = vand.u32 4294901760, %v7318_v39  ;;  %v9314_v52 = vand.u32 4294901760, %v7320_v40  ;;  %s6809_s13 = scalar_lea.vmem %s9186_s15, 256  ;;  %p9961_p8 = scmp.ne.s32.totalorder %s9552_s9, 0 }
  0xbc   : > { %v5851_v49 = vpack.c.bf16 %v841_v42, %v834_v41  ;;  %v869_v56 = vand.u32 4294901760, %v868_v37  ;;  %v882_v57 = vsub.f32 %v7296_v30, %v9286_v38  ;;  %v9313_v58 = vand.u32 4294901760, %v7322_v44  ;;  %p6810_p4 = scmp.ne.s32.totalorder %s9186_s15, %s6809_s13  ;;  %s6931_s1 = smov [#allocation11]  }
  0xbd   : > { %v5854_v55 = vpack.c.bf16 %v855_v45, %v848_v43  ;;  %v7344_v59 = vsub.f32 %v7318_v39, %v9319_v51  ;;  %v7349_v60 = vsub.f32 %v7320_v40, %v9314_v52  ;;  %v9312_v61 = vand.u32 4294901760, %v7327_v47  ;;  %v7482_v51 = vld [vmem:[#allocation7 + $0xc0] sm:$0xff]  ;;  %s6813_s30 = sshll.u32 %s6931_s1, 4  ;;  %s6814_s30 = int_to_ptr.vmem [resolvable:$false] %s6813_s30 }
  0xbe   : > { %5852 = vmatpush1.bf16.msra.mxu0 %v5851_v49  ;;  %v9311_v62 = vand.u32 4294901760, %v7329_v48  ;;  %v876_v31 = vand.u32 4294901760, %v875_v46  ;;  %v7359_v32 = vsub.f32 %v7322_v44, %v9313_v58  ;;  %v9309_v33 = vand.u32 4294901760, %v7333_v53  ;;  %9611 = vst [vmem:[#allocation55_spill] sm:$0xff] %v7482_v51  ;;  %p6811_p11 = pnand %p6810_p4, %p9961_p8  ;;  %s6815_s17 = scalar_lea.vmem %s6814_s30, 512 }
  0xbf   : > { %9591 = vst [vmem:[#allocation35_spill] sm:$0xff] %v7344_v59  ;;  %9592 = vst [vmem:[#allocation36_spill] sm:$0xff] %v7349_v60  ;;  %5853 = vmatprep.subr.bf16.mxu0 %v9326_v3  ;;  %v9303_v35 = vand.u32 4294901760, %v7335_v54  ;;  %v9290_v36 = vand.u32 4294901760, %v7344_v59  ;;  %v9291_v37 = vand.u32 4294901760, %v7349_v60  ;;  %v7368_v41 = vsub.f32 %v7327_v47, %v9312_v61  ;;  %v7459_v61 = vld [vmem:[#allocation7 + $0xb8] sm:$0xff]  ;;  %p6816_p3 = scmp.lt.s32.totalorder %s9186_s15, %s6814_s30  ;;  %p6817_p7 = scmp.lt.s32.totalorder %s6815_s17, %s6809_s13 }
  0xc0   : > { %9593 = vst [vmem:[#allocation37_spill] sm:$0xff] %v7359_v32  ;;  %v7373_v42 = vsub.f32 %v7329_v48, %v9311_v62  ;;  %v5857_v43 = vpack.c.bf16 %v869_v56, %v862_v50  ;;  %v9295_v45 = vand.u32 4294901760, %v7359_v32  ;;  %v7379_v46 = vsub.f32 %v7333_v53, %v9309_v33  ;;  %v7390_v56 = vld [vmem:[#allocation7 + $0x80] sm:$0xff]  ;;  %9607 = vst [vmem:[#allocation51_spill] sm:$0xff] %v7459_v61  ;;  %p6812_p5 = pneg %p6811_p11 }
  0xc1   : > { %9594 = vst [vmem:[#allocation38_spill] sm:$0xff] %v7368_v41  ;;  %v9302_v49 = vand.u32 4294901760, %v7353_v63  ;;  %v883_v38 = vand.u32 4294901760, %v882_v57  ;;  %v889_v34 = vsub.f32 %v7344_v59, %v9290_v36  ;;  %v896_v29 = vsub.f32 %v7349_v60, %v9291_v37  ;;  %v7401_v36 = vld [vmem:[#allocation7 + $0x88] sm:$0xff]  ;;  %p6818_p13 = por %p6817_p7, %p6816_p3 }
  0xc2   : > { %9595 = vst [vmem:[#allocation39_spill] sm:$0xff] %v7373_v42  ;;  %9596 = vst [vmem:[#allocation40_spill] sm:$0xff] %v7379_v46  ;;  %5855 = vmatpush1.bf16.msra.mxu0 %v5854_v55  ;;  %v9300_v50 = vand.u32 4294901760, %v7368_v41  ;;  %v903_v28 = vsub.f32 %v7359_v32, %v9295_v45  ;;  %v9305_v55 = vand.u32 4294901760, %v7373_v42  ;;  %v7399_v57 = vsub.f32 %v7335_v54, %v9303_v35 }
  0xc3   : > { %5856 = vmatprep.subr.bf16.mxu0 %v9326_v3  ;;  %v890_v37 = vand.u32 4294901760, %v889_v34  ;;  %v897_v27 = vand.u32 4294901760, %v896_v29  ;;  %v9307_v25 = vand.u32 4294901760, %v7379_v46  ;;  %v7407_v24 = vsub.f32 %v7353_v63, %v9302_v49  ;;  %v7417_v34 = vld [vmem:[#allocation7 + $0x98] sm:$0xff]  ;;  %p6819_p9 = pnand %p6818_p13, %p6812_p5 }
  0xc4   : > { %9597 = vst [vmem:[#allocation41_spill] sm:$0xff] %v7399_v57  ;;  %v5860_v45 = vpack.c.bf16 %v883_v38, %v876_v31  ;;  %v910_v23 = vsub.f32 %v7368_v41, %v9300_v50  ;;  %v9308_v22 = vand.u32 4294901760, %v7390_v56  ;;  %v9310_v29 = vand.u32 4294901760, %v7401_v36  ;;  %9600 = vst [vmem:[#allocation44_spill] sm:$0xff] %v7417_v34  ;;  %v7423_v31 = vld [vmem:[#allocation7 + $0xa0] sm:$0xff]  ;;  %v7425_v50 = vld [vmem:[#allocation7 + $0xa8] sm:$0xff] }
  0xc5   : > { %9598 = vst [vmem:[#allocation42_spill] sm:$0xff] %v7407_v24  ;;  %v904_v12 = vand.u32 4294901760, %v903_v28  ;;  %v9315_v38 = vand.u32 4294901760, %v7399_v57  ;;  %9601 = vst [vmem:[#allocation45_spill] sm:$0xff] %v7423_v31  ;;  %v5863_v11 = vpack.c.bf16 %v897_v27, %v890_v37  ;;  %v924_v49 = vsub.f32 %v7379_v46, %v9307_v25 }
  0xc6   : > { %5858 = vmatpush1.bf16.msra.mxu0 %v5857_v43  ;;  %v917_v43 = vsub.f32 %v7373_v42, %v9305_v55  ;;  %9602 = vst [vmem:[#allocation46_spill] sm:$0xff] %v7425_v50  ;;  %v9316_v35 = vand.u32 4294901760, %v7407_v24  ;;  %v9317_v10 = vand.u32 4294901760, %v7413_v18  ;;  %v911_v28 = vand.u32 4294901760, %v910_v23 }
  0xc7   : > { %5859 = vmatprep.subr.bf16.mxu0 %v9326_v3  ;;  %v7435_v55 = vsub.f32 %v7390_v56, %v9308_v22  ;;  %v7440_v7 = vsub.f32 %v7401_v36, %v9310_v29  ;;  %v9318_v27 = vand.u32 4294901760, %v7417_v34  ;;  %v9321_v37 = vand.u32 4294901760, %v7423_v31 }
  0xc8   : > { %v9322_v25 = vand.u32 4294901760, %v7425_v50  ;;  %v931_v23 = vsub.f32 %v7399_v57, %v9315_v38  ;;  %v918_v22 = vand.u32 4294901760, %v917_v43  ;;  %v925_v33 = vand.u32 4294901760, %v924_v49 }
  0xc9   : > { %9603 = vst [vmem:[#allocation47_spill] sm:$0xff] %v7435_v55  ;;  %9604 = vst [vmem:[#allocation48_spill] sm:$0xff] %v7440_v7  ;;  %v938_v29 = vsub.f32 %v7407_v24, %v9316_v35  ;;  %v7457_v62 = vsub.f32 %v7413_v18, %v9317_v10  ;;  %v5866_v58 = vpack.c.bf16 %v911_v28, %v904_v12  ;;  %v9325_v52 = vand.u32 4294901760, %v7435_v55 }
  0xca   : > { %5861 = vmatpush1.bf16.msra.mxu0 %v5860_v45  ;;  %v7449_v45 = vld [vmem:[#allocation7 + $0xb0] sm:$0xff]  ;;  %v9324_v38 = vand.u32 4294901760, %v7440_v7  ;;  %v7466_v49 = vsub.f32 %v7417_v34, %v9318_v27  ;;  %v7472_v43 = vsub.f32 %v7423_v31, %v9321_v37  ;;  %v9331_v28 = vand.u32 4294901760, %v7459_v61 }
  0xcb   : > { %5862 = vmatprep.subr.bf16.mxu0 %v9326_v3  ;;  %9605 = vst [vmem:[#allocation49_spill] sm:$0xff] %v7449_v45  ;;  %9606 = vst [vmem:[#allocation50_spill] sm:$0xff] %v7457_v62  ;;  %v9328_v12 = vand.u32 4294901760, %v7449_v45  ;;  %v932_v35 = vand.u32 4294901760, %v931_v23  ;;  %v939_v10 = vand.u32 4294901760, %v938_v29  ;;  %v9333_v27 = vand.u32 4294901760, %v7457_v62 }
  0xcc   : > { %9608 = vst [vmem:[#allocation52_spill] sm:$0xff] %v7466_v49  ;;  %9609 = vst [vmem:[#allocation53_spill] sm:$0xff] %v7472_v43  ;;  %v5869_v5 = vpack.c.bf16 %v925_v33, %v918_v22  ;;  %v945_v37 = vsub.f32 %v7435_v55, %v9325_v52  ;;  %v9334_v4 = vand.u32 4294901760, %v7466_v49  ;;  %v7504_v33 = vsub.f32 %v7459_v61, %v9331_v28  ;;  %v7516_v28 = vld [vmem:[#allocation7 + $0xd8] sm:$0xff] }
  0xcd   : > { %v7497_v22 = vsub.f32 %v7449_v45, %v9328_v12  ;;  %v5872_v52 = vpack.c.bf16 %v939_v10, %v932_v35  ;;  %v959_v23 = vsub.f32 %v7457_v62, %v9333_v27  ;;  %9616 = vst [vmem:[#allocation60_spill] sm:$0xff] %v7516_v28  ;;  %v9617_v61 = vmov 0.0|0.0   ;;  %v7527_v27 = vld [vmem:[%s7218_s16 + $0x8] sm:$0xff] }
  0xce   : > { %5864 = vmatpush1.bf16.msra.mxu0 %v5863_v11  ;;  %v7477_v11 = vsub.f32 %v7425_v50, %v9322_v25  ;;  %v952_v25 = vsub.f32 %v7440_v7, %v9324_v38  ;;  %9614 = vst [vmem:[#allocation58_spill] sm:$0xff] %v7504_v33  ;;  %v9340_v38 = vand.u32 4294901760, %v7482_v51  ;;  %v946_v29 = vand.u32 4294901760, %v945_v37  ;;  %v7514_v50 = vld [vmem:[#allocation7 + $0xd0] sm:$0xff]  ;;  %9620 = vst [vmem:[#allocation61_spill] sm:$0xff] %v7527_v27 }
  0xcf   : > { %5865 = vmatprep.subr.bf16.mxu0 %v9326_v3  ;;  %9612 = vst [vmem:[#allocation56_spill] sm:$0xff] %v7497_v22  ;;  %v966_v12 = vsub.f32 %v7466_v49, %v9334_v4  ;;  %9615 = vst [vmem:[#allocation59_spill] sm:$0xff] %v7514_v50  ;;  %v9618_v10 = vand.u32 4294901760, %v7472_v43  ;;  %v960_v31 = vand.u32 4294901760, %v959_v23  ;;  %v7544_v4 = vld [vmem:[#allocation7 + $0xe8] sm:$0xff] }
  0xd0   : > { %9610 = vst [vmem:[#allocation54_spill] sm:$0xff] %v7477_v11  ;;  %v7533_v45 = vsub.f32 %v7482_v51, %v9340_v38  ;;  %9624 = vst [vmem:[#allocation64_spill] sm:$0xff] %v7544_v4  ;;  %v7547_v38 = vand.u32 4294901760, %v7527_v27  ;;  %v9628_v27 = vand.u32 4294901760, %v7514_v50  ;;  %v7572_v51 = vld [vmem:[#allocation7 + $0xf0] sm:$0xff] }
  0xd1   : > { %v973_v35 = vsub.f32 %v7472_v43, %v9618_v10  ;;  %v967_v34 = vand.u32 4294901760, %v966_v12  ;;  %v9626_v10 = vand.u32 4294901760, %v7497_v22  ;;  %9632 = vst [vmem:[#allocation68_spill] sm:$0xff] %v7572_v51 }
  0xd2   : > { %5867 = vmatpush1.bf16.msra.mxu0 %v5866_v58  ;;  %v7499_v58 = vld [vmem:[#allocation7 + $0xc8] sm:$0xff]  ;;  %9621 = vst [vmem:[#allocation62_spill] sm:$0xff] %v7533_v45  ;;  %9625 = vst [vmem:[#allocation65_spill] sm:$0xff] %v7547_v38  ;;  %1054 = vmatprep.mubr.f32.mxu0 %v7547_v38 }
  0xd3   : > { %5868 = vmatprep.subr.bf16.mxu0 %v9326_v3  ;;  %9613 = vst [vmem:[#allocation57_spill] sm:$0xff] %v7499_v58  ;;  %v953_v3 = vand.u32 4294901760, %v952_v25  ;;  %v9622_v37 = vand.u32 4294901760, %v7499_v58  ;;  %v974_v23 = vand.u32 4294901760, %v973_v35  ;;  %v9630_v35 = vand.u32 4294901760, %v7516_v28 }
  0xd5   : > { %v7542_v18 = vsub.f32 %v7499_v58, %v9622_v37  ;;  %v7562_v58 = vsub.f32 %v7514_v50, %v9628_v27  ;;  %v9634_v50 = vand.u32 4294901760, %v7533_v45 }
  0xd6   : > { %5870 = vmatpush1.bf16.msra.mxu0 %v5869_v5  ;;  %v9619_v5 = vand.u32 4294901760, %v7477_v11 }
  0xd7   : > { %5871 = vmatprep.subr.bf16.mxu0 %v9617_v61  ;;  %9623 = vst [vmem:[#allocation63_spill] sm:$0xff] %v7542_v18  ;;  %9629 = vst [vmem:[#allocation66_spill] sm:$0xff] %v7562_v58 }
  0xd8   : > { %v980_v25 = vsub.f32 %v7477_v11, %v9619_v5  ;;  %v5875_v5 = vpack.c.bf16 %v953_v3, %v946_v29  ;;  %v9627_v3 = vand.u32 4294901760, %v7504_v33  ;;  %v9351_v29 = vand.u32 4294901760, %v7542_v18 }
  0xda   : > { %5873 = vmatpush1.bf16.msra.mxu0 %v5872_v52  ;;  %v981_v14 = vand.u32 4294901760, %v980_v25  ;;  %v987_v52 = vsub.f32 %v7497_v22, %v9626_v10  ;;  %v994_v12 = vsub.f32 %v7504_v33, %v9627_v3  ;;  %v7567_v25 = vsub.f32 %v7516_v28, %v9630_v35 }
  0xdb   : > { %5874 = vmatprep.subr.bf16.mxu0 %v9617_v61  ;;  %v9350_v10 = vand.u32 4294901760, %v7544_v4  ;;  %v5878_v3 = vpack.c.bf16 %v967_v34, %v960_v31  ;;  %v1001_v35 = vsub.f32 %v7533_v45, %v9634_v50  ;;  %v9635_v28 = vand.u32 4294901760, %v7537_v13 }
  0xdc   : > { %9631 = vst [vmem:[#allocation67_spill] sm:$0xff] %v7567_v25  ;;  %v5881_v37 = vpack.c.bf16 %v981_v14, %v974_v23  ;;  %v988_v38 = vand.u32 4294901760, %v987_v52  ;;  %v995_v27 = vand.u32 4294901760, %v994_v12  ;;  %v9638_v50 = vand.u32 4294901760, %v7562_v58 }
  0xdd   : > { %v7591_v23 = vsub.f32 %v7544_v4, %v9350_v10  ;;  %v1002_v14 = vand.u32 4294901760, %v1001_v35  ;;  %v9639_v52 = vand.u32 4294901760, %v7567_v25 }
  0xde   : > { %5876 = vmatpush1.bf16.msra.mxu0 %v5875_v5  ;;  %v7582_v5 = vsub.f32 %v7537_v13, %v9635_v28  ;;  %v1008_v28 = vsub.f32 %v7542_v18, %v9351_v29  ;;  %v5884_v31 = vpack.c.bf16 %v995_v27, %v988_v38  ;;  %v1015_v12 = vsub.f32 %v7562_v58, %v9638_v50 }
  0xdf   : > { %5877 = vmatprep.subr.bf16.mxu0 %v9617_v61  ;;  %9637 = vst [vmem:[#allocation71_spill] sm:$0xff] %v7591_v23  ;;  %v1022_v34 = vsub.f32 %v7567_v25, %v9639_v52  ;;  %v9640_v27 = vand.u32 4294901760, %v7572_v51  ;;  %v9642_v29 = vand.u32 4294901760, %v7574_v9  ;;  %v9644_v50 = vand.u32 4294901760, %v7591_v23 }
  0xe0   : > { %9636 = vst [vmem:[#allocation70_spill] sm:$0xff] %v7582_v5  ;;  %v9357_v4 = vand.u32 4294901760, %v7582_v5  ;;  %v1009_v38 = vand.u32 4294901760, %v1008_v28  ;;  %v1016_v28 = vand.u32 4294901760, %v1015_v12  ;;  %v9645_v12 = vand.u32 4294901760, %v7226_v0 }
  0xe1   : > { %v7620_v35 = vsub.f32 %v7572_v51, %v9640_v27  ;;  %v1023_v10 = vand.u32 4294901760, %v1022_v34  ;;  %v1036_v51 = vsub.f32 %v7591_v23, %v9644_v50  ;;  %v9688_v34 = vld [vmem:[#allocation45_spill] sm:$0xff] }
  0xe2   : > { %5879 = vmatpush1.bf16.msra.mxu0 %v5878_v3  ;;  %v7625_v3 = vsub.f32 %v7574_v9, %v9642_v29  ;;  %v1029_v27 = vsub.f32 %v7582_v5, %v9357_v4  ;;  %v5887_v9 = vpack.c.bf16 %v1009_v38, %v1002_v14  ;;  %v9646_v14 = vand.u32 4294901760, %v7228_v1 }
  0xe3   : > { %5880 = vmatprep.subr.bf16.mxu0 %v9617_v61  ;;  %9641 = vst [vmem:[#allocation72_spill] sm:$0xff] %v7620_v35  ;;  %v9359_v52 = vand.u32 4294901760, %v7620_v35  ;;  %v5890_v4 = vpack.c.bf16 %v1023_v10, %v1016_v28  ;;  %v9655_v1 = vand.u32 4294901760, %v7329_v48  ;;  %v9662_v48 = vand.u32 4294901760, %v7335_v54  ;;  %v7740_v54 = vld [vmem:[%s7218_s16 + $0x20] sm:$0xff] }
  0xe4   : > { %9643 = vst [vmem:[#allocation73_spill] sm:$0xff] %v7625_v3  ;;  %v9358_v57 = vand.u32 4294901760, %v7625_v3  ;;  %v1030_v29 = vand.u32 4294901760, %v1029_v27  ;;  %v7672_v10 = vpack.c.bf16 %v9646_v14, %v9645_v12  ;;  %v9656_v12 = vand.u32 4294901760, %v7333_v53 }
  0xe5   : > { %v1043_v38 = vsub.f32 %v7620_v35, %v9359_v52  ;;  %v7666_v52 = vld [vmem:[%s7218_s16] sm:$0xff]  ;;  %v9660_v14 = vand.u32 4294901760, %v7235_v6  ;;  %v9663_v53 = vand.u32 4294901760, %v7353_v63  ;;  %v9670_v63 = vpack.c.bf16 %v7258_v16, %v7253_v15  ;;  %v9690_v16 = vld [vmem:[#allocation46_spill] sm:$0xff] }
  0xe6   : > { %5882 = vmatpush1.bf16.msra.mxu0 %v5881_v37  ;;  %v1050_v50 = vsub.f32 %v7625_v3, %v9358_v57  ;;  %9647 = vst [vmem:[#allocation74_spill] sm:$0xff] %v7672_v10  ;;  %5804 = vmatpush1.bf16.msra.mxu1 %v7672_v10  ;;  %v7692_v0 = vand.u32 4294901760, %v7666_v52  ;;  %v9689_v37 = vand.u32 4294901760, %v9688_v34  ;;  %v9691_v15 = vand.u32 4294901760, %v9690_v16  ;;  %v7804_v34 = vld [vmem:[%s7224_s29] sm:$0xff]  ;;  %v7810_v16 = vld [vmem:[%s7224_s29 + $0x18] sm:$0xff] }
  0xe7   : > { %5883 = vmatprep.subr.bf16.mxu0 %v9617_v61  ;;  %v1044_v28 = vand.u32 4294901760, %v1043_v38  ;;  %5805 = vmatprep.subr.bf16.mxu1 %v9617_v61 }
  0xe8   : > { %v1051_v27 = vand.u32 4294901760, %v1050_v50  ;;  %v9651_v50 = vand.u32 4294901760, %v7322_v44  ;;  %9654 = vst [vmem:[#allocation77_spill] sm:$0xff] %v7692_v0  ;;  %v7705_v44 = vld [vmem:[%s7218_s16 + $0x10] sm:$0xff] }
  0xea   : > { %5885 = vmatpush1.bf16.msra.mxu0 %v5884_v31  ;;  %v1037_v31 = vand.u32 4294901760, %v1036_v51  ;;  %v5896_v57 = vpack.c.bf16 %v1051_v27, %v1044_v28 }
  0xeb   : > { %5886 = vmatprep.subr.bf16.mxu0 %v9617_v61 }
  0xec   : > { %v5893_v51 = vpack.c.bf16 %v1037_v31, %v1030_v29  ;;  %v9648_v29 = vand.u32 4294901760, %v7318_v39  ;;  %v9649_v31 = vand.u32 4294901760, %v7320_v40  ;;  %v7698_v39 = vpack.c.bf16 %v9656_v12, %v9655_v1 }
  0xee   : > { %5888 = vmatpush1.bf16.msra.mxu0 %v5887_v9  ;;  %v7682_v38 = vpack.c.bf16 %v9649_v31, %v9648_v29  ;;  %9657 = vst [vmem:[#allocation78_spill] sm:$0xff] %v7698_v39  ;;  %v7717_v29 = vpack.c.bf16 %v9663_v53, %v9662_v48  ;;  %v7720_v31 = vld [vmem:[%s7218_s16 + $0x28] sm:$0xff] }
  0xef   : > { %5889 = vmatprep.subr.bf16.mxu0 %v9617_v61  ;;  %v7737_v6 = vand.u32 4294901760, %v7720_v31  ;;  %v9677_v53 = vld [vmem:[#allocation44_spill] sm:$0xff] }
  0xf0   : > { %9650 = vst [vmem:[#allocation75_spill] sm:$0xff] %v7682_v38  ;;  %9664 = vst [vmem:[#allocation81_spill] sm:$0xff] %v7717_v29  ;;  %v7784_v9 = vld [vmem:[%s7224_s29 + $0x8] sm:$0xff] }
  0xf1   : > { %9669 = vst [vmem:[#allocation84_spill] sm:$0xff] %v7737_v6 }
  0xf2   : > { %5891 = vmatpush1.bf16.msra.mxu0 %v5890_v4  ;;  %v7676_v4 = vld [vmem:[%s7218_s16 + $0x18] sm:$0xff] }
  0xf3   : > { %5892 = vmatprep.subr.bf16.mxu0 %v9617_v61  ;;  %v7702_v40 = vand.u32 4294901760, %v7676_v4 }
  0xf5   : > { %9658 = vst [vmem:[#allocation79_spill] sm:$0xff] %v7702_v40 }
  0xf6   : > { %5894 = vmatpush1.bf16.msra.mxu0 %v5893_v51  ;;  %v9652_v51 = vand.u32 4294901760, %v7327_v47  ;;  %v9659_v47 = vand.u32 4294901760, %v7230_v2  ;;  %v7732_v2 = vand.u32 4294901760, %v7705_v44 }
  0xf7   : > { %5895 = vmatprep.subr.bf16.mxu0 %v9617_v61 }
  0xf8   : > { %v7688_v28 = vpack.c.bf16 %v9652_v51, %v9651_v50  ;;  %v7711_v27 = vpack.c.bf16 %v9660_v14, %v9659_v47  ;;  %v9666_v50 = vand.u32 4294901760, %v7401_v36  ;;  %9668 = vst [vmem:[#allocation83_spill] sm:$0xff] %v7732_v2  ;;  %v9671_v36 = vand.u32 4294901760, %v7238_v8  ;;  %v7752_v47 = vld [vmem:[%s7218_s16 + $0x38] sm:$0xff] }
  0xf9   : > { %v9675_v14 = vld [vmem:[#allocation43_spill] sm:$0xff]  ;;  %v7764_v8 = vand.u32 4294901760, %v7740_v54 }
  0xfa   : > { %9653 = vst [vmem:[#allocation76_spill] sm:$0xff] %v7688_v28  ;;  %5897 = vmatpush1.bf16.msra.mxu0 %v5896_v57  ;;  %9661 = vst [vmem:[#allocation80_spill] sm:$0xff] %v7711_v27  ;;  %v9665_v57 = vand.u32 4294901760, %v7390_v56  ;;  %5807 = vmatpush1.bf16.msra.mxu1 %v7711_v27  ;;  %v9672_v56 = vld [vmem:[#allocation24_spill] sm:$0xff]  ;;  %v9676_v48 = vand.u32 4294901760, %v9675_v14  ;;  %v7905_v27 = vmul.f32 %v7666_v52, %v7666_v52 }
  0xfb   : > { %5898 = vmatprep.subr.bf16.mxu0 %v9617_v61  ;;  %5808 = vmatprep.subr.bf16.mxu1 %v9617_v61  ;;  %v9673_v1 = vand.u32 4294901760, %v9672_v56  ;;  %9680 = vst [vmem:[#allocation44_spill] sm:$0xff] %v7764_v8  ;;  %v9682_v56 = vpack.c.bf16 %v7269_v19, %v7263_v17  ;;  %v7822_v17 = vand.u32 4294901760, %v7804_v34 }
  0xfc   : > { %v7727_v51 = vpack.c.bf16 %v9666_v50, %v9665_v57  ;;  %v9678_v57 = vand.u32 4294901760, %v9677_v53 }
  0xfd   : > { %1056 = vmatmul.mubr.f32.vlgmr.msra.gmra.mrb[0].mxu0 %v7692_v0  ;;  %v7749_v12 = vpack.c.bf16 %v9673_v1, %v9671_v36  ;;  %v7772_v36 = vld [vmem:[%s7218_s16 + $0x30] sm:$0xff] }
  0xfe   : > { %9667 = vst [vmem:[#allocation82_spill] sm:$0xff] %v7727_v51  ;;  %1061 = vmatprep.mubr.f32.mxu0 %v7702_v40  ;;  %5900 = vmatpush1.bf16.msra.mxu0 %v9670_v63  ;;  %v7759_v50 = vpack.c.bf16 %v9678_v57, %v9676_v48  ;;  %v7769_v63 = vand.u32 4294901760, %v7752_v47  ;;  %v9683_v1 = vld [vmem:[#allocation25_spill] sm:$0xff]  ;;  %v9685_v48 = vld [vmem:[#allocation26_spill] sm:$0xff] }
  0xff   : > { %9674 = vst [vmem:[#allocation24_spill] sm:$0xff] %v7749_v12  ;;  %5901 = vmatprep.subr.bf16.mxu0 %v9617_v61  ;;  %5810 = vmatpush1.bf16.msra.mxu1 %v7749_v12  ;;  %v9684_v14 = vand.u32 4294901760, %v9683_v1  ;;  %v9686_v53 = vand.u32 4294901760, %v9685_v48  ;;  %v7791_v12 = vpack.c.bf16 %v9691_v15, %v9689_v37  ;;  %v7801_v1 = vand.u32 4294901760, %v7784_v9  ;;  %v9696_v37 = vld [vmem:[#allocation49_spill] sm:$0xff]  ;;  %v9698_v48 = vld [vmem:[#allocation51_spill] sm:$0xff] }
 0x100   : > { %9679 = vst [vmem:[#allocation43_spill] sm:$0xff] %v7759_v50  ;;  %5811 = vmatprep.subr.bf16.mxu1 %v9617_v61  ;;  %9681 = vst [vmem:[#allocation85_spill] sm:$0xff] %v7769_v63  ;;  %v9695_v15 = vpack.c.bf16 %v7279_v21, %v7274_v20  ;;  %v9706_v20 = vld [vmem:[#allocation57_spill] sm:$0xff] }
 0x101   : > { %1063 = vmatmul.mubr.f32.gmra.mrb[2].mxu0 %v7732_v2  ;;  %v7781_v57 = vpack.c.bf16 %v9686_v53, %v9684_v14  ;;  %9692 = vst [vmem:[#allocation26_spill] sm:$0xff] %v7791_v12  ;;  %9694 = vst [vmem:[#allocation46_spill] sm:$0xff] %v7801_v1  ;;  %v9697_v14 = vand.u32 4294901760, %v9696_v37  ;;  %v9699_v53 = vand.u32 4294901760, %v9698_v48  ;;  %v7830_v37 = vld [vmem:[%s7224_s29 + $0x10] sm:$0xff]  ;;  %v7836_v48 = vld [vmem:[%s7224_s29 + $0x28] sm:$0xff] }
 0x102   : > { %1068 = vmatprep.mubr.f32.mxu0 %v7737_v6  ;;  %5903 = vmatpush1.bf16.msra.mxu0 %v9682_v56  ;;  %v7796_v56 = vand.u32 4294901760, %v7772_v36  ;;  %9701 = vst [vmem:[#allocation51_spill] sm:$0xff] %v7822_v17 }
 0x103   : > { %9687 = vst [vmem:[#allocation25_spill] sm:$0xff] %v7781_v57  ;;  %5904 = vmatprep.subr.bf16.mxu0 %v9617_v61  ;;  %5813 = vmatpush1.bf16.msra.mxu1 %v7781_v57  ;;  %v7817_v19 = vpack.c.bf16 %v9699_v53, %v9697_v14  ;;  %v9703_v14 = vpack.c.bf16 %v7296_v30, %v7288_v26  ;;  %v9704_v53 = vld [vmem:[#allocation55_spill] sm:$0xff]  ;;  %v9714_v26 = vld [vmem:[#allocation60_spill] sm:$0xff] }
 0x104   : > { %9693 = vst [vmem:[#allocation45_spill] sm:$0xff] %v7796_v56  ;;  %5814 = vmatprep.subr.bf16.mxu1 %v9617_v61  ;;  %v9705_v21 = vand.u32 4294901760, %v9704_v53  ;;  %v7856_v53 = vld [vmem:[%s7224_s29 + $0x20] sm:$0xff] }
 0x105   : > { %1070 = vmatmul.mubr.f32.gmra.mrb[4].mxu0 %v7764_v8  ;;  %9700 = vst [vmem:[#allocation49_spill] sm:$0xff] %v7817_v19 }
 0x106   : > { %1075 = vmatprep.mubr.f32.mxu0 %v7769_v63  ;;  %5906 = vmatpush1.bf16.msra.mxu0 %v9695_v15  ;;  %v7827_v15 = vand.u32 4294901760, %v7810_v16 }
 0x107   : > { %5907 = vmatprep.subr.bf16.mxu0 %v9617_v61  ;;  %5816 = vmatpush1.bf16.msra.mxu1 %v7682_v38  ;;  %v9707_v38 = vand.u32 4294901760, %v9706_v20  ;;  %v9711_v20 = vpack.c.bf16 %v7349_v60, %v7344_v59  ;;  %v7882_v60 = vld [vmem:[%s7224_s29 + $0x30] sm:$0xff]  ;;  %v9723_v59 = vld [vmem:[#allocation64_spill] sm:$0xff] }
 0x108   : > { %5817 = vmatprep.subr.bf16.mxu1 %v9617_v61  ;;  %9702 = vst [vmem:[#allocation86_spill] sm:$0xff] %v7827_v15 }
 0x109   : > { %1077 = vmatmul.mubr.f32.gmra.mrb[6].mxu0 %v7796_v56  ;;  %v7843_v57 = vpack.c.bf16 %v9707_v38, %v9705_v21  ;;  %v7862_v21 = vld [vmem:[%s7224_s29 + $0x38] sm:$0xff] }
 0x10a   : > { %1082 = vmatprep.mubr.f32.mxu0 %v7801_v1  ;;  %5909 = vmatpush1.bf16.msra.mxu0 %v9703_v14  ;;  %v7848_v1 = vand.u32 4294901760, %v7830_v37  ;;  %v7853_v14 = vand.u32 4294901760, %v7836_v48  ;;  %v9712_v38 = vld [vmem:[#allocation59_spill] sm:$0xff] }
 0x10b   : > { %5910 = vmatprep.subr.bf16.mxu0 %v9617_v61  ;;  %9708 = vst [vmem:[#allocation55_spill] sm:$0xff] %v7843_v57  ;;  %5819 = vmatpush1.bf16.msra.mxu1 %v7688_v28  ;;  %v9713_v30 = vand.u32 4294901760, %v9712_v38  ;;  %v9715_v28 = vand.u32 4294901760, %v9714_v26  ;;  %v9719_v38 = vld [vmem:[#allocation61_spill] sm:$0xff] }
 0x10c   : > { %9709 = vst [vmem:[#allocation57_spill] sm:$0xff] %v7848_v1  ;;  %5820 = vmatprep.subr.bf16.mxu1 %v9617_v61  ;;  %9710 = vst [vmem:[#allocation87_spill] sm:$0xff] %v7853_v14  ;;  %v7886_v26 = vmul.f32 %v9719_v38, %v9719_v38 }
 0x10d   : > { %1084 = vmatmul.mubr.f32.gmra.mrb[8].mxu0 %v7822_v17  ;;  %v7869_v17 = vpack.c.bf16 %v9715_v28, %v9713_v30  ;;  %v9721_v30 = vpack.c.bf16 %v7368_v41, %v7359_v32  ;;  %v9722_v28 = vand.u32 4294901760, %v7537_v13  ;;  %v9731_v41 = vld [vmem:[#allocation69_spill] sm:$0xff] }
 0x10e   : > { %1089 = vmatprep.mubr.f32.mxu0 %v7827_v15  ;;  %5912 = vmatpush1.bf16.msra.mxu0 %v9711_v20  ;;  %v7874_v15 = vand.u32 4294901760, %v7856_v53  ;;  %v7879_v20 = vand.u32 4294901760, %v7862_v21  ;;  %9720 = vst [vmem:[#allocation61_spill] sm:$0xff] %v7886_v26  ;;  %v7910_v13 = vand.u32 4294901760, %v7886_v26  ;;  %v9732_v32 = vand.u32 4294901760, %v9731_v41  ;;  %v9736_v41 = vld [vmem:[#allocation41_spill] sm:$0xff] }
 0x10f   : > { %5913 = vmatprep.subr.bf16.mxu0 %v9617_v61  ;;  %9716 = vst [vmem:[#allocation59_spill] sm:$0xff] %v7869_v17  ;;  %5822 = vmatpush1.bf16.msra.mxu1 %v7698_v39  ;;  %v9724_v39 = vand.u32 4294901760, %v9723_v59  ;;  %v7914_v59 = vmul.f32 %v7676_v4, %v7676_v4  ;;  %v7929_v26 = vand.u32 4294901760, %v7905_v27 }
 0x110   : > { %9717 = vst [vmem:[#allocation60_spill] sm:$0xff] %v7874_v15  ;;  %5823 = vmatprep.subr.bf16.mxu1 %v9617_v61  ;;  %9718 = vst [vmem:[#allocation88_spill] sm:$0xff] %v7879_v20 }
 0x111   : > { %1091 = vmatmul.mubr.f32.gmra.mrb[10].mxu0 %v7848_v1  ;;  %v7901_v1 = vand.u32 4294901760, %v7882_v60  ;;  %9727 = vst [vmem:[#allocation90_spill] sm:$0xff] %v7910_v13  ;;  %9734 = vst [vmem:[#allocation69_spill] sm:$0xff] %v7929_v26 }
 0x112   : > { %1096 = vmatprep.mubr.f32.mxu0 %v7853_v14  ;;  %5915 = vmatpush1.bf16.msra.mxu0 %v9721_v30  ;;  %v7896_v14 = vpack.c.bf16 %v9724_v39, %v9722_v28  ;;  %v9728_v39 = vpack.c.bf16 %v7379_v46, %v7373_v42  ;;  %v9729_v30 = vld [vmem:[#allocation68_spill] sm:$0xff]  ;;  %v7955_v46 = vmul.f32 %v7740_v54, %v7740_v54 }
 0x113   : > { %5916 = vmatprep.subr.bf16.mxu0 %v9617_v61  ;;  %5825 = vmatpush1.bf16.msra.mxu1 %v7717_v29  ;;  %9726 = vst [vmem:[#allocation89_spill] sm:$0xff] %v7901_v1  ;;  %v9730_v28 = vand.u32 4294901760, %v9729_v30  ;;  %v9737_v30 = vpack.c.bf16 %v7407_v24, %v9736_v41  ;;  %v9740_v41 = vpack.c.bf16 %v7440_v7, %v7435_v55 }
 0x114   : > { %9725 = vst [vmem:[#allocation64_spill] sm:$0xff] %v7896_v14  ;;  %5826 = vmatprep.subr.bf16.mxu1 %v9617_v61  ;;  %v7973_v42 = vand.u32 4294901760, %v7955_v46  ;;  %v9742_v55 = vpack.c.bf16 %v7466_v49, %v7457_v62  ;;  %v9744_v62 = vpack.c.bf16 %v7477_v11, %v7472_v43  ;;  %v9746_v43 = vpack.c.bf16 %v7504_v33, %v7497_v22 }
 0x115   : > { %1098 = vmatmul.mubr.f32.gmra.mrb[12].mxu0 %v7874_v15  ;;  %v7924_v29 = vpack.c.bf16 %v9732_v32, %v9730_v28  ;;  %v7942_v32 = vmul.f32 %v7720_v31, %v7720_v31  ;;  %v9748_v22 = vpack.c.bf16 %v7542_v18, %v7533_v45  ;;  %v9751_v45 = vpack.c.bf16 %v7567_v25, %v7562_v58 }
 0x116   : > { %1103 = vmatprep.mubr.f32.mxu0 %v7879_v20  ;;  %5918 = vmatpush1.bf16.msra.mxu0 %v9728_v39  ;;  %v7933_v20 = vmul.f32 %v7705_v44, %v7705_v44  ;;  %v7938_v39 = vand.u32 4294901760, %v7914_v59  ;;  %v9755_v58 = vpack.c.bf16 %v7591_v23, %v7582_v5  ;;  %v8116_v23 = vmul.f32 %v7836_v48, %v7720_v31 }
 0x117   : > { %5919 = vmatprep.subr.bf16.mxu0 %v9617_v61  ;;  %9733 = vst [vmem:[#allocation68_spill] sm:$0xff] %v7924_v29  ;;  %5828 = vmatpush1.bf16.msra.mxu1 %v7727_v51  ;;  %v7960_v24 = vand.u32 4294901760, %v7942_v32 }
 0x118   : > { %5829 = vmatprep.subr.bf16.mxu1 %v9617_v61  ;;  %9735 = vst [vmem:[#allocation91_spill] sm:$0xff] %v7938_v39  ;;  %v7951_v28 = vand.u32 4294901760, %v7933_v20  ;;  %9759 = vst [vmem:[#allocation106_spill] sm:$0xff] %v8116_v23 }
 0x119   : > { %1105 = vmatmul.mubr.f32.gmra.mrb[14].mxu0 %v7901_v1 }
 0x11a   : > { %1110 = vmatprep.mubr.f32.mxu0 %v7910_v13  ;;  %5921 = vmatpush1.bf16.msra.mxu0 %v9737_v30  ;;  %9738 = vst [vmem:[#allocation92_spill] sm:$0xff] %v7951_v28  ;;  %v7964_v30 = vmul.f32 %v7752_v47, %v7752_v47 }
 0x11b   : > { %5922 = vmatprep.subr.bf16.mxu0 %v9617_v61  ;;  %5831 = vmatpush1.bf16.msra.mxu1 %v7759_v50  ;;  %v7977_v50 = vmul.f32 %v7772_v36, %v7772_v36 }
 0x11c   : > { %5832 = vmatprep.subr.bf16.mxu1 %v9617_v61  ;;  %9739 = vst [vmem:[#allocation93_spill] sm:$0xff] %v7964_v30  ;;  %v7982_v7 = vand.u32 4294901760, %v7964_v30  ;;  %v7999_v30 = vmul.f32 %v7804_v34, %v7804_v34 }
 0x11d   : > { %1112 = vmatmul.mubr.f32.gmra.mrb[16].mxu0 %v7929_v26 }
 0x11e   : > { %1117 = vmatprep.mubr.f32.mxu0 %v7938_v39  ;;  %5924 = vmatpush1.bf16.msra.mxu0 %v9740_v41  ;;  %v7986_v41 = vmul.f32 %v7784_v9, %v7784_v9 }
 0x11f   : > { %5925 = vmatprep.subr.bf16.mxu0 %v9617_v61  ;;  %5834 = vmatpush1.bf16.msra.mxu1 %v7791_v12  ;;  %v7995_v12 = vand.u32 4294901760, %v7977_v50 }
 0x120   : > { %5835 = vmatprep.subr.bf16.mxu1 %v9617_v61  ;;  %9741 = vst [vmem:[#allocation94_spill] sm:$0xff] %v7986_v41  ;;  %v8004_v49 = vand.u32 4294901760, %v7986_v41  ;;  %v8021_v41 = vmul.f32 %v7830_v37, %v7830_v37 }
 0x121   : > { %1119 = vmatmul.mubr.f32.gmra.mrb[18].mxu0 %v7951_v28 }
 0x122   : > { %1124 = vmatprep.mubr.f32.mxu0 %v7960_v24  ;;  %5927 = vmatpush1.bf16.msra.mxu0 %v9742_v55  ;;  %v8008_v55 = vmul.f32 %v7810_v16, %v7810_v16 }
 0x123   : > { %5928 = vmatprep.subr.bf16.mxu0 %v9617_v61  ;;  %5837 = vmatpush1.bf16.msra.mxu1 %v7817_v19  ;;  %v8017_v19 = vand.u32 4294901760, %v7999_v30 }
 0x124   : > { %5838 = vmatprep.subr.bf16.mxu1 %v9617_v61  ;;  %9743 = vst [vmem:[#allocation95_spill] sm:$0xff] %v8008_v55  ;;  %v8026_v11 = vand.u32 4294901760, %v8008_v55  ;;  %v8043_v55 = vmul.f32 %v7856_v53, %v7856_v53 }
 0x125   : > { %1126 = vmatmul.mubr.f32.gmra.mrb[20].mxu0 %v7973_v42 }
 0x126   : > { %1131 = vmatprep.mubr.f32.mxu0 %v7982_v7  ;;  %5930 = vmatpush1.bf16.msra.mxu0 %v9744_v62  ;;  %v8030_v62 = vmul.f32 %v7836_v48, %v7836_v48 }
 0x127   : > { %5931 = vmatprep.subr.bf16.mxu0 %v9617_v61  ;;  %5840 = vmatpush1.bf16.msra.mxu1 %v7843_v57  ;;  %v8039_v57 = vand.u32 4294901760, %v8021_v41 }
 0x128   : > { %5841 = vmatprep.subr.bf16.mxu1 %v9617_v61  ;;  %9745 = vst [vmem:[#allocation96_spill] sm:$0xff] %v8030_v62  ;;  %v8048_v33 = vand.u32 4294901760, %v8030_v62  ;;  %v8065_v62 = vmul.f32 %v7882_v60, %v7882_v60 }
 0x129   : > { %1133 = vmatmul.mubr.f32.gmra.mrb[22].mxu0 %v7995_v12 }
 0x12a   : > { %1138 = vmatprep.mubr.f32.mxu0 %v8004_v49  ;;  %5933 = vmatpush1.bf16.msra.mxu0 %v9746_v43  ;;  %v8052_v43 = vmul.f32 %v7862_v21, %v7862_v21  ;;  %9749 = vst [vmem:[#allocation98_spill] sm:$0xff] %v8065_v62 }
 0x12b   : > { %5934 = vmatprep.subr.bf16.mxu0 %v9617_v61  ;;  %5843 = vmatpush1.bf16.msra.mxu1 %v7869_v17  ;;  %v8061_v17 = vand.u32 4294901760, %v8043_v55 }
 0x12c   : > { %5844 = vmatprep.subr.bf16.mxu1 %v9617_v61  ;;  %9747 = vst [vmem:[#allocation97_spill] sm:$0xff] %v8052_v43  ;;  %v8070_v18 = vand.u32 4294901760, %v8052_v43  ;;  %v8087_v43 = vmul.f32 %v7804_v34, %v7666_v52 }
 0x12d   : > { %1140 = vmatmul.mubr.f32.gmra.mrb[24].mxu0 %v8017_v19 }
 0x12e   : > { %1145 = vmatprep.mubr.f32.mxu0 %v8026_v11  ;;  %5936 = vmatpush1.bf16.msra.mxu0 %v9748_v22  ;;  %v8074_v22 = vmul.f32 %v7784_v9, %v9719_v38  ;;  %9752 = vst [vmem:[#allocation100_spill] sm:$0xff] %v8087_v43 }
 0x12f   : > { %5937 = vmatprep.subr.bf16.mxu0 %v9617_v61  ;;  %5846 = vmatpush1.bf16.msra.mxu1 %v7896_v14  ;;  %v8083_v14 = vand.u32 4294901760, %v8065_v62  ;;  %v8108_v62 = vmul.f32 %v7830_v37, %v7705_v44 }
 0x130   : > { %5847 = vmatprep.subr.bf16.mxu1 %v9617_v61  ;;  %9750 = vst [vmem:[#allocation99_spill] sm:$0xff] %v8074_v22  ;;  %v8092_v25 = vand.u32 4294901760, %v8074_v22 }
 0x131   : > { %1147 = vmatmul.mubr.f32.gmra.mrb[26].mxu0 %v8039_v57  ;;  %9757 = vst [vmem:[#allocation104_spill] sm:$0xff] %v8108_v62  ;;  %v8124_v5 = vand.u32 4294901760, %v8108_v62  ;;  %v8144_v62 = vsub.f32 %v7666_v52, %v7692_v0  ;;  %v8162_v52 = vsub.f32 %v7676_v4, %v7702_v40 }
 0x132   : > { %1152 = vmatprep.mubr.f32.mxu0 %v8048_v33  ;;  %5939 = vmatpush1.bf16.msra.mxu0 %v9751_v45  ;;  %9753 = vst [vmem:[#allocation101_spill] sm:$0xff] %v8092_v25  ;;  %v8096_v45 = vmul.f32 %v7810_v16, %v7676_v4 }
 0x133   : > { %5940 = vmatprep.subr.bf16.mxu0 %v9617_v61  ;;  %5849 = vmatpush1.bf16.msra.mxu1 %v7924_v29  ;;  %v8104_v29 = vand.u32 4294901760, %v8087_v43  ;;  %9761 = vst [vmem:[#allocation107_spill] sm:$0xff] %v8124_v5  ;;  %v8128_v43 = vmul.f32 %v7856_v53, %v7740_v54 }
 0x134   : > { %6330 = vmatprep.subr.bf16.mxu1 %v9617_v61  ;;  %9754 = vst [vmem:[#allocation102_spill] sm:$0xff] %v8096_v45  ;;  %v8112_v22 = vand.u32 4294901760, %v8096_v45  ;;  %v8132_v45 = vand.u32 4294901760, %v8116_v23  ;;  %v8153_v23 = vmul.f32 %v7882_v60, %v7772_v36 }
 0x135   : > { %1154 = vmatmul.mubr.f32.gmra.mrb[28].mxu0 %v8061_v17  ;;  %9756 = vst [vmem:[#allocation103_spill] sm:$0xff] %v8104_v29  ;;  %9762 = vst [vmem:[#allocation108_spill] sm:$0xff] %v8128_v43 }
 0x136   : > { %1159 = vmatprep.mubr.f32.mxu0 %v8070_v18  ;;  %5942 = vmatpush1.bf16.msra.mxu0 %v9755_v58  ;;  %9758 = vst [vmem:[#allocation105_spill] sm:$0xff] %v8112_v22  ;;  %v9760_v58 = vpack.c.bf16 %v7625_v3, %v7620_v35  ;;  %9763 = vst [vmem:[#allocation109_spill] sm:$0xff] %v8132_v45  ;;  %v8136_v3 = vmul.f32 %v7862_v21, %v7752_v47  ;;  %v8177_v4 = vand.u32 4294901760, %v8153_v23 }
 0x137   : > { %5943 = vmatprep.subr.bf16.mxu0 %v9617_v61 }
 0x138   : > { %9764 = vst [vmem:[#allocation110_spill] sm:$0xff] %v8136_v3 }
 0x139   : > { %1161 = vmatmul.mubr.f32.gmra.mrb[30].mxu0 %v8083_v14 }
 0x13a   : > { %1166 = vmatprep.mubr.f32.mxu0 %v8092_v25  ;;  %5945 = vmatpush1.bf16.msra.mxu0 %v9760_v58  ;;  %v9765_v58 = vld [vmem:[#allocation65_spill] sm:$0xff]  ;;  %v9459_v25 = vand.u32 4294901760, %v8144_v62 }
 0x13b   : > { %5946 = vmatprep.subr.bf16.mxu0 %v9617_v61  ;;  %v8140_v35 = vsub.f32 %v9719_v38, %v9765_v58  ;;  %v8158_v38 = vand.u32 4294901760, %v8136_v3  ;;  %v8169_v58 = vsub.f32 %v7705_v44, %v7732_v2  ;;  %v8183_v44 = vsub.f32 %v7720_v31, %v7737_v6 }
 0x13d   : > { %1168 = vmatmul.mubr.f32.gmra.mrb[32].mxu0 %v8104_v29  ;;  %v9460_v29 = vand.u32 4294901760, %v8140_v35  ;;  %v9463_v40 = vand.u32 4294901760, %v8169_v58 }
 0x13e   : > { %1173 = vmatprep.mubr.f32.mxu0 %v8112_v22  ;;  %v8149_v22 = vand.u32 4294901760, %v8128_v43  ;;  %v537_v43 = vsub.f32 %v8144_v62, %v9459_v25 }
 0x13f   : > { %v531_v0 = vsub.f32 %v8140_v35, %v9460_v29  ;;  %v9468_v29 = vand.u32 4294901760, %v8183_v44 }
 0x141   : > { %1175 = vmatmul.mubr.f32.gmra.mrb[34].mxu0 %v8124_v5  ;;  %v532_v3 = vand.u32 4294901760, %v531_v0  ;;  %v538_v5 = vand.u32 4294901760, %v537_v43  ;;  %v8190_v0 = vsub.f32 %v7740_v54, %v7764_v8  ;;  %v552_v43 = vsub.f32 %v8169_v58, %v9463_v40  ;;  %v9766_v8 = vld [vmem:[#allocation80_spill] sm:$0xff] }
 0x142   : > { %1180 = vmatprep.mubr.f32.mxu0 %v8132_v45  ;;  %v9464_v45 = vand.u32 4294901760, %v8162_v52  ;;  %v8210_v54 = vsub.f32 %v7772_v36, %v7796_v56  ;;  %v9767_v36 = vld [vmem:[#allocation46_spill] sm:$0xff] }
 0x143   : > { %533 = vmatprep.mubr.f32.mxu1 %v532_v3  ;;  %v9467_v3 = vand.u32 4294901760, %v8190_v0  ;;  %v553_v31 = vand.u32 4294901760, %v552_v43 }
 0x144   : > { %v546_v25 = vsub.f32 %v8162_v52, %v9464_v45  ;;  %539 = vmatmul.mubr.f32.vlgmr.msra.gmra.mrb[0].mxu1 %v538_v5  ;;  %v8203_v5 = vsub.f32 %v7752_v47, %v7769_v63  ;;  %v9769_v63 = vld [vmem:[#allocation24_spill] sm:$0xff] }
 0x145   : > { %1182 = vmatmul.mubr.f32.gmra.mrb[36].mxu0 %v8149_v22  ;;  %6346 = vmatpush1.bf16.msra.mxu1 %v7672_v10  ;;  %v567_v43 = vsub.f32 %v8190_v0, %v9467_v3  ;;  %v9768_v3 = vld [vmem:[#allocation51_spill] sm:$0xff] }
 0x146   : > { %1187 = vmatprep.mubr.f32.mxu0 %v8158_v38  ;;  %v547_v2 = vand.u32 4294901760, %v546_v25  ;;  %6331 = vmatprep.subr.bf16.mxu1 %v9617_v61  ;;  %v561_v25 = vsub.f32 %v8183_v44, %v9468_v29  ;;  %v9471_v40 = vand.u32 4294901760, %v8203_v5  ;;  %v8231_v29 = vsub.f32 %v7804_v34, %v9768_v3  ;;  %v9770_v34 = vld [vmem:[#allocation86_spill] sm:$0xff] }
 0x147   : > { %v568_v47 = vand.u32 4294901760, %v567_v43 }
 0x148   : > { %548 = vmatprep.mubr.f32.mxu1 %v547_v2  ;;  %v562_v45 = vand.u32 4294901760, %v561_v25  ;;  %v9474_v2 = vand.u32 4294901760, %v8210_v54  ;;  %v576_v25 = vsub.f32 %v8203_v5, %v9471_v40  ;;  %v9476_v56 = vand.u32 4294901760, %v8231_v29 }
 0x149   : > { %1189 = vmatmul.mubr.f32.gmra.mrb[38].mxu0 %v8177_v4  ;;  %554 = vmatmul.mubr.f32.gmra.mrb[2].mxu1 %v553_v31  ;;  %v8223_v31 = vsub.f32 %v7784_v9, %v9767_v36 }
 0x14a   : > { %1324 = vmatprep.mubr.f32.mxu0 %v8140_v35  ;;  %6347 = vmatpush1.bf16.msra.mxu1 %v9766_v8  ;;  %v582_v43 = vsub.f32 %v8210_v54, %v9474_v2  ;;  %v577_v36 = vand.u32 4294901760, %v576_v25  ;;  %v9771_v25 = vld [vmem:[#allocation57_spill] sm:$0xff] }
 0x14b   : > { %6332 = vmatprep.subr.bf16.mxu1 %v9617_v61  ;;  %563 = vmatprep.mubr.f32.mxu1 %v562_v45  ;;  %v9475_v9 = vand.u32 4294901760, %v8223_v31  ;;  %v8244_v45 = vsub.f32 %v7810_v16, %v9770_v34  ;;  %v8252_v2 = vsub.f32 %v7830_v37, %v9771_v25  ;;  %v9772_v37 = vld [vmem:[#allocation25_spill] sm:$0xff] }
 0x14c   : > { %v583_v40 = vand.u32 4294901760, %v582_v43  ;;  %v597_v43 = vsub.f32 %v8231_v29, %v9476_v56 }
 0x14d   : > { %1327 = vmatmul.mubr.f32.vlgmr.msra.gmra.mrb[0].mxu0 %v8144_v62  ;;  %569 = vmatmul.mubr.f32.gmra.mrb[4].mxu1 %v568_v47  ;;  %v591_v47 = vsub.f32 %v8223_v31, %v9475_v9  ;;  %v9477_v16 = vand.u32 4294901760, %v8244_v45  ;;  %v9480_v9 = vand.u32 4294901760, %v8252_v2 }
 0x14e   : > { %1333 = vmatprep.mubr.f32.mxu0 %v8162_v52  ;;  %5948 = vmatpush1.bf16.msra.mxu0 %v7672_v10  ;;  %v598_v3 = vand.u32 4294901760, %v597_v43 }
 0x14f   : > { %5949 = vmatprep.subr.bf16.mxu0 %v9617_v61  ;;  %6348 = vmatpush1.bf16.msra.mxu1 %v9769_v63  ;;  %v592_v34 = vand.u32 4294901760, %v591_v47  ;;  %v8274_v47 = vsub.f32 %v7856_v53, %v7874_v15  ;;  %v612_v43 = vsub.f32 %v8252_v2, %v9480_v9  ;;  %v9774_v53 = vld [vmem:[#allocation75_spill] sm:$0xff] }
 0x150   : > { %578 = vmatprep.mubr.f32.mxu1 %v577_v36  ;;  %6333 = vmatprep.subr.bf16.mxu1 %v9617_v61  ;;  %v9773_v36 = vld [vmem:[#allocation87_spill] sm:$0xff] }
 0x151   : > { %1336 = vmatmul.mubr.f32.gmra.mrb[2].mxu0 %v8169_v58  ;;  %584 = vmatmul.mubr.f32.gmra.mrb[6].mxu1 %v583_v40  ;;  %v8266_v25 = vsub.f32 %v7836_v48, %v9773_v36  ;;  %v606_v40 = vsub.f32 %v8244_v45, %v9477_v16  ;;  %v9484_v16 = vand.u32 4294901760, %v8274_v47  ;;  %v613_v36 = vand.u32 4294901760, %v612_v43 }
 0x152   : > { %1342 = vmatprep.mubr.f32.mxu0 %v8183_v44  ;;  %5951 = vmatpush1.bf16.msra.mxu0 %v9766_v8 }
 0x153   : > { %5952 = vmatprep.subr.bf16.mxu0 %v9617_v61  ;;  %6349 = vmatpush1.bf16.msra.mxu1 %v9772_v37  ;;  %v9481_v48 = vand.u32 4294901760, %v8266_v25  ;;  %v607_v56 = vand.u32 4294901760, %v606_v40  ;;  %v8296_v40 = vsub.f32 %v7882_v60, %v7901_v1  ;;  %v627_v43 = vsub.f32 %v8274_v47, %v9484_v16  ;;  %v9776_v60 = vld [vmem:[#allocation76_spill] sm:$0xff] }
 0x154   : > { %593 = vmatprep.mubr.f32.mxu1 %v592_v34  ;;  %6334 = vmatprep.subr.bf16.mxu1 %v9617_v61  ;;  %v9775_v34 = vld [vmem:[#allocation88_spill] sm:$0xff] }
 0x155   : > { %1345 = vmatmul.mubr.f32.gmra.mrb[4].mxu0 %v8190_v0  ;;  %599 = vmatmul.mubr.f32.gmra.mrb[8].mxu1 %v598_v3  ;;  %v8288_v15 = vsub.f32 %v7862_v21, %v9775_v34  ;;  %v621_v3 = vsub.f32 %v8266_v25, %v9481_v48  ;;  %v9488_v48 = vand.u32 4294901760, %v8296_v40  ;;  %v628_v34 = vand.u32 4294901760, %v627_v43 }
 0x156   : > { %1351 = vmatprep.mubr.f32.mxu0 %v8203_v5  ;;  %5954 = vmatpush1.bf16.msra.mxu0 %v9769_v63  ;;  %v9800_v63 = vld [vmem:[#allocation99_spill] sm:$0xff] }
 0x157   : > { %5955 = vmatprep.subr.bf16.mxu0 %v9617_v61  ;;  %6350 = vmatpush1.bf16.msra.mxu1 %v9774_v53  ;;  %v9485_v21 = vand.u32 4294901760, %v8288_v15  ;;  %v622_v9 = vand.u32 4294901760, %v621_v3  ;;  %v8318_v3 = vsub.f32 %v7905_v27, %v7929_v26  ;;  %v642_v43 = vsub.f32 %v8296_v40, %v9488_v48  ;;  %v9778_v27 = vld [vmem:[#allocation78_spill] sm:$0xff] }
 0x158   : > { %608 = vmatprep.mubr.f32.mxu1 %v607_v56  ;;  %6335 = vmatprep.subr.bf16.mxu1 %v9617_v61  ;;  %v9777_v56 = vld [vmem:[#allocation61_spill] sm:$0xff] }
 0x159   : > { %1354 = vmatmul.mubr.f32.gmra.mrb[6].mxu0 %v8210_v54  ;;  %614 = vmatmul.mubr.f32.gmra.mrb[10].mxu1 %v613_v36  ;;  %v8310_v1 = vsub.f32 %v9777_v56, %v7910_v13  ;;  %v636_v36 = vsub.f32 %v8288_v15, %v9485_v21  ;;  %v9492_v21 = vand.u32 4294901760, %v8318_v3  ;;  %v643_v13 = vand.u32 4294901760, %v642_v43 }
 0x15a   : > { %1360 = vmatprep.mubr.f32.mxu0 %v8223_v31  ;;  %5957 = vmatpush1.bf16.msra.mxu0 %v9772_v37 }
 0x15b   : > { %5958 = vmatprep.subr.bf16.mxu0 %v9617_v61  ;;  %6351 = vmatpush1.bf16.msra.mxu1 %v9776_v60  ;;  %v9489_v56 = vand.u32 4294901760, %v8310_v1  ;;  %v637_v16 = vand.u32 4294901760, %v636_v36  ;;  %v8340_v36 = vsub.f32 %v7933_v20, %v7951_v28  ;;  %v657_v43 = vsub.f32 %v8318_v3, %v9492_v21  ;;  %v9779_v20 = vld [vmem:[#allocation81_spill] sm:$0xff] }
 0x15c   : > { %623 = vmatprep.mubr.f32.mxu1 %v622_v9  ;;  %6336 = vmatprep.subr.bf16.mxu1 %v9617_v61  ;;  %v8332_v9 = vsub.f32 %v7914_v59, %v7938_v39 }
 0x15d   : > { %1363 = vmatmul.mubr.f32.gmra.mrb[8].mxu0 %v8231_v29  ;;  %629 = vmatmul.mubr.f32.gmra.mrb[12].mxu1 %v628_v34  ;;  %v651_v34 = vsub.f32 %v8310_v1, %v9489_v56  ;;  %v9496_v56 = vand.u32 4294901760, %v8340_v36  ;;  %v658_v39 = vand.u32 4294901760, %v657_v43 }
 0x15e   : > { %1369 = vmatprep.mubr.f32.mxu0 %v8244_v45  ;;  %5960 = vmatpush1.bf16.msra.mxu0 %v9774_v53  ;;  %v9493_v59 = vand.u32 4294901760, %v8332_v9 }
 0x15f   : > { %5961 = vmatprep.subr.bf16.mxu0 %v9617_v61  ;;  %6352 = vmatpush1.bf16.msra.mxu1 %v9778_v27  ;;  %v652_v48 = vand.u32 4294901760, %v651_v34  ;;  %v8362_v34 = vsub.f32 %v7955_v46, %v7973_v42  ;;  %v672_v43 = vsub.f32 %v8340_v36, %v9496_v56  ;;  %v9780_v46 = vld [vmem:[#allocation93_spill] sm:$0xff] }
 0x160   : > { %638 = vmatprep.mubr.f32.mxu1 %v637_v16  ;;  %6337 = vmatprep.subr.bf16.mxu1 %v9617_v61  ;;  %v8354_v16 = vsub.f32 %v7942_v32, %v7960_v24 }
 0x161   : > { %1372 = vmatmul.mubr.f32.gmra.mrb[10].mxu0 %v8252_v2  ;;  %644 = vmatmul.mubr.f32.gmra.mrb[14].mxu1 %v643_v13  ;;  %v666_v13 = vsub.f32 %v8332_v9, %v9493_v59  ;;  %v9501_v59 = vand.u32 4294901760, %v8362_v34  ;;  %v673_v28 = vand.u32 4294901760, %v672_v43 }
 0x162   : > { %1378 = vmatprep.mubr.f32.mxu0 %v8266_v25  ;;  %5963 = vmatpush1.bf16.msra.mxu0 %v9776_v60  ;;  %v9497_v32 = vand.u32 4294901760, %v8354_v16 }
 0x163   : > { %5964 = vmatprep.subr.bf16.mxu0 %v9617_v61  ;;  %6353 = vmatpush1.bf16.msra.mxu1 %v9779_v20  ;;  %v667_v21 = vand.u32 4294901760, %v666_v13  ;;  %v8384_v13 = vsub.f32 %v7977_v50, %v7995_v12  ;;  %v687_v43 = vsub.f32 %v8362_v34, %v9501_v59  ;;  %v9782_v50 = vld [vmem:[#allocation43_spill] sm:$0xff] }
 0x164   : > { %653 = vmatprep.mubr.f32.mxu1 %v652_v48  ;;  %6338 = vmatprep.subr.bf16.mxu1 %v9617_v61  ;;  %v8376_v48 = vsub.f32 %v9780_v46, %v7982_v7 }
 0x165   : > { %1381 = vmatmul.mubr.f32.gmra.mrb[12].mxu0 %v8274_v47  ;;  %659 = vmatmul.mubr.f32.gmra.mrb[16].mxu1 %v658_v39  ;;  %v681_v39 = vsub.f32 %v8354_v16, %v9497_v32  ;;  %9781 = vst [vmem:[#allocation61_spill] sm:$0xff] %v8384_v13  ;;  %v9505_v32 = vand.u32 4294901760, %v8384_v13  ;;  %v688_v26 = vand.u32 4294901760, %v687_v43 }
 0x166   : > { %1387 = vmatprep.mubr.f32.mxu0 %v8288_v15  ;;  %5966 = vmatpush1.bf16.msra.mxu0 %v9778_v27  ;;  %v9502_v46 = vand.u32 4294901760, %v8376_v48 }
 0x167   : > { %5967 = vmatprep.subr.bf16.mxu0 %v9617_v61  ;;  %6354 = vmatpush1.bf16.msra.mxu1 %v7727_v51  ;;  %v682_v56 = vand.u32 4294901760, %v681_v39  ;;  %v8406_v39 = vsub.f32 %v7999_v30, %v8017_v19  ;;  %v702_v43 = vsub.f32 %v8384_v13, %v9505_v32  ;;  %v9786_v30 = vld [vmem:[#allocation26_spill] sm:$0xff] }
 0x168   : > { %668 = vmatprep.mubr.f32.mxu1 %v667_v21  ;;  %6339 = vmatprep.subr.bf16.mxu1 %v9617_v61  ;;  %v9783_v21 = vld [vmem:[#allocation94_spill] sm:$0xff] }
 0x169   : > { %1390 = vmatmul.mubr.f32.gmra.mrb[14].mxu0 %v8296_v40  ;;  %674 = vmatmul.mubr.f32.gmra.mrb[18].mxu1 %v673_v28  ;;  %v696_v28 = vsub.f32 %v8376_v48, %v9502_v46  ;;  %9785 = vst [vmem:[#allocation94_spill] sm:$0xff] %v8406_v39  ;;  %v9509_v46 = vand.u32 4294901760, %v8406_v39 }
 0x16a   : > { %1396 = vmatprep.mubr.f32.mxu0 %v8310_v1  ;;  %5969 = vmatpush1.bf16.msra.mxu0 %v9779_v20  ;;  %v8398_v20 = vsub.f32 %v9783_v21, %v8004_v49 }
 0x16b   : > { %5970 = vmatprep.subr.bf16.mxu0 %v9617_v61  ;;  %6355 = vmatpush1.bf16.msra.mxu1 %v9782_v50  ;;  %v697_v59 = vand.u32 4294901760, %v696_v28  ;;  %v8428_v28 = vsub.f32 %v8021_v41, %v8039_v57  ;;  %v9790_v41 = vld [vmem:[#allocation49_spill] sm:$0xff] }
 0x16c   : > { %9784 = vst [vmem:[#allocation93_spill] sm:$0xff] %v8398_v20  ;;  %683 = vmatprep.mubr.f32.mxu1 %v682_v56  ;;  %v9506_v21 = vand.u32 4294901760, %v8398_v20  ;;  %6340 = vmatprep.subr.bf16.mxu1 %v9617_v61  ;;  %v9787_v56 = vld [vmem:[#allocation95_spill] sm:$0xff] }
 0x16d   : > { %1399 = vmatmul.mubr.f32.gmra.mrb[16].mxu0 %v8318_v3  ;;  %689 = vmatmul.mubr.f32.gmra.mrb[20].mxu1 %v688_v26  ;;  %v8420_v27 = vsub.f32 %v9787_v56, %v8026_v11  ;;  %9789 = vst [vmem:[#allocation111_spill] sm:$0xff] %v8428_v28 }
 0x16e   : > { %1405 = vmatprep.mubr.f32.mxu0 %v8332_v9  ;;  %5972 = vmatpush1.bf16.msra.mxu0 %v7727_v51  ;;  %v703_v51 = vand.u32 4294901760, %v702_v43  ;;  %v711_v26 = vsub.f32 %v8398_v20, %v9506_v21  ;;  %v717_v43 = vsub.f32 %v8406_v39, %v9509_v46  ;;  %v9513_v21 = vand.u32 4294901760, %v8428_v28 }
 0x16f   : > { %5973 = vmatprep.subr.bf16.mxu0 %v9617_v61  ;;  %6356 = vmatpush1.bf16.msra.mxu1 %v9786_v30  ;;  %9788 = vst [vmem:[#allocation95_spill] sm:$0xff] %v8420_v27  ;;  %v9510_v56 = vand.u32 4294901760, %v8420_v27 }
 0x170   : > { %698 = vmatprep.mubr.f32.mxu1 %v697_v59  ;;  %v712_v32 = vand.u32 4294901760, %v711_v26  ;;  %6341 = vmatprep.subr.bf16.mxu1 %v9617_v61  ;;  %v9791_v59 = vld [vmem:[#allocation96_spill] sm:$0xff]  ;;  %v8450_v26 = vsub.f32 %v8043_v55, %v8061_v17  ;;  %v9794_v55 = vld [vmem:[#allocation55_spill] sm:$0xff] }
 0x171   : > { %1408 = vmatmul.mubr.f32.gmra.mrb[18].mxu0 %v8340_v36  ;;  %704 = vmatmul.mubr.f32.gmra.mrb[22].mxu1 %v703_v51  ;;  %v8442_v60 = vsub.f32 %v9791_v59, %v8048_v33  ;;  %v726_v51 = vsub.f32 %v8420_v27, %v9510_v56 }
 0x172   : > { %1414 = vmatprep.mubr.f32.mxu0 %v8354_v16  ;;  %5975 = vmatpush1.bf16.msra.mxu0 %v9782_v50  ;;  %v718_v50 = vand.u32 4294901760, %v717_v43  ;;  %9793 = vst [vmem:[#allocation112_spill] sm:$0xff] %v8450_v26  ;;  %v732_v43 = vsub.f32 %v8428_v28, %v9513_v21  ;;  %v9519_v56 = vand.u32 4294901760, %v8450_v26 }
 0x173   : > { %5976 = vmatprep.subr.bf16.mxu0 %v9617_v61  ;;  %6357 = vmatpush1.bf16.msra.mxu1 %v9790_v41  ;;  %9792 = vst [vmem:[#allocation96_spill] sm:$0xff] %v8442_v60  ;;  %v9515_v59 = vand.u32 4294901760, %v8442_v60  ;;  %v727_v46 = vand.u32 4294901760, %v726_v51  ;;  %v9797_v51 = vld [vmem:[#allocation98_spill] sm:$0xff] }
 0x174   : > { %713 = vmatprep.mubr.f32.mxu1 %v712_v32  ;;  %6342 = vmatprep.subr.bf16.mxu1 %v9617_v61  ;;  %v9795_v32 = vld [vmem:[#allocation97_spill] sm:$0xff]  ;;  %v8472_v21 = vsub.f32 %v9797_v51, %v8083_v14  ;;  %v9798_v51 = vld [vmem:[#allocation59_spill] sm:$0xff] }
 0x175   : > { %1417 = vmatmul.mubr.f32.gmra.mrb[20].mxu0 %v8362_v34  ;;  %719 = vmatmul.mubr.f32.gmra.mrb[24].mxu1 %v718_v50  ;;  %v8464_v53 = vsub.f32 %v9795_v32, %v8070_v18  ;;  %v741_v50 = vsub.f32 %v8442_v60, %v9515_v59 }
 0x176   : > { %1423 = vmatprep.mubr.f32.mxu0 %v8376_v48  ;;  %5978 = vmatpush1.bf16.msra.mxu0 %v9786_v30  ;;  %v733_v30 = vand.u32 4294901760, %v732_v43  ;;  %v747_v43 = vsub.f32 %v8450_v26, %v9519_v56  ;;  %v9527_v59 = vand.u32 4294901760, %v8472_v21  ;;  %v9802_v56 = vld [vmem:[#allocation100_spill] sm:$0xff] }
 0x177   : > { %5979 = vmatprep.subr.bf16.mxu0 %v9617_v61  ;;  %6358 = vmatpush1.bf16.msra.mxu1 %v9794_v55  ;;  %9796 = vst [vmem:[#allocation97_spill] sm:$0xff] %v8464_v53  ;;  %v9523_v32 = vand.u32 4294901760, %v8464_v53  ;;  %v742_v37 = vand.u32 4294901760, %v741_v50  ;;  %v9801_v50 = vld [vmem:[#allocation103_spill] sm:$0xff] }
 0x178   : > { %728 = vmatprep.mubr.f32.mxu1 %v727_v46  ;;  %6343 = vmatprep.subr.bf16.mxu1 %v9617_v61  ;;  %v9799_v46 = vld [vmem:[#allocation101_spill] sm:$0xff]  ;;  %v8494_v6 = vsub.f32 %v9802_v56, %v9801_v50  ;;  %v9803_v56 = vld [vmem:[#allocation64_spill] sm:$0xff] }
 0x179   : > { %1426 = vmatmul.mubr.f32.gmra.mrb[22].mxu0 %v8384_v13  ;;  %734 = vmatmul.mubr.f32.gmra.mrb[26].mxu1 %v733_v30  ;;  %v8486_v8 = vsub.f32 %v9800_v63, %v9799_v46  ;;  %v756_v30 = vsub.f32 %v8464_v53, %v9523_v32 }
 0x17a   : > { %1432 = vmatprep.mubr.f32.mxu0 %v8398_v20  ;;  %5981 = vmatpush1.bf16.msra.mxu0 %v9790_v41  ;;  %v748_v41 = vand.u32 4294901760, %v747_v43  ;;  %v762_v43 = vsub.f32 %v8472_v21, %v9527_v59  ;;  %v9534_v32 = vand.u32 4294901760, %v8494_v6  ;;  %v9807_v59 = vld [vmem:[#allocation104_spill] sm:$0xff]  ;;  %v9810_v20 = vld [vmem:[#allocation106_spill] sm:$0xff] }
 0x17b   : > { %5982 = vmatprep.subr.bf16.mxu0 %v9617_v61  ;;  %6359 = vmatpush1.bf16.msra.mxu1 %v9798_v51  ;;  %v9530_v63 = vand.u32 4294901760, %v8486_v8  ;;  %v757_v10 = vand.u32 4294901760, %v756_v30  ;;  %v9806_v30 = vld [vmem:[#allocation107_spill] sm:$0xff] }
 0x17c   : > { %743 = vmatprep.mubr.f32.mxu1 %v742_v37  ;;  %6344 = vmatprep.subr.bf16.mxu1 %v9617_v61  ;;  %v9804_v37 = vld [vmem:[#allocation105_spill] sm:$0xff] }
 0x17d   : > { %1435 = vmatmul.mubr.f32.gmra.mrb[24].mxu0 %v8406_v39  ;;  %749 = vmatmul.mubr.f32.gmra.mrb[28].mxu1 %v748_v41  ;;  %v771_v41 = vsub.f32 %v8486_v8, %v9530_v63 }
 0x17e   : > { %1441 = vmatprep.mubr.f32.mxu0 %v8420_v27  ;;  %5984 = vmatpush1.bf16.msra.mxu0 %v9794_v55  ;;  %v763_v55 = vand.u32 4294901760, %v762_v43  ;;  %v9805_v27 = vld [vmem:[#allocation102_spill] sm:$0xff]  ;;  %v777_v43 = vsub.f32 %v8494_v6, %v9534_v32 }
 0x17f   : > { %5985 = vmatprep.subr.bf16.mxu0 %v9617_v61  ;;  %6360 = vmatpush1.bf16.msra.mxu1 %v9803_v56  ;;  %v8508_v39 = vsub.f32 %v9805_v27, %v9804_v37 }
 0x180   : > { %758 = vmatprep.mubr.f32.mxu1 %v757_v10  ;;  %6345 = vmatprep.subr.bf16.mxu1 %v9617_v61  ;;  %v9809_v10 = vld [vmem:[#allocation109_spill] sm:$0xff] }
 0x181   : > { %1444 = vmatmul.mubr.f32.gmra.mrb[26].mxu0 %v8428_v28  ;;  %v8516_v28 = vsub.f32 %v9807_v59, %v9806_v30  ;;  %v9537_v27 = vand.u32 4294901760, %v8508_v39  ;;  %764 = vmatmul.mubr.f32.gmra.mrb[30].mxu1 %v763_v55  ;;  %v9808_v59 = vld [vmem:[#allocation68_spill] sm:$0xff]  ;;  %v8530_v13 = vsub.f32 %v9810_v20, %v9809_v10 }
 0x182   : > { %1450 = vmatprep.mubr.f32.mxu0 %v8442_v60  ;;  %5987 = vmatpush1.bf16.msra.mxu0 %v9798_v51  ;;  %v772_v60 = vand.u32 4294901760, %v771_v41  ;;  %v778_v51 = vand.u32 4294901760, %v777_v43  ;;  %v9811_v41 = vld [vmem:[#allocation108_spill] sm:$0xff] }
 0x183   : > { %5988 = vmatprep.subr.bf16.mxu0 %v9617_v61  ;;  %v9539_v63 = vand.u32 4294901760, %v8516_v28  ;;  %6361 = vmatpush1.bf16.msra.mxu1 %v9808_v59  ;;  %v786_v55 = vsub.f32 %v8508_v39, %v9537_v27  ;;  %v8538_v32 = vsub.f32 %v9811_v41, %v8149_v22  ;;  %v9540_v20 = vand.u32 4294901760, %v8530_v13  ;;  %v9812_v41 = vld [vmem:[#allocation110_spill] sm:$0xff] }
 0x184   : > { %773 = vmatprep.mubr.f32.mxu1 %v772_v60 }
 0x185   : > { %1453 = vmatmul.mubr.f32.gmra.mrb[28].mxu0 %v8450_v26  ;;  %v792_v43 = vsub.f32 %v8516_v28, %v9539_v63  ;;  %779 = vmatmul.mubr.f32.gmra.mrb[32].mxu1 %v778_v51  ;;  %v8550_v26 = vsub.f32 %v9812_v41, %v8158_v38  ;;  %v801_v60 = vsub.f32 %v8530_v13, %v9540_v20 }
 0x186   : > { %1459 = vmatprep.mubr.f32.mxu0 %v8464_v53  ;;  %5990 = vmatpush1.bf16.msra.mxu0 %v9803_v56  ;;  %v787_v53 = vand.u32 4294901760, %v786_v55  ;;  %v9541_v56 = vand.u32 4294901760, %v8538_v32  ;;  %v8558_v51 = vsub.f32 %v8153_v23, %v8177_v4 }
 0x187   : > { %5991 = vmatprep.subr.bf16.mxu0 %v9617_v61  ;;  %v793_v27 = vand.u32 4294901760, %v792_v43  ;;  %v9543_v43 = vand.u32 4294901760, %v8550_v26  ;;  %v802_v41 = vand.u32 4294901760, %v801_v60  ;;  %v9814_v60 = vld [vmem:[#allocation27_spill] sm:$0xff] }
 0x188   : > { %788 = vmatprep.mubr.f32.mxu1 %v787_v53  ;;  %v807_v55 = vsub.f32 %v8538_v32, %v9541_v56  ;;  %v9542_v63 = vand.u32 4294901760, %v8558_v51 }
 0x189   : > { %1462 = vmatmul.mubr.f32.gmra.mrb[30].mxu0 %v8472_v21  ;;  %794 = vmatmul.mubr.f32.gmra.mrb[34].mxu1 %v793_v27  ;;  %v816_v23 = vsub.f32 %v8550_v26, %v9543_v43 }
 0x18a   : > { %1468 = vmatprep.mubr.f32.mxu0 %v8486_v8  ;;  %5993 = vmatpush1.bf16.msra.mxu0 %v9808_v59  ;;  %v808_v20 = vand.u32 4294901760, %v807_v55  ;;  %v822_v53 = vsub.f32 %v8558_v51, %v9542_v63  ;;  %v9815_v55 = vand.u32 4294901760, %v9814_v60  ;;  %v9820_v63 = vld [vmem:[#allocation29_spill] sm:$0xff]  ;;  %v9824_v60 = vand.u32 4294901760, %v8169_v58 }
 0x18b   : > { %5994 = vmatprep.subr.bf16.mxu0 %v9617_v61  ;;  %803 = vmatprep.mubr.f32.mxu1 %v802_v41  ;;  %v817_v56 = vand.u32 4294901760, %v816_v23  ;;  %v9816_v41 = vld [vmem:[#allocation28_spill] sm:$0xff]  ;;  %v9821_v43 = vand.u32 4294901760, %v9820_v63  ;;  %v9831_v58 = vand.u32 4294901760, %v8203_v5  ;;  %v9838_v5 = vld [vmem:[#allocation35_spill] sm:$0xff] }
 0x18c   : > { %v823_v27 = vand.u32 4294901760, %v822_v53  ;;  %v9818_v53 = vand.u32 4294901760, %v8144_v62  ;;  %v9825_v62 = vand.u32 4294901760, %v8183_v44  ;;  %v9832_v44 = vld [vmem:[#allocation33_spill] sm:$0xff] }
 0x18d   : > { %1471 = vmatmul.mubr.f32.gmra.mrb[32].mxu0 %v8494_v6  ;;  %809 = vmatmul.mubr.f32.gmra.mrb[36].mxu1 %v808_v20  ;;  %v9813_v20 = vand.u32 4294901760, %v8140_v35  ;;  %v9822_v35 = vld [vmem:[#allocation30_spill] sm:$0xff] }
 0x18e   : > { %1477 = vmatprep.mubr.f32.mxu0 %v8508_v39  ;;  %818 = vmatprep.mubr.f32.mxu1 %v817_v56  ;;  %v9817_v56 = vand.u32 4294901760, %v9816_v41  ;;  %v9828_v41 = vld [vmem:[#allocation32_spill] sm:$0xff] }
 0x18f   : > { %v9829_v63 = vand.u32 4294901760, %v9828_v41 }
 0x190   : > { %v5995_v23 = vpack.c.bf16 %v9817_v56, %v9815_v55 }
 0x191   : > { %1480 = vmatmul.mubr.f32.gmra.mrb[34].mxu0 %v8516_v28  ;;  %824 = vmatmul.mubr.f32.gmra.mrb[38].mxu1 %v823_v27  ;;  %v9819_v27 = vand.u32 4294901760, %v8162_v52  ;;  %v9826_v52 = vld [vmem:[#allocation31_spill] sm:$0xff] }
 0x192   : > { %1486 = vmatprep.mubr.f32.mxu0 %v8530_v13  ;;  %2288 = vmatprep.mubr.f32.mxu1 %v7960_v24  ;;  %v9827_v55 = vand.u32 4294901760, %v9826_v52 }
 0x194   : > { %v6001_v56 = vpack.c.bf16 %v9829_v63, %v9827_v55  ;;  %v9842_v55 = vand.u32 4294901760, %v8231_v29  ;;  %v9846_v63 = vld [vmem:[#allocation38_spill] sm:$0xff]  ;;  %v9849_v29 = vand.u32 4294901760, %v8266_v25  ;;  %v9856_v25 = vld [vmem:[#allocation41_spill] sm:$0xff] }
 0x195   : > { %1489 = vmatmul.mubr.f32.gmra.mrb[36].mxu0 %v8538_v32  ;;  %2290 = vmatmul.mubr.f32.vlgmr.msra.gmra.mrb[40].mxu1 %v7973_v42 }
 0x196   : > { %1495 = vmatprep.mubr.f32.mxu0 %v8550_v26  ;;  %2295 = vmatprep.mubr.f32.mxu1 %v7982_v7 }
 0x199   : > { %1498 = vmatmul.mubr.f32.gmra.mrb[38].mxu0 %v8558_v51  ;;  %2297 = vmatmul.mubr.f32.gmra.mrb[42].mxu1 %v7995_v12 }
 0x19a   : > { %1602 = vmatprep.mubr.f32.mxu0 %v9813_v20  ;;  %2302 = vmatprep.mubr.f32.mxu1 %v8004_v49  ;;  %v9823_v20 = vand.u32 4294901760, %v9822_v35  ;;  %v9836_v35 = vand.u32 4294901760, %v8210_v54  ;;  %v9843_v54 = vand.u32 4294901760, %v8244_v45  ;;  %v9850_v45 = vld [vmem:[#allocation39_spill] sm:$0xff] }
 0x19c   : > { %v5998_v59 = vpack.c.bf16 %v9823_v20, %v9821_v43  ;;  %v9830_v43 = vand.u32 4294901760, %v8190_v0  ;;  %v9837_v0 = vand.u32 4294901760, %v8223_v31  ;;  %v9839_v20 = vand.u32 4294901760, %v9838_v5  ;;  %v9844_v31 = vld [vmem:[#allocation37_spill] sm:$0xff] }
 0x19d   : > { %1606 = vmatmul.mubr.f32.vlgmr.msra.gmra.mrb[0].mxu0 %v9818_v53  ;;  %2304 = vmatmul.mubr.f32.gmra.mrb[44].mxu1 %v8017_v19  ;;  %v9845_v41 = vand.u32 4294901760, %v9844_v31  ;;  %v9866_v31 = vand.u32 4294901760, %v8318_v3  ;;  %v9874_v3 = vld [vmem:[#allocation53_spill] sm:$0xff] }
 0x19e   : > { %1613 = vmatprep.mubr.f32.mxu0 %v9819_v27  ;;  %5996 = vmatpush1.bf16.msra.mxu0 %v5995_v23  ;;  %v9834_v23 = vld [vmem:[#allocation34_spill] sm:$0xff] }
 0x19f   : > { %5997 = vmatprep.subr.bf16.mxu0 %v9617_v61  ;;  %2309 = vmatprep.mubr.f32.mxu1 %v8026_v11  ;;  %v9835_v53 = vand.u32 4294901760, %v9834_v23 }
 0x1a1   : > { %1617 = vmatmul.mubr.f32.gmra.mrb[2].mxu0 %v9824_v60  ;;  %2311 = vmatmul.mubr.f32.gmra.mrb[46].mxu1 %v8039_v57  ;;  %v9840_v60 = vld [vmem:[#allocation36_spill] sm:$0xff] }
 0x1a2   : > { %1624 = vmatprep.mubr.f32.mxu0 %v9825_v62  ;;  %5999 = vmatpush1.bf16.msra.mxu0 %v5998_v59  ;;  %v9833_v59 = vand.u32 4294901760, %v9832_v44  ;;  %v9841_v62 = vand.u32 4294901760, %v9840_v60  ;;  %v9851_v44 = vand.u32 4294901760, %v9850_v45  ;;  %v9860_v60 = vand.u32 4294901760, %v8296_v40 }
 0x1a3   : > { %6000 = vmatprep.subr.bf16.mxu0 %v9617_v61  ;;  %2316 = vmatprep.mubr.f32.mxu1 %v8048_v33  ;;  %v9867_v40 = vand.u32 4294901760, %v8332_v9  ;;  %v9875_v45 = vand.u32 4294901760, %v9874_v3  ;;  %v9904_v3 = vld [vmem:[#allocation70_spill] sm:$0xff] }
 0x1a4   : > { %v6004_v27 = vpack.c.bf16 %v9835_v53, %v9833_v59  ;;  %v6007_v52 = vpack.c.bf16 %v9841_v62, %v9839_v20  ;;  %v9852_v59 = vld [vmem:[#allocation40_spill] sm:$0xff] }
 0x1a5   : > { %1628 = vmatmul.mubr.f32.gmra.mrb[4].mxu0 %v9830_v43  ;;  %2318 = vmatmul.mubr.f32.gmra.mrb[48].mxu1 %v8061_v17  ;;  %v9853_v23 = vand.u32 4294901760, %v9852_v59 }
 0x1a6   : > { %1635 = vmatprep.mubr.f32.mxu0 %v9831_v58  ;;  %6002 = vmatpush1.bf16.msra.mxu0 %v6001_v56  ;;  %v9847_v56 = vand.u32 4294901760, %v9846_v63  ;;  %v9848_v58 = vand.u32 4294901760, %v8252_v2  ;;  %v9855_v2 = vand.u32 4294901760, %v8288_v15  ;;  %v9862_v15 = vld [vmem:[#allocation47_spill] sm:$0xff]  ;;  %v9870_v63 = vld [vmem:[#allocation52_spill] sm:$0xff] }
 0x1a7   : > { %6003 = vmatprep.subr.bf16.mxu0 %v9617_v61  ;;  %2323 = vmatprep.mubr.f32.mxu1 %v8070_v18  ;;  %v6013_v53 = vpack.c.bf16 %v9853_v23, %v9851_v44  ;;  %v9863_v62 = vand.u32 4294901760, %v9862_v15  ;;  %v9876_v44 = vld [vmem:[#allocation54_spill] sm:$0xff]  ;;  %v9878_v23 = vand.u32 4294901760, %v8362_v34 }
 0x1a8   : > { %v6010_v43 = vpack.c.bf16 %v9847_v56, %v9845_v41  ;;  %v9868_v41 = vld [vmem:[#allocation50_spill] sm:$0xff]  ;;  %v9871_v56 = vand.u32 4294901760, %v9870_v63  ;;  %v9877_v9 = vand.u32 4294901760, %v9876_v44  ;;  %v9906_v44 = vld [vmem:[#allocation71_spill] sm:$0xff] }
 0x1a9   : > { %1639 = vmatmul.mubr.f32.gmra.mrb[6].mxu0 %v9836_v35  ;;  %2325 = vmatmul.mubr.f32.gmra.mrb[50].mxu1 %v8083_v14  ;;  %v9857_v35 = vand.u32 4294901760, %v9856_v25  ;;  %v9888_v34 = vld [vmem:[#allocation62_spill] sm:$0xff] }
 0x1aa   : > { %1646 = vmatprep.mubr.f32.mxu0 %v9837_v0  ;;  %6005 = vmatpush1.bf16.msra.mxu0 %v6004_v27  ;;  %v9854_v27 = vand.u32 4294901760, %v8274_v47  ;;  %v9858_v0 = vld [vmem:[#allocation42_spill] sm:$0xff]  ;;  %v9861_v47 = vand.u32 4294901760, %v8310_v1  ;;  %v9869_v1 = vand.u32 4294901760, %v9868_v41  ;;  %v6025_v59 = vpack.c.bf16 %v9877_v9, %v9875_v45  ;;  %v9898_v41 = vld [vmem:[#allocation67_spill] sm:$0xff] }
 0x1ab   : > { %6006 = vmatprep.subr.bf16.mxu0 %v9617_v61  ;;  %2330 = vmatprep.mubr.f32.mxu1 %v9799_v46  ;;  %v9859_v5 = vand.u32 4294901760, %v9858_v0  ;;  %v9905_v45 = vand.u32 4294901760, %v9904_v3  ;;  %v9907_v9 = vand.u32 4294901760, %v9906_v44  ;;  %v9945_v3 = vld [vmem:[#allocation88_spill] sm:$0xff]  ;;  %v9947_v44 = vld [vmem:[#allocation89_spill] sm:$0xff] }
 0x1ad   : > { %1650 = vmatmul.mubr.f32.gmra.mrb[8].mxu0 %v9842_v55  ;;  %2332 = vmatmul.mubr.f32.gmra.mrb[52].mxu1 %v9801_v50  ;;  %v6016_v20 = vpack.c.bf16 %v9859_v5, %v9857_v35  ;;  %v9884_v35 = vld [vmem:[#allocation61_spill] sm:$0xff] }
 0x1ae   : > { %1657 = vmatprep.mubr.f32.mxu0 %v9843_v54  ;;  %6008 = vmatpush1.bf16.msra.mxu0 %v6007_v52  ;;  %v9864_v52 = vld [vmem:[#allocation48_spill] sm:$0xff]  ;;  %v9885_v0 = vand.u32 4294901760, %v9884_v35  ;;  %v9886_v5 = vld [vmem:[#allocation93_spill] sm:$0xff] }
 0x1af   : > { %6009 = vmatprep.subr.bf16.mxu0 %v9617_v61  ;;  %2337 = vmatprep.mubr.f32.mxu1 %v9804_v37  ;;  %v9865_v55 = vand.u32 4294901760, %v9864_v52 }
 0x1b1   : > { %1661 = vmatmul.mubr.f32.gmra.mrb[10].mxu0 %v9848_v58  ;;  %2339 = vmatmul.mubr.f32.gmra.mrb[54].mxu1 %v9806_v30  ;;  %v6019_v54 = vpack.c.bf16 %v9865_v55, %v9863_v62  ;;  %v9872_v58 = vand.u32 4294901760, %v8340_v36  ;;  %v9880_v36 = vld [vmem:[#allocation56_spill] sm:$0xff]  ;;  %v9892_v62 = vld [vmem:[#allocation94_spill] sm:$0xff]  ;;  %v9894_v55 = vld [vmem:[#allocation95_spill] sm:$0xff] }
 0x1b2   : > { %1668 = vmatprep.mubr.f32.mxu0 %v9849_v29  ;;  %6011 = vmatpush1.bf16.msra.mxu0 %v6010_v43  ;;  %v6022_v43 = vpack.c.bf16 %v9871_v56, %v9869_v1  ;;  %v9873_v29 = vand.u32 4294901760, %v8354_v16  ;;  %v9893_v52 = vand.u32 4294901760, %v9892_v62  ;;  %v9899_v1 = vand.u32 4294901760, %v9898_v41  ;;  %v9900_v56 = vld [vmem:[#allocation111_spill] sm:$0xff]  ;;  %v9926_v62 = vld [vmem:[#allocation77_spill] sm:$0xff] }
 0x1b3   : > { %6012 = vmatprep.subr.bf16.mxu0 %v9617_v61  ;;  %2344 = vmatprep.mubr.f32.mxu1 %v9809_v10  ;;  %v9938_v41 = vld [vmem:[#allocation51_spill] sm:$0xff] }
 0x1b5   : > { %1672 = vmatmul.mubr.f32.gmra.mrb[12].mxu0 %v9854_v27  ;;  %2346 = vmatmul.mubr.f32.gmra.mrb[56].mxu1 %v8149_v22  ;;  %v9881_v27 = vand.u32 4294901760, %v9880_v36  ;;  %v9910_v36 = vld [vmem:[#allocation97_spill] sm:$0xff] }
 0x1b6   : > { %1679 = vmatprep.mubr.f32.mxu0 %v9855_v2  ;;  %6014 = vmatpush1.bf16.msra.mxu0 %v6013_v53  ;;  %v9879_v53 = vand.u32 4294901760, %v8376_v48  ;;  %v9882_v2 = vld [vmem:[#allocation58_spill] sm:$0xff] }
 0x1b7   : > { %6015 = vmatprep.subr.bf16.mxu0 %v9617_v61  ;;  %2351 = vmatprep.mubr.f32.mxu1 %v8158_v38  ;;  %v9883_v16 = vand.u32 4294901760, %v9882_v2  ;;  %v9912_v2 = vld [vmem:[#allocation72_spill] sm:$0xff] }
 0x1b9   : > { %1683 = vmatmul.mubr.f32.gmra.mrb[14].mxu0 %v9860_v60  ;;  %2353 = vmatmul.mubr.f32.gmra.mrb[58].mxu1 %v8177_v4  ;;  %v6028_v25 = vpack.c.bf16 %v9883_v16, %v9881_v27  ;;  %v9889_v60 = vand.u32 4294901760, %v9888_v34  ;;  %v9911_v27 = vand.u32 4294901760, %v9910_v36  ;;  %v9913_v16 = vand.u32 4294901760, %v9912_v2  ;;  %v9952_v36 = vld [vmem:[#allocation82_spill] sm:$0xff]  ;;  %v9954_v2 = vld [vmem:[#allocation43_spill] sm:$0xff] }
 0x1ba   : > { %1690 = vmatprep.mubr.f32.mxu0 %v9861_v47  ;;  %6017 = vmatpush1.bf16.msra.mxu0 %v6016_v20  ;;  %v9887_v20 = vand.u32 4294901760, %v9886_v5  ;;  %v9890_v47 = vld [vmem:[#allocation63_spill] sm:$0xff]  ;;  %v9916_v5 = vand.u32 4294901760, %v8472_v21  ;;  %v9918_v34 = vand.u32 4294901760, %v8494_v6  ;;  %v9922_v21 = vand.u32 4294901760, %v8538_v32  ;;  %v9925_v6 = vld [vmem:[#allocation65_spill] sm:$0xff] }
 0x1bb   : > { %6018 = vmatprep.subr.bf16.mxu0 %v9617_v61  ;;  %v9891_v48 = vand.u32 4294901760, %v9890_v47  ;;  %v9920_v47 = vand.u32 4294901760, %v8516_v28  ;;  %v9928_v28 = vld [vmem:[#allocation74_spill] sm:$0xff]  ;;  %v9930_v32 = vld [vmem:[#allocation84_spill] sm:$0xff] }
 0x1bd   : > { %1694 = vmatmul.mubr.f32.gmra.mrb[16].mxu0 %v9866_v31  ;;  %v6031_v15 = vpack.c.bf16 %v9891_v48, %v9889_v60  ;;  %v9896_v31 = vld [vmem:[#allocation66_spill] sm:$0xff]  ;;  %v9919_v60 = vand.u32 4294901760, %v8508_v39  ;;  %v9921_v48 = vand.u32 4294901760, %v8530_v13  ;;  %v9927_v39 = vld [vmem:[#allocation79_spill] sm:$0xff] }
 0x1be   : > { %1701 = vmatprep.mubr.f32.mxu0 %v9867_v40  ;;  %6020 = vmatpush1.bf16.msra.mxu0 %v6019_v54  ;;  %v9895_v54 = vand.u32 4294901760, %v9894_v55  ;;  %v9897_v40 = vand.u32 4294901760, %v9896_v31  ;;  %v9929_v13 = vld [vmem:[#allocation83_spill] sm:$0xff]  ;;  %v9934_v55 = vld [vmem:[#allocation24_spill] sm:$0xff]  ;;  %v9936_v31 = vld [vmem:[#allocation46_spill] sm:$0xff] }
 0x1bf   : > { %6021 = vmatprep.subr.bf16.mxu0 %v9617_v61 }
 0x1c0   : > { %v6034_v63 = vpack.c.bf16 %v9899_v1, %v9897_v40  ;;  %v9937_v40 = vld [vmem:[#allocation25_spill] sm:$0xff]  ;;  %v9939_v1 = vld [vmem:[#allocation86_spill] sm:$0xff] }
 0x1c1   : > { %1705 = vmatmul.mubr.f32.gmra.mrb[18].mxu0 %v9872_v58  ;;  %v9902_v58 = vld [vmem:[#allocation96_spill] sm:$0xff] }
 0x1c2   : > { %1712 = vmatprep.mubr.f32.mxu0 %v9873_v29  ;;  %6023 = vmatpush1.bf16.msra.mxu0 %v6022_v43  ;;  %v9901_v43 = vand.u32 4294901760, %v9900_v56  ;;  %v9903_v29 = vand.u32 4294901760, %v9902_v58  ;;  %v9941_v56 = vld [vmem:[#allocation57_spill] sm:$0xff]  ;;  %v9943_v58 = vld [vmem:[#allocation76_spill] sm:$0xff] }
 0x1c3   : > { %6024 = vmatprep.subr.bf16.mxu0 %v9617_v61 }
 0x1c5   : > { %1716 = vmatmul.mubr.f32.gmra.mrb[20].mxu0 %v9878_v23  ;;  %v9908_v23 = vld [vmem:[#allocation112_spill] sm:$0xff] }
 0x1c6   : > { %1723 = vmatprep.mubr.f32.mxu0 %v9879_v53  ;;  %6026 = vmatpush1.bf16.msra.mxu0 %v6025_v59  ;;  %v6037_v59 = vpack.c.bf16 %v9907_v9, %v9905_v45  ;;  %v9909_v53 = vand.u32 4294901760, %v9908_v23  ;;  %v9946_v45 = vld [vmem:[#allocation78_spill] sm:$0xff]  ;;  %v9950_v23 = vld [vmem:[#allocation69_spill] sm:$0xff] }
 0x1c7   : > { %6027 = vmatprep.subr.bf16.mxu0 %v9617_v61  ;;  %v9948_v9 = vld [vmem:[#allocation90_spill] sm:$0xff] }
 0x1c9   : > { %1727 = vmatmul.mubr.f32.gmra.mrb[22].mxu0 %v9885_v0 }
 0x1ca   : > { %1734 = vmatprep.mubr.f32.mxu0 %v9887_v20  ;;  %6029 = vmatpush1.bf16.msra.mxu0 %v6028_v25  ;;  %v9914_v25 = vld [vmem:[#allocation73_spill] sm:$0xff]  ;;  %v9917_v20 = vand.u32 4294901760, %v8486_v8  ;;  %v9923_v8 = vand.u32 4294901760, %v8550_v26  ;;  %v9932_v26 = vld [vmem:[#allocation44_spill] sm:$0xff] }
 0x1cb   : > { %6030 = vmatprep.subr.bf16.mxu0 %v9617_v61  ;;  %v9915_v35 = vand.u32 4294901760, %v9914_v25  ;;  %v9956_v25 = vld [vmem:[#allocation49_spill] sm:$0xff] }
 0x1cd   : > { %1738 = vmatmul.mubr.f32.gmra.mrb[24].mxu0 %v9893_v52  ;;  %v6040_v0 = vpack.c.bf16 %v9915_v35, %v9913_v16  ;;  %v9931_v52 = vld [vmem:[#allocation80_spill] sm:$0xff]  ;;  %v9955_v16 = vld [vmem:[#allocation26_spill] sm:$0xff] }
 0x1ce   : > { %1745 = vmatprep.mubr.f32.mxu0 %v9895_v54  ;;  %6032 = vmatpush1.bf16.msra.mxu0 %v6031_v15  ;;  %v9924_v15 = vand.u32 4294901760, %v8558_v51  ;;  %v9933_v51 = vld [vmem:[#allocation85_spill] sm:$0xff] }
 0x1cf   : > { %6033 = vmatprep.subr.bf16.mxu0 %v9617_v61  ;;  %v9935_v54 = vld [vmem:[#allocation45_spill] sm:$0xff] }
 0x1d1   : > { %1749 = vmatmul.mubr.f32.gmra.mrb[26].mxu0 %v9901_v43  ;;  %v9942_v43 = vld [vmem:[#allocation87_spill] sm:$0xff] }
 0x1d2   : > { %1756 = vmatprep.mubr.f32.mxu0 %v9903_v29  ;;  %6035 = vmatpush1.bf16.msra.mxu0 %v6034_v63  ;;  %v9940_v63 = vld [vmem:[#allocation75_spill] sm:$0xff]  ;;  %v9944_v29 = vld [vmem:[#allocation60_spill] sm:$0xff] }
 0x1d3   : > { %6036 = vmatprep.subr.bf16.mxu0 %v9617_v61 }
 0x1d5   : > { %1760 = vmatmul.mubr.f32.gmra.mrb[28].mxu0 %v9909_v53  ;;  %v9951_v53 = vld [vmem:[#allocation91_spill] sm:$0xff] }
 0x1d6   : > { %1767 = vmatprep.mubr.f32.mxu0 %v9911_v27  ;;  %6038 = vmatpush1.bf16.msra.mxu0 %v6037_v59  ;;  %v9949_v59 = vld [vmem:[#allocation81_spill] sm:$0xff]  ;;  %v9953_v27 = vld [vmem:[#allocation92_spill] sm:$0xff] }
 0x1d7   : > { %6039 = vmatprep.subr.bf16.mxu0 %v9617_v61 }
 0x1d9   : > { %1771 = vmatmul.mubr.f32.gmra.mrb[30].mxu0 %v9916_v5 }
 0x1da   : > { %1778 = vmatprep.mubr.f32.mxu0 %v9917_v20  ;;  %6041 = vmatpush1.bf16.msra.mxu0 %v6040_v0 }
 0x1db   : > { %6042 = vmatprep.subr.bf16.mxu0 %v9617_v61 }
 0x1dd   : > { %1782 = vmatmul.mubr.f32.gmra.mrb[32].mxu0 %v9918_v34 }
 0x1de   : > { %1789 = vmatprep.mubr.f32.mxu0 %v9919_v60 }
 0x1e1   : > { %1793 = vmatmul.mubr.f32.gmra.mrb[34].mxu0 %v9920_v47 }
 0x1e2   : > { %1800 = vmatprep.mubr.f32.mxu0 %v9921_v48 }
 0x1e5   : > { %1804 = vmatmul.mubr.f32.gmra.mrb[36].mxu0 %v9922_v21 }
 0x1e6   : > { %1811 = vmatprep.mubr.f32.mxu0 %v9923_v8 }
 0x1e9   : > { %1815 = vmatmul.mubr.f32.gmra.mrb[38].mxu0 %v9924_v15 }
 0x1ea   : > { %1981 = vmatprep.mubr.f32.mxu0 %v9925_v6 }
 0x1ed   : > { %1983 = vmatmul.mubr.f32.vlgmr.msra.gmra.mrb[0].mxu0 %v9926_v62 }
 0x1ee   : > { %1988 = vmatprep.mubr.f32.mxu0 %v9927_v39  ;;  %6044 = vmatpush1.bf16.msra.mxu0 %v9928_v28 }
 0x1ef   : > { %6045 = vmatprep.subr.bf16.mxu0 %v9617_v61 }
 0x1f1   : > { %1990 = vmatmul.mubr.f32.gmra.mrb[2].mxu0 %v9929_v13 }
 0x1f2   : > { %1995 = vmatprep.mubr.f32.mxu0 %v9930_v32  ;;  %6047 = vmatpush1.bf16.msra.mxu0 %v9931_v52 }
 0x1f3   : > { %6048 = vmatprep.subr.bf16.mxu0 %v9617_v61 }
 0x1f5   : > { %1997 = vmatmul.mubr.f32.gmra.mrb[4].mxu0 %v9932_v26 }
 0x1f6   : > { %2002 = vmatprep.mubr.f32.mxu0 %v9933_v51  ;;  %6050 = vmatpush1.bf16.msra.mxu0 %v9934_v55 }
 0x1f7   : > { %6051 = vmatprep.subr.bf16.mxu0 %v9617_v61 }
 0x1f9   : > { %2004 = vmatmul.mubr.f32.gmra.mrb[6].mxu0 %v9935_v54 }
 0x1fa   : > { %2009 = vmatprep.mubr.f32.mxu0 %v9936_v31  ;;  %6053 = vmatpush1.bf16.msra.mxu0 %v9937_v40 }
 0x1fb   : > { %6054 = vmatprep.subr.bf16.mxu0 %v9617_v61 }
 0x1fd   : > { %2011 = vmatmul.mubr.f32.gmra.mrb[8].mxu0 %v9938_v41 }
 0x1fe   : > { %2016 = vmatprep.mubr.f32.mxu0 %v9939_v1  ;;  %6056 = vmatpush1.bf16.msra.mxu0 %v9940_v63 }
 0x1ff   : > { %6057 = vmatprep.subr.bf16.mxu0 %v9617_v61 }
 0x201   : > { %2018 = vmatmul.mubr.f32.gmra.mrb[10].mxu0 %v9941_v56 }
 0x202   : > { %2023 = vmatprep.mubr.f32.mxu0 %v9942_v43  ;;  %6059 = vmatpush1.bf16.msra.mxu0 %v9943_v58 }
 0x203   : > { %6060 = vmatprep.subr.bf16.mxu0 %v9617_v61 }
 0x205   : > { %2025 = vmatmul.mubr.f32.gmra.mrb[12].mxu0 %v9944_v29 }
 0x206   : > { %2030 = vmatprep.mubr.f32.mxu0 %v9945_v3  ;;  %6062 = vmatpush1.bf16.msra.mxu0 %v9946_v45 }
 0x207   : > { %6063 = vmatprep.subr.bf16.mxu0 %v9617_v61 }
 0x209   : > { %2032 = vmatmul.mubr.f32.gmra.mrb[14].mxu0 %v9947_v44 }
 0x20a   : > { %2037 = vmatprep.mubr.f32.mxu0 %v9948_v9  ;;  %6065 = vmatpush1.bf16.msra.mxu0 %v9949_v59 }
 0x20b   : > { %6066 = vmatprep.subr.bf16.mxu0 %v9617_v61 }
 0x20d   : > { %2039 = vmatmul.mubr.f32.gmra.mrb[16].mxu0 %v9950_v23 }
 0x20e   : > { %2044 = vmatprep.mubr.f32.mxu0 %v9951_v53  ;;  %6068 = vmatpush1.bf16.msra.mxu0 %v9952_v36 }
 0x20f   : > { %6069 = vmatprep.subr.bf16.mxu0 %v9617_v61 }
 0x211   : > { %2046 = vmatmul.mubr.f32.gmra.mrb[18].mxu0 %v9953_v27 }
 0x212   : > { %2051 = vmatprep.mubr.f32.mxu0 %v7960_v24  ;;  %6071 = vmatpush1.bf16.msra.mxu0 %v9954_v2 }
 0x213   : > { %6072 = vmatprep.subr.bf16.mxu0 %v9617_v61 }
 0x215   : > { %2053 = vmatmul.mubr.f32.gmra.mrb[20].mxu0 %v7973_v42 }
 0x216   : > { %2058 = vmatprep.mubr.f32.mxu0 %v7982_v7  ;;  %6074 = vmatpush1.bf16.msra.mxu0 %v9955_v16  ;;  %v9957_v7 = vld [vmem:[#allocation55_spill] sm:$0xff] }
 0x217   : > { %6075 = vmatprep.subr.bf16.mxu0 %v9617_v61  ;;  %v8807_v35 = vpop.f32.mrb[0].mxu1 }
 0x218   : > { %v542_v24 = vpop.f32.mrb[1].mxu1 }
 0x219   : > { %2060 = vmatmul.mubr.f32.gmra.mrb[22].mxu0 %v7995_v12  ;;  %v374_v24 = vld [vmem:[#allocation6] sm:$0xff] }
 0x21a   : > { %2065 = vmatprep.mubr.f32.mxu0 %v8004_v49  ;;  %6077 = vmatpush1.bf16.msra.mxu0 %v9956_v25  ;;  %v9958_v49 = vld [vmem:[#allocation59_spill] sm:$0xff] }
 0x21b   : > { %6078 = vmatprep.subr.bf16.mxu0 %v9617_v61 }
 0x21c   : > { %v8813_v42 = vpop.f32.mrb[2].mxu1 }
 0x21d   : > { %2067 = vmatmul.mubr.f32.gmra.mrb[24].mxu0 %v8017_v19  ;;  %v557_v12 = vpop.f32.mrb[3].mxu1 }
 0x21e   : > { %2072 = vmatprep.mubr.f32.mxu0 %v8026_v11  ;;  %6080 = vmatpush1.bf16.msra.mxu0 %v9957_v7  ;;  %v9959_v11 = vld [vmem:[#allocation64_spill] sm:$0xff]  ;;  %v2360_v7 = vsel %vm2358_vm0, %v374_v24, 0 }
 0x21f   : > { %6081 = vmatprep.subr.bf16.mxu0 %v9617_v61  ;;  %v8901_v12 = vand.u32 4294901760, %v2360_v7 }
 0x220   : > { %v8820_v0 = vpop.f32.mrb[4].mxu1 }
 0x221   : > { %2074 = vmatmul.mubr.f32.gmra.mrb[26].mxu0 %v8039_v57  ;;  %v572_v19 = vpop.f32.mrb[5].mxu1 }
 0x222   : > { %2079 = vmatprep.mubr.f32.mxu0 %v8048_v33  ;;  %6083 = vmatpush1.bf16.msra.mxu0 %v9958_v49  ;;  %v9960_v33 = vld [vmem:[#allocation68_spill] sm:$0xff]  ;;  %v8904_v49 = vsub.f32 %v2360_v7, %v8901_v12 }
 0x223   : > { %6084 = vmatprep.subr.bf16.mxu0 %v9617_v61 }
 0x224   : > { %v8826_v5 = vpop.f32.mrb[6].mxu1  ;;  %v8907_v19 = vand.u32 4294901760, %v8904_v49 }
 0x225   : > { %2081 = vmatmul.mubr.f32.gmra.mrb[28].mxu0 %v8061_v17  ;;  %v587_v57 = vpop.f32.mrb[7].mxu1 }
 0x226   : > { %2086 = vmatprep.mubr.f32.mxu0 %v8070_v18  ;;  %6086 = vmatpush1.bf16.msra.mxu0 %v9959_v11  ;;  %v2437_v11 = vsub.f32 %v8904_v49, %v8907_v19 }
 0x227   : > { %6087 = vmatprep.subr.bf16.mxu0 %v9617_v61 }
 0x228   : > { %v8831_v20 = vpop.f32.mrb[8].mxu1  ;;  %v8911_v57 = vand.u32 4294901760, %v2437_v11 }
 0x229   : > { %2088 = vmatmul.mubr.f32.gmra.mrb[30].mxu0 %v8083_v14  ;;  %v602_v34 = vpop.f32.mrb[9].mxu1 }
 0x22a   : > { %2093 = vmatprep.mubr.f32.mxu0 %v9799_v46  ;;  %6089 = vmatpush1.bf16.msra.mxu0 %v9960_v33 }
 0x22b   : > { %5480 = vmatprep.mubr.f32.mxu1 %v8911_v57 }
 0x22c   : > { %v8835_v17 = vpop.f32.mrb[10].mxu1 }
 0x22d   : > { %2095 = vmatmul.mubr.f32.gmra.mrb[32].mxu0 %v9801_v50  ;;  %v617_v18 = vpop.f32.mrb[11].mxu1 }
 0x22e   : > { %2100 = vmatprep.mubr.f32.mxu0 %v9804_v37 }
 0x230   : > { %v8839_v61 = vpop.f32.mrb[12].mxu1 }
 0x231   : > { %2102 = vmatmul.mubr.f32.gmra.mrb[34].mxu0 %v9806_v30  ;;  %v632_v14 = vpop.f32.mrb[13].mxu1 }
 0x232   : > { %2107 = vmatprep.mubr.f32.mxu0 %v9809_v10 }
 0x234   : > { %v8843_v46 = vpop.f32.mrb[14].mxu1 }
 0x235   : > { %2109 = vmatmul.mubr.f32.gmra.mrb[36].mxu0 %v8149_v22  ;;  %v647_v60 = vpop.f32.mrb[15].mxu1 }
 0x236   : > { %2114 = vmatprep.mubr.f32.mxu0 %v8158_v38 }
 0x238   : > { %v8847_v50 = vpop.f32.mrb[16].mxu1 }
 0x239   : > { %2116 = vmatmul.mubr.f32.gmra.mrb[38].mxu0 %v8177_v4  ;;  %v662_v37 = vpop.f32.mrb[17].mxu1 }
 0x23a   : > { %2218 = vmatprep.mubr.f32.mxu0 %v9925_v6 }
 0x23c   : > { %v8851_v30 = vpop.f32.mrb[18].mxu1 }
 0x23d   : > { %2220 = vmatmul.mubr.f32.vlgmr.msra.gmra.mrb[0].mxu0 %v9926_v62  ;;  %v677_v10 = vpop.f32.mrb[19].mxu1 }
 0x23e   : > { %2225 = vmatprep.mubr.f32.mxu0 %v9927_v39 }
 0x240   : > { %v8855_v22 = vpop.f32.mrb[20].mxu1 }
 0x241   : > { %2227 = vmatmul.mubr.f32.gmra.mrb[2].mxu0 %v9929_v13  ;;  %v692_v38 = vpop.f32.mrb[21].mxu1 }
 0x242   : > { %2232 = vmatprep.mubr.f32.mxu0 %v9930_v32 }
 0x244   : > { %v8859_v4 = vpop.f32.mrb[22].mxu1 }
 0x245   : > { %2234 = vmatmul.mubr.f32.gmra.mrb[4].mxu0 %v9932_v26  ;;  %v707_v47 = vpop.f32.mrb[23].mxu1 }
 0x246   : > { %2239 = vmatprep.mubr.f32.mxu0 %v9933_v51 }
 0x248   : > { %v8863_v48 = vpop.f32.mrb[24].mxu1 }
 0x249   : > { %2241 = vmatmul.mubr.f32.gmra.mrb[6].mxu0 %v9935_v54  ;;  %v722_v21 = vpop.f32.mrb[25].mxu1 }
 0x24a   : > { %2246 = vmatprep.mubr.f32.mxu0 %v9936_v31 }
 0x24c   : > { %v8867_v8 = vpop.f32.mrb[26].mxu1 }
 0x24d   : > { %2248 = vmatmul.mubr.f32.gmra.mrb[8].mxu0 %v9938_v41  ;;  %v737_v15 = vpop.f32.mrb[27].mxu1 }
 0x24e   : > { %2253 = vmatprep.mubr.f32.mxu0 %v9939_v1 }
 0x250   : > { %v8871_v6 = vpop.f32.mrb[28].mxu1 }
 0x251   : > { %2255 = vmatmul.mubr.f32.gmra.mrb[10].mxu0 %v9941_v56  ;;  %v752_v62 = vpop.f32.mrb[29].mxu1 }
 0x252   : > { %2260 = vmatprep.mubr.f32.mxu0 %v9942_v43 }
 0x254   : > { %v8875_v39 = vpop.f32.mrb[30].mxu1 }
 0x255   : > { %2262 = vmatmul.mubr.f32.gmra.mrb[12].mxu0 %v9944_v29  ;;  %v767_v28 = vpop.f32.mrb[31].mxu1 }
 0x256   : > { %2267 = vmatprep.mubr.f32.mxu0 %v9945_v3 }
 0x258   : > { %v8879_v13 = vpop.f32.mrb[32].mxu1 }
 0x259   : > { %2269 = vmatmul.mubr.f32.gmra.mrb[14].mxu0 %v9947_v44  ;;  %v782_v32 = vpop.f32.mrb[33].mxu1 }
 0x25a   : > { %2274 = vmatprep.mubr.f32.mxu0 %v9948_v9 }
 0x25c   : > { %v8883_v52 = vpop.f32.mrb[34].mxu1 }
 0x25d   : > { %2276 = vmatmul.mubr.f32.gmra.mrb[16].mxu0 %v9950_v23  ;;  %v797_v26 = vpop.f32.mrb[35].mxu1 }
 0x25e   : > { %2281 = vmatprep.mubr.f32.mxu0 %v9951_v53 }
 0x260   : > { %v8886_v51 = vpop.f32.mrb[36].mxu1 }
 0x261   : > { %2283 = vmatmul.mubr.f32.gmra.mrb[18].mxu0 %v9953_v27  ;;  %v812_v55 = vpop.f32.mrb[37].mxu1 }
 0x264   : > { %v8888_v54 = vpop.f32.mrb[38].mxu1 }
 0x265   : > { %v827_v31 = vpop.f32.mrb[39].mxu1 }
 0x268   : > { %v2291_v40 = vpop.f32.mrb[40].mxu1 }
 0x269   : > { %v2293_v41 = vpop.f32.mrb[41].mxu1 }
 0x26c   : > { %v2298_v1 = vpop.f32.mrb[42].mxu1 }
 0x26d   : > { %v2300_v63 = vpop.f32.mrb[43].mxu1 }
 0x270   : > { %v2305_v56 = vpop.f32.mrb[44].mxu1 }
 0x271   : > { %v2307_v43 = vpop.f32.mrb[45].mxu1 }
 0x274   : > { %v2312_v58 = vpop.f32.mrb[46].mxu1 }
 0x275   : > { %v2314_v29 = vpop.f32.mrb[47].mxu1 }
 0x278   : > { %v2319_v3 = vpop.f32.mrb[48].mxu1 }
 0x279   : > { %v2321_v45 = vpop.f32.mrb[49].mxu1 }
 0x27c   : > { %v8890_v44 = vpop.f32.mrb[50].mxu1 }
 0x27d   : > { %v2328_v9 = vpop.f32.mrb[51].mxu1 }
 0x280   : > { %v8892_v59 = vpop.f32.mrb[52].mxu1 }
 0x281   : > { %v2335_v23 = vpop.f32.mrb[53].mxu1 }
 0x284   : > { %v8894_v53 = vpop.f32.mrb[54].mxu1 }
 0x285   : > { %v2342_v36 = vpop.f32.mrb[55].mxu1 }
 0x288   : > { %v8896_v27 = vpop.f32.mrb[56].mxu1 }
 0x289   : > { %v2349_v2 = vpop.f32.mrb[57].mxu1 }
 0x28c   : > { %v8898_v16 = vpop.f32.mrb[58].mxu1 }
 0x28d   : > { %v2356_v25 = vpop.f32.mrb[59].mxu1 }
 0x2e8   : > { %v2054_v33 = vpop.f32.mrb[20].mxu0 }
 0x2e9   : > { %v6372_v34 = vadd.f32 %v2054_v33, %v8855_v22  ;;  %v2056_v18 = vpop.f32.mrb[21].mxu0 }
 0x2eb   : > { %v6373_v14 = vadd.f32 %v6372_v34, %v2291_v40 }
 0x2ec   : > { %v2061_v60 = vpop.f32.mrb[22].mxu0 }
 0x2ed   : > { %v3428_v37 = vand.u32 4294901760, %v6373_v14  ;;  %v6374_v10 = vadd.f32 %v2061_v60, %v8859_v4  ;;  %v2063_v38 = vpop.f32.mrb[23].mxu0 }
 0x2ef   : > { %v3526_v47 = vsub.f32 %v6373_v14, %v3428_v37  ;;  %v6375_v21 = vadd.f32 %v6374_v10, %v2298_v1 }
 0x2f0   : > { %v2068_v15 = vpop.f32.mrb[24].mxu0 }
 0x2f1   : > { %v3527_v62 = vand.u32 4294901760, %v3526_v47  ;;  %v3431_v28 = vand.u32 4294901760, %v6375_v21  ;;  %v6376_v32 = vadd.f32 %v2068_v15, %v8863_v48  ;;  %v2070_v26 = vpop.f32.mrb[25].mxu0 }
 0x2f3   : > { %v8917_v55 = vpack.c.bf16 %v3431_v28, %v3428_v37  ;;  %v3533_v31 = vsub.f32 %v6375_v21, %v3431_v28  ;;  %v6377_v41 = vadd.f32 %v6376_v32, %v2305_v56  ;;  %v3528_v63 = vsub.f32 %v3526_v47, %v3527_v62 }
 0x2f4   : > { %v2075_v22 = vpop.f32.mrb[26].mxu0 }
 0x2f5   : > { %v3534_v40 = vand.u32 4294901760, %v3533_v31  ;;  %v3950_v43 = vand.u32 4294901760, %v6377_v41  ;;  %v6378_v29 = vadd.f32 %v2075_v22, %v8867_v8  ;;  %v2077_v4 = vpop.f32.mrb[27].mxu0  ;;  %v8920_v45 = vpack.c.bf16 %v3533_v31, %v3526_v47 }
 0x2f6   : > { %v3529_v2 = vand.u32 4294901760, %v3528_v63 }
 0x2f7   : > { %v4040_v1 = vsub.f32 %v6377_v41, %v3950_v43  ;;  %v6379_v9 = vadd.f32 %v6378_v29, %v2312_v58  ;;  %v3535_v23 = vsub.f32 %v3533_v31, %v3534_v40  ;;  %v8922_v36 = vpack.c.bf16 %v3534_v40, %v3527_v62 }
 0x2f8   : > { %v2082_v48 = vpop.f32.mrb[28].mxu0 }
 0x2f9   : > { %v4041_v25 = vand.u32 4294901760, %v4040_v1  ;;  %v3953_v24 = vand.u32 4294901760, %v6379_v9  ;;  %v6380_v56 = vadd.f32 %v2082_v48, %v8871_v6  ;;  %v2084_v7 = vpop.f32.mrb[29].mxu0  ;;  %v3536_v11 = vand.u32 4294901760, %v3535_v23 }
 0x2fb   : > { %v8925_v33 = vpack.c.bf16 %v3953_v24, %v3950_v43  ;;  %v4047_v34 = vsub.f32 %v6379_v9, %v3953_v24  ;;  %v6381_v8 = vadd.f32 %v6380_v56, %v2319_v3  ;;  %v8927_v18 = vpack.c.bf16 %v3536_v11, %v3529_v2 }
 0x2fc   : > { %v2089_v14 = vpop.f32.mrb[30].mxu0  ;;  %v4042_v60 = vsub.f32 %v4040_v1, %v4041_v25 }
 0x2fd   : > { %v4048_v58 = vand.u32 4294901760, %v4047_v34  ;;  %v3956_v37 = vand.u32 4294901760, %v6381_v8  ;;  %v6382_v10 = vadd.f32 %v2089_v14, %v8875_v39  ;;  %v2091_v38 = vpop.f32.mrb[31].mxu0  ;;  %v8930_v47 = vpack.c.bf16 %v4047_v34, %v4040_v1 }
 0x2fe   : > { %v4043_v32 = vand.u32 4294901760, %v4042_v60 }
 0x2ff   : > { %v4054_v21 = vsub.f32 %v6381_v8, %v3956_v37  ;;  %v6383_v6 = vadd.f32 %v6382_v10, %v8890_v44  ;;  %v4049_v15 = vsub.f32 %v4047_v34, %v4048_v58  ;;  %v8933_v62 = vpack.c.bf16 %v4048_v58, %v4041_v25 }
 0x300   : > { %v2096_v28 = vpop.f32.mrb[32].mxu0 }
 0x301   : > { %v4055_v3 = vand.u32 4294901760, %v4054_v21  ;;  %v3959_v26 = vand.u32 4294901760, %v6383_v6  ;;  %v6384_v31 = vadd.f32 %v2096_v28, %v8879_v13  ;;  %v2098_v41 = vpop.f32.mrb[33].mxu0  ;;  %v4050_v22 = vand.u32 4294901760, %v4049_v15 }
 0x303   : > { %v8936_v63 = vpack.c.bf16 %v3959_v26, %v3956_v37  ;;  %v4061_v39 = vsub.f32 %v6383_v6, %v3959_v26  ;;  %v6385_v40 = vadd.f32 %v6384_v31, %v8892_v59  ;;  %v8939_v43 = vpack.c.bf16 %v4050_v22, %v4043_v32  ;;  %v375_v37 = vld [vmem:[#allocation6 + $0x8] sm:$0xff] }
 0x304   : > { %v2103_v29 = vpop.f32.mrb[34].mxu0  ;;  %v4056_v44 = vsub.f32 %v4054_v21, %v4055_v3 }
 0x305   : > { %v4062_v4 = vand.u32 4294901760, %v4061_v39  ;;  %v4478_v1 = vand.u32 4294901760, %v6385_v40  ;;  %v6386_v9 = vadd.f32 %v2103_v29, %v8883_v52  ;;  %v2105_v23 = vpop.f32.mrb[35].mxu0  ;;  %v8942_v48 = vpack.c.bf16 %v4061_v39, %v4054_v21 }
 0x306   : > { %v4057_v7 = vand.u32 4294901760, %v4056_v44 }
 0x307   : > { %v4568_v2 = vsub.f32 %v6385_v40, %v4478_v1  ;;  %v6387_v13 = vadd.f32 %v6386_v9, %v8894_v53  ;;  %v4063_v25 = vsub.f32 %v4061_v39, %v4062_v4  ;;  %v8945_v24 = vpack.c.bf16 %v4062_v4, %v4055_v3 }
 0x308   : > { %v2110_v56 = vpop.f32.mrb[36].mxu0 }
 0x309   : > { %v4569_v59 = vand.u32 4294901760, %v4568_v2  ;;  %v4481_v11 = vand.u32 4294901760, %v6387_v13  ;;  %v6388_v34 = vadd.f32 %v2110_v56, %v8886_v51  ;;  %v2112_v8 = vpop.f32.mrb[37].mxu0  ;;  %v4064_v14 = vand.u32 4294901760, %v4063_v25 }
 0x30a   : > { %v2363_v51 = vsel %vm2358_vm0, %v375_v37, 0 }
 0x30b   : > { %v8948_v60 = vpack.c.bf16 %v4481_v11, %v4478_v1  ;;  %v4575_v52 = vsub.f32 %v6387_v13, %v4481_v11  ;;  %v6389_v58 = vadd.f32 %v6388_v34, %v8896_v27  ;;  %v8951_v10 = vpack.c.bf16 %v4064_v14, %v4057_v7 }
 0x30c   : > { %v2117_v53 = vpop.f32.mrb[38].mxu0  ;;  %v4570_v38 = vsub.f32 %v4568_v2, %v4569_v59 }
 0x30d   : > { %v4576_v21 = vand.u32 4294901760, %v4575_v52  ;;  %v4484_v6 = vand.u32 4294901760, %v6389_v58  ;;  %v6390_v15 = vadd.f32 %v2117_v53, %v8888_v54  ;;  %v2119_v28 = vpop.f32.mrb[39].mxu0  ;;  %v8954_v32 = vpack.c.bf16 %v4575_v52, %v4568_v2 }
 0x30e   : > { %v4571_v29 = vand.u32 4294901760, %v4570_v38  ;;  %v8961_v54 = vand.u32 4294901760, %v2363_v51 }
 0x30f   : > { %v4582_v3 = vsub.f32 %v6389_v58, %v4484_v6  ;;  %v6391_v26 = vadd.f32 %v6390_v15, %v8898_v16  ;;  %v4577_v31 = vsub.f32 %v4575_v52, %v4576_v21  ;;  %v8958_v41 = vpack.c.bf16 %v4576_v21, %v4569_v59 }
 0x310   : > { %v2221_v27 = vpop.f32.mrb[0].mxu0 }
 0x311   : > { %v4487_v22 = vand.u32 4294901760, %v6391_v26  ;;  %v6362_v39 = vadd.f32 %v2221_v27, %v8807_v35  ;;  %v2223_v40 = vpop.f32.mrb[1].mxu0  ;;  %v4578_v44 = vand.u32 4294901760, %v4577_v31  ;;  %v4583_v4 = vand.u32 4294901760, %v4582_v3 }
 0x312   : > { %v8971_v35 = vsub.f32 %v2363_v51, %v8961_v54 }
 0x313   : > { %v8963_v1 = vpack.c.bf16 %v4487_v22, %v4484_v6  ;;  %v4589_v9 = vsub.f32 %v6391_v26, %v4487_v22  ;;  %v2366_v23 = vand.u32 4294901760, %v6362_v39  ;;  %v8965_v2 = vpack.c.bf16 %v4578_v44, %v4571_v29 }
 0x314   : > { %v2228_v16 = vpop.f32.mrb[2].mxu0  ;;  %v4584_v11 = vsub.f32 %v4582_v3, %v4583_v4 }
 0x315   : > { %v4590_v13 = vand.u32 4294901760, %v4589_v9  ;;  %v2456_v25 = vsub.f32 %v6362_v39, %v2366_v23  ;;  %v6363_v56 = vadd.f32 %v2228_v16, %v8813_v42  ;;  %v2230_v7 = vpop.f32.mrb[3].mxu0  ;;  %v8968_v59 = vpack.c.bf16 %v4589_v9, %v4582_v3 }
 0x316   : > { %v8979_v42 = vand.u32 4294901760, %v8971_v35  ;;  %v4585_v6 = vand.u32 4294901760, %v4584_v11 }
 0x317   : > { %v2457_v34 = vand.u32 4294901760, %v2456_v25  ;;  %v2369_v8 = vand.u32 4294901760, %v6363_v56  ;;  %v4591_v14 = vsub.f32 %v4589_v9, %v4590_v13  ;;  %v8973_v52 = vpack.c.bf16 %v4590_v13, %v4583_v4 }
 0x318   : > { %v2235_v58 = vpop.f32.mrb[4].mxu0  ;;  %v2447_v44 = vsub.f32 %v8971_v35, %v8979_v42 }
 0x319   : > { %v8975_v37 = vpack.c.bf16 %v2369_v8, %v2366_v23  ;;  %v2463_v53 = vsub.f32 %v6363_v56, %v2369_v8  ;;  %v6364_v38 = vadd.f32 %v2235_v58, %v8820_v0  ;;  %v2237_v21 = vpop.f32.mrb[5].mxu0  ;;  %v4592_v15 = vand.u32 4294901760, %v4591_v14 }
 0x31a   : > { %v2458_v3 = vsub.f32 %v2456_v25, %v2457_v34 }
 0x31b   : > { %v2464_v28 = vand.u32 4294901760, %v2463_v53  ;;  %v2372_v51 = vand.u32 4294901760, %v6364_v38  ;;  %6091 = vmatprep.subr.bf16.mxu1 %v8975_v37  ;;  %v8982_v26 = vpack.c.bf16 %v2463_v53, %v2456_v25  ;;  %v8985_v27 = vpack.c.bf16 %v4592_v15, %v4585_v6 }
 0x31c   : > { %v2242_v31 = vpop.f32.mrb[6].mxu0  ;;  %6093 = vmatpush3.bf16.msra.mxu1 %v8975_v37  ;;  %v2459_v23 = vand.u32 4294901760, %v2458_v3 }
 0x31d   : > { %v2470_v22 = vsub.f32 %v6364_v38, %v2372_v51  ;;  %v6365_v0 = vadd.f32 %v2242_v31, %v8826_v5  ;;  %v2244_v39 = vpop.f32.mrb[7].mxu0  ;;  %v2465_v40 = vsub.f32 %v2463_v53, %v2464_v28  ;;  %v8988_v29 = vpack.c.bf16 %v2464_v28, %v2457_v34 }
 0x31e   : > { %v8995_v5 = vand.u32 4294901760, %v2447_v44 }
 0x31f   : > { %v2471_v4 = vand.u32 4294901760, %v2470_v22  ;;  %v2375_v9 = vand.u32 4294901760, %v6365_v0  ;;  %v2466_v16 = vand.u32 4294901760, %v2465_v40 }
 0x320   : > { %v2249_v13 = vpop.f32.mrb[8].mxu0 }
 0x321   : > { %v8992_v25 = vpack.c.bf16 %v2375_v9, %v2372_v51  ;;  %v2477_v56 = vsub.f32 %v6365_v0, %v2375_v9  ;;  %v6366_v7 = vadd.f32 %v2249_v13, %v8831_v20  ;;  %v2251_v11 = vpop.f32.mrb[9].mxu0  ;;  %v6098_v8 = vpack.c.bf16 %v2466_v16, %v2459_v23 }
 0x322   : > { %v2472_v58 = vsub.f32 %v2470_v22, %v2471_v4 }
 0x323   : > { %v2478_v14 = vand.u32 4294901760, %v2477_v56  ;;  %v2894_v34 = vand.u32 4294901760, %v6366_v7  ;;  %6095 = vmatprep.subr.bf16.mxu1 %v8992_v25  ;;  %v6110_v53 = vpack.c.bf16 %v2477_v56, %v2470_v22 }
 0x324   : > { %v2256_v38 = vpop.f32.mrb[10].mxu0  ;;  %6097 = vmatpush3.bf16.msra.mxu1 %v8992_v25  ;;  %v2473_v31 = vand.u32 4294901760, %v2472_v58 }
 0x325   : > { %v2984_v21 = vsub.f32 %v6366_v7, %v2894_v34  ;;  %v6367_v6 = vadd.f32 %v2256_v38, %v8835_v17  ;;  %v2258_v15 = vpop.f32.mrb[11].mxu0  ;;  %6099 = vmatprep.subr.bf16.mxu1 %v6098_v8  ;;  %v2479_v28 = vsub.f32 %v2477_v56, %v2478_v14  ;;  %v9000_v20 = vpack.c.bf16 %v2478_v14, %v2471_v4 }
 0x327   : > { %v2985_v51 = vand.u32 4294901760, %v2984_v21  ;;  %v2897_v3 = vand.u32 4294901760, %v6367_v6  ;;  %5481 = vmatmul.mubr.f32.vlgmr.msra.gmra.mrb[60].mxu1 %v8995_v5  ;;  %v2480_v0 = vand.u32 4294901760, %v2479_v28 }
 0x328   : > { %v2263_v39 = vpop.f32.mrb[12].mxu0  ;;  %6101 = vmatpush3.bf16.msra.mxu1 %v6098_v8  ;;  %5491 = vmatprep.mubr.f32.mxu1 %v8901_v12 }
 0x329   : > { %v9004_v22 = vpack.c.bf16 %v2897_v3, %v2894_v34  ;;  %v2991_v40 = vsub.f32 %v6367_v6, %v2897_v3  ;;  %v6368_v17 = vadd.f32 %v2263_v39, %v8839_v61  ;;  %v2265_v44 = vpop.f32.mrb[13].mxu0  ;;  %v6102_v9 = vpack.c.bf16 %v2480_v0, %v2473_v31 }
 0x32a   : > { %v2986_v16 = vsub.f32 %v2984_v21, %v2985_v51 }
 0x32b   : > { %v2992_v23 = vand.u32 4294901760, %v2991_v40  ;;  %v2900_v4 = vand.u32 4294901760, %v6368_v17  ;;  %6103 = vmatprep.subr.bf16.mxu1 %v6102_v9  ;;  %v9007_v13 = vpack.c.bf16 %v2991_v40, %v2984_v21 }
 0x32c   : > { %v2270_v56 = vpop.f32.mrb[14].mxu0  ;;  %6105 = vmatpush3.bf16.msra.mxu1 %v6102_v9  ;;  %v2987_v38 = vand.u32 4294901760, %v2986_v16 }
 0x32d   : > { %v2998_v7 = vsub.f32 %v6368_v17, %v2900_v4  ;;  %v6369_v11 = vadd.f32 %v2270_v56, %v8843_v46  ;;  %v2272_v8 = vpop.f32.mrb[15].mxu0  ;;  %6107 = vmatprep.subr.bf16.mxu1 %v8982_v26  ;;  %v2993_v14 = vsub.f32 %v2991_v40, %v2992_v23  ;;  %v9011_v34 = vpack.c.bf16 %v2992_v23, %v2985_v51 }
 0x32f   : > { %v2999_v61 = vand.u32 4294901760, %v2998_v7  ;;  %v2903_v58 = vand.u32 4294901760, %v6369_v11  ;;  %5492 = vmatmul.mubr.f32.vlgmr.msra.gmra.mrb[60].mxu1 %v8961_v54  ;;  %v2994_v6 = vand.u32 4294901760, %v2993_v14 }
 0x330   : > { %v2277_v15 = vpop.f32.mrb[16].mxu0  ;;  %6109 = vmatpush3.bf16.msra.mxu1 %v8982_v26  ;;  %5502 = vmatprep.mubr.f32.mxu1 %v8904_v49 }
 0x331   : > { %v9016_v21 = vpack.c.bf16 %v2903_v58, %v2900_v4  ;;  %v3005_v46 = vsub.f32 %v6369_v11, %v2903_v58  ;;  %v6370_v28 = vadd.f32 %v2277_v15, %v8847_v50  ;;  %v2279_v3 = vpop.f32.mrb[17].mxu0  ;;  %6111 = vmatprep.subr.bf16.mxu1 %v6110_v53  ;;  %v6146_v51 = vpack.c.bf16 %v2994_v6, %v2987_v38 }
 0x332   : > { %v3000_v39 = vsub.f32 %v2998_v7, %v2999_v61 }
 0x333   : > { %v3006_v31 = vand.u32 4294901760, %v3005_v46  ;;  %v3422_v0 = vand.u32 4294901760, %v6370_v28  ;;  %v6158_v40 = vpack.c.bf16 %v3005_v46, %v2998_v7 }
 0x334   : > { %v2284_v17 = vpop.f32.mrb[18].mxu0  ;;  %6113 = vmatpush3.bf16.msra.mxu1 %v6110_v53  ;;  %v3001_v50 = vand.u32 4294901760, %v3000_v39 }
 0x335   : > { %v3512_v44 = vsub.f32 %v6370_v28, %v3422_v0  ;;  %v6371_v9 = vadd.f32 %v2284_v17, %v8851_v30  ;;  %v2286_v26 = vpop.f32.mrb[19].mxu0  ;;  %6115 = vmatprep.subr.bf16.mxu1 %v8975_v37  ;;  %v3007_v23 = vsub.f32 %v3005_v46, %v3006_v31  ;;  %v6174_v4 = vpack.c.bf16 %v3006_v31, %v2999_v61 }
 0x337   : > { %v3513_v16 = vand.u32 4294901760, %v3512_v44  ;;  %v3425_v56 = vand.u32 4294901760, %v6371_v9  ;;  %5503 = vmatmul.mubr.f32.vlgmr.msra.gmra.mrb[60].mxu1 %v8971_v35  ;;  %v3008_v11 = vand.u32 4294901760, %v3007_v23 }
 0x338   : > { %6117 = vmatpush3.bf16.msra.mxu1 %v8975_v37  ;;  %5513 = vmatprep.mubr.f32.mxu1 %v8907_v19 }
 0x339   : > { %v9024_v7 = vpack.c.bf16 %v3425_v56, %v3422_v0  ;;  %v3519_v53 = vsub.f32 %v6371_v9, %v3425_v56  ;;  %6119 = vmatprep.subr.bf16.mxu1 %v8992_v25  ;;  %v6150_v30 = vpack.c.bf16 %v3008_v11, %v3001_v50  ;;  %v3514_v14 = vsub.f32 %v3512_v44, %v3513_v16 }
 0x33b   : > { %v3520_v8 = vand.u32 4294901760, %v3519_v53  ;;  %v9027_v58 = vpack.c.bf16 %v3519_v53, %v3512_v44  ;;  %v3515_v6 = vand.u32 4294901760, %v3514_v14 }
 0x33c   : > { %6121 = vmatpush3.bf16.msra.mxu1 %v8992_v25 }
 0x33d   : > { %6123 = vmatprep.subr.bf16.mxu1 %v8988_v29  ;;  %v3521_v61 = vsub.f32 %v3519_v53, %v3520_v8  ;;  %v9031_v38 = vpack.c.bf16 %v3520_v8, %v3513_v16 }
 0x33f   : > { %5514 = vmatmul.mubr.f32.vlgmr.msra.gmra.mrb[60].mxu1 %v8979_v42  ;;  %v3522_v15 = vand.u32 4294901760, %v3521_v61 }
 0x340   : > { %6125 = vmatpush3.bf16.msra.mxu1 %v8988_v29  ;;  %5524 = vmatprep.mubr.f32.mxu1 %v8901_v12 }
 0x341   : > { %6127 = vmatprep.subr.bf16.mxu1 %v9000_v20  ;;  %v6194_v46 = vpack.c.bf16 %v3522_v15, %v3515_v6 }
 0x344   : > { %6129 = vmatpush3.bf16.msra.mxu1 %v9000_v20 }
 0x345   : > { %6131 = vmatprep.subr.bf16.mxu1 %v8975_v37 }
 0x347   : > { %5525 = vmatmul.mubr.f32.vlgmr.msra.gmra.mrb[60].mxu1 %v8961_v54 }
 0x348   : > { %6133 = vmatpush3.bf16.msra.mxu1 %v8975_v37  ;;  %5535 = vmatprep.mubr.f32.mxu1 %v8901_v12 }
 0x349   : > { %6135 = vmatprep.subr.bf16.mxu1 %v8992_v25 }
 0x34c   : > { %6137 = vmatpush3.bf16.msra.mxu1 %v8992_v25 }
 0x34d   : > { %6139 = vmatprep.subr.bf16.mxu1 %v9004_v22 }
 0x34f   : > { %5536 = vmatmul.mubr.f32.vlgmr.msra.gmra.mrb[60].mxu1 %v8961_v54 }
 0x350   : > { %6141 = vmatpush3.bf16.msra.mxu1 %v9004_v22  ;;  %5546 = vmatprep.mubr.f32.mxu1 %v8911_v57 }
 0x351   : > { %6143 = vmatprep.subr.bf16.mxu1 %v9016_v21 }
 0x354   : > { %6145 = vmatpush3.bf16.msra.mxu1 %v9016_v21 }
 0x355   : > { %6147 = vmatprep.subr.bf16.mxu1 %v6146_v51 }
 0x357   : > { %5547 = vmatmul.mubr.f32.vlgmr.msra.gmra.mrb[62].mxu1 %v8995_v5 }
 0x358   : > { %6149 = vmatpush3.bf16.msra.mxu1 %v6146_v51  ;;  %5557 = vmatprep.mubr.f32.mxu1 %v8901_v12  ;;  %v5053_v51 = vlaneseq }
 0x359   : > { %6151 = vmatprep.subr.bf16.mxu1 %v6150_v30 }
 0x35a   : > { %v5054_v31 = vshrl.u32 %v5053_v51, 7 }
 0x35c   : > { %6153 = vmatpush3.bf16.msra.mxu1 %v6150_v30  ;;  %v5055_v39 = vadd.s32 8, %v5054_v31  ;;  %vm5058_vm3 = vcmp.ge.s32.totalorder %v5054_v31, 5 }
 0x35d   : > { %6155 = vmatprep.subr.bf16.mxu1 %v9007_v13 }
 0x35e   : > { %vm5061_vm1 = vcmp.lt.s32.totalorder %v5055_v39, 11 }
 0x35f   : > { %5558 = vmatmul.mubr.f32.vlgmr.msra.gmra.mrb[62].mxu1 %v8961_v54 }
 0x360   : > { %6157 = vmatpush3.bf16.msra.mxu1 %v9007_v13  ;;  %5568 = vmatprep.mubr.f32.mxu1 %v8904_v49 }
 0x361   : > { %6159 = vmatprep.subr.bf16.mxu1 %v6158_v40 }
 0x364   : > { %6161 = vmatpush3.bf16.msra.mxu1 %v6158_v40  ;;  %v5057_v40 = vand.u32 127, %v5053_v51 }
 0x365   : > { %6163 = vmatprep.subr.bf16.mxu1 %v9004_v22 }
 0x366   : > { %vm5064_vm2 = vcmp.ge.s32.totalorder %v5057_v40, 5  ;;  %vm5067_vm5 = vcmp.lt.s32.totalorder %v5057_v40, 11 }
 0x367   : > { %5569 = vmatmul.mubr.f32.vlgmr.msra.gmra.mrb[62].mxu1 %v8971_v35  ;;  %vm5066_vm4 = vmand %vm5061_vm1, %vm5064_vm2 }
 0x368   : > { %6165 = vmatpush3.bf16.msra.mxu1 %v9004_v22  ;;  %5579 = vmatprep.mubr.f32.mxu1 %v8907_v19  ;;  %vm5065_vm6 = vmand %vm5058_vm3, %vm5064_vm2 }
 0x369   : > { %6167 = vmatprep.subr.bf16.mxu1 %v9016_v21  ;;  %vm5069_vm7 = vmand %vm5066_vm4, %vm5067_vm5 }
 0x36a   : > { %vm5068_vm8 = vmand %vm5065_vm6, %vm5067_vm5 }
 0x36c   : > { %6169 = vmatpush3.bf16.msra.mxu1 %v9016_v21 }
 0x36d   : > { %6171 = vmatprep.subr.bf16.mxu1 %v9011_v34 }
 0x36f   : > { %5580 = vmatmul.mubr.f32.vlgmr.msra.gmra.mrb[62].mxu1 %v8979_v42 }
 0x370   : > { %6173 = vmatpush3.bf16.msra.mxu1 %v9011_v34  ;;  %5590 = vmatprep.mubr.f32.mxu1 %v8901_v12 }
 0x371   : > { %6175 = vmatprep.subr.bf16.mxu1 %v6174_v4 }
 0x374   : > { %6177 = vmatpush3.bf16.msra.mxu1 %v6174_v4 }
 0x375   : > { %6179 = vmatprep.subr.bf16.mxu1 %v9004_v22 }
 0x377   : > { %5591 = vmatmul.mubr.f32.vlgmr.msra.gmra.mrb[62].mxu1 %v8961_v54 }
 0x378   : > { %6181 = vmatpush3.bf16.msra.mxu1 %v9004_v22  ;;  %5601 = vmatprep.mubr.f32.mxu1 %v8901_v12 }
 0x379   : > { %6183 = vmatprep.subr.bf16.mxu1 %v9016_v21 }
 0x37c   : > { %6185 = vmatpush3.bf16.msra.mxu1 %v9016_v21 }
 0x37d   : > { %6187 = vmatprep.subr.bf16.mxu1 %v9024_v7 }
 0x37f   : > { %5602 = vmatmul.mubr.f32.vlgmr.msra.gmra.mrb[62].mxu1 %v8961_v54 }
 0x380   : > { %6189 = vmatpush3.bf16.msra.mxu1 %v9024_v7  ;;  %5612 = vmatprep.mubr.f32.mxu1 %v8911_v57 }
 0x381   : > { %6191 = vmatprep.subr.bf16.mxu1 %v8917_v55 }
 0x384   : > { %6193 = vmatpush3.bf16.msra.mxu1 %v8917_v55 }
 0x385   : > { %6195 = vmatprep.subr.bf16.mxu1 %v6194_v46 }
 0x387   : > { %5613 = vmatmul.mubr.f32.vlgmr.msra.gmra.mrb[64].mxu1 %v8995_v5 }
 0x388   : > { %6197 = vmatpush3.bf16.msra.mxu1 %v6194_v46  ;;  %5623 = vmatprep.mubr.f32.mxu1 %v8901_v12 }
 0x389   : > { %6199 = vmatprep.subr.bf16.mxu1 %v8927_v18 }
 0x38c   : > { %6201 = vmatpush3.bf16.msra.mxu1 %v8927_v18 }
 0x38d   : > { %6203 = vmatprep.subr.bf16.mxu1 %v9027_v58 }
 0x38f   : > { %5624 = vmatmul.mubr.f32.vlgmr.msra.gmra.mrb[64].mxu1 %v8961_v54 }
 0x390   : > { %6205 = vmatpush3.bf16.msra.mxu1 %v9027_v58  ;;  %5634 = vmatprep.mubr.f32.mxu1 %v8904_v49 }
 0x391   : > { %6207 = vmatprep.subr.bf16.mxu1 %v8920_v45 }
 0x394   : > { %6209 = vmatpush3.bf16.msra.mxu1 %v8920_v45 }
 0x395   : > { %6211 = vmatprep.subr.bf16.mxu1 %v9024_v7 }
 0x397   : > { %5635 = vmatmul.mubr.f32.vlgmr.msra.gmra.mrb[64].mxu1 %v8971_v35 }
 0x398   : > { %6213 = vmatpush3.bf16.msra.mxu1 %v9024_v7  ;;  %5645 = vmatprep.mubr.f32.mxu1 %v8907_v19 }
 0x399   : > { %6215 = vmatprep.subr.bf16.mxu1 %v8917_v55 }
 0x39c   : > { %6217 = vmatpush3.bf16.msra.mxu1 %v8917_v55 }
 0x39d   : > { %6219 = vmatprep.subr.bf16.mxu1 %v9031_v38 }
 0x39f   : > { %5646 = vmatmul.mubr.f32.vlgmr.msra.gmra.mrb[64].mxu1 %v8979_v42 }
 0x3a0   : > { %6221 = vmatpush3.bf16.msra.mxu1 %v9031_v38  ;;  %5656 = vmatprep.mubr.f32.mxu1 %v8901_v12 }
 0x3a1   : > { %6223 = vmatprep.subr.bf16.mxu1 %v8922_v36 }
 0x3a4   : > { %6225 = vmatpush3.bf16.msra.mxu1 %v8922_v36 }
 0x3a5   : > { %6227 = vmatprep.subr.bf16.mxu1 %v9024_v7 }
 0x3a7   : > { %5657 = vmatmul.mubr.f32.vlgmr.msra.gmra.mrb[64].mxu1 %v8961_v54 }
 0x3a8   : > { %6229 = vmatpush3.bf16.msra.mxu1 %v9024_v7  ;;  %5667 = vmatprep.mubr.f32.mxu1 %v8901_v12 }
 0x3a9   : > { %6231 = vmatprep.subr.bf16.mxu1 %v8917_v55 }
 0x3ac   : > { %6233 = vmatpush3.bf16.msra.mxu1 %v8917_v55 }
 0x3ad   : > { %6235 = vmatprep.subr.bf16.mxu1 %v8925_v33 }
 0x3af   : > { %5668 = vmatmul.mubr.f32.vlgmr.msra.gmra.mrb[64].mxu1 %v8961_v54 }
 0x3b0   : > { %6237 = vmatpush3.bf16.msra.mxu1 %v8925_v33  ;;  %5678 = vmatprep.mubr.f32.mxu1 %v8911_v57 }
 0x3b1   : > { %6239 = vmatprep.subr.bf16.mxu1 %v8936_v63 }
 0x3b4   : > { %6241 = vmatpush3.bf16.msra.mxu1 %v8936_v63 }
 0x3b5   : > { %6243 = vmatprep.subr.bf16.mxu1 %v8939_v43 }
 0x3b7   : > { %5679 = vmatmul.mubr.f32.vlgmr.msra.gmra.mrb[66].mxu1 %v8995_v5 }
 0x3b8   : > { %6245 = vmatpush3.bf16.msra.mxu1 %v8939_v43  ;;  %5689 = vmatprep.mubr.f32.mxu1 %v8901_v12 }
 0x3b9   : > { %6247 = vmatprep.subr.bf16.mxu1 %v8951_v10 }
 0x3bc   : > { %6249 = vmatpush3.bf16.msra.mxu1 %v8951_v10 }
 0x3bd   : > { %6251 = vmatprep.subr.bf16.mxu1 %v8930_v47 }
 0x3bf   : > { %5690 = vmatmul.mubr.f32.vlgmr.msra.gmra.mrb[66].mxu1 %v8961_v54 }
 0x3c0   : > { %6253 = vmatpush3.bf16.msra.mxu1 %v8930_v47  ;;  %5700 = vmatprep.mubr.f32.mxu1 %v8904_v49 }
 0x3c1   : > { %6255 = vmatprep.subr.bf16.mxu1 %v8942_v48 }
 0x3c4   : > { %6257 = vmatpush3.bf16.msra.mxu1 %v8942_v48 }
 0x3c5   : > { %6259 = vmatprep.subr.bf16.mxu1 %v8925_v33 }
 0x3c7   : > { %5701 = vmatmul.mubr.f32.vlgmr.msra.gmra.mrb[66].mxu1 %v8971_v35 }
 0x3c8   : > { %6261 = vmatpush3.bf16.msra.mxu1 %v8925_v33  ;;  %5711 = vmatprep.mubr.f32.mxu1 %v8907_v19 }
 0x3c9   : > { %6263 = vmatprep.subr.bf16.mxu1 %v8936_v63 }
 0x3cc   : > { %6265 = vmatpush3.bf16.msra.mxu1 %v8936_v63 }
 0x3cd   : > { %6267 = vmatprep.subr.bf16.mxu1 %v8933_v62 }
 0x3cf   : > { %5712 = vmatmul.mubr.f32.vlgmr.msra.gmra.mrb[66].mxu1 %v8979_v42 }
 0x3d0   : > { %6269 = vmatpush3.bf16.msra.mxu1 %v8933_v62  ;;  %5722 = vmatprep.mubr.f32.mxu1 %v8901_v12 }
 0x3d1   : > { %6271 = vmatprep.subr.bf16.mxu1 %v8945_v24 }
 0x3d4   : > { %6273 = vmatpush3.bf16.msra.mxu1 %v8945_v24 }
 0x3d5   : > { %6275 = vmatprep.subr.bf16.mxu1 %v8925_v33 }
 0x3d7   : > { %5723 = vmatmul.mubr.f32.vlgmr.msra.gmra.mrb[66].mxu1 %v8961_v54 }
 0x3d8   : > { %6277 = vmatpush3.bf16.msra.mxu1 %v8925_v33  ;;  %5733 = vmatprep.mubr.f32.mxu1 %v8901_v12 }
 0x3d9   : > { %6279 = vmatprep.subr.bf16.mxu1 %v8936_v63 }
 0x3dc   : > { %6281 = vmatpush3.bf16.msra.mxu1 %v8936_v63 }
 0x3dd   : > { %6283 = vmatprep.subr.bf16.mxu1 %v8948_v60 }
 0x3df   : > { %5734 = vmatmul.mubr.f32.vlgmr.msra.gmra.mrb[66].mxu1 %v8961_v54 }
 0x3e0   : > { %6285 = vmatpush3.bf16.msra.mxu1 %v8948_v60  ;;  %5744 = vmatprep.mubr.f32.mxu1 %v8911_v57 }
 0x3e1   : > { %6287 = vmatprep.subr.bf16.mxu1 %v8963_v1 }
 0x3e4   : > { %6289 = vmatpush3.bf16.msra.mxu1 %v8963_v1 }
 0x3e5   : > { %6291 = vmatprep.subr.bf16.mxu1 %v8965_v2 }
 0x3e7   : > { %5745 = vmatmul.mubr.f32.vlgmr.msra.gmra.mrb[68].mxu1 %v8995_v5  ;;  %v5027_v5 = vstv %s372_s19 }
 0x3e8   : > { %6293 = vmatpush3.bf16.msra.mxu1 %v8965_v2  ;;  %5755 = vmatprep.mubr.f32.mxu1 %v8901_v12 }
 0x3e9   : > { %6295 = vmatprep.subr.bf16.mxu1 %v8985_v27 }
 0x3ec   : > { %6297 = vmatpush3.bf16.msra.mxu1 %v8985_v27  ;;  %v5032_v27 = vstv %s5282_s8 }
 0x3ed   : > { %6299 = vmatprep.subr.bf16.mxu1 %v8954_v32 }
 0x3ef   : > { %5756 = vmatmul.mubr.f32.vlgmr.msra.gmra.mrb[68].mxu1 %v8961_v54 }
 0x3f0   : > { %6301 = vmatpush3.bf16.msra.mxu1 %v8954_v32  ;;  %5766 = vmatprep.mubr.f32.mxu1 %v8904_v49 }
 0x3f1   : > { %6303 = vmatprep.subr.bf16.mxu1 %v8968_v59 }
 0x3f4   : > { %6305 = vmatpush3.bf16.msra.mxu1 %v8968_v59 }
 0x3f5   : > { %6307 = vmatprep.subr.bf16.mxu1 %v8948_v60 }
 0x3f7   : > { %5767 = vmatmul.mubr.f32.vlgmr.msra.gmra.mrb[68].mxu1 %v8971_v35 }
 0x3f8   : > { %6309 = vmatpush3.bf16.msra.mxu1 %v8948_v60  ;;  %5777 = vmatprep.mubr.f32.mxu1 %v8907_v19 }
 0x3f9   : > { %6311 = vmatprep.subr.bf16.mxu1 %v8963_v1 }
 0x3fc   : > { %6313 = vmatpush3.bf16.msra.mxu1 %v8963_v1 }
 0x3fd   : > { %6315 = vmatprep.subr.bf16.mxu1 %v8958_v41 }
 0x3ff   : > { %5778 = vmatmul.mubr.f32.vlgmr.msra.gmra.mrb[68].mxu1 %v8979_v42 }
 0x400   : > { %6317 = vmatpush3.bf16.msra.mxu1 %v8958_v41  ;;  %5788 = vmatprep.mubr.f32.mxu1 %v8901_v12 }
 0x401   : > { %6319 = vmatprep.subr.bf16.mxu1 %v8973_v52 }
 0x404   : > { %6321 = vmatpush3.bf16.msra.mxu1 %v8973_v52 }
 0x405   : > { %6323 = vmatprep.subr.bf16.mxu1 %v8948_v60 }
 0x407   : > { %5789 = vmatmul.mubr.f32.vlgmr.msra.gmra.mrb[68].mxu1 %v8961_v54 }
 0x408   : > { %6325 = vmatpush3.bf16.msra.mxu1 %v8948_v60  ;;  %5799 = vmatprep.mubr.f32.mxu1 %v8901_v12 }
 0x409   : > { %6327 = vmatprep.subr.bf16.mxu1 %v8963_v1 }
 0x40c   : > { %6329 = vmatpush3.bf16.msra.mxu1 %v8963_v1 }
 0x40f   : > { %5800 = vmatmul.mubr.f32.vlgmr.msra.gmra.mrb[68].mxu1 %v8961_v54 }
 0x422   : > { %v5537_v49 = vpop.f32.mrb[60].mxu1 }
 0x423   : > { %v2883_v19 = vpop.f32.mrb[61].mxu1  ;;  %v5024_v57 = vmul.f32 2.0, %v5537_v49  ;;  %v5006_v18 = vmul.f32 %v5537_v49, %v5537_v49 }
 0x424   : > { %v5023_v55 = vmul.f32 2.0, %v2883_v19  ;;  %v5005_v43 = vmul.f32 %v2883_v19, %v2883_v19 }
 0x452   : > { %v5603_v45 = vpop.f32.mrb[62].mxu1 }
 0x453   : > { %v5026_v36 = vmul.f32 %v5603_v45, %v5024_v57  ;;  %v3411_v33 = vpop.f32.mrb[63].mxu1  ;;  %v5012_v47 = vmul.f32 %v5603_v45, %v5603_v45  ;;  %v5018_v62 = vmul.f32 %v5603_v45, %v5537_v49 }
 0x454   : > { %v5025_v63 = vmul.f32 %v5023_v55, %v3411_v33  ;;  %v5011_v48 = vmul.f32 %v3411_v33, %v3411_v33  ;;  %v5017_v12 = vmul.f32 %v3411_v33, %v2883_v19 }
 0x455   : > { %v5036_v24 = vadd.f32 %v5012_v47, %v5006_v18  ;;  %v5029_v56 = vadd.f32 %v5027_v5, %v5026_v36 }
 0x456   : > { %v5035_v60 = vadd.f32 %v5011_v48, %v5005_v43  ;;  %v5028_v11 = vadd.f32 %v5027_v5, %v5025_v63 }
 0x457   : > { %v5038_v22 = vadd.f32 %v5036_v24, %v5027_v5 }
 0x458   : > { %v5037_v34 = vadd.f32 %v5035_v60, %v5027_v5 }
 0x482   : > { %v5669_v10 = vpop.f32.mrb[64].mxu1 }
 0x483   : > { %v5008_v32 = vsub.f32 %v5669_v10, %v5006_v18  ;;  %v3939_v41 = vpop.f32.mrb[65].mxu1 }
 0x484   : > { %v5007_v54 = vsub.f32 %v3939_v41, %v5005_v43 }
 0x485   : > { %v5010_v52 = vmul.f32 1.0083333, %v5008_v32 }
 0x486   : > { %v5009_v42 = vmul.f32 1.0083333, %v5007_v54 }
 0x4b2   : > { %v5735_v1 = vpop.f32.mrb[66].mxu1 }
 0x4b3   : > { %v5014_v2 = vsub.f32 %v5735_v1, %v5012_v47  ;;  %v4467_v59 = vpop.f32.mrb[67].mxu1 }
 0x4b4   : > { %v5013_v35 = vsub.f32 %v4467_v59, %v5011_v48 }
 0x4b5   : > { %v5016_v37 = vmul.f32 1.0083333, %v5014_v2 }
 0x4b6   : > { %v5015_v29 = vmul.f32 1.0083333, %v5013_v35 }
 0x4b7   : > { %v5040_v25 = vadd.f32 %v5016_v37, %v5010_v52 }
 0x4b8   : > { %v5039_v20 = vadd.f32 %v5015_v29, %v5009_v42 }
 0x4b9   : > { %v5042_v13 = vadd.f32 %v5040_v25, %v5032_v27 }
 0x4ba   : > { %v5041_v21 = vadd.f32 %v5039_v20, %v5032_v27 }
 0x4bb   : > { %v5046_v28 = vmul.f32 %v5042_v13, %v5038_v22 }
 0x4bc   : > { %v5045_v3 = vmul.f32 %v5041_v21, %v5037_v34 }
 0x4bd   : > { %6676 = vrcp.f32 %v5046_v28 }
 0x4be   : > { %6678 = vrcp.f32 %v5045_v3 }
 0x4c7   : > { %v6677_v30 = vpop.eup %6676 }
 0x4c8   : > { %v6679_v14 = vpop.eup %6678 }
 0x4e2   : > { %v5801_v0 = vpop.f32.mrb[68].mxu1 }
 0x4e3   : > { %v5020_v17 = vsub.f32 %v5801_v0, %v5018_v62  ;;  %v4995_v44 = vpop.f32.mrb[69].mxu1 }
 0x4e4   : > { %v5019_v9 = vsub.f32 %v4995_v44, %v5017_v12 }
 0x4e5   : > { %v5022_v26 = vmul.f32 1.0083333, %v5020_v17 }
 0x4e6   : > { %v5021_v23 = vmul.f32 1.0083333, %v5019_v9 }
 0x4e7   : > { %v5031_v4 = vmul.f32 2.0, %v5022_v26 }
 0x4e8   : > { %v5030_v16 = vmul.f32 2.0, %v5021_v23 }
 0x4e9   : > { %v5034_v50 = vadd.f32 %v5032_v27, %v5031_v4 }
 0x4ea   : > { %v5033_v7 = vadd.f32 %v5032_v27, %v5030_v16 }
 0x4eb   : > { %v5044_v53 = vmul.f32 %v5034_v50, %v5029_v56 }
 0x4ec   : > { %v5043_v8 = vmul.f32 %v5033_v7, %v5028_v11 }
 0x4ed   : > { %v5050_v58 = vmul.f32 %v6677_v30, %v5044_v53 }
 0x4ee   : > { %v5048_v61 = vmul.f32 %v6679_v14, %v5043_v8 }
 0x4ef   : > { %5052 = vst [vmem:[%s349_s14 + $0x8] sm:$0xff] %v5050_v58  ;;  %v5071_v38 = vsel %vm5069_vm7, %v5050_v58, 0.0 }
 0x4f0   : > { %5051 = vst [vmem:[%s349_s14] sm:$0xff] %v5048_v61  ;;  %v5070_v6 = vsel %vm5068_vm8, %v5048_v61, 0.0 }
 0x4f1   : > { %v5072_v15 = vadd.f32 %v5071_v38, %v5070_v6 }
 0x4f2   : > { %6822 = shalt.err (!%p6819_p9)
}
 0x4f3   : > { %s6823_s3 = scalar_lea.hbm %s9184_s10, 256  ;;  %s6827_s12 = scalar_lea.hbm %s9266_s5, 512 }
 0x4f4   : > { %p6824_p2 = scmp.ne.s32.totalorder %s9184_s10, %s6823_s3  ;;  %p6828_p10 = scmp.lt.u32.totalorder %s9184_s10, %s9266_s5 }
 0x4f5   : > { %p6829_p12 = scmp.lt.u32.totalorder %s6827_s12, %s6823_s3  ;;  %p6831_p4 = scmp.lt.u32.totalorder %s6823_s3, %s9184_s10 }
 0x4f6   : > { %p6825_p6 = pnand %p6824_p2, %p9961_p8 }
 0x4f7   : > { %p6830_p1 = por %p6829_p12, %p6828_p10 }
 0x4f8   : > { %p6826_p0 = pneg %p6825_p6 }
 0x4f9   : > { %p6832_p11 = por %p6831_p4, %p6830_p1 }
 0x4fb   : > { %p6833_p5 = pnand %p6832_p11, %p6826_p0 }
 0x4fd   : > { %6836 = shalt.err (!%p6833_p5)
}
 0x4fe   : > { %s6932_s8 = smov 128   ;;  %s6933_s19 = smov 8   ;;  %v5073_v46 = vrot.slane %v5072_v15, 4 }
 0x4ff   : > { %6598 = dma.vmem_to_hbm [thread:$0]  (%p9961_p8), %s9186_s15, 256, %s9184_s10, %s5081_s28, %s6932_s8, %s6932_s8, %s6933_s19  }
 0x500   : > { %v5074_v49 = vadd.f32 %v5073_v46, %v5072_v15  ;;  %s5286_s23 = sshll.u32 %s6991_s25, 4  ;;  %s355_s26 = scalar_lea.vmem [#allocation12], %s7215_s20 }
 0x501   : > { %s5114_s14 = sshll.u32 %s355_s26, 4  ;;  %s9217_s13 = scalar_lea.hbm %s9267_s6, %s5286_s23  ;;  %s9219_s14 = int_to_ptr.vmem [resolvable:$true] %s5114_s14 }
 0x502   : > { %v5075_v19 = vrot.slane %v5074_v49, 2  ;;  %s5086_s15 = scalar_lea.sflag [#allocation13], %s7215_s20  ;;  %s6837_s10 = scalar_lea.vmem %s9219_s14, 16 }
 0x503   : > { %p6838_p3 = scmp.ne.s32.totalorder %s9219_s14, %s6837_s10  ;;  %s6934_s25 = smov [#allocation12]  }
 0x504   : > { %v5076_v57 = vadd.f32 %v5075_v19, %v5074_v49  ;;  %s6841_s28 = sshll.u32 %s6934_s25, 4  ;;  %s6842_s28 = int_to_ptr.vmem [resolvable:$false] %s6841_s28 }
 0x505   : > { %p6839_p7 = pnand %p6838_p3, %p9961_p8  ;;  %s6843_s1 = scalar_lea.vmem %s6842_s28, 32 }
 0x506   : > { %v5077_v55 = vrot.slane %v5076_v57, 1  ;;  %p6844_p9 = scmp.lt.s32.totalorder %s9219_s14, %s6842_s28  ;;  %p6845_p2 = scmp.lt.s32.totalorder %s6843_s1, %s6837_s10 }
 0x507   : > { %p6840_p13 = pneg %p6839_p7 }
 0x508   : > { %v5078_v45 = vadd.f32 %v5077_v55, %v5076_v57  ;;  %p6846_p6 = por %p6845_p2, %p6844_p9 }
 0x50a   : > { %5079 = vst [vmem:[%s355_s26] sm:$0x1] %v5078_v45  ;;  %p6847_p0 = pnand %p6846_p6, %p6840_p13 }
 0x50c   : > { %6850 = shalt.err (!%p6847_p0)
}
 0x50d   : > { %s6851_s20 = scalar_lea.hbm %s9217_s13, 16  ;;  %s6855_s3 = scalar_lea.hbm %s9267_s6, 32 }
 0x50e   : > { %p6852_p10 = scmp.ne.s32.totalorder %s9217_s13, %s6851_s20  ;;  %p6856_p4 = scmp.lt.u32.totalorder %s9217_s13, %s9267_s6 }
 0x50f   : > { %p6857_p11 = scmp.lt.u32.totalorder %s6855_s3, %s6851_s20  ;;  %p6859_p3 = scmp.lt.u32.totalorder %s6851_s20, %s9217_s13 }
 0x510   : > { %p6853_p12 = pnand %p6852_p10, %p9961_p8 }
 0x511   : > { %p6858_p5 = por %p6857_p11, %p6856_p4 }
 0x512   : > { %p6854_p1 = pneg %p6853_p12 }
 0x513   : > { %p6860_p7 = por %p6859_p3, %p6858_p5 }
 0x515   : > { %p6861_p13 = pnand %p6860_p7, %p6854_p1 }
 0x517   : > { %6864 = shalt.err (!%p6861_p13)
}
 0x518   : > { %6599 = dma.vmem_to_hbm [thread:$0]  (%p9961_p8), %s9219_s14, 16, %s9217_s13, %s5086_s15  }
 0x519 PF: > { %s9962_s12 = sld [smem:[#allocation23_spill]]  ;;  %s5126_s16 = sand.u32 1, %s6907_s21  }
 0x51a   : > { %p9964_p2 = scmp.ge.s32.totalorder %s6919_s24, 2  ;;  %s5127_s29 = scalar_lea.sflag [#allocation4], %s5126_s16 }
 0x51f   : > { %p9963_p9 = scmp.ne.s32.totalorder %s9962_s12, 0 }
 0x521   : > { %p6620_p6 = pnand %p9964_p2, %p9963_p9 }
 0x523   : > { %6898 = dma.done.wait (!%p6620_p6), %s5127_s29, 256  }
 0x524   : > { %6900 = vsyncadd (!%p6620_p6), %s5127_s29, 4294967040  ;;  %s5136_s8 = scalar_lea.sflag [#allocation13], %s5126_s16 }
 0x525   : > { %6902 = dma.done.wait (!%p6620_p6), %s5136_s8, 16  }
 0x526   : > { %6904 = vsyncadd (!%p6620_p6), %s5136_s8, 4294967280  ;;  %s9965_s24 = sld [smem:[#allocation21_spill]]  ;;  %s9966_s9 = sld [smem:[#allocation20_spill]] }
 0x527   : > { %s9967_s23 = sld [smem:[#allocation22_spill]]  ;;  %s9968_s21 = smov %s6911_s22 }
 0x52c   : > { %p23_p8 = scmp.ge.s32.totalorder %s9965_s24, 4   ;;  %s9969_s22 = smov %s9966_s9 }
 0x52e   :  { %25 = sbr.rel (!%p23_p8) target bundleno = 11 (0xb), region = 125 }
 0x535   :  { %5140 = vsyncpa [#allocation3], 1 }
 0x536   :  { %5142 = vsyncpa [#allocation3 + $0x1], 1 }
 0x537   :  { %5143 = vsyncpa [#allocation8], 1 }
 0x538   :  { %5144 = vsyncpa [#allocation4], 1 }
 0x539   :  { %5146 = vsyncpa [#allocation4 + $0x1], 1 }
 0x53a   :  { %5147 = vsyncpa [#allocation13], 1 }
 0x53b   :  { %5149 = vsyncpa [#allocation13 + $0x1], 1 }
 0x53c   :  { %5150 = vsyncpa [#allocation5], 1 }
 0x53d   :  { %5152 = vsyncpa [#allocation5 + $0x1], 1 }

// kernel: tpu_custom_call.1
= control target key start
LH: loop header
LB: loop body
LE: loop exit
PB: predicated region body
PF: predicated region fallthrough
CT: control target
= control target key end

     0   :  { %s5757_s0 = inlined_call_operand.hbm [shape: f32[2], index: 0, kind: input, shape index: {}]   ;;  %s5758_s1 = inlined_call_operand.hbm [shape: f32[16,32], index: 1, kind: input, shape index: {}]   ;;  %s5759_s2 = inlined_call_operand.hbm [shape: f32[256,128], index: 2, kind: input, shape index: {}]   ;;  %s5760_s3 = inlined_call_operand.hbm [shape: f32[2,32,256], index: 3, kind: input, shape index: {}]   ;;  %s5761_s4 = inlined_call_operand.hbm [shape: f32[2,32,256], index: 4, kind: input, shape index: {}]   ;;  %s5762_s5 = inlined_call_operand.hbm [shape: f32[2,16,128], index: 5, kind: output, shape index: {0}]   ;;  %s5763_s6 = inlined_call_operand.hbm [shape: f32[2,1,128], index: 6, kind: output, shape index: {1}]  }
   0x1   :  { %5854 = sst [smem:[#allocation83_spill]] %s5758_s1 }
   0x2   :  { %5855 = sst [smem:[#allocation84_spill]] %s5760_s3 }
   0x3   :  { %12 = vsyncpa [#allocation5], 0 }
   0x4   :  { %13 = vsyncpa [#allocation3], 0 }
   0x5   :  { %14 = vsyncpa [#allocation8], 0 }
   0x6   :  { %15 = vsyncpa [#allocation4], 0 }
   0x7   :  { %17 = vsyncpa [#allocation4 + $0x1], 0 }
   0x8   :  { %18 = vsyncpa [#allocation13], 0 }
   0x9   :  { %20 = vsyncpa [#allocation13 + $0x1], 0  ;;  %s3244_s21 = smov 0   ;;  %s3246_s22 = smov 0  }
   0xa   :  { %s3248_s23 = smov 0   ;;  %s3250_s24 = smov 0  }
   0xb LB: > { %5856 = sst [smem:[#allocation20_spill]] %s3180_s23  ;;  %s3265_s25 = sadd.s32 4294967295, %s3184_s24   ;;  %s3184_s24 = sphi %s3250_s24, %s6156_s24   ;;  %s3180_s23 = sphi %s3248_s23, %s6158_s23   ;;  %s3176_s22 = sphi %s3246_s22, %s6160_s22   ;;  %s3172_s21 = sphi %s3244_s21, %s6159_s21  }
   0xc   : > { %s2793_s26 = sadd.s32 4294967294, %s3184_s24   ;;  %s3269_s27 = sadd.s32 1, %s3184_s24  }
   0xd   : > { %5857 = sst [smem:[#allocation21_spill]] %s3269_s27  ;;  %s96_s28 = sadd.s32 1, %s3180_s23 }
   0xe   : > { %s93_s29 = ssub.s32 %s3184_s24, %s3269_s27  ;;  %p103_p0 = scmp.ne.s32.totalorder %s3180_s23, %s3176_s22 }
   0xf   : > { %p94_p1 = scmp.eq.s32.totalorder %s93_s29, 0  ;;  %p104_p2 = scmp.eq.s32.totalorder %s3184_s24, 0 }
  0x10   : > { %p109_p3 = scmp.ne.s32.totalorder %s3176_s22, %s3172_s21  ;;  %p5764_p4 = scmp.eq.s32.totalorder %s3265_s25, 0 }
  0x11   : > { %s3281_s30 = scalar_select %p94_p1, %s3180_s23, %s96_s28  }
  0x12   : > { %p3283_p5 = por %p104_p2, %p103_p0  ;;  %p3289_p6 = por %p5764_p4, %p109_p3 }
  0x13   : > { %5858 = sst [smem:[#allocation22_spill]] %s3281_s30  ;;  %p159_p7 = scmp.eq.s32.totalorder %s3265_s25, 1 }
  0x14   : > { %s5859_s7 = scalar_select %p3283_p5, 1, 0 }
  0x15   : > { %s5860_s8 = scalar_select %p3289_p6, 1, 0 }
  0x16   : > { %p165_p8 = scmp.eq.s32.totalorder %s2793_s26, 1  ;;  %p2794_p9 = scmp.ge.s32.totalorder %s3184_s24, 1 }
  0x17   : > { %p198_p10 = scmp.lt.s32.totalorder %s3184_s24, 3  ;;  %p3296_p11 = por %p159_p7, %p103_p0 }
  0x18   : > { %p3300_p12 = por %p165_p8, %p109_p3  ;;  %s3186_s12 = smov [#allocation6]  }
  0x19   : > { %s5861_s9 = scalar_select %p3296_p11, 1, 0 }
  0x1a   : > { %s5862_s10 = scalar_select %p3300_p12, 1, 0 }
  0x1b   : > { %p3304_p13 = pnand %p2794_p9, %p198_p10  ;;  %s219_s13 = sshll.u32 %s3186_s12, 4  ;;  %s220_s13 = int_to_ptr.vmem [resolvable:$true] %s219_s13 }
  0x1c   : > { %5863 = sst [smem:[#allocation23_spill]] %s5862_s10  ;;  %s246_s15 = sand.u32 1, %s3184_s24  }
  0x1d   : > { %s5864_s11 = scalar_select %p3304_p13, 1, 0 }
  0x1e   : > { %p2842_p1 = pneg %p3304_p13  ;;  %s5866_s1 = sld [smem:[#allocation83_spill]] }
  0x20   : > { %p3312_p2 = pnand %p2842_p1, %p5764_p4 }
  0x22   : > { %s5865_s14 = scalar_select %p3312_p2, 1, 0 }
  0x23   : > { %p3327_p8 = pneg %p3312_p2 }
  0x24   : > { %s2945_s18 = scalar_lea.hbm %s5866_s1, 256 }
  0x25   : > { %p2946_p7 = scmp.ne.s32.totalorder %s5866_s1, %s2945_s18  ;;  %p2952_p1 = scmp.lt.u32.totalorder %s2945_s18, %s5866_s1 }
  0x27   : > { %p2948_p9 = pnand %p3327_p8, %p2946_p7 }
  0x29   : > { %p2949_p10 = pneg %p2948_p9 }
  0x2b   : > { %p2954_p0 = pnand %p2952_p1, %p2949_p10 }
  0x2d   : > { %2957 = shalt.err (!%p2954_p0)
}
  0x2e   : > { %s2958_s12 = scalar_lea.vmem %s220_s13, 256  ;;  %p2966_p11 = scmp.lt.s32.totalorder %s220_s13, %s220_s13 }
  0x2f   : > { %p2959_p4 = scmp.ne.s32.totalorder %s220_s13, %s2958_s12  ;;  %p2967_p6 = scmp.lt.s32.totalorder %s2958_s12, %s2958_s12 }
  0x31   : > { %p2961_p3 = pnand %p2959_p4, %p3327_p8  ;;  %p2968_p13 = por %p2967_p6, %p2966_p11 }
  0x33   : > { %p2962_p12 = pneg %p2961_p3 }
  0x35   : > { %p2969_p5 = pnand %p2968_p13, %p2962_p12 }
  0x37   : > { %2972 = shalt.err (!%p2969_p5)
}
  0x38   : > { %s5771_s16 = smov 128   ;;  %s5772_s17 = smov 8  }
  0x39   : > { %2848 = dma.hbm_to_vmem [thread:$0]  (!%p3312_p2), %s5866_s1, 256, %s220_s13, [#allocation3], %s5771_s16, %s5771_s16, %s5772_s17  }
  0x3a   : > { %p5868_p4 = scmp.ne.s32.totalorder %s5859_s7, 0  ;;  %p5869_p6 = scmp.lt.s32.totalorder %s3184_s24, 2 }
  0x3b   : > { %s248_s28 = sand.u32 1, %s3180_s23   ;;  %s5775_s12 = sshll.u32 %s3184_s24, 10 }
  0x3c   : > { %p3350_p11 = pnand %p5869_p6, %p5868_p4  ;;  %s3355_s29 = sshll.u32 %s248_s28, 6 }
  0x3d   : > { %s5871_s3 = sld [smem:[#allocation84_spill]]  ;;  %s250_s7 = scalar_lea.vmem [#allocation9], %s3355_s29 }
  0x3e   : > { %s5870_s20 = scalar_select %p3350_p11, 1, 0 }
  0x3f   : > { %s257_s13 = sshll.u32 %s250_s7, 4  ;;  %s3368_s18 = scalar_lea.sflag [#allocation3], %s246_s15  ;;  %s3366_s13 = int_to_ptr.vmem [resolvable:$true] %s257_s13 }
  0x40   : > { %p5779_p12 = pneg %p3350_p11 }
  0x43   : > { %s3363_s10 = scalar_lea.hbm %s5871_s3, %s5775_s12  ;;  %s2978_s28 = scalar_lea.hbm %s5871_s3, 2048 }
  0x44   : > { %s2973_s19 = scalar_lea.hbm %s3363_s10, 1024  ;;  %p2979_p3 = scmp.lt.u32.totalorder %s3363_s10, %s5871_s3 }
  0x45   : > { %p2974_p5 = scmp.ne.s32.totalorder %s3363_s10, %s2973_s19  ;;  %p2980_p7 = scmp.lt.u32.totalorder %s2978_s28, %s2973_s19 }
  0x46   : > { %p2982_p10 = scmp.lt.u32.totalorder %s2973_s19, %s3363_s10 }
  0x47   : > { %p2976_p13 = pnand %p5779_p12, %p2974_p5  ;;  %p2981_p9 = por %p2980_p7, %p2979_p3 }
  0x49   : > { %p2977_p0 = pneg %p2976_p13  ;;  %p2983_p1 = por %p2982_p10, %p2981_p9 }
  0x4b   : > { %p2984_p4 = pnand %p2983_p1, %p2977_p0 }
  0x4d   : > { %2987 = shalt.err (!%p2984_p4)
}
  0x4e   : > { %s2988_s15 = scalar_lea.vmem %s3366_s13, 1024  ;;  %s3189_s7 = smov [#allocation9]  }
  0x4f   : > { %p2989_p6 = scmp.ne.s32.totalorder %s3366_s13, %s2988_s15  ;;  %s2993_s27 = sshll.u32 %s3189_s7, 4  ;;  %s2994_s27 = int_to_ptr.vmem [resolvable:$false] %s2993_s27 }
  0x50   : > { %s2995_s16 = scalar_lea.vmem %s2994_s27, 2048  ;;  %p2996_p2 = scmp.lt.s32.totalorder %s3366_s13, %s2994_s27 }
  0x51   : > { %p2991_p5 = pnand %p2989_p6, %p5779_p12  ;;  %p2997_p3 = scmp.lt.s32.totalorder %s2995_s16, %s2988_s15 }
  0x53   : > { %p2992_p13 = pneg %p2991_p5  ;;  %p2998_p7 = por %p2997_p3, %p2996_p2 }
  0x55   : > { %p2999_p9 = pnand %p2998_p7, %p2992_p13 }
  0x57   : > { %3002 = shalt.err (!%p2999_p9)
}
  0x58   : > { %s5776_s17 = smov 256   ;;  %s5777_s19 = smov 16  }
  0x59   : > { %2855 = dma.hbm_to_vmem [thread:$0]  (!%p3350_p11), %s3363_s10, 1024, %s3366_s13, %s3368_s18, %s5776_s17, %s5776_s17, %s5777_s19  }
  0x5a   : > { %s3003_s7 = scalar_lea.hbm %s5757_s0, 16 }
  0x5b   : > { %p3004_p2 = scmp.ne.s32.totalorder %s5757_s0, %s3003_s7  ;;  %p3010_p1 = scmp.lt.u32.totalorder %s3003_s7, %s5757_s0 }
  0x5d   : > { %p3006_p0 = pnand %p3004_p2, %p3327_p8 }
  0x5f   : > { %p3007_p10 = pneg %p3006_p0 }
  0x61   : > { %p3012_p4 = pnand %p3010_p1, %p3007_p10 }
  0x63   : > { %3015 = shalt.err (!%p3012_p4)
}
  0x64   : > { %s3192_s1 = smov [#allocation2]   ;;  %p5872_p6 = scmp.ne.s32.totalorder %s5865_s14, 0 }
  0x65   : > { %s3193_s30 = smov [#allocation7]   ;;  %s5873_s15 = sshll.u32 %s3184_s24, 10 }
  0x66   : > { %2845 = dma.hbm_to_smem (!%p5872_p6), %s5757_s0, 16, %s3192_s1, [#allocation5]  }
  0x67   : > { %s232_s28 = sshll.u32 %s3193_s30, 4  ;;  %s3420_s12 = scalar_lea.hbm %s5761_s4, %s5873_s15  ;;  %s233_s28 = int_to_ptr.vmem [resolvable:$true] %s232_s28 }
  0x68   : > { %s271_s7 = scalar_lea.vmem [#allocation10], %s3355_s29  ;;  %s3016_s23 = scalar_lea.hbm %s5759_s2, 4096 }
  0x69   : > { %s278_s16 = sshll.u32 %s271_s7, 4  ;;  %p3017_p5 = scmp.ne.s32.totalorder %s5759_s2, %s3016_s23  ;;  %s3444_s16 = int_to_ptr.vmem [resolvable:$true] %s278_s16 }
  0x6a   : > { %p3023_p7 = scmp.lt.u32.totalorder %s3016_s23, %s5759_s2 }
  0x6b   : > { %p3019_p13 = pnand %p3017_p5, %p3327_p8 }
  0x6d   : > { %p3020_p3 = pneg %p3019_p13 }
  0x6f   : > { %p3025_p9 = pnand %p3023_p7, %p3020_p3 }
  0x71   : > { %3028 = shalt.err (!%p3025_p9)
}
  0x72   : > { %s3029_s17 = scalar_lea.vmem %s233_s28, 4096  ;;  %p3037_p1 = scmp.lt.s32.totalorder %s233_s28, %s233_s28 }
  0x73   : > { %p3030_p2 = scmp.ne.s32.totalorder %s233_s28, %s3029_s17  ;;  %p3038_p4 = scmp.lt.s32.totalorder %s3029_s17, %s3029_s17 }
  0x75   : > { %p3032_p0 = pnand %p3030_p2, %p3327_p8  ;;  %p3039_p12 = por %p3038_p4, %p3037_p1 }
  0x77   : > { %p3033_p10 = pneg %p3032_p0 }
  0x79   : > { %p3040_p11 = pnand %p3039_p12, %p3033_p10 }
  0x7b   : > { %3043 = shalt.err (!%p3040_p11)
}
  0x7c   : > { %s5874_s3 = smov 8   ;;  %s5875_s29 = smov 128  }
  0x7d   : > { %2851 = dma.hbm_to_vmem [thread:$0]  (!%p5872_p6), %s5759_s2, 4096, %s233_s28, [#allocation8], %s5875_s29, %s5875_s29, %s5874_s3  }
  0x7e   : > { %s3044_s26 = scalar_lea.hbm %s3420_s12, 1024  ;;  %p5876_p12 = scmp.ne.s32.totalorder %s5870_s20, 0 }
  0x7f   : > { %p3045_p8 = scmp.ne.s32.totalorder %s3420_s12, %s3044_s26  ;;  %s3049_s27 = scalar_lea.hbm %s5761_s4, 2048 }
  0x80   : > { %p5877_p11 = pneg %p5876_p12  ;;  %p3050_p3 = scmp.lt.u32.totalorder %s3420_s12, %s5761_s4 }
  0x81   : > { %p3051_p7 = scmp.lt.u32.totalorder %s3049_s27, %s3044_s26  ;;  %p3053_p2 = scmp.lt.u32.totalorder %s3044_s26, %s3420_s12 }
  0x82   : > { %p3047_p5 = pnand %p3045_p8, %p5877_p11 }
  0x83   : > { %p3052_p9 = por %p3051_p7, %p3050_p3 }
  0x84   : > { %p3048_p13 = pneg %p3047_p5 }
  0x85   : > { %p3054_p6 = por %p3053_p2, %p3052_p9 }
  0x87   : > { %p3055_p0 = pnand %p3054_p6, %p3048_p13 }
  0x89   : > { %3058 = shalt.err (!%p3055_p0)
}
  0x8a   : > { %s3059_s28 = scalar_lea.vmem %s3444_s16, 1024  ;;  %p5878_p1 = pmov %p5877_p11 }
  0x8b   : > { %p3060_p10 = scmp.ne.s32.totalorder %s3444_s16, %s3059_s28  ;;  %s3194_s13 = smov [#allocation10]  }
  0x8c   : > { %s3064_s1 = sshll.u32 %s3194_s13, 4  ;;  %s3065_s1 = int_to_ptr.vmem [resolvable:$false] %s3064_s1 }
  0x8d   : > { %p3062_p4 = pnand %p3060_p10, %p5878_p1  ;;  %s3066_s30 = scalar_lea.vmem %s3065_s1, 2048 }
  0x8e   : > { %p3067_p11 = scmp.lt.s32.totalorder %s3444_s16, %s3065_s1  ;;  %p3068_p5 = scmp.lt.s32.totalorder %s3066_s30, %s3059_s28 }
  0x8f   : > { %p3063_p8 = pneg %p3062_p4 }
  0x90   : > { %p3069_p3 = por %p3068_p5, %p3067_p11 }
  0x92   : > { %p3070_p7 = pnand %p3069_p3, %p3063_p8 }
  0x94   : > { %3073 = shalt.err (!%p3070_p7)
}
  0x95   : > { %s5879_s17 = smov 16   ;;  %s5880_s3 = smov 256  }
  0x96   : > { %2858 = dma.hbm_to_vmem [thread:$0]  (!%p5876_p12), %s3420_s12, 1024, %s3444_s16, %s3368_s18, %s5880_s3, %s5880_s3, %s5879_s17  }
  0x97   : > { %p5881_p13 = scmp.ne.s32.totalorder %s5864_s11, 0 }
  0x99   : > { %290 = sbr.rel (%p5881_p13) target bundleno = 800 (0x320), region = 40 }
  0xa0   : > { %p5882_p9 = scmp.eq.s32.totalorder %s3265_s25, 0 }
  0xa2   : > { %3147 = dma.done.wait (%p5882_p9), [#allocation5], 16   ;;  %p5883_p2 = pmov %p5882_p9 }
  0xa4   : > { %3149 = vsyncadd (%p5883_p2), [#allocation5], 4294967280  ;;  %p5884_p6 = pmov %p5883_p2 }
  0xa5   : > { %p5885_p0 = pmov %p5883_p2 }
  0xa6   : > { %3151 = dma.done.wait (%p5884_p6), [#allocation3], 256  }
  0xa7   : > { %3153 = vsyncadd (%p5885_p0), [#allocation3], 4294967040  ;;  %p5886_p10 = pmov %p5885_p0 }
  0xa8   : > { %p5887_p12 = pmov %p5885_p0 }
  0xa9   : > { %3155 = dma.done.wait (%p5886_p10), [#allocation8], 4096  }
  0xaa   : > { %3157 = vsyncadd (%p5887_p12), [#allocation8], 4294963200  ;;  %s304_s11 = sand.u32 1, %s3265_s25   ;;  %s3489_s20 = sand.u32 1, %s3176_s22  }
  0xab   : > { %s2809_s18 = sshll.u32 %s3489_s20, 6  ;;  %s305_s12 = scalar_lea.sflag [#allocation3], %s304_s11 }
  0xac   : > { %s3492_s16 = scalar_lea.vmem [#allocation9], %s2809_s18  ;;  %p5888_p1 = scmp.ne.s32.totalorder %s5860_s8, 0 }
  0xae   : > { %3159 = dma.done.wait (%p5888_p1), %s305_s12, 2048  }
  0xaf   : > { %3161 = vsyncadd (%p5888_p1), %s305_s12, 4294965248  ;;  %s3498_s29 = scalar_lea.vmem [#allocation10], %s2809_s18 }
  0xb0   : > { %322 = sfence }
  0xb1   : > { %v3501_v0 = vld [vmem:[%s3492_s16 + $0x10] sm:$0xff]  ;;  %v3504_v1 = vld [vmem:[%s3492_s16 + $0x20] sm:$0xff]  ;;  %vm5849_vm0 = vcmask 1046528   ;;  %vm421_vm1 = vcmask 1045504   ;;  %vm452_vm2 = vcmask 1044480   ;;  %vm483_vm3 = vcmask 1043456  }
  0xb2   : > { %5889 = vst [vmem:[#allocation24_spill] sm:$0xff] %v3501_v0  ;;  %5890 = vst [vmem:[#allocation25_spill] sm:$0xff] %v3504_v1  ;;  %v3507_v2 = vmul.f32 0.0010283804, %v3501_v0  ;;  %v3510_v3 = vmul.f32 0.0075987587, %v3501_v0 }
  0xb3   : > { %v3513_v4 = vmul.f32 0.0075987587, %v3504_v1  ;;  %v3516_v5 = vmul.f32 0.036000773, %v3501_v0  ;;  %v3519_v6 = vmul.f32 0.036000773, %v3504_v1 }
  0xb4   : > { %v3522_v7 = vmul.f32 0.1093607, %v3501_v0  ;;  %v392_v8 = vrot.slane %v3510_v3, 1  ;;  %v444_v10 = vmul.f32 0.1093607, %v3504_v1  ;;  %v362_v23 = vld [vmem:[%s3492_s16 + $0x30] sm:$0xff] }
  0xb5   : > { %v397_v9 = vrot.slane %v3513_v4, 1  ;;  %v3528_v11 = vmul.f32 0.21300554, %v3501_v0  ;;  %v423_v12 = vrot.slane %v3516_v5, 2  ;;  %v428_v13 = vrot.slane %v3519_v6, 2  ;;  %v3552_v37 = vld [vmem:[%s3492_s16] sm:$0xff] }
  0xb6   : > { %v454_v14 = vrot.slane %v3522_v7, 3  ;;  %v475_v15 = vmul.f32 0.21300554, %v3504_v1  ;;  %v459_v17 = vrot.slane %v444_v10, 3  ;;  %v504_v22 = vmul.f32 0.26601174, %v3501_v0 }
  0xb7   : > { %v3535_v16 = vsel %vm5849_vm0, %v392_v8, %v397_v9  ;;  %v485_v18 = vrot.slane %v3528_v11, 4  ;;  %v429_v20 = vsel %vm421_vm1, %v423_v12, %v428_v13  ;;  %v506_v25 = vmul.f32 0.26601174, %v3504_v1  ;;  %5891 = vst [vmem:[#allocation26_spill] sm:$0xff] %v3552_v37  ;;  %v3568_v3 = vld [vmem:[%s3492_s16 + $0x18] sm:$0xff]  ;;  %v3575_v13 = vld [vmem:[%s3492_s16 + $0x28] sm:$0xff] }
  0xb8   : > { %v407_v19 = vadd.f32 %v3535_v16, %v3507_v2  ;;  %v490_v21 = vrot.slane %v475_v15, 4  ;;  %v460_v24 = vsel %vm452_vm2, %v454_v14, %v459_v17  ;;  %vm514_vm4 = vcmask 1042432   ;;  %5892 = vst [vmem:[#allocation27_spill] sm:$0xff] %v3568_v3  ;;  %5893 = vst [vmem:[#allocation28_spill] sm:$0xff] %v3575_v13  ;;  %s3195_s8 = smov 127   ;;  %s3196_s19 = smov 126  }
  0xb9   : > { %vm533_vm5 = vcmask 1041408   ;;  %v516_v28 = vrot.slane %v504_v22, 5  ;;  %v535_v29 = vrot.slane %v3528_v11, 6  ;;  %v521_v30 = vrot.slane %v506_v25, 5  ;;  %s3197_s23 = smov 125   ;;  %s3198_s26 = smov 124  }
  0xba   : > { %v438_v26 = vadd.f32 %v429_v20, %v407_v19  ;;  %v491_v27 = vsel %vm483_vm3, %v485_v18, %v490_v21  ;;  %v540_v31 = vrot.slane %v475_v15, 6  ;;  %vm552_vm6 = vcmask 1040384   ;;  %s3199_s14 = smov 123   ;;  %s3200_s15 = smov 122  }
  0xbb   : > { %v554_v32 = vrot.slane %v3522_v7, 7  ;;  %v559_v34 = vrot.slane %v444_v10, 7  ;;  %v575_v35 = vmul.f32 0.0075987587, %v362_v23  ;;  %v3549_v36 = vmul.f32 0.0010283804, %v3504_v1 }
  0xbc   : > { %v469_v33 = vadd.f32 %v460_v24, %v438_v26  ;;  %v522_v38 = vsel %vm514_vm4, %v516_v28, %v521_v30  ;;  %v591_v39 = vmul.f32 0.0010283804, %v362_v23  ;;  %v541_v41 = vsel %vm533_vm5, %v535_v29, %v540_v31  ;;  %s3201_s27 = smov 121   ;;  %s3202_s7 = smov 120  }
  0xbd   : > { %v560_v42 = vsel %vm552_vm6, %v554_v32, %v559_v34  ;;  %v374_v43 = vmul.f32 0.0010283804, %v3552_v37  ;;  %v579_v44 = vrot.slane %v575_v35, 1  ;;  %v600_v45 = vrot.slane %v3549_v36, 2  ;;  %s3203_s10 = smov 119   ;;  %s3204_s28 = smov 118  }
  0xbe   : > { %v500_v40 = vadd.f32 %v491_v27, %v469_v33  ;;  %v378_v46 = vmul.f32 0.0075987587, %v3552_v37  ;;  %v409_v47 = vmul.f32 0.036000773, %v3552_v37  ;;  %v605_v49 = vrot.slane %v591_v39, 2  ;;  %s2812_s13 = sld [smem:[#allocation2 + $0x1]] }
  0xbf   : > { %v440_v50 = vmul.f32 0.1093607, %v3552_v37  ;;  %v471_v51 = vmul.f32 0.21300554, %v3552_v37  ;;  %v502_v54 = vmul.f32 0.26601174, %v3552_v37  ;;  %v580_v7 = vsel %vm5849_vm0, %v397_v9, %v579_v44 }
  0xc0   : > { %v531_v48 = vadd.f32 %v522_v38, %v500_v40  ;;  %v391_v52 = vrot.slane %v378_v46, 1  ;;  %v422_v53 = vrot.slane %v409_v47, 2  ;;  %v599_v55 = vrot.slane %v3507_v2, 2  ;;  %s372_s1 = sld [smem:[#allocation2]]  ;;  %s2811_s30 = sshll.u32 %s3489_s20, 4 }
  0xc1   : > { %v453_v57 = vrot.slane %v440_v50, 3  ;;  %v484_v58 = vrot.slane %v471_v51, 4  ;;  %v534_v59 = vrot.slane %v471_v51, 6  ;;  %v515_v62 = vrot.slane %v502_v54, 5  ;;  %v3633_v51 = vld [vmem:[%s3492_s16 + $0x38] sm:$0xff]  ;;  %s2821_s17 = sshll.u32 %s3265_s25, 8 }
  0xc2   : > { %v550_v56 = vadd.f32 %v541_v41, %v531_v48  ;;  %v393_v60 = vsel %vm5849_vm0, %v391_v52, %v392_v8  ;;  %v424_v61 = vsel %vm421_vm1, %v422_v53, %v423_v12  ;;  %v553_v63 = vrot.slane %v440_v50, 7  ;;  %5895 = vst [vmem:[#allocation30_spill] sm:$0xff] %v3633_v51  ;;  %s349_s3 = scalar_lea.vmem [#allocation11], %s2811_s30  ;;  %p6152_p8 = scmp.ne.s32.totalorder %s5861_s9, 0 }
  0xc3   : > { %v606_v10 = vsel %vm421_vm1, %v600_v45, %v605_v49  ;;  %v405_v11 = vadd.f32 %v393_v60, %v374_v43  ;;  %v455_v15 = vsel %vm452_vm2, %v453_v57, %v454_v14  ;;  %v486_v8 = vsel %vm483_vm3, %v484_v58, %v485_v18  ;;  %s2628_s11 = sshll.u32 %s349_s3, 4  ;;  %s5674_s11 = int_to_ptr.vmem [resolvable:$true] %s2628_s11 }
  0xc4   : > { %v569_v4 = vadd.f32 %v560_v42, %v550_v56  ;;  %v517_v12 = vsel %vm514_vm4, %v515_v62, %v516_v28  ;;  %v536_v17 = vsel %vm533_vm5, %v534_v59, %v535_v29  ;;  %v3583_v9 = vmul.f32 0.0010283804, %v3568_v3 }
  0xc5   : > { %v436_v20 = vadd.f32 %v424_v61, %v405_v11  ;;  %v3586_v21 = vmul.f32 0.0075987587, %v3568_v3  ;;  %v555_v22 = vsel %vm552_vm6, %v553_v63, %v554_v32  ;;  %v3590_v23 = vmul.f32 0.0075987587, %v3575_v13  ;;  %v3639_v63 = vld [vmem:[%s3492_s16 + $0x8] sm:$0xff] }
  0xc6   : > { %v573_v19 = vadd.f32 %v569_v4, %v3519_v6  ;;  %v3593_v14 = vmul.f32 0.036000773, %v3568_v3  ;;  %v3596_v18 = vmul.f32 0.036000773, %v3575_v13  ;;  %v3600_v26 = vmul.f32 0.1093607, %v3568_v3 }
  0xc7   : > { %v467_v6 = vadd.f32 %v455_v15, %v436_v20  ;;  %v395_v25 = vrot.slane %v3586_v21, 1  ;;  %v399_v27 = vrot.slane %v3590_v23, 1  ;;  %v445_v30 = vmul.f32 0.1093607, %v3575_v13  ;;  %5896 = vst [vmem:[#allocation31_spill] sm:$0xff] %v3639_v63 }
  0xc8   : > { %v587_v24 = vadd.f32 %v580_v7, %v573_v19  ;;  %v426_v28 = vrot.slane %v3593_v14, 2  ;;  %v430_v29 = vrot.slane %v3596_v18, 2  ;;  %v457_v33 = vrot.slane %v3600_v26, 3 }
  0xc9   : > { %v498_v32 = vadd.f32 %v486_v8, %v467_v6  ;;  %v3610_v34 = vmul.f32 0.21300554, %v3568_v3  ;;  %v3615_v35 = vsel %vm5849_vm0, %v395_v25, %v399_v27  ;;  %v461_v39 = vrot.slane %v445_v30, 3 }
  0xca   : > { %v3606_v31 = vadd.f32 %v606_v10, %v587_v24  ;;  %v431_v38 = vsel %vm421_vm1, %v426_v28, %v430_v29  ;;  %v476_v40 = vmul.f32 0.21300554, %v3575_v13  ;;  %v408_v43 = vadd.f32 %v3615_v35, %v3583_v9 }
  0xcb   : > { %v529_v42 = vadd.f32 %v517_v12, %v498_v32  ;;  %v488_v44 = vrot.slane %v3610_v34, 4  ;;  %v462_v46 = vsel %vm452_vm2, %v457_v33, %v461_v39  ;;  %v505_v48 = vmul.f32 0.26601174, %v3568_v3 }
  0xcc   : > { %5894 = vst [vmem:[#allocation29_spill] sm:$0xff] %v3606_v31  ;;  %v3622_v41 = vmul.f32 0.0075987587, %v3606_v31  ;;  %v492_v47 = vrot.slane %v476_v40, 4  ;;  %v507_v49 = vmul.f32 0.26601174, %v3575_v13  ;;  %v439_v52 = vadd.f32 %v431_v38, %v408_v43 }
  0xcd   : > { %v548_v50 = vadd.f32 %v536_v17, %v529_v42  ;;  %v538_v53 = vrot.slane %v3610_v34, 6  ;;  %v542_v54 = vrot.slane %v476_v40, 6  ;;  %v519_v57 = vrot.slane %v505_v48, 5 }
  0xce   : > { %631 = vrot.lane.b32.xlu1 %v3622_v41, %s3195_s8  ;;  %v493_v56 = vsel %vm483_vm3, %v488_v44, %v492_v47  ;;  %v523_v58 = vrot.slane %v507_v49, 5  ;;  %v557_v59 = vrot.slane %v3600_v26, 7  ;;  %v470_v61 = vadd.f32 %v462_v46, %v439_v52 }
  0xcf   : > { %v567_v60 = vadd.f32 %v555_v22, %v548_v50  ;;  %v561_v62 = vrot.slane %v445_v30, 7  ;;  %v576_v7 = vmul.f32 0.0075987587, %v3633_v51  ;;  %v590_v10 = vmul.f32 0.0010283804, %v3575_v13 }
  0xd0   : > { %v524_v4 = vsel %vm514_vm4, %v519_v57, %v523_v58  ;;  %v601_v15 = vsel %vm421_vm1, %v599_v55, %v600_v45  ;;  %v501_v8 = vadd.f32 %v493_v56, %v470_v61  ;;  %v543_v12 = vsel %vm533_vm5, %v538_v53, %v542_v54 }
  0xd1   : > { %v571_v11 = vadd.f32 %v567_v60, %v3516_v5  ;;  %v562_v17 = vsel %vm552_vm6, %v557_v59, %v561_v62  ;;  %v592_v19 = vmul.f32 0.0010283804, %v3633_v51  ;;  %v375_v20 = vmul.f32 0.0010283804, %v3639_v63 }
  0xd2   : > { %v379_v21 = vmul.f32 0.0075987587, %v3639_v63  ;;  %v532_v5 = vadd.f32 %v524_v4, %v501_v8  ;;  %v410_v36 = vmul.f32 0.036000773, %v3639_v63  ;;  %v441_v2 = vmul.f32 0.1093607, %v3639_v63 }
  0xd3   : > { %v585_v22 = vadd.f32 %v571_v11, %v3535_v16  ;;  %v581_v24 = vrot.slane %v576_v7, 1  ;;  %v603_v45 = vrot.slane %v590_v10, 2  ;;  %v472_v6 = vmul.f32 0.21300554, %v3639_v63 }
  0xd4   : > { %v394_v55 = vrot.slane %v379_v21, 1  ;;  %v551_v29 = vadd.f32 %v543_v12, %v532_v5  ;;  %v425_v30 = vrot.slane %v410_v36, 2  ;;  %v456_v32 = vrot.slane %v441_v2, 3  ;;  %v3734_v21 = vld [vmem:[%s3498_s29 + $0x18] sm:$0xff]  ;;  %v3747_v36 = vld [vmem:[%s3498_s29 + $0x28] sm:$0xff] }
  0xd5   : > { %v3659_v26 = vadd.f32 %v601_v15, %v585_v22  ;;  %v607_v34 = vrot.slane %v592_v19, 2  ;;  %v487_v39 = vrot.slane %v472_v6, 4  ;;  %v503_v16 = vmul.f32 0.26601174, %v3639_v63  ;;  %5899 = vst [vmem:[#allocation34_spill] sm:$0xff] %v3734_v21  ;;  %5900 = vst [vmem:[#allocation35_spill] sm:$0xff] %v3747_v36 }
  0xd6   : > { %v396_v38 = vsel %vm5849_vm0, %v394_v55, %v395_v25  ;;  %v570_v42 = vadd.f32 %v562_v17, %v551_v29  ;;  %v427_v46 = vsel %vm421_vm1, %v425_v30, %v426_v28  ;;  %v582_v47 = vsel %vm5849_vm0, %v399_v27, %v581_v24 }
  0xd7   : > { %v3664_v40 = vmul.f32 0.0075987587, %v3659_v26  ;;  %v406_v43 = vadd.f32 %v396_v38, %v375_v20  ;;  %v458_v48 = vsel %vm452_vm2, %v456_v32, %v457_v33  ;;  %v518_v49 = vrot.slane %v503_v16, 5  ;;  %v3731_v20 = vld [vmem:[%s3498_s29 + $0x8] sm:$0xff]  ;;  %v3769_v38 = vld [vmem:[%s3498_s29] sm:$0xff] }
  0xd8   : > { %v574_v25 = vadd.f32 %v570_v42, %v3596_v18  ;;  %v608_v52 = vsel %vm421_vm1, %v603_v45, %v607_v34  ;;  %v489_v54 = vsel %vm483_vm3, %v487_v39, %v488_v44  ;;  %v537_v56 = vrot.slane %v472_v6, 6  ;;  %5898 = vst [vmem:[#allocation33_spill] sm:$0xff] %v3731_v20  ;;  %5901 = vst [vmem:[#allocation36_spill] sm:$0xff] %v3769_v38  ;;  %v3772_v39 = vld [vmem:[%s3498_s29 + $0x10] sm:$0xff] }
  0xd9   : > { %627 = vrot.lane.b32.xlu0 %v3664_v40, %s3195_s8  ;;  %v437_v50 = vadd.f32 %v427_v46, %v406_v43  ;;  %v520_v23 = vsel %vm514_vm4, %v518_v49, %v519_v57  ;;  %v556_v60 = vrot.slane %v441_v2, 7  ;;  %v602_v7 = vrot.slane %v3583_v9, 2  ;;  %5902 = vst [vmem:[#allocation37_spill] sm:$0xff] %v3772_v39  ;;  %v3781_v43 = vld [vmem:[%s3498_s29 + $0x20] sm:$0xff] }
  0xda   : > { %v588_v58 = vadd.f32 %v582_v47, %v574_v25  ;;  %v539_v61 = vsel %vm533_vm5, %v537_v56, %v538_v53  ;;  %v3705_v9 = vmul.f32 0.036000773, %v3659_v26  ;;  %v3725_v17 = vmul.f32 0.1093607, %v3659_v26 }
  0xdb   : > { %v468_v28 = vadd.f32 %v458_v48, %v437_v50  ;;  %v558_v4 = vsel %vm552_vm6, %v556_v60, %v557_v59  ;;  %v604_v11 = vsel %vm421_vm1, %v602_v7, %v603_v45  ;;  %v3741_v22 = vmul.f32 0.1093607, %v3606_v31 }
  0xdc   : > { %v3679_v27 = vadd.f32 %v608_v52, %v588_v58  ;;  %v820_v2 = vmul.f32 0.0075987587, %v3731_v20  ;;  %v822_v24 = vmul.f32 0.0075987587, %v3734_v21  ;;  %v3752_v45 = vmul.f32 0.0075987587, %v3747_v36 }
  0xdd   : > { %v499_v33 = vadd.f32 %v489_v54, %v468_v28  ;;  %v850_v55 = vmul.f32 0.036000773, %v3731_v20  ;;  %v3760_v6 = vmul.f32 0.21300554, %v3659_v26  ;;  %v3766_v34 = vmul.f32 0.036000773, %v3734_v21 }
  0xde   : > { %5897 = vst [vmem:[#allocation32_spill] sm:$0xff] %v3679_v27  ;;  %v3683_v62 = vmul.f32 0.0075987587, %v3679_v27  ;;  %v3728_v19 = vmul.f32 0.1093607, %v3679_v27  ;;  %v834_v30 = vrot.slane %v820_v2, 1 }
  0xdf   : > { %v530_v18 = vadd.f32 %v520_v23, %v499_v33  ;;  %v3763_v29 = vmul.f32 0.21300554, %v3679_v27  ;;  %v835_v32 = vrot.slane %v822_v24, 1  ;;  %v3775_v16 = vmul.f32 0.21300554, %v3606_v31 }
  0xe0   : > { %633 = vrot.lane.b32.xlu1 %v3683_v62, %s3195_s8  ;;  %v3778_v42 = vmul.f32 0.036000773, %v3747_v36  ;;  %v711_v46 = vmul.f32 0.26601174, %v3659_v26  ;;  %v816_v47 = vmul.f32 0.0010283804, %v3731_v20 }
  0xe1   : > { %v549_v44 = vadd.f32 %v539_v61, %v530_v18  ;;  %v5782_v48 = vrot.slane %v3752_v45, 1  ;;  %v864_v49 = vrot.slane %v850_v55, 2  ;;  %v819_v50 = vmul.f32 0.0075987587, %v3769_v38 }
  0xe2   : > { %v821_v52 = vmul.f32 0.0075987587, %v3772_v39  ;;  %v836_v54 = vsel %vm5849_vm0, %v834_v30, %v835_v32  ;;  %v865_v56 = vrot.slane %v3766_v34, 2  ;;  %v3796_v58 = vmul.f32 0.1093607, %v3731_v20 }
  0xe3   : > { %v568_v10 = vadd.f32 %v558_v4, %v549_v44  ;;  %v3799_v28 = vmul.f32 0.1093607, %v3734_v21  ;;  %v713_v23 = vmul.f32 0.26601174, %v3606_v31  ;;  %v3803_v60 = vmul.f32 0.0010283804, %v3734_v21 }
  0xe4   : > { %v869_v33 = vrot.slane %v3778_v42, 2  ;;  %v714_v61 = vmul.f32 0.26601174, %v3679_v27  ;;  %v3810_v18 = vsel %vm5849_vm0, %v835_v32, %v5782_v48  ;;  %v3813_v4 = vmul.f32 0.0075987587, %v3781_v43 }
  0xe5   : > { %v572_v57 = vadd.f32 %v568_v10, %v3593_v14  ;;  %v3708_v14 = vmul.f32 0.036000773, %v3679_v27  ;;  %v849_v44 = vmul.f32 0.036000773, %v3769_v38  ;;  %v846_v7 = vadd.f32 %v836_v54, %v816_v47 }
  0xe6   : > { %5903 = vst [vmem:[#allocation38_spill] sm:$0xff] %v3813_v4  ;;  %v831_v10 = vrot.slane %v819_v50, 1  ;;  %v3824_v2 = vmul.f32 0.1093607, %v3747_v36  ;;  %v894_v24 = vrot.slane %v3796_v58, 3  ;;  %v895_v55 = vrot.slane %v3799_v28, 3 }
  0xe7   : > { %v586_v15 = vadd.f32 %v572_v57, %v3615_v35  ;;  %v3715_v35 = vmul.f32 0.036000773, %v3606_v31  ;;  %v832_v57 = vrot.slane %v821_v52, 1  ;;  %v848_v30 = vadd.f32 %v3810_v18, %v3803_v60 }
  0xe8   : > { %v870_v32 = vsel %vm421_vm1, %v865_v56, %v869_v33  ;;  %v3832_v47 = vmul.f32 0.21300554, %v3731_v20  ;;  %v3840_v52 = vmul.f32 0.036000773, %v3781_v43  ;;  %v861_v54 = vrot.slane %v849_v44, 2 }
  0xe9   : > { %v3692_v53 = vadd.f32 %v604_v11, %v586_v15  ;;  %v3820_v11 = vmul.f32 0.036000773, %v3772_v39  ;;  %v866_v15 = vsel %vm421_vm1, %v864_v49, %v865_v56  ;;  %v815_v49 = vmul.f32 0.0010283804, %v3769_v38 }
  0xea   : > { %5904 = vst [vmem:[#allocation39_spill] sm:$0xff] %v3840_v52  ;;  %v833_v56 = vsel %vm5849_vm0, %v831_v10, %v832_v57  ;;  %v3847_v48 = vmul.f32 0.1093607, %v3769_v38  ;;  %v3850_v51 = vmul.f32 0.1093607, %v3772_v39  ;;  %v876_v1 = vadd.f32 %v866_v15, %v846_v7 }
  0xeb   : > { %v3695_v8 = vmul.f32 0.0075987587, %v3692_v53  ;;  %v3698_v59 = vmul.f32 0.036000773, %v3692_v53  ;;  %v3718_v12 = vmul.f32 0.1093607, %v3692_v53  ;;  %v896_v50 = vsel %vm452_vm2, %v894_v24, %v895_v55 }
  0xec   : > { %v3744_v5 = vmul.f32 0.21300554, %v3692_v53  ;;  %v712_v25 = vmul.f32 0.26601174, %v3692_v53  ;;  %v862_v33 = vrot.slane %v3820_v11, 2  ;;  %v899_v0 = vrot.slane %v3824_v2, 3 }
  0xed   : > { %629 = vrot.lane.b32.xlu0 %v3695_v8, %s3195_s8  ;;  %652 = vrot.lane.b32.xlu1 %v3698_v59, %s3196_s19  ;;  %v3855_v44 = vmul.f32 0.21300554, %v3747_v36  ;;  %v940_v10 = vmul.f32 0.26601174, %v3731_v20  ;;  %v3861_v37 = vmul.f32 0.26601174, %v3734_v21  ;;  %v845_v24 = vadd.f32 %v833_v56, %v815_v49 }
  0xee   : > { %v3864_v13 = vmul.f32 0.0010283804, %v3772_v39  ;;  %v5905_v7 = vrot.slane %v3813_v4, 1  ;;  %v867_v3 = vrot.slane %v3840_v52, 2  ;;  %v3877_v20 = vmul.f32 0.1093607, %v3781_v43 }
  0xef   : > { %v891_v63 = vrot.slane %v3847_v48, 3  ;;  %v892_v31 = vrot.slane %v3850_v51, 3  ;;  %v900_v49 = vsel %vm452_vm2, %v895_v55, %v899_v0  ;;  %v3883_v56 = vmul.f32 0.21300554, %v3769_v38 }
  0xf0   : > { %v3869_v15 = vsel %vm5849_vm0, %v832_v57, %v5905_v7  ;;  %v878_v57 = vadd.f32 %v870_v32, %v848_v30  ;;  %v906_v7 = vadd.f32 %v896_v50, %v876_v1  ;;  %v954_v4 = vrot.slane %v940_v10, 5 }
  0xf1   : > { %650 = vrot.lane.b32.xlu0 %v3705_v9, %s3196_s19  ;;  %656 = vrot.lane.b32.xlu1 %v3708_v14, %s3196_s19  ;;  %5906 = vst [vmem:[#allocation40_spill] sm:$0xff] %v3869_v15  ;;  %v955_v52 = vrot.slane %v3861_v37, 5  ;;  %v847_v27 = vadd.f32 %v3869_v15, %v3864_v13  ;;  %v868_v30 = vsel %vm421_vm1, %v862_v33, %v867_v3  ;;  %v897_v55 = vrot.slane %v3877_v20, 3 }
  0xf2   : > { %v893_v1 = vsel %vm452_vm2, %v891_v63, %v892_v31  ;;  %v3901_v32 = vmul.f32 0.21300554, %v3781_v43  ;;  %v939_v37 = vmul.f32 0.26601174, %v3769_v38  ;;  %v921_v50 = vrot.slane %v3883_v56, 4 }
  0xf3   : > { %v877_v15 = vadd.f32 %v868_v30, %v847_v27  ;;  %v990_v27 = vrot.slane %v3796_v58, 7  ;;  %vm635_vm7 = vcmask 1039360   ;;  %vm658_vm8 = vcmask 1031168  }
  0xf4   : > { %vm681_vm9 = vcmask 1022976   ;;  %vm704_vm10 = vcmask 1014784   ;;  %vm727_vm11 = vcmask 1006592   ;;  %vm742_vm12 = vcmask 998400  }
  0xf5   : > { %654 = vrot.lane.b32.xlu0 %v3715_v35, %s3196_s19  ;;  %675 = vrot.lane.b32.xlu1 %v3718_v12, %s3197_s23  ;;  %vm757_vm13 = vcmask 990208   ;;  %vm772_vm14 = vcmask 982016   ;;  %vm787_vm15 = vcmask 973824  }
  0xf9   : > { %673 = vrot.lane.b32.xlu0 %v3725_v17, %s3197_s23  ;;  %679 = vrot.lane.b32.xlu1 %v3728_v19, %s3197_s23 }
  0xfd   : > { %677 = vrot.lane.b32.xlu0 %v3741_v22, %s3197_s23  ;;  %698 = vrot.lane.b32.xlu1 %v3744_v5, %s3198_s26 }
 0x101   : > { %696 = vrot.lane.b32.xlu0 %v3760_v6, %s3198_s26  ;;  %702 = vrot.lane.b32.xlu1 %v3763_v29, %s3198_s26 }
 0x105   : > { %700 = vrot.lane.b32.xlu0 %v3775_v16, %s3198_s26  ;;  %721 = vrot.lane.b32.xlu1 %v712_v25, %s3199_s14  ;;  %v3835_v25 = vmul.f32 0.21300554, %v3734_v21  ;;  %v863_v21 = vsel %vm421_vm1, %v861_v54, %v862_v33  ;;  %v929_v54 = vrot.slane %v3855_v44, 4  ;;  %v908_v33 = vadd.f32 %v900_v49, %v878_v57 }
 0x106   : > { %v875_v0 = vadd.f32 %v863_v21, %v845_v24  ;;  %v941_v21 = vmul.f32 0.26601174, %v3772_v39  ;;  %v956_v24 = vsel %vm514_vm4, %v954_v4, %v955_v52  ;;  %v951_v49 = vrot.slane %v939_v37, 5 }
 0x107   : > { %v973_v63 = vrot.slane %v3835_v25, 6  ;;  %v943_v4 = vmul.f32 0.26601174, %v3781_v43  ;;  %v977_v37 = vrot.slane %v3855_v44, 6 }
 0x108   : > { %v905_v57 = vadd.f32 %v893_v1, %v875_v0  ;;  %v969_v1 = vrot.slane %v3883_v56, 6 }
 0x109   : > { %719 = vrot.lane.b32.xlu0 %v711_v46, %s3199_s14  ;;  %725 = vrot.lane.b32.xlu1 %v714_v61, %s3199_s14  ;;  %v924_v46 = vrot.slane %v3832_v47, 4  ;;  %v925_v61 = vrot.slane %v3835_v25, 4 }
 0x10d   : > { %723 = vrot.lane.b32.xlu0 %v713_v23, %s3199_s14  ;;  %736 = vrot.lane.b32.xlu1 %v3744_v5, %s3200_s15  ;;  %v3886_v23 = vmul.f32 0.21300554, %v3772_v39  ;;  %v926_v5 = vsel %vm483_vm3, %v924_v46, %v925_v61  ;;  %v930_v46 = vsel %vm483_vm3, %v925_v61, %v929_v54  ;;  %v898_v39 = vsel %vm452_vm2, %v892_v31, %v897_v55 }
 0x10e   : > { %v936_v10 = vadd.f32 %v926_v5, %v906_v7  ;;  %v952_v61 = vrot.slane %v941_v21, 5  ;;  %v938_v5 = vadd.f32 %v930_v46, %v908_v33  ;;  %v907_v30 = vadd.f32 %v898_v39, %v877_v15 }
 0x10f   : > { %v922_v3 = vrot.slane %v3886_v23, 4  ;;  %v970_v58 = vrot.slane %v3886_v23, 6  ;;  %v957_v39 = vrot.slane %v943_v4, 5  ;;  %v978_v23 = vsel %vm533_vm5, %v973_v63, %v977_v37  ;;  %v5912_v37 = vld [vmem:[#allocation38_spill] sm:$0xff] }
 0x110   : > { %v966_v54 = vadd.f32 %v956_v24, %v936_v10  ;;  %v995_v21 = vrot.slane %v3824_v2, 7  ;;  %v993_v24 = vrot.slane %v3877_v20, 7 }
 0x111   : > { %734 = vrot.lane.b32.xlu0 %v3760_v6, %s3200_s15  ;;  %740 = vrot.lane.b32.xlu1 %v3763_v29, %s3200_s15  ;;  %v944_v6 = vmul.f32 0.26601174, %v3747_v36  ;;  %v972_v29 = vrot.slane %v3832_v47, 6  ;;  %v927_v47 = vrot.slane %v3901_v32, 4  ;;  %v923_v25 = vsel %vm483_vm3, %v921_v50, %v922_v3 }
 0x112   : > { %v935_v0 = vadd.f32 %v923_v25, %v905_v57  ;;  %v971_v44 = vsel %vm533_vm5, %v969_v1, %v970_v58  ;;  %v370_v57 = vld [vmem:[%s3498_s29 + $0x30] sm:$0xff] }
 0x113   : > { %v959_v7 = vrot.slane %v944_v6, 5  ;;  %v928_v31 = vsel %vm483_vm3, %v922_v3, %v927_v47  ;;  %v988_v3 = vrot.slane %v3850_v51, 7  ;;  %v975_v51 = vrot.slane %v3901_v32, 6  ;;  %v371_v6 = vld [vmem:[%s3498_s29 + $0x38] sm:$0xff] }
 0x114   : > { %v937_v50 = vadd.f32 %v928_v31, %v907_v30  ;;  %v1010_v10 = vmul.f32 0.0075987587, %v371_v6  ;;  %v1026_v20 = vmul.f32 0.0010283804, %v371_v6 }
 0x115   : > { %738 = vrot.lane.b32.xlu0 %v3775_v16, %s3200_s15  ;;  %751 = vrot.lane.b32.xlu1 %v3718_v12, %s3201_s27  ;;  %v991_v16 = vrot.slane %v3799_v28, 7  ;;  %v974_v12 = vsel %vm533_vm5, %v972_v29, %v973_v63  ;;  %v953_v28 = vsel %vm514_vm4, %v951_v49, %v952_v61  ;;  %v960_v55 = vsel %vm514_vm4, %v955_v52, %v959_v7 }
 0x116   : > { %v984_v15 = vadd.f32 %v974_v12, %v966_v54  ;;  %v965_v52 = vadd.f32 %v953_v28, %v935_v0  ;;  %v968_v56 = vadd.f32 %v960_v55, %v938_v5  ;;  %v976_v32 = vsel %vm533_vm5, %v970_v58, %v975_v51  ;;  %v5911_v58 = vld [vmem:[#allocation39_spill] sm:$0xff] }
 0x117   : > { %v996_v46 = vsel %vm552_vm6, %v991_v16, %v995_v21  ;;  %v1036_v49 = vrot.slane %v3803_v60, 2  ;;  %v1015_v4 = vrot.slane %v1010_v10, 1  ;;  %v794_v60 = vmul.f32 0.0010283804, %v3692_v53 }
 0x118   : > { %v986_v63 = vadd.f32 %v978_v23, %v968_v56  ;;  %v1033_v5 = vrot.slane %v3864_v13, 2  ;;  %v5907_v53 = vrot.slane %v3752_v45, 1  ;;  %v1041_v30 = vrot.slane %v1026_v20, 2  ;;  %v5922_v20 = vld [vmem:[#allocation26_spill] sm:$0xff] }
 0x119   : > { %749 = vrot.lane.b32.xlu0 %v3725_v17, %s3201_s27  ;;  %755 = vrot.lane.b32.xlu1 %v3728_v19, %s3201_s27  ;;  %v992_v17 = vsel %vm552_vm6, %v990_v27, %v991_v16  ;;  %v987_v19 = vrot.slane %v3847_v48, 7  ;;  %v958_v48 = vsel %vm514_vm4, %v952_v61, %v957_v39  ;;  %v994_v27 = vsel %vm552_vm6, %v988_v3, %v993_v24 }
 0x11a   : > { %v1002_v33 = vadd.f32 %v992_v17, %v984_v15  ;;  %v967_v2 = vadd.f32 %v958_v48, %v937_v50  ;;  %v1004_v61 = vadd.f32 %v996_v46, %v986_v63  ;;  %v1025_v0 = vmul.f32 0.0010283804, %v370_v57  ;;  %v5919_v46 = vld [vmem:[#allocation31_spill] sm:$0xff] }
 0x11b   : > { %v989_v29 = vsel %vm552_vm6, %v987_v19, %v988_v3  ;;  %v3978_v13 = vmul.f32 0.0010283804, %v3659_v26  ;;  %v5913_v39 = vrot.slane %v5912_v37, 1  ;;  %v4061_v10 = vmul.f32 %v5919_v46, %v5919_v46 }
 0x11c   : > { %v1006_v47 = vadd.f32 %v1002_v33, %v3766_v34  ;;  %v985_v7 = vadd.f32 %v976_v32, %v967_v2  ;;  %v1009_v34 = vmul.f32 0.0075987587, %v370_v57  ;;  %v1008_v54 = vadd.f32 %v1004_v61, %v3778_v42  ;;  %v5920_v32 = vld [vmem:[#allocation27_spill] sm:$0xff]  ;;  %v5921_v57 = vld [vmem:[#allocation28_spill] sm:$0xff] }
 0x11d   : > { %753 = vrot.lane.b32.xlu0 %v3741_v22, %s3201_s27  ;;  %766 = vrot.lane.b32.xlu1 %v3698_v59, %s3202_s7  ;;  %v1024_v22 = vmul.f32 0.0010283804, %v3747_v36  ;;  %v983_v59 = vadd.f32 %v971_v44, %v965_v52  ;;  %5908 = vst [vmem:[#allocation41_spill] sm:$0xff] %v3978_v13  ;;  %v1039_v15 = vrot.slane %v1025_v0, 2  ;;  %v4065_v24 = vmul.f32 %v5920_v32, %v5920_v32 }
 0x11e   : > { %v1020_v16 = vadd.f32 %v1006_v47, %v3810_v18  ;;  %v1003_v12 = vadd.f32 %v994_v27, %v985_v7  ;;  %v1016_v18 = vsel %vm5849_vm0, %v5907_v53, %v1015_v4  ;;  %v1013_v31 = vrot.slane %v1009_v34, 1  ;;  %v5923_v34 = vld [vmem:[#allocation24_spill] sm:$0xff] }
 0x11f   : > { %v1037_v25 = vrot.slane %v1024_v22, 2  ;;  %v1022_v1 = vadd.f32 %v1016_v18, %v1008_v54  ;;  %v4069_v47 = vmul.f32 %v5921_v57, %v5921_v57  ;;  %v4098_v27 = vmul.f32 %v5922_v20, %v5922_v20 }
 0x120   : > { %v1007_v28 = vadd.f32 %v1003_v12, %v5911_v58  ;;  %v1014_v17 = vsel %vm5849_vm0, %v5913_v39, %v1013_v31  ;;  %v1248_v53 = vmul.f32 0.0010283804, %v4061_v10  ;;  %v4133_v58 = vmul.f32 0.1093607, %v4065_v24 }
 0x121   : > { %764 = vrot.lane.b32.xlu0 %v3705_v9, %s3202_s7  ;;  %770 = vrot.lane.b32.xlu1 %v3708_v14, %s3202_s7  ;;  %v1001_v9 = vadd.f32 %v989_v29, %v983_v59  ;;  %v1023_v14 = vmul.f32 0.0010283804, %v3781_v43  ;;  %v1042_v26 = vsel %vm421_vm1, %v1037_v25, %v1041_v30  ;;  %v4084_v61 = vmul.f32 0.0075987587, %v4069_v47  ;;  %v5924_v30 = vld [vmem:[#allocation25_spill] sm:$0xff] }
 0x122   : > { %v4004_v52 = vadd.f32 %v1042_v26, %v1022_v1  ;;  %v1021_v44 = vadd.f32 %v1014_v17, %v1007_v28  ;;  %v4110_v54 = vmul.f32 0.036000773, %v4069_v47  ;;  %v4117_v31 = vmul.f32 %v5924_v30, %v5924_v30 }
 0x123   : > { %v1034_v43 = vrot.slane %v1023_v14, 2  ;;  %v1254_v14 = vmul.f32 0.0075987587, %v4065_v24  ;;  %v5798_v18 = vrot.slane %v4084_v61, 1  ;;  %v4130_v1 = vmul.f32 0.1093607, %v4061_v10 }
 0x124   : > { %v4015_v21 = vmul.f32 0.0075987587, %v4004_v52  ;;  %v4037_v22 = vmul.f32 0.036000773, %v4004_v52  ;;  %v4057_v2 = vmul.f32 0.1093607, %v4004_v52 }
 0x125   : > { %768 = vrot.lane.b32.xlu0 %v3715_v35, %s3202_s7  ;;  %781 = vrot.lane.b32.xlu1 %v3695_v8, %s3203_s10  ;;  %v1038_v35 = vsel %vm421_vm1, %v1036_v49, %v1037_v25  ;;  %v1005_v8 = vadd.f32 %v1001_v9, %v3820_v11  ;;  %v5910_v11 = vld [vmem:[#allocation40_spill] sm:$0xff]  ;;  %v1035_v55 = vsel %vm421_vm1, %v1033_v5, %v1034_v43  ;;  %v1252_v9 = vmul.f32 0.0075987587, %v4061_v10 }
 0x126   : > { %5916 = vst [vmem:[#allocation40_spill] sm:$0xff] %v4004_v52  ;;  %v1040_v56 = vsel %vm421_vm1, %v1034_v43, %v1039_v15  ;;  %v4094_v4 = vmul.f32 0.21300554, %v4004_v52  ;;  %v1267_v43 = vrot.slane %v1254_v14, 1  ;;  %v4139_v26 = vmul.f32 0.0010283804, %v4065_v24 }
 0x127   : > { %v1019_v45 = vadd.f32 %v1005_v8, %v5910_v11  ;;  %v4017_v48 = vadd.f32 %v1040_v56, %v1021_v44  ;;  %v1266_v8 = vrot.slane %v1252_v9, 1  ;;  %v1301_v39 = vrot.slane %v4110_v54, 2 }
 0x128   : > { %v4147_v15 = vsel %vm5849_vm0, %v1267_v43, %v5798_v18  ;;  %v1281_v44 = vmul.f32 0.036000773, %v4098_v27  ;;  %v4157_v56 = vmul.f32 0.1093607, %v4069_v47  ;;  %v1326_v20 = vrot.slane %v4130_v1, 3 }
 0x129   : > { %779 = vrot.lane.b32.xlu0 %v3664_v40, %s3203_s10  ;;  %785 = vrot.lane.b32.xlu1 %v3683_v62, %s3203_s10  ;;  %v3980_v40 = vadd.f32 %v1038_v35, %v1020_v16  ;;  %v5909_v62 = vld [vmem:[#allocation32_spill] sm:$0xff]  ;;  %v4002_v3 = vadd.f32 %v1035_v55, %v1019_v45  ;;  %5917 = vst [vmem:[#allocation39_spill] sm:$0xff] %v4017_v48  ;;  %v4024_v51 = vmul.f32 0.0075987587, %v4017_v48  ;;  %v4044_v29 = vmul.f32 0.036000773, %v4017_v48 }
 0x12a   : > { %v795_v42 = vmul.f32 0.0010283804, %v5909_v62  ;;  %v4076_v49 = vmul.f32 0.1093607, %v4017_v48  ;;  %v1282_v16 = vmul.f32 0.036000773, %v4061_v10  ;;  %v1268_v37 = vsel %vm5849_vm0, %v1266_v8, %v1267_v43 }
 0x12b   : > { %v4000_v19 = vmul.f32 0.0075987587, %v3980_v40  ;;  %v4012_v23 = vmul.f32 0.0075987587, %v4002_v3  ;;  %5918 = vst [vmem:[#allocation38_spill] sm:$0xff] %v4024_v51  ;;  %v1278_v9 = vadd.f32 %v1268_v37, %v1248_v53 }
 0x12c   : > { %v4027_v6 = vmul.f32 0.036000773, %v3980_v40  ;;  %v4034_v33 = vmul.f32 0.036000773, %v4002_v3  ;;  %v4047_v59 = vmul.f32 0.1093607, %v3980_v40 }
 0x12d   : > { %783 = vrot.lane.b32.xlu0 %v3622_v41, %s3203_s10  ;;  %802 = vrot.lane.b32.xlu1 %v794_v60, %s3204_s28  ;;  %v5914_v41 = vld [vmem:[#allocation29_spill] sm:$0xff]  ;;  %v4054_v63 = vmul.f32 0.1093607, %v4002_v3  ;;  %v4079_v25 = vmul.f32 0.21300554, %v3980_v40  ;;  %v4102_v60 = vmul.f32 %v5923_v34, %v5923_v34  ;;  %v1296_v11 = vrot.slane %v1282_v16, 2 }
 0x12e   : > { %v3994_v50 = vmul.f32 0.0010283804, %v5914_v41  ;;  %v4091_v7 = vmul.f32 0.21300554, %v4002_v3  ;;  %v4106_v35 = vmul.f32 0.036000773, %v4065_v24  ;;  %v1280_v16 = vadd.f32 %v4147_v15, %v4139_v26 }
 0x12f   : > { %v1142_v5 = vmul.f32 0.26601174, %v3980_v40  ;;  %v1141_v12 = vmul.f32 0.26601174, %v4002_v3  ;;  %v4124_v0 = vmul.f32 0.21300554, %v4017_v48 }
 0x130   : > { %5915 = vst [vmem:[#allocation32_spill] sm:$0xff] %v3994_v50  ;;  %v1251_v62 = vmul.f32 0.0075987587, %v4098_v27  ;;  %v1297_v45 = vrot.slane %v4106_v35, 2  ;;  %v1144_v55 = vmul.f32 0.26601174, %v4004_v52 }
 0x131   : > { %800 = vrot.lane.b32.xlu0 %v3978_v13, %s3204_s28  ;;  %806 = vrot.lane.b32.xlu1 %v795_v42, %s3204_s28  ;;  %v1253_v42 = vmul.f32 0.0075987587, %v4102_v60  ;;  %v1143_v17 = vmul.f32 0.26601174, %v4017_v48  ;;  %v4150_v41 = vmul.f32 0.0075987587, %v4117_v31 }
 0x132   : > { %v1263_v46 = vrot.slane %v1251_v62, 1  ;;  %v4160_v57 = vmul.f32 0.036000773, %v4102_v60  ;;  %v1298_v14 = vsel %vm421_vm1, %v1296_v11, %v1297_v45  ;;  %v1327_v34 = vrot.slane %v4133_v58, 3 }
 0x133   : > { %5926 = vst [vmem:[#allocation31_spill] sm:$0xff] %v4150_v41  ;;  %v1264_v32 = vrot.slane %v1253_v42, 1  ;;  %v4169_v8 = vmul.f32 0.21300554, %v4061_v10  ;;  %v4172_v43 = vmul.f32 0.21300554, %v4065_v24  ;;  %v1308_v13 = vadd.f32 %v1298_v14, %v1278_v9 }
 0x134   : > { %v1247_v30 = vmul.f32 0.0010283804, %v4098_v27  ;;  %v4177_v62 = vmul.f32 0.036000773, %v4117_v31  ;;  %v1293_v42 = vrot.slane %v1281_v44, 2  ;;  %v1328_v44 = vsel %vm452_vm2, %v1326_v20, %v1327_v34 }
 0x135   : > { %804 = vrot.lane.b32.xlu0 %v3994_v50, %s3204_s28  ;;  %1063 = vrot.lane.b32.xlu1 %v4000_v19, %s3195_s8  ;;  %v1265_v37 = vsel %vm5849_vm0, %v1263_v46, %v1264_v32  ;;  %v4188_v18 = vmul.f32 0.1093607, %v4098_v27  ;;  %v4191_v53 = vmul.f32 0.1093607, %v4102_v60  ;;  %v4196_v50 = vmul.f32 0.21300554, %v4069_v47 }
 0x136   : > { %5927 = vst [vmem:[#allocation27_spill] sm:$0xff] %v4177_v62  ;;  %v1357_v46 = vrot.slane %v4172_v43, 4  ;;  %v5930_v9 = vrot.slane %v4150_v41, 1  ;;  %v1277_v20 = vadd.f32 %v1265_v37, %v1247_v30  ;;  %v1299_v36 = vrot.slane %v4177_v62, 2 }
 0x137   : > { %v1323_v38 = vrot.slane %v4188_v18, 3  ;;  %v1324_v48 = vrot.slane %v4191_v53, 3  ;;  %v4224_v30 = vmul.f32 0.21300554, %v4098_v27  ;;  %v1361_v62 = vrot.slane %v4196_v50, 4 }
 0x138   : > { %v4210_v14 = vsel %vm5849_vm0, %v1264_v32, %v5930_v9 }
 0x139   : > { %1061 = vrot.lane.b32.xlu0 %v4012_v23, %s3195_s8  ;;  %1067 = vrot.lane.b32.xlu1 %v4015_v21, %s3195_s8  ;;  %5931 = vst [vmem:[#allocation24_spill] sm:$0xff] %v4210_v14 }
 0x13d   : > { %1065 = vrot.lane.b32.xlu0 %v4024_v51, %s3195_s8  ;;  %1085 = vrot.lane.b32.xlu1 %v4027_v6, %s3196_s19 }
 0x140   : > { %v4135_v28 = vpop.permute.xlu1 %631 }
 0x141   : > { %1083 = vrot.lane.b32.xlu0 %v4034_v33, %s3196_s19  ;;  %1089 = vrot.lane.b32.xlu1 %v4037_v22, %s3196_s19  ;;  %5925 = vst [vmem:[#allocation29_spill] sm:$0xff] %v4135_v28  ;;  %v4202_v28 = vmul.f32 0.26601174, %v4065_v24  ;;  %v4218_v24 = vmul.f32 0.1093607, %v4117_v31 }
 0x145   : > { %1087 = vrot.lane.b32.xlu0 %v4044_v29, %s3196_s19  ;;  %1107 = vrot.lane.b32.xlu1 %v4047_v59, %s3197_s23 }
 0x149   : > { %1105 = vrot.lane.b32.xlu0 %v4054_v63, %s3197_s23  ;;  %1111 = vrot.lane.b32.xlu1 %v4057_v2, %s3197_s23 }
 0x14b   : > { %v4180_v11 = vpop.permute.xlu0 %627 }
 0x14c   : > { %5928 = vst [vmem:[#allocation28_spill] sm:$0xff] %v4180_v11  ;;  %v1372_v11 = vmul.f32 0.26601174, %v4061_v10 }
 0x14d   : > { %1109 = vrot.lane.b32.xlu0 %v4076_v49, %s3197_s23  ;;  %1129 = vrot.lane.b32.xlu1 %v4079_v25, %s3198_s26 }
 0x14e   : > { %v1386_v52 = vrot.slane %v1372_v11, 5  ;;  %v4246_v11 = vmul.f32 0.21300554, %v4117_v31 }
 0x151   : > { %1127 = vrot.lane.b32.xlu0 %v4091_v7, %s3198_s26  ;;  %1133 = vrot.lane.b32.xlu1 %v4094_v4, %s3198_s26 }
 0x155   : > { %1131 = vrot.lane.b32.xlu0 %v4124_v0, %s3198_s26  ;;  %1151 = vrot.lane.b32.xlu1 %v1142_v5, %s3199_s14  ;;  %v1302_v5 = vsel %vm421_vm1, %v1297_v45, %v1301_v39  ;;  %v4183_v45 = vpop.permute.xlu1 %633  ;;  %v1294_v39 = vrot.slane %v4160_v57, 2 }
 0x156   : > { %5929 = vst [vmem:[#allocation26_spill] sm:$0xff] %v4183_v45  ;;  %v4205_v45 = vmul.f32 0.0010283804, %v4102_v60  ;;  %v1310_v41 = vadd.f32 %v1302_v5, %v1280_v16  ;;  %v1387_v16 = vrot.slane %v4202_v28, 5  ;;  %v1371_v28 = vmul.f32 0.26601174, %v4098_v27 }
 0x157   : > { %v1295_v10 = vsel %vm421_vm1, %v1293_v42, %v1294_v39  ;;  %v1338_v42 = vadd.f32 %v1328_v44, %v1308_v13  ;;  %v1300_v5 = vsel %vm421_vm1, %v1294_v39, %v1299_v36  ;;  %v1325_v13 = vsel %vm452_vm2, %v1323_v38, %v1324_v48 }
 0x158   : > { %v1329_v44 = vrot.slane %v4218_v24, 3  ;;  %v1373_v39 = vmul.f32 0.26601174, %v4102_v60 }
 0x159   : > { %1149 = vrot.lane.b32.xlu0 %v1141_v12, %s3199_s14  ;;  %1155 = vrot.lane.b32.xlu1 %v1144_v55, %s3199_s14  ;;  %v1331_v12 = vrot.slane %v4157_v56, 3  ;;  %v1356_v55 = vrot.slane %v4169_v8, 4 }
 0x15b   : > { %v1332_v32 = vsel %vm452_vm2, %v1327_v34, %v1331_v12  ;;  %v1358_v9 = vsel %vm483_vm3, %v1356_v55, %v1357_v46  ;;  %v1279_v34 = vadd.f32 %v4210_v14, %v4205_v45  ;;  %v1307_v12 = vadd.f32 %v1295_v10, %v1277_v20 }
 0x15c   : > { %v1353_v55 = vrot.slane %v4224_v30, 4  ;;  %v1340_v38 = vadd.f32 %v1332_v32, %v1310_v41  ;;  %v1404_v10 = vrot.slane %v4169_v8, 6  ;;  %v1368_v27 = vadd.f32 %v1358_v9, %v1338_v42 }
 0x15d   : > { %1153 = vrot.lane.b32.xlu0 %v1143_v17, %s3199_s14  ;;  %1165 = vrot.lane.b32.xlu1 %v4079_v25, %s3200_s15  ;;  %v4227_v17 = vmul.f32 0.21300554, %v4102_v60  ;;  %v1388_v14 = vsel %vm514_vm4, %v1386_v52, %v1387_v16  ;;  %v1309_v51 = vadd.f32 %v1300_v5, %v1279_v34  ;;  %v1330_v60 = vsel %vm452_vm2, %v1324_v48, %v1329_v44 }
 0x15e   : > { %v1359_v41 = vrot.slane %v4246_v11, 4  ;;  %v1383_v8 = vrot.slane %v1371_v28, 5  ;;  %v1384_v32 = vrot.slane %v1373_v39, 5  ;;  %v1398_v48 = vadd.f32 %v1388_v14, %v1368_v27 }
 0x15f   : > { %v4229_v37 = vpop.permute.xlu0 %629  ;;  %v4231_v25 = vpop.permute.xlu1 %652  ;;  %v1354_v36 = vrot.slane %v4227_v17, 4  ;;  %v1339_v5 = vadd.f32 %v1330_v60, %v1309_v51  ;;  %v1401_v44 = vrot.slane %v4224_v30, 6 }
 0x160   : > { %5932 = vst [vmem:[#allocation25_spill] sm:$0xff] %v4229_v37  ;;  %5933 = vst [vmem:[#allocation42_spill] sm:$0xff] %v4231_v25  ;;  %v1405_v25 = vrot.slane %v4172_v43, 6  ;;  %v1362_v37 = vsel %vm483_vm3, %v1357_v46, %v1361_v62  ;;  %v1375_v46 = vmul.f32 0.26601174, %v4117_v31 }
 0x161   : > { %1163 = vrot.lane.b32.xlu0 %v4091_v7, %s3200_s15  ;;  %1169 = vrot.lane.b32.xlu1 %v4094_v4, %s3200_s15  ;;  %v1376_v7 = vmul.f32 0.26601174, %v4069_v47  ;;  %v1355_v43 = vsel %vm483_vm3, %v1353_v55, %v1354_v36  ;;  %v1370_v9 = vadd.f32 %v1362_v37, %v1340_v38  ;;  %v1409_v37 = vrot.slane %v4196_v50, 6  ;;  %v5935_v55 = vld [vmem:[#allocation30_spill] sm:$0xff] }
 0x162   : > { %v1406_v34 = vsel %vm533_vm5, %v1404_v10, %v1405_v25  ;;  %v1389_v51 = vrot.slane %v1375_v46, 5  ;;  %v1427_v10 = vrot.slane %v4157_v56, 7  ;;  %v1425_v46 = vrot.slane %v4218_v24, 7 }
 0x163   : > { %v4253_v20 = vpop.permute.xlu0 %650  ;;  %v4255_v4 = vpop.permute.xlu1 %656  ;;  %v1391_v62 = vrot.slane %v1376_v7, 5  ;;  %v1416_v39 = vadd.f32 %v1406_v34, %v1398_v48  ;;  %v1420_v7 = vrot.slane %v4191_v53, 7  ;;  %v1410_v38 = vsel %vm533_vm5, %v1405_v25, %v1409_v37 }
 0x164   : > { %5934 = vst [vmem:[#allocation43_spill] sm:$0xff] %v4255_v4  ;;  %v1337_v4 = vadd.f32 %v1325_v13, %v1307_v12  ;;  %v1360_v12 = vsel %vm483_vm3, %v1354_v36, %v1359_v41  ;;  %v1246_v36 = vmul.f32 %v5935_v55, %v5935_v55  ;;  %v1390_v27 = vsel %vm514_vm4, %v1384_v32, %v1389_v51 }
 0x165   : > { %1167 = vrot.lane.b32.xlu0 %v4124_v0, %s3200_s15  ;;  %1179 = vrot.lane.b32.xlu1 %v4047_v59, %s3201_s27  ;;  %v1422_v0 = vrot.slane %v4130_v1, 7  ;;  %v1423_v59 = vrot.slane %v4133_v58, 7  ;;  %v1402_v1 = vrot.slane %v4227_v17, 6  ;;  %v1385_v58 = vsel %vm514_vm4, %v1383_v8, %v1384_v32  ;;  %v4311_v8 = vld [vmem:[%s3492_s16 + $0x30] sm:$0xff] }
 0x166   : > { %v1367_v13 = vadd.f32 %v1355_v43, %v1337_v4  ;;  %v1392_v14 = vsel %vm514_vm4, %v1387_v16, %v1391_v62  ;;  %v1369_v30 = vadd.f32 %v1360_v12, %v1339_v5  ;;  %v1419_v17 = vrot.slane %v4188_v18, 7  ;;  %5937 = vst [vmem:[#allocation44_spill] sm:$0xff] %v4311_v8 }
 0x167   : > { %v4269_v52 = vpop.permute.xlu0 %654  ;;  %v4271_v42 = vpop.permute.xlu1 %675  ;;  %v1403_v16 = vsel %vm533_vm5, %v1401_v44, %v1402_v1  ;;  %v1400_v4 = vadd.f32 %v1392_v14, %v1370_v9  ;;  %v1407_v18 = vrot.slane %v4246_v11, 6  ;;  %v1456_v41 = vmul.f32 0.0010283804, %v4069_v47 }
 0x168   : > { %v1397_v50 = vadd.f32 %v1385_v58, %v1367_v13  ;;  %v1245_v25 = vmul.f32 %v4311_v8, %v4311_v8  ;;  %v1399_v43 = vadd.f32 %v1390_v27, %v1369_v30  ;;  %v1428_v32 = vsel %vm552_vm6, %v1423_v59, %v1427_v10 }
 0x169   : > { %1177 = vrot.lane.b32.xlu0 %v4054_v63, %s3201_s27  ;;  %1183 = vrot.lane.b32.xlu1 %v4057_v2, %s3201_s27  ;;  %v1424_v2 = vsel %vm552_vm6, %v1422_v0, %v1423_v59  ;;  %v1418_v11 = vadd.f32 %v1410_v38, %v1400_v4  ;;  %v1442_v62 = vmul.f32 0.0075987587, %v1246_v36  ;;  %v1408_v47 = vsel %vm533_vm5, %v1402_v1, %v1407_v18 }
 0x16a   : > { %v1415_v56 = vadd.f32 %v1403_v16, %v1397_v50  ;;  %v1469_v34 = vrot.slane %v1456_v41, 2  ;;  %v1455_v59 = vmul.f32 0.0010283804, %v4117_v31  ;;  %v1417_v24 = vadd.f32 %v1408_v47, %v1399_v43  ;;  %v5949_v16 = vld [vmem:[#allocation27_spill] sm:$0xff] }
 0x16b   : > { %v4286_v28 = vpop.permute.xlu0 %673  ;;  %v4288_v63 = vpop.permute.xlu1 %679  ;;  %v1436_v5 = vadd.f32 %v1428_v32, %v1418_v11  ;;  %v1447_v12 = vrot.slane %v1442_v62, 1  ;;  %v1458_v13 = vmul.f32 0.0010283804, %v1246_v36  ;;  %v1426_v44 = vsel %vm552_vm6, %v1420_v7, %v1425_v46  ;;  %v5956_v11 = vld [vmem:[#allocation33_spill] sm:$0xff]  ;;  %v5957_v32 = vld [vmem:[#allocation34_spill] sm:$0xff] }
 0x16c   : > { %v1441_v1 = vmul.f32 0.0075987587, %v1245_v25  ;;  %v1219_v58 = vmul.f32 0.0010283804, %v3980_v40  ;;  %v1465_v14 = vrot.slane %v4205_v45, 2  ;;  %v1466_v37 = vrot.slane %v1455_v59, 2 }
 0x16d   : > { %1181 = vrot.lane.b32.xlu0 %v4076_v49, %s3201_s27  ;;  %1193 = vrot.lane.b32.xlu1 %v4027_v6, %s3202_s7  ;;  %v1434_v49 = vadd.f32 %v1424_v2, %v1416_v39  ;;  %v1421_v6 = vsel %vm552_vm6, %v1419_v17, %v1420_v7  ;;  %v1440_v51 = vadd.f32 %v1436_v5, %v4110_v54  ;;  %v5942_v40 = vrot.slane %v4084_v61, 1  ;;  %v5947_v61 = vld [vmem:[#allocation40_spill] sm:$0xff] }
 0x16e   : > { %v1435_v2 = vadd.f32 %v1426_v44, %v1417_v24  ;;  %v1473_v55 = vrot.slane %v1458_v13, 2  ;;  %v1445_v36 = vrot.slane %v1441_v1, 1  ;;  %v1457_v39 = vmul.f32 0.0010283804, %v1245_v25  ;;  %v5948_v17 = vld [vmem:[#allocation24_spill] sm:$0xff]  ;;  %v5954_v25 = vld [vmem:[#allocation39_spill] sm:$0xff] }
 0x16f   : > { %v4304_v60 = vpop.permute.xlu0 %677  ;;  %v4306_v53 = vpop.permute.xlu1 %698  ;;  %v1438_v48 = vadd.f32 %v1434_v49, %v4106_v35  ;;  %v1220_v54 = vmul.f32 0.0010283804, %v5947_v61  ;;  %v1467_v38 = vsel %vm421_vm1, %v1465_v14, %v1466_v37  ;;  %v4380_v43 = vmul.f32 %v5956_v11, %v5956_v11 }
 0x170   : > { %5936 = vst [vmem:[#allocation30_spill] sm:$0xff] %v4306_v53  ;;  %v1439_v4 = vadd.f32 %v1435_v2, %v5949_v16  ;;  %v1474_v10 = vsel %vm421_vm1, %v1469_v34, %v1473_v55  ;;  %v1471_v49 = vrot.slane %v1457_v39, 2  ;;  %v4384_v62 = vmul.f32 %v5957_v32, %v5957_v32  ;;  %v5966_v2 = vld [vmem:[#allocation36_spill] sm:$0xff] }
 0x171   : > { %1191 = vrot.lane.b32.xlu0 %v4034_v33, %s3202_s7  ;;  %1197 = vrot.lane.b32.xlu1 %v4037_v22, %s3202_s7  ;;  %v1468_v33 = vrot.slane %v4139_v26, 2  ;;  %v1433_v22 = vadd.f32 %v1421_v6, %v1415_v56  ;;  %v4376_v56 = vmul.f32 0.0010283804, %v5954_v25  ;;  %v1684_v5 = vmul.f32 0.0075987587, %v4380_v43 }
 0x172   : > { %v4403_v24 = vmul.f32 0.0075987587, %v4384_v62  ;;  %v1714_v14 = vmul.f32 0.036000773, %v4380_v43 }
 0x173   : > { %v4322_v0 = vpop.permute.xlu0 %696  ;;  %v4324_v9 = vpop.permute.xlu1 %702  ;;  %v1437_v31 = vadd.f32 %v1433_v22, %v4160_v57  ;;  %v5946_v57 = vld [vmem:[#allocation38_spill] sm:$0xff]  ;;  %5955 = vst [vmem:[#allocation24_spill] sm:$0xff] %v4376_v56 }
 0x174   : > { %5938 = vst [vmem:[#allocation45_spill] sm:$0xff] %v4322_v0  ;;  %5939 = vst [vmem:[#allocation46_spill] sm:$0xff] %v4324_v9  ;;  %v1728_v16 = vrot.slane %v1714_v14, 2  ;;  %v4496_v14 = vmul.f32 0.21300554, %v4380_v43 }
 0x175   : > { %1195 = vrot.lane.b32.xlu0 %v4044_v29, %s3202_s7  ;;  %1207 = vrot.lane.b32.xlu1 %v4000_v19, %s3203_s10  ;;  %v1452_v29 = vadd.f32 %v1438_v48, %v4147_v15  ;;  %v1470_v19 = vsel %vm421_vm1, %v1468_v33, %v1469_v34  ;;  %v1448_v15 = vsel %vm5849_vm0, %v5942_v40, %v1447_v12 }
 0x176   : > { %v1451_v7 = vadd.f32 %v1437_v31, %v5948_v17  ;;  %v1454_v50 = vadd.f32 %v1448_v15, %v1440_v51  ;;  %v1472_v34 = vsel %vm421_vm1, %v1466_v37, %v1471_v49  ;;  %v4424_v31 = vmul.f32 0.036000773, %v4384_v62  ;;  %v5967_v15 = vld [vmem:[#allocation37_spill] sm:$0xff] }
 0x177   : > { %v4334_v35 = vpop.permute.xlu0 %700  ;;  %v4336_v26 = vpop.permute.xlu1 %721  ;;  %v4438_v40 = vmul.f32 %v5966_v2, %v5966_v2  ;;  %v4442_v55 = vmul.f32 %v5967_v15, %v5967_v15  ;;  %v4454_v17 = vmul.f32 0.1093607, %v4380_v43  ;;  %v4499_v2 = vmul.f32 0.21300554, %v4384_v62 }
 0x178   : > { %5940 = vst [vmem:[#allocation47_spill] sm:$0xff] %v4334_v35  ;;  %5941 = vst [vmem:[#allocation48_spill] sm:$0xff] %v4336_v26  ;;  %v4392_v46 = vadd.f32 %v1467_v38, %v1451_v7  ;;  %v4394_v48 = vadd.f32 %v1474_v10, %v1454_v50  ;;  %v4457_v7 = vmul.f32 0.1093607, %v4384_v62  ;;  %v5996_v0 = vrot.slane %v4424_v31, 2 }
 0x179   : > { %1205 = vrot.lane.b32.xlu0 %v4012_v23, %s3203_s10  ;;  %1211 = vrot.lane.b32.xlu1 %v4015_v21, %s3203_s10  ;;  %v4356_v23 = vmul.f32 0.0010283804, %v4002_v3  ;;  %v4358_v21 = vadd.f32 %v1470_v19, %v1452_v29  ;;  %v5950_v3 = vld [vmem:[#allocation31_spill] sm:$0xff]  ;;  %v1698_v29 = vrot.slane %v1684_v5, 1  ;;  %v5810_v19 = vrot.slane %v4403_v24, 1 }
 0x17a   : > { %v5951_v27 = vrot.slane %v5950_v3, 1  ;;  %v4410_v12 = vmul.f32 0.0075987587, %v4392_v46  ;;  %v4413_v13 = vmul.f32 0.0075987587, %v4394_v48  ;;  %v1854_v53 = vrot.slane %v4454_v17, 7 }
 0x17b   : > { %v4351_v45 = vpop.permute.xlu0 %719  ;;  %v4353_v30 = vpop.permute.xlu1 %725  ;;  %5945 = vst [vmem:[#allocation51_spill] sm:$0xff] %v4356_v23  ;;  %v4390_v47 = vmul.f32 0.0075987587, %v4358_v21  ;;  %v4434_v51 = vmul.f32 0.036000773, %v4358_v21  ;;  %v1700_v50 = vsel %vm5849_vm0, %v1698_v29, %v5810_v19 }
 0x17c   : > { %5943 = vst [vmem:[#allocation49_spill] sm:$0xff] %v4351_v45  ;;  %5944 = vst [vmem:[#allocation50_spill] sm:$0xff] %v4353_v30  ;;  %v1446_v18 = vsel %vm5849_vm0, %v5951_v27, %v1445_v36  ;;  %v4468_v38 = vmul.f32 0.036000773, %v4392_v46  ;;  %v4471_v10 = vmul.f32 0.036000773, %v4394_v48 }
 0x17d   : > { %1209 = vrot.lane.b32.xlu0 %v5946_v57, %s3203_s10  ;;  %1227 = vrot.lane.b32.xlu1 %v1219_v58, %s3204_s28  ;;  %5958 = vst [vmem:[#allocation27_spill] sm:$0xff] %v4390_v47  ;;  %v1453_v33 = vadd.f32 %v1446_v18, %v1439_v4  ;;  %5961 = vst [vmem:[#allocation33_spill] sm:$0xff] %v4410_v12  ;;  %v5970_v57 = vld [vmem:[#allocation35_spill] sm:$0xff]  ;;  %v5809_v4 = vrot.slane %v4424_v31, 2  ;;  %v4474_v3 = vmul.f32 0.1093607, %v4358_v21 }
 0x17e   : > { %5962 = vst [vmem:[#allocation34_spill] sm:$0xff] %v4413_v13  ;;  %v4450_v61 = vmul.f32 %v5970_v57, %v5970_v57  ;;  %5971 = vst [vmem:[#allocation35_spill] sm:$0xff] %v4468_v38  ;;  %v1683_v27 = vmul.f32 0.0075987587, %v4438_v40  ;;  %v4478_v18 = vmul.f32 0.0075987587, %v4442_v55 }
 0x17f   : > { %v4371_v41 = vpop.permute.xlu0 %723  ;;  %v4373_v6 = vpop.permute.xlu1 %736  ;;  %v4415_v44 = vadd.f32 %v1472_v34, %v1453_v33  ;;  %5972 = vst [vmem:[#allocation55_spill] sm:$0xff] %v4471_v10  ;;  %v1758_v33 = vrot.slane %v4454_v17, 3  ;;  %v4490_v5 = vmul.f32 0.21300554, %v4358_v21  ;;  %v1730_v29 = vsel %vm421_vm1, %v1728_v16, %v5809_v4 }
 0x180   : > { %5952 = vst [vmem:[#allocation38_spill] sm:$0xff] %v4371_v41  ;;  %5953 = vst [vmem:[#allocation40_spill] sm:$0xff] %v4373_v6  ;;  %v4485_v11 = vmul.f32 0.0075987587, %v4450_v61  ;;  %v4509_v57 = vmul.f32 0.1093607, %v4392_v46 }
 0x181   : > { %1225 = vrot.lane.b32.xlu0 %v4356_v23, %s3204_s28  ;;  %1231 = vrot.lane.b32.xlu1 %v1220_v54, %s3204_s28  ;;  %v4431_v37 = vmul.f32 0.0075987587, %v4415_v44  ;;  %v1680_v54 = vmul.f32 0.0010283804, %v4380_v43  ;;  %v4506_v15 = vmul.f32 0.036000773, %v4415_v44 }
 0x182   : > { %5975 = vst [vmem:[#allocation58_spill] sm:$0xff] %v4485_v11  ;;  %v1713_v4 = vmul.f32 0.036000773, %v4438_v40  ;;  %v4517_v19 = vmul.f32 0.036000773, %v4442_v55  ;;  %v1788_v16 = vrot.slane %v4496_v14, 4 }
 0x183   : > { %v4397_v22 = vpop.permute.xlu0 %734  ;;  %v4399_v59 = vpop.permute.xlu1 %740  ;;  %5965 = vst [vmem:[#allocation54_spill] sm:$0xff] %v4431_v37  ;;  %v1710_v32 = vadd.f32 %v1700_v50, %v1680_v54  ;;  %5976 = vst [vmem:[#allocation59_spill] sm:$0xff] %v4506_v15  ;;  %v4512_v54 = vmul.f32 0.21300554, %v4392_v46  ;;  %v1695_v50 = vrot.slane %v1683_v27, 1  ;;  %v5979_v27 = vrot.slane %v4457_v7, 3 }
 0x184   : > { %5959 = vst [vmem:[#allocation31_spill] sm:$0xff] %v4397_v22  ;;  %5960 = vst [vmem:[#allocation39_spill] sm:$0xff] %v4399_v59  ;;  %v4524_v23 = vmul.f32 0.1093607, %v4394_v48  ;;  %v4555_v8 = vmul.f32 0.26601174, %v4358_v21 }
 0x185   : > { %1229 = vrot.lane.b32.xlu0 %v4376_v56, %s3204_s28  ;;  %1495 = vrot.lane.b32.xlu1 %v4390_v47, %s3195_s8  ;;  %v4566_v6 = vmul.f32 0.1093607, %v4415_v44  ;;  %v4569_v41 = vmul.f32 0.0010283804, %v4384_v62  ;;  %v4572_v30 = vmul.f32 0.036000773, %v4450_v61 }
 0x186   : > { %v5984_v26 = vrot.slane %v4485_v11, 1  ;;  %v4639_v35 = vmul.f32 0.26601174, %v4442_v55  ;;  %v6003_v11 = vrot.slane %v4457_v7, 3 }
 0x187   : > { %v4417_v1 = vpop.permute.xlu0 %738  ;;  %v4419_v58 = vpop.permute.xlu1 %751  ;;  %5983 = vst [vmem:[#allocation64_spill] sm:$0xff] %v4572_v30 }
 0x188   : > { %5963 = vst [vmem:[#allocation52_spill] sm:$0xff] %v4417_v1  ;;  %5964 = vst [vmem:[#allocation53_spill] sm:$0xff] %v4419_v58  ;;  %v1725_v58 = vrot.slane %v1713_v4, 2  ;;  %v5985_v4 = vrot.slane %v4403_v24, 1 }
 0x189   : > { %1493 = vrot.lane.b32.xlu0 %v4410_v12, %s3195_s8  ;;  %1499 = vrot.lane.b32.xlu1 %v4413_v13, %s3195_s8 }
 0x18b   : > { %v4444_v36 = vpop.permute.xlu0 %749  ;;  %v4446_v39 = vpop.permute.xlu1 %755 }
 0x18c   : > { %5968 = vst [vmem:[#allocation36_spill] sm:$0xff] %v4444_v36  ;;  %5969 = vst [vmem:[#allocation37_spill] sm:$0xff] %v4446_v39  ;;  %v1760_v39 = vsel %vm452_vm2, %v1758_v33, %v5979_v27  ;;  %v1804_v36 = vmul.f32 0.26601174, %v4380_v43  ;;  %v4549_v27 = vmul.f32 0.1093607, %v4438_v40 }
 0x18d   : > { %1497 = vrot.lane.b32.xlu0 %v4431_v37, %s3195_s8  ;;  %1517 = vrot.lane.b32.xlu1 %v4434_v51, %s3196_s19  ;;  %v4552_v43 = vmul.f32 0.1093607, %v4442_v55  ;;  %v4615_v37 = vmul.f32 0.1093607, %v4450_v61 }
 0x18f   : > { %v4480_v49 = vpop.permute.xlu0 %753  ;;  %v4482_v25 = vpop.permute.xlu1 %766 }
 0x190   : > { %5973 = vst [vmem:[#allocation56_spill] sm:$0xff] %v4480_v49  ;;  %5974 = vst [vmem:[#allocation57_spill] sm:$0xff] %v4482_v25  ;;  %v1740_v49 = vadd.f32 %v1730_v29, %v1710_v32  ;;  %v4541_v32 = vld [vmem:[%s3498_s29 + $0x20] sm:$0xff]  ;;  %v1679_v29 = vmul.f32 0.0010283804, %v4438_v40  ;;  %v5980_v25 = vrot.slane %v4478_v18, 1 }
 0x191   : > { %1515 = vrot.lane.b32.xlu0 %v4468_v38, %s3196_s19  ;;  %1521 = vrot.lane.b32.xlu1 %v4471_v10, %s3196_s19  ;;  %v4545_v33 = vmul.f32 %v4541_v32, %v4541_v32  ;;  %v5825_v10 = vrot.slane %v4639_v35, 5 }
 0x192   : > { %v1770_v45 = vadd.f32 %v1760_v39, %v1740_v49  ;;  %v4595_v49 = vmul.f32 0.21300554, %v4394_v48  ;;  %v1733_v39 = vrot.slane %v4572_v30, 2 }
 0x193   : > { %v4519_v34 = vpop.permute.xlu0 %764  ;;  %v4521_v56 = vpop.permute.xlu1 %770  ;;  %v4673_v17 = vmul.f32 0.1093607, %v4545_v33 }
 0x194   : > { %5977 = vst [vmem:[#allocation60_spill] sm:$0xff] %v4519_v34  ;;  %5978 = vst [vmem:[#allocation61_spill] sm:$0xff] %v4521_v56  ;;  %v4534_v34 = vmul.f32 0.26601174, %v4384_v62  ;;  %v1697_v56 = vsel %vm5849_vm0, %v1695_v50, %v5980_v25  ;;  %v4579_v25 = vsel %vm5849_vm0, %v5985_v4, %v5984_v26  ;;  %v5986_v50 = vrot.slane %v4499_v2, 4 }
 0x195   : > { %1519 = vrot.lane.b32.xlu0 %v4506_v15, %s3196_s19  ;;  %1539 = vrot.lane.b32.xlu1 %v4474_v3, %s3197_s23  ;;  %v4590_v62 = vmul.f32 0.0075987587, %v4545_v33  ;;  %v1709_v24 = vadd.f32 %v1697_v56, %v1679_v29  ;;  %v1755_v26 = vrot.slane %v4549_v27, 3  ;;  %v4601_v4 = vmul.f32 0.21300554, %v4438_v40 }
 0x196   : > { %v1790_v1 = vsel %vm483_vm3, %v1788_v16, %v5986_v50  ;;  %v4604_v50 = vmul.f32 0.21300554, %v4442_v55  ;;  %v4611_v29 = vmul.f32 0.21300554, %v4415_v44  ;;  %v5993_v15 = vrot.slane %v4552_v43, 3 }
 0x197   : > { %v4561_v59 = vpop.permute.xlu0 %768  ;;  %v4563_v22 = vpop.permute.xlu1 %781  ;;  %5987 = vst [vmem:[#allocation65_spill] sm:$0xff] %v4590_v62  ;;  %v1800_v13 = vadd.f32 %v1790_v1, %v1770_v45  ;;  %v4630_v45 = vmul.f32 0.036000773, %v4545_v33 }
 0x198   : > { %5981 = vst [vmem:[#allocation62_spill] sm:$0xff] %v4561_v59  ;;  %5982 = vst [vmem:[#allocation63_spill] sm:$0xff] %v4563_v22  ;;  %v1818_v22 = vrot.slane %v1804_v36, 5  ;;  %v5988_v36 = vrot.slane %v4517_v19, 2 }
 0x199   : > { %1537 = vrot.lane.b32.xlu0 %v4509_v57, %s3197_s23  ;;  %1543 = vrot.lane.b32.xlu1 %v4524_v23, %s3197_s23  ;;  %5992 = vst [vmem:[#allocation68_spill] sm:$0xff] %v4630_v45 }
 0x19a   : > { %v1727_v16 = vsel %vm421_vm1, %v1725_v58, %v5988_v36  ;;  %v1712_v58 = vadd.f32 %v4579_v25, %v4569_v41  ;;  %v5991_v36 = vrot.slane %v4534_v34, 5 }
 0x19b   : > { %v4606_v59 = vpop.permute.xlu0 %779  ;;  %v4608_v56 = vpop.permute.xlu1 %785  ;;  %v1739_v1 = vadd.f32 %v1727_v16, %v1709_v24  ;;  %v1734_v24 = vsel %vm421_vm1, %v5996_v0, %v1733_v39  ;;  %v1763_v16 = vrot.slane %v4615_v37, 3  ;;  %v5998_v0 = vrot.slane %v4590_v62, 1 }
 0x19c   : > { %5989 = vst [vmem:[#allocation66_spill] sm:$0xff] %v4606_v59  ;;  %5990 = vst [vmem:[#allocation67_spill] sm:$0xff] %v4608_v56  ;;  %v1820_v12 = vsel %vm514_vm4, %v1818_v22, %v5991_v36  ;;  %v1836_v59 = vrot.slane %v4496_v14, 6  ;;  %v1757_v22 = vsel %vm452_vm2, %v1755_v26, %v5993_v15  ;;  %v1785_v14 = vrot.slane %v4601_v4, 4 }
 0x19d   : > { %1541 = vrot.lane.b32.xlu0 %v4566_v6, %s3197_s23  ;;  %1561 = vrot.lane.b32.xlu1 %v4490_v5, %s3198_s26  ;;  %v1803_v56 = vmul.f32 0.26601174, %v4438_v40  ;;  %v4650_v15 = vmul.f32 0.21300554, %v4450_v61  ;;  %v1830_v26 = vadd.f32 %v1820_v12, %v1800_v13  ;;  %v5997_v36 = vrot.slane %v4499_v2, 6 }
 0x19e   : > { %v5999_v12 = vrot.slane %v4478_v18, 1  ;;  %v6000_v39 = vrot.slane %v4604_v50, 4  ;;  %v1573_v18 = vmul.f32 0.26601174, %v4392_v46 }
 0x19f   : > { %v4641_v9 = vpop.permute.xlu0 %783  ;;  %v4643_v47 = vpop.permute.xlu1 %802  ;;  %v1838_v40 = vsel %vm533_vm5, %v1836_v59, %v5997_v36  ;;  %v1731_v59 = vrot.slane %v4630_v45, 2 }
 0x1a0   : > { %5994 = vst [vmem:[#allocation69_spill] sm:$0xff] %v4641_v9  ;;  %5995 = vst [vmem:[#allocation70_spill] sm:$0xff] %v4643_v47  ;;  %v4658_v47 = vmul.f32 0.0010283804, %v4442_v55  ;;  %v4669_v13 = vsel %vm5849_vm0, %v5999_v12, %v5998_v0  ;;  %v1769_v55 = vadd.f32 %v1757_v22, %v1739_v1  ;;  %v1787_v36 = vsel %vm483_vm3, %v1785_v14, %v6000_v39 }
 0x1a1   : > { %1559 = vrot.lane.b32.xlu0 %v4512_v54, %s3198_s26  ;;  %1565 = vrot.lane.b32.xlu1 %v4595_v49, %s3198_s26  ;;  %v1815_v9 = vrot.slane %v1803_v56, 5  ;;  %v1576_v0 = vmul.f32 0.26601174, %v4394_v48  ;;  %v1742_v12 = vadd.f32 %v1734_v24, %v1712_v58  ;;  %v1848_v45 = vadd.f32 %v1838_v40, %v1830_v26 }
 0x1a2   : > { %v1764_v1 = vsel %vm452_vm2, %v6003_v11, %v1763_v16  ;;  %v1793_v22 = vrot.slane %v4650_v15, 4  ;;  %v6004_v56 = vrot.slane %v4457_v7, 7  ;;  %v1711_v39 = vadd.f32 %v4669_v13, %v4658_v47 }
 0x1a3   : > { %v4679_v38 = vpop.permute.xlu0 %800  ;;  %v4681_v62 = vpop.permute.xlu1 %806  ;;  %v6005_v58 = vrot.slane %v4517_v19, 2  ;;  %v1761_v11 = vrot.slane %v4673_v17, 3  ;;  %v4703_v16 = vmul.f32 0.21300554, %v4545_v33  ;;  %v1799_v26 = vadd.f32 %v1787_v36, %v1769_v55 }
 0x1a4   : > { %6001 = vst [vmem:[#allocation71_spill] sm:$0xff] %v4679_v38  ;;  %6002 = vst [vmem:[#allocation72_spill] sm:$0xff] %v4681_v62  ;;  %v1856_v14 = vsel %vm552_vm6, %v1854_v53, %v6004_v56  ;;  %v1817_v53 = vsel %vm514_vm4, %v1815_v9, %v5825_v10  ;;  %v1833_v40 = vrot.slane %v4601_v4, 6  ;;  %v1772_v30 = vadd.f32 %v1764_v1, %v1742_v12 }
 0x1a5   : > { %1563 = vrot.lane.b32.xlu0 %v4611_v29, %s3198_s26  ;;  %1583 = vrot.lane.b32.xlu1 %v4555_v8, %s3199_s14  ;;  %v1732_v24 = vsel %vm421_vm1, %v6005_v58, %v1731_v59  ;;  %v1808_v8 = vmul.f32 0.26601174, %v4450_v61  ;;  %v1866_v59 = vadd.f32 %v1856_v14, %v1848_v45  ;;  %v1575_v58 = vmul.f32 0.26601174, %v4415_v44 }
 0x1a6   : > { %v6007_v55 = vrot.slane %v4499_v2, 4  ;;  %v4720_v9 = vmul.f32 0.0010283804, %v4450_v61  ;;  %v1741_v4 = vadd.f32 %v1732_v24, %v1711_v39  ;;  %v6008_v10 = vrot.slane %v4552_v43, 3 }
 0x1a7   : > { %v4711_v62 = vpop.permute.xlu0 %804  ;;  %v4713_v38 = vpop.permute.xlu1 %1063  ;;  %v1791_v45 = vrot.slane %v4703_v16, 4  ;;  %v1829_v14 = vadd.f32 %v1817_v53, %v1799_v26  ;;  %v6009_v12 = vrot.slane %v4604_v50, 6  ;;  %v1852_v61 = vrot.slane %v4552_v43, 7 }
 0x1a8   : > { %6006 = vst [vmem:[#allocation73_spill] sm:$0xff] %v4711_v62  ;;  %v1794_v36 = vsel %vm483_vm3, %v6007_v55, %v1793_v22  ;;  %v1762_v56 = vsel %vm452_vm2, %v6008_v10, %v1761_v11  ;;  %v1851_v22 = vrot.slane %v4549_v27, 7  ;;  %v1823_v55 = vrot.slane %v1808_v8, 5 }
 0x1a9   : > { %1581 = vrot.lane.b32.xlu0 %v1573_v18, %s3199_s14  ;;  %1587 = vrot.lane.b32.xlu1 %v1576_v0, %s3199_s14  ;;  %v1835_v1 = vsel %vm533_vm5, %v1833_v40, %v6009_v12  ;;  %v1870_v39 = vadd.f32 %v1866_v59, %v4424_v31  ;;  %v1807_v10 = vmul.f32 0.26601174, %v4545_v33  ;;  %v1900_v24 = vrot.slane %v4569_v41, 2  ;;  %v6014_v12 = vld [vmem:[#allocation25_spill] sm:$0xff] }
 0x1aa   : > { %v1901_v11 = vrot.slane %v4720_v9, 2  ;;  %v1802_v27 = vadd.f32 %v1794_v36, %v1772_v30  ;;  %v1771_v26 = vadd.f32 %v1762_v56, %v1741_v4  ;;  %v1847_v53 = vadd.f32 %v1835_v1, %v1829_v14  ;;  %v6012_v4 = vld [vmem:[#allocation26_spill] sm:$0xff]  ;;  %v6015_v1 = vld [vmem:[#allocation28_spill] sm:$0xff]  ;;  %v6037_v9 = vld [vmem:[#allocation55_spill] sm:$0xff] }
 0x1ab   : > { %v4733_v18 = vpop.permute.xlu0 %1061  ;;  %v4735_v0 = vpop.permute.xlu1 %1067  ;;  %v6010_v40 = vrot.slane %v4604_v50, 4  ;;  %v1853_v31 = vsel %vm552_vm6, %v1851_v22, %v1852_v61  ;;  %v6011_v41 = vrot.slane %v4534_v34, 5  ;;  %v1884_v56 = vadd.f32 %v1870_v39, %v4579_v25 }
 0x1ac   : > { %v1821_v36 = vrot.slane %v1807_v10, 5  ;;  %v636_v34 = vsel %vm635_vm7, %v6015_v1, %v6014_v12  ;;  %v4773_v25 = vmul.f32 0.0010283804, %v4358_v21  ;;  %v4776_v10 = vmul.f32 0.0010283804, %v4545_v33 }
 0x1ad   : > { %1585 = vrot.lane.b32.xlu0 %v1575_v58, %s3199_s14  ;;  %1597 = vrot.lane.b32.xlu1 %v4490_v5, %s3200_s15  ;;  %v1792_v8 = vsel %vm483_vm3, %v6010_v40, %v1791_v45  ;;  %v1824_v59 = vsel %vm514_vm4, %v6011_v41, %v1823_v55  ;;  %v1841_v58 = vrot.slane %v4650_v15, 6  ;;  %v6013_v45 = vld [vmem:[#allocation29_spill] sm:$0xff]  ;;  %v1902_v15 = vsel %vm421_vm1, %v1900_v24, %v1901_v11  ;;  %v4779_v40 = vld [vmem:[%s3498_s29 + $0x38] sm:$0xff] }
 0x1ae   : > { %v637_v14 = vsel %vm635_vm7, %v6013_v45, %v6012_v4  ;;  %v1801_v22 = vadd.f32 %v1792_v8, %v1771_v26  ;;  %v1865_v55 = vadd.f32 %v1853_v31, %v1847_v53  ;;  %v1832_v39 = vadd.f32 %v1824_v59, %v1802_v27  ;;  %6016 = vst [vmem:[#allocation26_spill] sm:$0xff] %v4779_v40  ;;  %v6021_v31 = vld [vmem:[#allocation32_spill] sm:$0xff] }
 0x1af   : > { %v4754_v5 = vpop.permute.xlu0 %1065  ;;  %v4756_v30 = vpop.permute.xlu1 %1085  ;;  %v1678_v24 = vmul.f32 %v4779_v40, %v4779_v40  ;;  %v6017_v41 = vrot.slane %v4499_v2, 6  ;;  %v4792_v27 = vmul.f32 0.0010283804, %v4392_v46  ;;  %v4794_v33 = vadd.f32 %v1902_v15, %v1884_v56  ;;  %v4815_v56 = vld [vmem:[%s3498_s29 + $0x30] sm:$0xff] }
 0x1b0   : > { %v6020_v53 = vrot.slane %v4639_v35, 5  ;;  %v1839_v2 = vrot.slane %v4703_v16, 6  ;;  %v641_v59 = vadd.f32 %v637_v14, %v6021_v31  ;;  %v4803_v4 = vmul.f32 0.0010283804, %v4394_v48 }
 0x1b1   : > { %1595 = vrot.lane.b32.xlu0 %v4512_v54, %s3200_s15  ;;  %1601 = vrot.lane.b32.xlu1 %v4595_v49, %s3200_s15  ;;  %v1842_v54 = vsel %vm533_vm5, %v6017_v41, %v1841_v58  ;;  %v1859_v49 = vrot.slane %v4615_v37, 7  ;;  %6018 = vst [vmem:[#allocation29_spill] sm:$0xff] %v4792_v27  ;;  %6019 = vst [vmem:[#allocation25_spill] sm:$0xff] %v4794_v33  ;;  %v6022_v58 = vld [vmem:[#allocation41_spill] sm:$0xff]  ;;  %v4806_v45 = vmul.f32 0.0010283804, %v4415_v44 }
 0x1b2   : > { %v1822_v8 = vsel %vm514_vm4, %v6020_v53, %v1821_v36  ;;  %v640_v37 = vadd.f32 %v636_v34, %v6022_v58  ;;  %v1869_v35 = vadd.f32 %v1865_v55, %v4517_v19  ;;  %v1897_v46 = vrot.slane %v4658_v47, 2  ;;  %v6027_v55 = vld [vmem:[#allocation42_spill] sm:$0xff]  ;;  %v6028_v41 = vld [vmem:[#allocation43_spill] sm:$0xff] }
 0x1b3   : > { %v4787_v21 = vpop.permute.xlu0 %1083  ;;  %v4789_v26 = vpop.permute.xlu1 %1089  ;;  %6023 = vst [vmem:[#allocation28_spill] sm:$0xff] %v4806_v45  ;;  %v1850_v16 = vadd.f32 %v1842_v54, %v1832_v39  ;;  %v1677_v48 = vmul.f32 %v4815_v56, %v4815_v56  ;;  %v1898_v44 = vrot.slane %v4776_v10, 2  ;;  %v6024_v36 = vrot.slane %v4457_v7, 7  ;;  %v2933_v54 = vld [vmem:[%s3492_s16] sm:$0xff] }
 0x1b4   : > { %v1831_v19 = vadd.f32 %v1822_v8, %v1801_v22  ;;  %v4828_v12 = vmul.f32 0.0075987587, %v4794_v33  ;;  %v1890_v1 = vmul.f32 0.0010283804, %v1678_v24  ;;  %v6026_v34 = vrot.slane %v4604_v50, 6  ;;  %v2936_v50 = vld [vmem:[%s3498_s29 + $0x10] sm:$0xff] }
 0x1b5   : > { %1599 = vrot.lane.b32.xlu0 %v4611_v29, %s3200_s15  ;;  %1611 = vrot.lane.b32.xlu1 %v4474_v3, %s3201_s27  ;;  %v1860_v29 = vsel %vm552_vm6, %v6024_v36, %v1859_v49  ;;  %v1874_v3 = vmul.f32 0.0075987587, %v1678_v24  ;;  %v1857_v7 = vrot.slane %v4673_v17, 7  ;;  %v659_v39 = vsel %vm658_vm8, %v4253_v20, %v6027_v55  ;;  %v2934_v49 = vld [vmem:[%s3498_s29] sm:$0xff]  ;;  %v2935_v24 = vld [vmem:[%s3492_s16 + $0x10] sm:$0xff] }
 0x1b6   : > { %6025 = vst [vmem:[#allocation32_spill] sm:$0xff] %v4828_v12  ;;  %v1840_v15 = vsel %vm533_vm5, %v6026_v34, %v1839_v2  ;;  %v660_v22 = vsel %vm658_vm8, %v4269_v52, %v6028_v41  ;;  %v4842_v53 = vmul.f32 %v2934_v49, %v2933_v54  ;;  %v4846_v8 = vmul.f32 %v2936_v50, %v2935_v24  ;;  %v2937_v34 = vld [vmem:[%s3492_s16 + $0x20] sm:$0xff] }
 0x1b7   : > { %v4823_v14 = vpop.permute.xlu0 %1087  ;;  %v4825_v47 = vpop.permute.xlu1 %1107  ;;  %v1883_v20 = vadd.f32 %v1869_v35, %v4669_v13  ;;  %v1868_v17 = vadd.f32 %v1860_v29, %v1850_v16  ;;  %v1873_v52 = vmul.f32 0.0075987587, %v1677_v48  ;;  %v1889_v2 = vmul.f32 0.0010283804, %v1677_v48 }
 0x1b8   : > { %v1899_v31 = vsel %vm421_vm1, %v1897_v46, %v1898_v44  ;;  %v1879_v58 = vrot.slane %v1874_v3, 1  ;;  %v1849_v36 = vadd.f32 %v1840_v15, %v1831_v19  ;;  %v4858_v55 = vmul.f32 %v2937_v34, %v4541_v32  ;;  %v6031_v3 = vld [vmem:[#allocation58_spill] sm:$0xff] }
 0x1b9   : > { %1609 = vrot.lane.b32.xlu0 %v4509_v57, %s3201_s27  ;;  %1615 = vrot.lane.b32.xlu1 %v4524_v23, %s3201_s27  ;;  %v663_v41 = vadd.f32 %v659_v39, %v640_v37  ;;  %v682_v23 = vsel %vm681_vm9, %v4286_v28, %v4271_v42  ;;  %v1905_v35 = vrot.slane %v1890_v1, 2  ;;  %v1858_v46 = vsel %vm552_vm6, %v1852_v61, %v1857_v7  ;;  %v6030_v28 = vld [vmem:[#allocation64_spill] sm:$0xff] }
 0x1ba   : > { %v664_v16 = vadd.f32 %v660_v22, %v641_v59  ;;  %v683_v32 = vsel %vm681_vm9, %v4304_v60, %v4288_v63  ;;  %v2115_v37 = vmul.f32 0.0075987587, %v4842_v53  ;;  %v2117_v48 = vmul.f32 0.0075987587, %v4846_v8 }
 0x1bb   : > { %v4863_v57 = vpop.permute.xlu0 %1105  ;;  %v4865_v13 = vpop.permute.xlu1 %1111  ;;  %v4879_v42 = vadd.f32 %v1899_v31, %v1883_v20  ;;  %v1872_v43 = vadd.f32 %v1868_v17, %v6030_v28  ;;  %v1877_v61 = vrot.slane %v1873_v52, 1  ;;  %v1903_v59 = vrot.slane %v1889_v2, 2  ;;  %v6036_v20 = vld [vmem:[#allocation35_spill] sm:$0xff]  ;;  %v6039_v52 = vld [vmem:[#allocation65_spill] sm:$0xff] }
 0x1bc   : > { %v686_v29 = vadd.f32 %v682_v23, %v663_v41  ;;  %v6032_v19 = vrot.slane %v6031_v3, 1  ;;  %v1867_v60 = vadd.f32 %v1858_v46, %v1849_v36  ;;  %v4886_v1 = vmul.f32 0.0075987587, %v4858_v55  ;;  %v6041_v36 = vld [vmem:[#allocation68_spill] sm:$0xff]  ;;  %v6044_v46 = vld [vmem:[#allocation30_spill] sm:$0xff] }
 0x1bd   : > { %1613 = vrot.lane.b32.xlu0 %v4566_v6, %s3201_s27  ;;  %1625 = vrot.lane.b32.xlu1 %v4434_v51, %s3202_s7  ;;  %6029 = vst [vmem:[#allocation41_spill] sm:$0xff] %v4879_v42  ;;  %v687_v15 = vadd.f32 %v683_v32, %v664_v16  ;;  %v1906_v51 = vsel %vm421_vm1, %v1901_v11, %v1905_v35  ;;  %v4896_v39 = vmul.f32 0.036000773, %v4794_v33  ;;  %v4899_v22 = vmul.f32 0.1093607, %v4794_v33  ;;  %v6045_v16 = vld [vmem:[#allocation45_spill] sm:$0xff] }
 0x1be   : > { %v1880_v63 = vsel %vm5849_vm0, %v6032_v19, %v1879_v58  ;;  %6033 = vst [vmem:[#allocation42_spill] sm:$0xff] %v4886_v1  ;;  %v2127_v54 = vrot.slane %v2115_v37, 1  ;;  %v2128_v49 = vrot.slane %v2117_v48, 1  ;;  %v2145_v24 = vmul.f32 0.036000773, %v4842_v53  ;;  %v6048_v19 = vld [vmem:[#allocation46_spill] sm:$0xff] }
 0x1bf   : > { %v4888_v6 = vpop.permute.xlu0 %1109  ;;  %v4890_v7 = vpop.permute.xlu1 %1129  ;;  %6034 = vst [vmem:[#allocation43_spill] sm:$0xff] %v4896_v39  ;;  %v4903_v50 = vmul.f32 0.036000773, %v4846_v8  ;;  %v4910_v11 = vmul.f32 0.0075987587, %v4879_v42  ;;  %v1886_v17 = vadd.f32 %v1880_v63, %v1872_v43  ;;  %v6040_v2 = vrot.slane %v6039_v52, 1 }
 0x1c0   : > { %v1904_v58 = vsel %vm421_vm1, %v1898_v44, %v1903_v59  ;;  %v1871_v34 = vadd.f32 %v1867_v60, %v6041_v36  ;;  %v4920_v41 = vmul.f32 0.036000773, %v4879_v42  ;;  %v5826_v23 = vrot.slane %v4886_v1, 1  ;;  %v6049_v63 = vld [vmem:[#allocation47_spill] sm:$0xff] }
 0x1c1   : > { %6035 = vst [vmem:[#allocation64_spill] sm:$0xff] %v4903_v50  ;;  %1623 = vrot.lane.b32.xlu0 %v6036_v20, %s3202_s7  ;;  %1629 = vrot.lane.b32.xlu1 %v6037_v9, %s3202_s7  ;;  %6038 = vst [vmem:[#allocation58_spill] sm:$0xff] %v4910_v11  ;;  %v1878_v31 = vsel %vm5849_vm0, %v6040_v2, %v1877_v61  ;;  %v4924_v35 = vmul.f32 0.036000773, %v4858_v55  ;;  %v705_v32 = vsel %vm704_vm10, %v6045_v16, %v6044_v46  ;;  %v6050_v20 = vld [vmem:[#allocation59_spill] sm:$0xff] }
 0x1c2   : > { %6042 = vst [vmem:[#allocation35_spill] sm:$0xff] %v4920_v41  ;;  %v2111_v44 = vmul.f32 0.0010283804, %v4842_v53  ;;  %v4935_v48 = vmul.f32 0.1093607, %v4842_v53  ;;  %v2129_v61 = vsel %vm5849_vm0, %v2127_v54, %v2128_v49  ;;  %v2157_v59 = vrot.slane %v2145_v24, 2 }
 0x1c3   : > { %6043 = vst [vmem:[#allocation55_spill] sm:$0xff] %v4924_v35  ;;  %v4929_v37 = vpop.permute.xlu0 %1127  ;;  %v4931_v10 = vpop.permute.xlu1 %1133  ;;  %v4938_v28 = vmul.f32 0.1093607, %v4846_v8  ;;  %v4941_v43 = vmul.f32 0.1093607, %v4879_v42  ;;  %v2158_v3 = vrot.slane %v4903_v50, 2  ;;  %v706_v60 = vsel %vm704_vm10, %v6049_v63, %v6048_v19 }
 0x1c4   : > { %6046 = vst [vmem:[#allocation65_spill] sm:$0xff] %v4931_v10  ;;  %v6051_v9 = vld [vmem:[#allocation27_spill] sm:$0xff]  ;;  %v4952_v52 = vadd.f32 %v1906_v51, %v1886_v17  ;;  %v4955_v2 = vmul.f32 0.21300554, %v4794_v33  ;;  %v4958_v54 = vmul.f32 0.21300554, %v4879_v42  ;;  %v1885_v24 = vadd.f32 %v1878_v31, %v1871_v34 }
 0x1c5   : > { %6047 = vst [vmem:[#allocation68_spill] sm:$0xff] %v4941_v43  ;;  %1627 = vrot.lane.b32.xlu0 %v6050_v20, %s3202_s7  ;;  %1639 = vrot.lane.b32.xlu1 %v6051_v9, %s3203_s10  ;;  %v4961_v36 = vmul.f32 0.0010283804, %v4846_v8  ;;  %v4966_v46 = vsel %vm5849_vm0, %v2128_v49, %v5826_v23  ;;  %v2163_v16 = vrot.slane %v4924_v35, 2  ;;  %v2141_v19 = vadd.f32 %v2129_v61, %v2111_v44  ;;  %v6058_v44 = vld [vmem:[#allocation33_spill] sm:$0xff]  ;;  %v6059_v61 = vld [vmem:[#allocation34_spill] sm:$0xff] }
 0x1c6   : > { %6052 = vst [vmem:[#allocation30_spill] sm:$0xff] %v4952_v52  ;;  %6053 = vst [vmem:[#allocation45_spill] sm:$0xff] %v4955_v2  ;;  %v4974_v63 = vmul.f32 0.1093607, %v4858_v55  ;;  %v2187_v31 = vrot.slane %v4935_v48, 3  ;;  %v2188_v34 = vrot.slane %v4938_v28, 3  ;;  %v2159_v49 = vsel %vm421_vm1, %v2157_v59, %v2158_v3 }
 0x1c7   : > { %6054 = vst [vmem:[#allocation46_spill] sm:$0xff] %v4958_v54  ;;  %6055 = vst [vmem:[#allocation47_spill] sm:$0xff] %v4966_v46  ;;  %v4969_v51 = vpop.permute.xlu0 %1131  ;;  %v4971_v17 = vpop.permute.xlu1 %1151  ;;  %v4979_v20 = vmul.f32 0.26601174, %v4794_v33  ;;  %v4983_v9 = vmul.f32 0.21300554, %v4842_v53  ;;  %v709_v1 = vadd.f32 %v705_v32, %v686_v29  ;;  %v710_v40 = vadd.f32 %v706_v60, %v687_v15 }
 0x1c8   : > { %6056 = vst [vmem:[#allocation59_spill] sm:$0xff] %v4969_v51  ;;  %v4986_v23 = vmul.f32 0.21300554, %v4846_v8  ;;  %v4993_v35 = vmul.f32 0.0075987587, %v4952_v52  ;;  %v5001_v50 = vadd.f32 %v1904_v58, %v1885_v24  ;;  %v2143_v29 = vadd.f32 %v4966_v46, %v4961_v36  ;;  %v2939_v46 = vld [vmem:[%s3498_s29 + $0x8] sm:$0xff] }
 0x1c9   : > { %6057 = vst [vmem:[#allocation27_spill] sm:$0xff] %v4979_v20  ;;  %1637 = vrot.lane.b32.xlu0 %v6058_v44, %s3203_s10  ;;  %1643 = vrot.lane.b32.xlu1 %v6059_v61, %s3203_s10  ;;  %v4996_v33 = vmul.f32 0.036000773, %v4952_v52  ;;  %v4999_v59 = vmul.f32 0.26601174, %v4879_v42  ;;  %v2164_v32 = vsel %vm421_vm1, %v2158_v3, %v2163_v16  ;;  %v2171_v20 = vadd.f32 %v2159_v49, %v2141_v19  ;;  %v6066_v16 = vld [vmem:[#allocation54_spill] sm:$0xff] }
 0x1ca   : > { %6060 = vst [vmem:[#allocation33_spill] sm:$0xff] %v4993_v35  ;;  %6063 = vst [vmem:[#allocation75_spill] sm:$0xff] %v5001_v50  ;;  %v2189_v62 = vsel %vm452_vm2, %v2187_v31, %v2188_v34  ;;  %v2193_v42 = vrot.slane %v4974_v63, 3  ;;  %v5013_v15 = vmul.f32 0.21300554, %v4858_v55  ;;  %v2217_v58 = vrot.slane %v4983_v9, 4 }
 0x1cb   : > { %6061 = vst [vmem:[#allocation34_spill] sm:$0xff] %v4996_v33  ;;  %6062 = vst [vmem:[#allocation74_spill] sm:$0xff] %v4999_v59  ;;  %v5006_v44 = vpop.permute.xlu0 %1149  ;;  %v5008_v61 = vpop.permute.xlu1 %1155  ;;  %v2218_v60 = vrot.slane %v4986_v23, 4  ;;  %v2235_v3 = vmul.f32 0.26601174, %v4842_v53  ;;  %v2938_v53 = vld [vmem:[%s3492_s16 + $0x8] sm:$0xff] }
 0x1cc   : > { %6064 = vst [vmem:[#allocation76_spill] sm:$0xff] %v5006_v44  ;;  %6065 = vst [vmem:[#allocation77_spill] sm:$0xff] %v5008_v61  ;;  %v5019_v24 = vmul.f32 0.26601174, %v4846_v8  ;;  %v5026_v19 = vmul.f32 0.1093607, %v4952_v52  ;;  %v5036_v8 = vmul.f32 %v2939_v46, %v2938_v53  ;;  %v2173_v61 = vadd.f32 %v2164_v32, %v2143_v29 }
 0x1cd   : > { %1641 = vrot.lane.b32.xlu0 %v6066_v16, %s3203_s10  ;;  %1659 = vrot.lane.b32.xlu1 %v4773_v25, %s3204_s28  ;;  %v5029_v31 = vmul.f32 0.21300554, %v4952_v52  ;;  %v5032_v49 = vmul.f32 0.26601174, %v4952_v52  ;;  %v6070_v59 = vld [vmem:[#allocation48_spill] sm:$0xff]  ;;  %v6071_v54 = vld [vmem:[#allocation49_spill] sm:$0xff]  ;;  %v2194_v53 = vsel %vm452_vm2, %v2188_v34, %v2193_v42 }
 0x1ce   : > { %6067 = vst [vmem:[#allocation54_spill] sm:$0xff] %v5026_v19  ;;  %v728_v16 = vsel %vm727_vm11, %v6071_v54, %v6070_v59  ;;  %v5042_v2 = vmul.f32 0.0075987587, %v5001_v50  ;;  %v5045_v25 = vmul.f32 0.036000773, %v5001_v50  ;;  %v2223_v54 = vrot.slane %v5013_v15, 4 }
 0x1cf   : > { %6068 = vst [vmem:[#allocation78_spill] sm:$0xff] %v5029_v31  ;;  %6069 = vst [vmem:[#allocation79_spill] sm:$0xff] %v5032_v49  ;;  %v5047_v31 = vpop.permute.xlu0 %1153  ;;  %v5049_v52 = vpop.permute.xlu1 %1165  ;;  %v5052_v46 = vmul.f32 0.1093607, %v5001_v50  ;;  %v2201_v49 = vadd.f32 %v2189_v62, %v2171_v20  ;;  %v2219_v59 = vsel %vm483_vm3, %v2217_v58, %v2218_v60  ;;  %v2247_v51 = vrot.slane %v2235_v3, 5  ;;  %v6077_v10 = vld [vmem:[#allocation50_spill] sm:$0xff] }
 0x1d0   : > { %6072 = vst [vmem:[#allocation48_spill] sm:$0xff] %v5042_v2  ;;  %6073 = vst [vmem:[#allocation49_spill] sm:$0xff] %v5045_v25  ;;  %v2248_v29 = vrot.slane %v5019_v24, 5  ;;  %v2239_v32 = vmul.f32 0.26601174, %v4858_v55  ;;  %v2940_v42 = vld [vmem:[%s3492_s16 + $0x18] sm:$0xff]  ;;  %v2203_v24 = vadd.f32 %v2194_v53, %v2173_v61 }
 0x1d1   : > { %6074 = vst [vmem:[#allocation80_spill] sm:$0xff] %v5047_v31  ;;  %6075 = vst [vmem:[#allocation81_spill] sm:$0xff] %v5049_v52  ;;  %v732_v31 = vadd.f32 %v728_v16, %v709_v1  ;;  %v6078_v52 = vld [vmem:[#allocation38_spill] sm:$0xff]  ;;  %1657 = vrot.lane.b32.xlu0 %v4792_v27, %s3204_s28  ;;  %1663 = vrot.lane.b32.xlu1 %v4803_v4, %s3204_s28  ;;  %v5067_v62 = vmul.f32 0.21300554, %v5001_v50  ;;  %v6080_v58 = vld [vmem:[#allocation40_spill] sm:$0xff]  ;;  %v2231_v44 = vadd.f32 %v2219_v59, %v2201_v49 }
 0x1d2   : > { %6076 = vst [vmem:[#allocation82_spill] sm:$0xff] %v5052_v46  ;;  %v729_v19 = vsel %vm727_vm11, %v6078_v52, %v6077_v10  ;;  %v2941_v34 = vld [vmem:[%s3498_s29 + $0x18] sm:$0xff]  ;;  %v2265_v10 = vrot.slane %v4983_v9, 6  ;;  %v2942_v52 = vld [vmem:[%s3492_s16 + $0x28] sm:$0xff]  ;;  %v5091_v9 = vmul.f32 0.26601174, %v5001_v50  ;;  %v2249_v53 = vsel %vm514_vm4, %v2247_v51, %v2248_v29 }
 0x1d3   : > { %6079 = vst [vmem:[#allocation50_spill] sm:$0xff] %v5067_v62  ;;  %v5071_v20 = vmul.f32 %v2941_v34, %v2940_v42  ;;  %v6081_v3 = vld [vmem:[#allocation31_spill] sm:$0xff]  ;;  %v2943_v16 = vld [vmem:[%s3498_s29 + $0x28] sm:$0xff]  ;;  %v5084_v43 = vpop.permute.xlu0 %1163  ;;  %v5086_v42 = vpop.permute.xlu1 %1169  ;;  %v2224_v34 = vsel %vm483_vm3, %v2218_v60, %v2223_v54  ;;  %v733_v61 = vadd.f32 %v729_v19, %v710_v40  ;;  %v2116_v60 = vmul.f32 0.0075987587, %v5036_v8  ;;  %s2611_s29 = scalar_lea.sflag [#allocation4], %s3489_s20 }
 0x1d4   : > { %v743_v1 = vsel %vm742_vm12, %v6081_v3, %v6080_v58  ;;  %v5079_v27 = vmul.f32 %v2943_v16, %v2942_v52  ;;  %v6082_v4 = vld [vmem:[#allocation39_spill] sm:$0xff]  ;;  %v6083_v46 = vld [vmem:[#allocation52_spill] sm:$0xff]  ;;  %v2266_v58 = vrot.slane %v4986_v23, 6  ;;  %v2253_v3 = vrot.slane %v2239_v32, 5  ;;  %v6087_v50 = vld [vmem:[#allocation37_spill] sm:$0xff] }
 0x1d5   : > { %v744_v62 = vsel %vm742_vm12, %v6083_v46, %v6082_v4  ;;  %v747_v52 = vadd.f32 %v743_v1, %v732_v31  ;;  %1661 = vrot.lane.b32.xlu0 %v4806_v45, %s3204_s28  ;;  %1927 = vrot.lane.b32.xlu1 %v4828_v12, %s3195_s8  ;;  %v2283_v46 = vrot.slane %v4935_v48, 7  ;;  %v2118_v23 = vmul.f32 0.0075987587, %v5071_v20  ;;  %v6086_v4 = vld [vmem:[#allocation44_spill] sm:$0xff] }
 0x1d6   : > { %v748_v40 = vadd.f32 %v744_v62, %v733_v61  ;;  %v2233_v19 = vadd.f32 %v2224_v34, %v2203_v24  ;;  %v2284_v49 = vrot.slane %v4938_v28, 7  ;;  %v5103_v51 = vmul.f32 0.0075987587, %v5079_v27  ;;  %v6084_v62 = vld [vmem:[#allocation53_spill] sm:$0xff]  ;;  %v6085_v24 = vld [vmem:[#allocation36_spill] sm:$0xff] }
 0x1d7   : > { %v5105_v31 = vpop.permute.xlu0 %1167  ;;  %v5107_v54 = vpop.permute.xlu1 %1179  ;;  %v2261_v59 = vadd.f32 %v2249_v53, %v2231_v44  ;;  %v2267_v32 = vsel %vm533_vm5, %v2265_v10, %v2266_v58  ;;  %v5111_v48 = vmul.f32 0.0010283804, %v4858_v55  ;;  %v2271_v1 = vrot.slane %v5013_v15, 6 }
 0x1d8   : > { %v758_v28 = vsel %vm757_vm13, %v6085_v24, %v6084_v62  ;;  %v5120_v34 = vmul.f32 %v4815_v56, %v6086_v4  ;;  %v2254_v61 = vsel %vm514_vm4, %v2248_v29, %v2253_v3  ;;  %v2130_v55 = vrot.slane %v2116_v60, 1 }
 0x1d9   : > { %1925 = vrot.lane.b32.xlu0 %v4910_v11, %s3195_s8  ;;  %1931 = vrot.lane.b32.xlu1 %v4993_v35, %s3195_s8  ;;  %v2131_v44 = vrot.slane %v2118_v23, 1  ;;  %v2146_v15 = vmul.f32 0.036000773, %v5036_v8  ;;  %v5129_v10 = vmul.f32 0.036000773, %v5071_v20  ;;  %v2285_v53 = vsel %vm552_vm6, %v2283_v46, %v2284_v49  ;;  %v6088_v35 = vld [vmem:[#allocation56_spill] sm:$0xff] }
 0x1da   : > { %v2289_v56 = vrot.slane %v4974_v63, 7  ;;  %v5135_v29 = vmul.f32 0.036000773, %v5079_v27  ;;  %v762_v3 = vadd.f32 %v758_v28, %v747_v52  ;;  %v2279_v60 = vadd.f32 %v2267_v32, %v2261_v59  ;;  %v6089_v52 = vld [vmem:[#allocation57_spill] sm:$0xff]  ;;  %v6090_v28 = vld [vmem:[#allocation60_spill] sm:$0xff] }
 0x1db   : > { %v5137_v24 = vpop.permute.xlu0 %1177  ;;  %v5139_v4 = vpop.permute.xlu1 %1183  ;;  %v2272_v16 = vsel %vm533_vm5, %v2266_v58, %v2271_v1  ;;  %v759_v46 = vsel %vm757_vm13, %v6088_v35, %v6087_v50  ;;  %v2263_v63 = vadd.f32 %v2254_v61, %v2233_v19  ;;  %v2112_v62 = vmul.f32 0.0010283804, %v5036_v8 }
 0x1dc   : > { %v5148_v11 = vmul.f32 0.0010283804, %v5071_v20  ;;  %v773_v12 = vsel %vm772_vm14, %v6090_v28, %v6089_v52  ;;  %v2132_v58 = vsel %vm5849_vm0, %v2130_v55, %v2131_v44  ;;  %v2160_v59 = vrot.slane %v2146_v15, 2 }
 0x1dd   : > { %1929 = vrot.lane.b32.xlu0 %v5042_v2, %s3195_s8  ;;  %1949 = vrot.lane.b32.xlu1 %v4896_v39, %s3196_s19  ;;  %v2161_v50 = vrot.slane %v5129_v10, 2  ;;  %v5160_v35 = vsel %vm552_vm6, %v2284_v49, %v2289_v56  ;;  %v5163_v19 = vmul.f32 0.0075987587, %v5120_v34  ;;  %v6091_v32 = vrot.slane %v5103_v51, 1  ;;  %v6093_v2 = vld [vmem:[#allocation62_spill] sm:$0xff] }
 0x1de   : > { %v2165_v61 = vrot.slane %v5135_v29, 2  ;;  %v763_v52 = vadd.f32 %v759_v46, %v748_v40  ;;  %v5175_v15 = vadd.f32 %v2285_v53, %v2279_v60  ;;  %v5178_v49 = vmul.f32 0.1093607, %v5036_v8  ;;  %v6092_v46 = vld [vmem:[#allocation61_spill] sm:$0xff] }
 0x1df   : > { %v5168_v1 = vsel %vm5849_vm0, %v2131_v44, %v6091_v32  ;;  %v5171_v28 = vpop.permute.xlu0 %1181  ;;  %v5173_v55 = vpop.permute.xlu1 %1193  ;;  %v5181_v56 = vmul.f32 0.1093607, %v5071_v20  ;;  %v777_v23 = vadd.f32 %v773_v12, %v762_v3  ;;  %v1069_v44 = vsel %vm635_vm7, %v4733_v18, %v4713_v38  ;;  %v6094_v18 = vld [vmem:[#allocation63_spill] sm:$0xff] }
 0x1e0   : > { %v5186_v32 = vadd.f32 %v2272_v16, %v2263_v63  ;;  %v2142_v40 = vadd.f32 %v2132_v58, %v2112_v62  ;;  %v774_v45 = vsel %vm772_vm14, %v6093_v2, %v6092_v46  ;;  %v2144_v12 = vadd.f32 %v5168_v1, %v5148_v11  ;;  %v6095_v16 = vld [vmem:[#allocation66_spill] sm:$0xff]  ;;  %v6096_v63 = vld [vmem:[#allocation51_spill] sm:$0xff] }
 0x1e1   : > { %1947 = vrot.lane.b32.xlu0 %v4920_v41, %s3196_s19  ;;  %1953 = vrot.lane.b32.xlu1 %v4996_v33, %s3196_s19  ;;  %v2162_v53 = vsel %vm421_vm1, %v2160_v59, %v2161_v50  ;;  %v5199_v38 = vmul.f32 0.1093607, %v5079_v27  ;;  %v788_v62 = vsel %vm787_vm15, %v6095_v16, %v6094_v18  ;;  %v1091_v2 = vsel %vm658_vm8, %v4787_v21, %v4756_v30 }
 0x1e2   : > { %v2166_v3 = vsel %vm421_vm1, %v2161_v50, %v2165_v61  ;;  %v5209_v60 = vmul.f32 0.21300554, %v5036_v8  ;;  %vm808_vm0 = vcmask 965632   ;;  %v1073_v58 = vadd.f32 %v1069_v44, %v6096_v63 }
 0x1e3   : > { %v1192_v59 = vpop.permute.xlu0 %1191  ;;  %v5212_v46 = vpop.permute.xlu1 %1197  ;;  %v2190_v33 = vrot.slane %v5178_v49, 3  ;;  %v2191_v41 = vrot.slane %v5181_v56, 3  ;;  %v5217_v18 = vmul.f32 0.21300554, %v5071_v20  ;;  %v5219_v16 = vadd.f32 %v774_v45, %v763_v52 }
 0x1e4   : > { %v1070_v30 = vsel %vm635_vm7, %v4754_v5, %v4735_v0  ;;  %v1113_v21 = vsel %vm681_vm9, %v4863_v57, %v4825_v47  ;;  %v2172_v50 = vadd.f32 %v2162_v53, %v2142_v40  ;;  %v792_v61 = vadd.f32 %v788_v62, %v777_v23  ;;  %v6097_v23 = vld [vmem:[#allocation24_spill] sm:$0xff] }
 0x1e5   : > { %v1095_v44 = vadd.f32 %v1091_v2, %v1073_v58  ;;  %1951 = vrot.lane.b32.xlu0 %v5045_v25, %s3196_s19  ;;  %1971 = vrot.lane.b32.xlu1 %v4899_v22, %s3197_s23  ;;  %v2174_v63 = vadd.f32 %v2166_v3, %v2144_v12  ;;  %v2195_v45 = vrot.slane %v5199_v38, 3  ;;  %v1092_v0 = vsel %vm658_vm8, %v4823_v14, %v4789_v26  ;;  %v6098_v14 = vld [vmem:[#allocation76_spill] sm:$0xff] }
 0x1e6   : > { %v1135_v5 = vsel %vm704_vm10, %v4929_v37, %v4890_v7  ;;  %v5239_v47 = vmul.f32 0.21300554, %v5079_v27  ;;  %v2220_v57 = vrot.slane %v5209_v60, 4  ;;  %v1074_v52 = vadd.f32 %v1070_v30, %v6097_v23  ;;  %v6103_v23 = vld [vmem:[#allocation81_spill] sm:$0xff] }
 0x1e7   : > { %v1117_v40 = vadd.f32 %v1113_v21, %v1095_v44  ;;  %v1196_v53 = vpop.permute.xlu0 %1195  ;;  %v1208_v12 = vpop.permute.xlu1 %1207  ;;  %v2192_v62 = vsel %vm452_vm2, %v2190_v33, %v2191_v41  ;;  %v2221_v2 = vrot.slane %v5217_v18, 4  ;;  %v1114_v26 = vsel %vm681_vm9, %v4888_v6, %v4865_v13  ;;  %v6099_v21 = vld [vmem:[#allocation68_spill] sm:$0xff]  ;;  %v6100_v33 = vld [vmem:[#allocation54_spill] sm:$0xff]  ;;  %v6101_v6 = vld [vmem:[#allocation65_spill] sm:$0xff] }
 0x1e8   : > { %v1157_v7 = vsel %vm727_vm11, %v6098_v14, %v4971_v17  ;;  %v2236_v37 = vmul.f32 0.26601174, %v5036_v8  ;;  %v5253_v3 = vmul.f32 0.26601174, %v5071_v20  ;;  %v1096_v58 = vadd.f32 %v1092_v0, %v1074_v52  ;;  %v6102_v17 = vld [vmem:[#allocation59_spill] sm:$0xff] }
 0x1e9   : > { %v1139_v30 = vadd.f32 %v1135_v5, %v1117_v40  ;;  %1969 = vrot.lane.b32.xlu0 %v6099_v21, %s3197_s23  ;;  %1975 = vrot.lane.b32.xlu1 %v6100_v33, %s3197_s23  ;;  %v5260_v44 = vmul.f32 0.0010283804, %v5120_v34  ;;  %v2196_v13 = vsel %vm452_vm2, %v2191_v41, %v2195_v45  ;;  %v1136_v8 = vsel %vm704_vm10, %v6102_v17, %v6101_v6  ;;  %v6104_v52 = vld [vmem:[#allocation67_spill] sm:$0xff]  ;;  %v6105_v40 = vld [vmem:[#allocation69_spill] sm:$0xff]  ;;  %v6107_v21 = vld [vmem:[#allocation80_spill] sm:$0xff] }
 0x1ea   : > { %v1171_v20 = vsel %vm742_vm12, %v5084_v43, %v6103_v23  ;;  %v2202_v0 = vadd.f32 %v2192_v62, %v2172_v50  ;;  %v2225_v5 = vrot.slane %v5239_v47, 4  ;;  %v789_v14 = vsel %vm787_vm15, %v6105_v40, %v6104_v52  ;;  %v6106_v45 = vld [vmem:[#allocation77_spill] sm:$0xff] }
 0x1eb   : > { %v1118_v25 = vadd.f32 %v1114_v26, %v1096_v58  ;;  %v1161_v34 = vadd.f32 %v1157_v7, %v1139_v30  ;;  %v1206_v39 = vpop.permute.xlu0 %1205  ;;  %v1212_v33 = vpop.permute.xlu1 %1211  ;;  %v2222_v41 = vsel %vm483_vm3, %v2220_v57, %v2221_v2  ;;  %v1158_v6 = vsel %vm727_vm11, %v6107_v21, %v6106_v45  ;;  %v6108_v26 = vld [vmem:[#allocation82_spill] sm:$0xff]  ;;  %v6109_v7 = vld [vmem:[#allocation45_spill] sm:$0xff]  ;;  %v6111_v21 = vld [vmem:[#allocation71_spill] sm:$0xff] }
 0x1ec   : > { %v1185_v43 = vsel %vm757_vm13, %v5137_v24, %v5107_v54  ;;  %v2250_v50 = vrot.slane %v2236_v37, 5  ;;  %v2251_v62 = vrot.slane %v5253_v3, 5  ;;  %v2204_v57 = vadd.f32 %v2196_v13, %v2174_v63  ;;  %v6110_v30 = vld [vmem:[#allocation70_spill] sm:$0xff] }
 0x1ed   : > { %v1140_v17 = vadd.f32 %v1136_v8, %v1118_v25  ;;  %v1175_v23 = vadd.f32 %v1171_v20, %v1161_v34  ;;  %1973 = vrot.lane.b32.xlu0 %v6108_v26, %s3197_s23  ;;  %1993 = vrot.lane.b32.xlu1 %v6109_v7, %s3198_s26  ;;  %v2268_v58 = vrot.slane %v5209_v60, 6  ;;  %v809_v52 = vsel %vm808_vm0, %v6111_v21, %v6110_v30  ;;  %v6112_v45 = vld [vmem:[#allocation46_spill] sm:$0xff] }
 0x1ee   : > { %v1172_v54 = vsel %vm742_vm12, %v5105_v31, %v5086_v42  ;;  %v1199_v25 = vsel %vm772_vm14, %v1192_v59, %v5173_v55  ;;  %v2240_v24 = vmul.f32 0.26601174, %v5079_v27  ;;  %v2226_v63 = vsel %vm483_vm3, %v2221_v2, %v2225_v5  ;;  %v6115_v5 = vld [vmem:[#allocation73_spill] sm:$0xff] }
 0x1ef   : > { %v1162_v37 = vadd.f32 %v1158_v6, %v1140_v17  ;;  %v1189_v3 = vadd.f32 %v1185_v43, %v1175_v23  ;;  %v1210_v8 = vpop.permute.xlu0 %1209  ;;  %v1228_v20 = vpop.permute.xlu1 %1227  ;;  %v2232_v60 = vadd.f32 %v2222_v41, %v2202_v0  ;;  %v1186_v13 = vsel %vm757_vm13, %v5171_v28, %v5139_v4  ;;  %v6113_v6 = vld [vmem:[#allocation78_spill] sm:$0xff]  ;;  %v6114_v0 = vld [vmem:[#allocation72_spill] sm:$0xff] }
 0x1f0   : > { %v1213_v40 = vsel %vm787_vm15, %v1206_v39, %v1208_v12  ;;  %v2252_v42 = vsel %vm514_vm4, %v2250_v50, %v2251_v62  ;;  %v2269_v31 = vrot.slane %v5217_v18, 6  ;;  %v813_v55 = vadd.f32 %v809_v52, %v792_v61 }
 0x1f1   : > { %v1176_v59 = vadd.f32 %v1172_v54, %v1162_v37  ;;  %v1203_v34 = vadd.f32 %v1199_v25, %v1189_v3  ;;  %1991 = vrot.lane.b32.xlu0 %v6112_v45, %s3198_s26  ;;  %1997 = vrot.lane.b32.xlu1 %v6113_v6, %s3198_s26  ;;  %v2309_v2 = vrot.slane %v5163_v19, 1  ;;  %v810_v4 = vsel %vm808_vm0, %v6115_v5, %v6114_v0  ;;  %v6121_v5 = vld [vmem:[#allocation26_spill] sm:$0xff] }
 0x1f2   : > { %v1200_v39 = vsel %vm772_vm14, %v1196_v53, %v5212_v46  ;;  %v2286_v28 = vrot.slane %v5178_v49, 7  ;;  %v2255_v18 = vrot.slane %v2240_v24, 5  ;;  %v793_v61 = vadd.f32 %v789_v14, %v5219_v16  ;;  %v6116_v49 = vld [vmem:[#allocation50_spill] sm:$0xff]  ;;  %v6117_v16 = vld [vmem:[#allocation27_spill] sm:$0xff] }
 0x1f3   : > { %v1190_v12 = vadd.f32 %v1186_v13, %v1176_v59  ;;  %v1217_v41 = vadd.f32 %v1213_v40, %v1203_v34  ;;  %v1226_v43 = vpop.permute.xlu0 %1225  ;;  %v1232_v50 = vpop.permute.xlu1 %1231  ;;  %v2234_v17 = vadd.f32 %v2226_v63, %v2204_v57  ;;  %v1214_v23 = vsel %vm787_vm15, %v1210_v8, %v1212_v33  ;;  %v6120_v59 = vld [vmem:[#allocation79_spill] sm:$0xff] }
 0x1f4   : > { %v1233_v19 = vsel %vm808_vm0, %v1226_v43, %v1228_v20  ;;  %v2262_v30 = vadd.f32 %v2252_v42, %v2232_v60  ;;  %v2270_v21 = vsel %vm533_vm5, %v2268_v58, %v2269_v31  ;;  %v2553_v52 = vmul.f32 2.0, %v813_v55  ;;  %v6119_v42 = vld [vmem:[#allocation74_spill] sm:$0xff] }
 0x1f5   : > { %v814_v54 = vadd.f32 %v810_v4, %v793_v61  ;;  %v1204_v46 = vadd.f32 %v1200_v39, %v1190_v12  ;;  %v1237_v53 = vadd.f32 %v1233_v19, %v1217_v41  ;;  %1995 = vrot.lane.b32.xlu0 %v6116_v49, %s3198_s26  ;;  %2015 = vrot.lane.b32.xlu1 %v6117_v16, %s3199_s14  ;;  %v2287_v14 = vrot.slane %v5181_v56, 7  ;;  %v6118_v56 = vld [vmem:[#allocation64_spill] sm:$0xff] }
 0x1f6   : > { %v2256_v57 = vsel %vm514_vm4, %v2251_v62, %v2255_v18  ;;  %v2273_v33 = vrot.slane %v5239_v47, 6  ;;  %v5324_v25 = vmul.f32 %v813_v55, %v813_v55  ;;  %v2301_v62 = vadd.f32 %v5175_v15, %v6118_v56  ;;  %v2944_v15 = vld [vmem:[%s3492_s16 + $0x38] sm:$0xff]  ;;  %s5672_s16 = scalar_lea.hbm %s5762_s5, %s2821_s17 }
 0x1f7   : > { %v1218_v24 = vadd.f32 %v1214_v23, %v1204_v46  ;;  %v5326_v58 = vmul.f32 %v2553_v52, %v1237_v53  ;;  %v1230_v37 = vpop.permute.xlu0 %1229  ;;  %v5328_v3 = vpop.permute.xlu1 %1495  ;;  %v5330_v8 = vmul.f32 %v1237_v53, %v1237_v53  ;;  %v5332_v20 = vmul.f32 %v1237_v53, %v813_v55  ;;  %v6125_v23 = vld [vmem:[#allocation55_spill] sm:$0xff]  ;;  %v6126_v46 = vld [vmem:[#allocation42_spill] sm:$0xff] }
 0x1f8   : > { %v1234_v63 = vsel %vm808_vm0, %v1230_v37, %v1232_v50  ;;  %v2299_v47 = vadd.f32 %v5160_v35, %v5186_v32  ;;  %v2280_v60 = vadd.f32 %v2270_v21, %v2262_v30  ;;  %v2554_v13 = vmul.f32 2.0, %v814_v54 }
 0x1f9   : > { %v1238_v40 = vadd.f32 %v1234_v63, %v1218_v24  ;;  %2013 = vrot.lane.b32.xlu0 %v6119_v42, %s3199_s14  ;;  %2019 = vrot.lane.b32.xlu1 %v6120_v59, %s3199_s14  ;;  %v2264_v34 = vadd.f32 %v2256_v57, %v2234_v17  ;;  %v5345_v55 = vadd.f32 %v5330_v8, %v5324_v25  ;;  %v2291_v32 = vrot.slane %v5199_v38, 7 }
 0x1fa   : > { %v2288_v0 = vsel %vm552_vm6, %v2286_v28, %v2287_v14  ;;  %v2110_v4 = vmul.f32 %v2944_v15, %v6121_v5  ;;  %v2274_v35 = vsel %vm533_vm5, %v2269_v31, %v2273_v33  ;;  %v5358_v12 = vmul.f32 %v814_v54, %v814_v54  ;;  %v6122_v28 = vld [vmem:[#allocation47_spill] sm:$0xff] }
 0x1fb   : > { %v5352_v39 = vmul.f32 %v2554_v13, %v1238_v40  ;;  %v5354_v18 = vpop.permute.xlu0 %1493  ;;  %v5356_v61 = vpop.permute.xlu1 %1499  ;;  %v5360_v41 = vmul.f32 %v1238_v40, %v1238_v40  ;;  %v5362_v43 = vmul.f32 %v1238_v40, %v814_v54  ;;  %v2315_v50 = vadd.f32 %v2301_v62, %v6122_v28 }
 0x1fc   : > { %v6123_v17 = vrot.slane %v5111_v48, 2  ;;  %v6124_v31 = vrot.slane %v4961_v36, 2  ;;  %v2303_v19 = vadd.f32 %v2299_v47, %v6125_v23  ;;  %v2335_v30 = vrot.slane %v5260_v44, 2 }
 0x1fd   : > { %2017 = vrot.lane.b32.xlu0 %v5091_v9, %s3199_s14  ;;  %2029 = vrot.lane.b32.xlu1 %v6109_v7, %s3200_s15  ;;  %v2298_v21 = vadd.f32 %v2288_v0, %v2280_v60  ;;  %v2282_v52 = vadd.f32 %v2274_v35, %v2264_v34  ;;  %v5378_v54 = vadd.f32 %v5360_v41, %v5358_v12  ;;  %v6127_v36 = vrot.slane %v6126_v46, 1 }
 0x1fe   : > { %v2331_v38 = vsel %vm421_vm1, %v6124_v31, %v6123_v17  ;;  %vm6128_vm2 = vcmask 1046528   ;;  %v2320_v16 = vmul.f32 0.0010283804, %v5079_v27  ;;  %v2292_v44 = vsel %vm552_vm6, %v2287_v14, %v2291_v32 }
 0x1ff   : > { %v2310_v53 = vsel %vm6128_vm2, %v6127_v36, %v2309_v2  ;;  %v2306_v57 = vmul.f32 0.0075987587, %v2110_v4  ;;  %v1498_v33 = vpop.permute.xlu0 %1497  ;;  %v5385_v9 = vpop.permute.xlu1 %1517  ;;  %v5387_v24 = vadd.f32 %v2331_v38, %v2315_v50  ;;  %v6129_v7 = vmov %v6123_v17  ;;  %vm6131_vm3 = vmmov %vm6128_vm2  ;;  %v6133_v50 = vld [vmem:[#allocation54_spill] sm:$0xff] }
 0x200   : > { %v2336_v37 = vsel %vm421_vm1, %v6129_v7, %v2335_v30  ;;  %v2317_v2 = vadd.f32 %v2310_v53, %v2303_v19  ;;  %v2302_v27 = vadd.f32 %v2298_v21, %v5129_v10  ;;  %v2300_v14 = vadd.f32 %v2292_v44, %v2282_v52  ;;  %v6135_v7 = vld [vmem:[#allocation28_spill] sm:$0xff] }
 0x201   : > { %2027 = vrot.lane.b32.xlu0 %v6112_v45, %s3200_s15  ;;  %2033 = vrot.lane.b32.xlu1 %v6113_v6, %s3200_s15  ;;  %v2332_v63 = vrot.slane %v5148_v11, 2  ;;  %v2333_v56 = vrot.slane %v2320_v16, 2  ;;  %v2311_v62 = vrot.slane %v2306_v57, 1  ;;  %v2322_v47 = vmul.f32 0.0010283804, %v2110_v4  ;;  %v6134_v16 = vld [vmem:[#allocation43_spill] sm:$0xff] }
 0x202   : > { %v5403_v48 = vmul.f32 0.0075987587, %v5387_v24  ;;  %v5405_v45 = vadd.f32 %v2336_v37, %v2317_v2  ;;  %v2316_v10 = vadd.f32 %v2302_v27, %v5168_v1  ;;  %v2304_v11 = vadd.f32 %v2300_v14, %v5135_v29 }
 0x203   : > { %v1516_v60 = vpop.permute.xlu0 %1515  ;;  %v1522_v13 = vpop.permute.xlu1 %1521  ;;  %v2334_v6 = vsel %vm421_vm1, %v2332_v63, %v2333_v56  ;;  %v6130_v40 = vrot.slane %v5103_v51, 1  ;;  %v2337_v59 = vrot.slane %v2322_v47, 2  ;;  %v5447_v23 = vmul.f32 0.036000773, %v5387_v24  ;;  %v6138_v47 = vld [vmem:[#allocation34_spill] sm:$0xff] }
 0x204   : > { %v5418_v0 = vmul.f32 0.0075987587, %v5405_v45  ;;  %v5420_v1 = vadd.f32 %v2334_v6, %v2316_v10  ;;  %v5457_v52 = vmul.f32 0.036000773, %v5405_v45  ;;  %v1502_v53 = vsel %vm635_vm7, %v1498_v33, %v5356_v61  ;;  %v6136_v33 = vld [vmem:[#allocation29_spill] sm:$0xff] }
 0x205   : > { %2031 = vrot.lane.b32.xlu0 %v6116_v49, %s3200_s15  ;;  %2043 = vrot.lane.b32.xlu1 %v4899_v22, %s3201_s27  ;;  %v2312_v42 = vsel %vm6131_vm3, %v6130_v40, %v2311_v62  ;;  %v6132_v22 = vld [vmem:[#allocation68_spill] sm:$0xff]  ;;  %v2338_v15 = vsel %vm421_vm1, %v2333_v56, %v2337_v59  ;;  %v1501_v44 = vsel %vm635_vm7, %v5354_v18, %v5328_v3  ;;  %v6137_v62 = vld [vmem:[#allocation35_spill] sm:$0xff] }
 0x206   : > { %v2318_v29 = vadd.f32 %v2312_v42, %v2304_v11  ;;  %v5428_v4 = vmul.f32 0.0075987587, %v5420_v1  ;;  %v1506_v37 = vadd.f32 %v1502_v53, %v6135_v7  ;;  %v1523_v14 = vsel %vm658_vm8, %v1516_v60, %v5385_v9 }
 0x207   : > { %v1520_v49 = vpop.permute.xlu0 %1519  ;;  %v1540_v34 = vpop.permute.xlu1 %1539  ;;  %v1505_v63 = vadd.f32 %v1501_v44, %v6136_v33  ;;  %v5479_v3 = vmul.f32 0.1093607, %v5420_v1  ;;  %v6140_v44 = vld [vmem:[#allocation32_spill] sm:$0xff] }
 0x208   : > { %v5430_v35 = vadd.f32 %v2338_v15, %v2318_v29  ;;  %v1524_v57 = vsel %vm658_vm8, %v1520_v49, %v1522_v13  ;;  %v6139_v49 = vld [vmem:[#allocation49_spill] sm:$0xff] }
 0x209   : > { %2041 = vrot.lane.b32.xlu0 %v6132_v22, %s3201_s27  ;;  %2357 = vrot.lane.b32.xlu1 %v5403_v48, %s3195_s8  ;;  %v1528_v56 = vadd.f32 %v1524_v57, %v1506_v37  ;;  %v1527_v10 = vadd.f32 %v1523_v14, %v1505_v63  ;;  %v6142_v14 = vld [vmem:[#allocation33_spill] sm:$0xff] }
 0x20a   : > { %v5437_v17 = vmul.f32 0.0075987587, %v5430_v35  ;;  %v5450_v19 = vmul.f32 0.036000773, %v5430_v35  ;;  %v5493_v22 = vmul.f32 0.1093607, %v5430_v35 }
 0x20b   : > { %v1538_v51 = vpop.permute.xlu0 %1537  ;;  %v1544_v5 = vpop.permute.xlu1 %1543 }
 0x20c   : > { %v1545_v18 = vsel %vm681_vm9, %v1538_v51, %v1540_v34  ;;  %v5490_v34 = vmul.f32 0.1093607, %v5387_v24 }
 0x20d   : > { %2045 = vrot.lane.b32.xlu0 %v6108_v26, %s3201_s27  ;;  %2361 = vrot.lane.b32.xlu1 %v5418_v0, %s3195_s8  ;;  %v5440_v26 = vmul.f32 0.036000773, %v5420_v1  ;;  %v1549_v42 = vadd.f32 %v1545_v18, %v1527_v10  ;;  %v2415_v18 = vmul.f32 0.21300554, %v5387_v24 }
 0x20f   : > { %v1542_v32 = vpop.permute.xlu0 %1541  ;;  %v1562_v28 = vpop.permute.xlu1 %1561 }
 0x210   : > { %v1546_v61 = vsel %vm681_vm9, %v1542_v32, %v1544_v5 }
 0x211   : > { %2359 = vrot.lane.b32.xlu0 %v5428_v4, %s3195_s8  ;;  %2047 = vrot.lane.b32.xlu1 %v6133_v50, %s3201_s27  ;;  %v1550_v9 = vadd.f32 %v1546_v61, %v1528_v56  ;;  %v2416_v61 = vmul.f32 0.21300554, %v5420_v1 }
 0x213   : > { %v1560_v31 = vpop.permute.xlu0 %1559  ;;  %v1566_v38 = vpop.permute.xlu1 %1565 }
 0x214   : > { %v1567_v6 = vsel %vm704_vm10, %v1560_v31, %v1562_v28 }
 0x215   : > { %2363 = vrot.lane.b32.xlu0 %v5437_v17, %s3195_s8  ;;  %2381 = vrot.lane.b32.xlu1 %v5440_v26, %s3196_s19  ;;  %v1571_v15 = vadd.f32 %v1567_v6, %v1549_v42  ;;  %v2417_v6 = vmul.f32 0.21300554, %v5405_v45  ;;  %s3074_s8 = scalar_lea.vmem %s5674_s11, 256 }
 0x216   : > { %p3075_p4 = scmp.ne.s32.totalorder %s5674_s11, %s3074_s8 }
 0x217   : > { %v1564_v30 = vpop.permute.xlu0 %1563  ;;  %v1584_v21 = vpop.permute.xlu1 %1583 }
 0x218   : > { %v1568_v13 = vsel %vm704_vm10, %v1564_v30, %v1566_v38  ;;  %v5503_v30 = vmul.f32 0.1093607, %v5405_v45  ;;  %p3076_p11 = pnand %p3075_p4, %p6152_p8 }
 0x219   : > { %2379 = vrot.lane.b32.xlu0 %v5447_v23, %s3196_s19  ;;  %2385 = vrot.lane.b32.xlu1 %v5450_v19, %s3196_s19  ;;  %v1572_v59 = vadd.f32 %v1568_v13, %v1550_v9  ;;  %v2418_v13 = vmul.f32 0.21300554, %v5430_v35 }
 0x21a   : > { %p3077_p5 = pneg %p3076_p11 }
 0x21b   : > { %v1582_v46 = vpop.permute.xlu0 %1581  ;;  %v1588_v36 = vpop.permute.xlu1 %1587 }
 0x21c   : > { %v1589_v29 = vsel %vm727_vm11, %v1582_v46, %v1584_v21 }
 0x21d   : > { %2383 = vrot.lane.b32.xlu0 %v5457_v52, %s3196_s19  ;;  %2057 = vrot.lane.b32.xlu1 %v6134_v16, %s3202_s7  ;;  %v1593_v31 = vadd.f32 %v1589_v29, %v1571_v15  ;;  %s3205_s19 = smov [#allocation11]  }
 0x21f   : > { %v1586_v2 = vpop.permute.xlu0 %1585  ;;  %v1598_v27 = vpop.permute.xlu1 %1597 }
 0x220   : > { %v1590_v40 = vsel %vm727_vm11, %v1586_v2, %v1588_v36 }
 0x221   : > { %2055 = vrot.lane.b32.xlu0 %v6137_v62, %s3202_s7  ;;  %2061 = vrot.lane.b32.xlu1 %v6138_v47, %s3202_s7  ;;  %v1594_v51 = vadd.f32 %v1590_v40, %v1572_v59  ;;  %v6143_v47 = vld [vmem:[#allocation48_spill] sm:$0xff]  ;;  %v6144_v40 = vld [vmem:[#allocation25_spill] sm:$0xff] }
 0x222   : > { %v2083_v42 = vmul.f32 0.0010283804, %v6144_v40 }
 0x223   : > { %v1596_v60 = vpop.permute.xlu0 %1595  ;;  %v1602_v11 = vpop.permute.xlu1 %1601 }
 0x224   : > { %v1603_v28 = vsel %vm742_vm12, %v1596_v60, %v1598_v27  ;;  %v6141_v27 = vld [vmem:[#allocation58_spill] sm:$0xff] }
 0x225   : > { %2059 = vrot.lane.b32.xlu0 %v6139_v49, %s3202_s7  ;;  %2403 = vrot.lane.b32.xlu1 %v5479_v3, %s3197_s23  ;;  %v1607_v21 = vadd.f32 %v1603_v28, %v1593_v31 }
 0x227   : > { %v1600_v5 = vpop.permute.xlu0 %1599  ;;  %v1612_v32 = vpop.permute.xlu1 %1611 }
 0x228   : > { %v1604_v50 = vsel %vm742_vm12, %v1600_v5, %v1602_v11 }
 0x229   : > { %v1608_v38 = vadd.f32 %v1604_v50, %v1594_v51  ;;  %2401 = vrot.lane.b32.xlu0 %v5490_v34, %s3197_s23  ;;  %2407 = vrot.lane.b32.xlu1 %v5493_v22, %s3197_s23  ;;  %v6145_v51 = vld [vmem:[#allocation41_spill] sm:$0xff] }
 0x22a   : > { %v1915_v5 = vmul.f32 0.0010283804, %v6145_v51 }
 0x22b   : > { %v1610_v46 = vpop.permute.xlu0 %1609  ;;  %v1616_v36 = vpop.permute.xlu1 %1615 }
 0x22c   : > { %v1617_v53 = vsel %vm757_vm13, %v1610_v46, %v1612_v32  ;;  %v6146_v32 = vld [vmem:[#allocation30_spill] sm:$0xff]  ;;  %v6147_v46 = vld [vmem:[#allocation75_spill] sm:$0xff] }
 0x22d   : > { %v1621_v16 = vadd.f32 %v1617_v53, %v1607_v21  ;;  %2405 = vrot.lane.b32.xlu0 %v5503_v30, %s3197_s23  ;;  %2071 = vrot.lane.b32.xlu1 %v6140_v44, %s3203_s10  ;;  %v2084_v28 = vmul.f32 0.0010283804, %v6146_v32  ;;  %v2438_v53 = vmul.f32 0.26601174, %v5420_v1  ;;  %s3078_s23 = sshll.u32 %s3205_s19, 4  ;;  %s3079_s23 = int_to_ptr.vmem [resolvable:$false] %s3078_s23 }
 0x22e   : > { %p3081_p3 = scmp.lt.s32.totalorder %s5674_s11, %s3079_s23 }
 0x22f   : > { %v1614_v57 = vpop.permute.xlu0 %1613  ;;  %v1626_v7 = vpop.permute.xlu1 %1625 }
 0x230   : > { %v1618_v37 = vsel %vm757_vm13, %v1614_v57, %v1616_v36  ;;  %v1916_v36 = vmul.f32 0.0010283804, %v6147_v46 }
 0x231   : > { %v1622_v2 = vadd.f32 %v1618_v37, %v1608_v38  ;;  %2069 = vrot.lane.b32.xlu0 %v6141_v27, %s3203_s10  ;;  %2075 = vrot.lane.b32.xlu1 %v6142_v14, %s3203_s10  ;;  %v2437_v37 = vmul.f32 0.26601174, %v5387_v24 }
 0x233   : > { %v1624_v33 = vpop.permute.xlu0 %1623  ;;  %v1630_v63 = vpop.permute.xlu1 %1629 }
 0x234   : > { %v1631_v56 = vsel %vm772_vm14, %v1624_v33, %v1626_v7 }
 0x235   : > { %v1635_v62 = vadd.f32 %v1631_v56, %v1621_v16  ;;  %2073 = vrot.lane.b32.xlu0 %v6143_v47, %s3203_s10  ;;  %2425 = vrot.lane.b32.xlu1 %v2416_v61, %s3198_s26 }
 0x237   : > { %v1628_v10 = vpop.permute.xlu0 %1627  ;;  %v1640_v9 = vpop.permute.xlu1 %1639 }
 0x238   : > { %v1632_v60 = vsel %vm772_vm14, %v1628_v10, %v1630_v63 }
 0x239   : > { %v1636_v11 = vadd.f32 %v1632_v60, %v1622_v2  ;;  %2423 = vrot.lane.b32.xlu0 %v2415_v18, %s3198_s26  ;;  %2429 = vrot.lane.b32.xlu1 %v2418_v13, %s3198_s26  ;;  %v2440_v2 = vmul.f32 0.26601174, %v5430_v35 }
 0x23b   : > { %v1638_v59 = vpop.permute.xlu0 %1637  ;;  %v1644_v49 = vpop.permute.xlu1 %1643 }
 0x23c   : > { %v1645_v29 = vsel %vm787_vm15, %v1638_v59, %v1640_v9 }
 0x23d   : > { %v1649_v15 = vadd.f32 %v1645_v29, %v1635_v62  ;;  %2427 = vrot.lane.b32.xlu0 %v2417_v6, %s3198_s26  ;;  %2091 = vrot.lane.b32.xlu1 %v2083_v42, %s3204_s28  ;;  %v2439_v62 = vmul.f32 0.26601174, %v5405_v45  ;;  %s3080_s26 = scalar_lea.vmem %s3079_s23, 512 }
 0x23e   : > { %p3082_p7 = scmp.lt.s32.totalorder %s3080_s26, %s3074_s8 }
 0x23f   : > { %v1642_v50 = vpop.permute.xlu0 %1641  ;;  %v1660_v31 = vpop.permute.xlu1 %1659 }
 0x240   : > { %v1646_v38 = vsel %vm787_vm15, %v1642_v50, %v1644_v49  ;;  %p3083_p13 = por %p3082_p7, %p3081_p3 }
 0x241   : > { %v1650_v21 = vadd.f32 %v1646_v38, %v1636_v11  ;;  %2089 = vrot.lane.b32.xlu0 %v1915_v5, %s3204_s28  ;;  %2095 = vrot.lane.b32.xlu1 %v2084_v28, %s3204_s28 }
 0x242   : > { %p3084_p9 = pnand %p3083_p13, %p3077_p5 }
 0x243   : > { %v1658_v16 = vpop.permute.xlu0 %1657  ;;  %v1664_v44 = vpop.permute.xlu1 %1663 }
 0x244   : > { %v1665_v57 = vsel %vm808_vm0, %v1658_v16, %v1660_v31 }
 0x245   : > { %v5538_v7 = vadd.f32 %v1665_v57, %v1649_v15  ;;  %2093 = vrot.lane.b32.xlu0 %v1916_v36, %s3204_s28  ;;  %2447 = vrot.lane.b32.xlu1 %v2438_v53, %s3199_s14 }
 0x247   : > { %v2537_v27 = vsub.f32 %v5538_v7, %v5324_v25  ;;  %v1662_v14 = vpop.permute.xlu0 %1661  ;;  %v1928_v33 = vpop.permute.xlu1 %1927 }
 0x248   : > { %v1666_v63 = vsel %vm808_vm0, %v1662_v14, %v1664_v44 }
 0x249   : > { %v5547_v56 = vadd.f32 %v1666_v63, %v1650_v21  ;;  %2445 = vrot.lane.b32.xlu0 %v2437_v37, %s3199_s14  ;;  %2451 = vrot.lane.b32.xlu1 %v2440_v2, %s3199_s14  ;;  %v2516_v2 = vmul.f32 0.0010283804, %v5430_v35 }
 0x24b   : > { %v2538_v47 = vsub.f32 %v5547_v56, %v5358_v12  ;;  %v1926_v10 = vpop.permute.xlu0 %1925  ;;  %v1932_v9 = vpop.permute.xlu1 %1931 }
 0x24c   : > { %v1933_v60 = vsel %vm635_vm7, %v1926_v10, %v1928_v33 }
 0x24d   : > { %v1937_v11 = vadd.f32 %v1933_v60, %v1915_v5  ;;  %2449 = vrot.lane.b32.xlu0 %v2439_v62, %s3199_s14  ;;  %2461 = vrot.lane.b32.xlu1 %v2416_v61, %s3200_s15 }
 0x24f   : > { %v1930_v40 = vpop.permute.xlu0 %1929  ;;  %v1950_v42 = vpop.permute.xlu1 %1949 }
 0x250   : > { %v1934_v59 = vsel %vm635_vm7, %v1930_v40, %v1932_v9 }
 0x251   : > { %v1938_v49 = vadd.f32 %v1934_v59, %v1916_v36  ;;  %2459 = vrot.lane.b32.xlu0 %v2415_v18, %s3200_s15  ;;  %2465 = vrot.lane.b32.xlu1 %v2418_v13, %s3200_s15 }
 0x253   : > { %v1948_v29 = vpop.permute.xlu0 %1947  ;;  %v1954_v15 = vpop.permute.xlu1 %1953 }
 0x254   : > { %v1955_v51 = vsel %vm658_vm8, %v1948_v29, %v1950_v42 }
 0x255   : > { %v1959_v32 = vadd.f32 %v1955_v51, %v1937_v11  ;;  %2463 = vrot.lane.b32.xlu0 %v2417_v6, %s3200_s15  ;;  %2475 = vrot.lane.b32.xlu1 %v5479_v3, %s3201_s27 }
 0x257   : > { %v1952_v61 = vpop.permute.xlu0 %1951  ;;  %v1972_v5 = vpop.permute.xlu1 %1971 }
 0x258   : > { %v1956_v28 = vsel %vm658_vm8, %v1952_v61, %v1954_v15 }
 0x259   : > { %v1960_v50 = vadd.f32 %v1956_v28, %v1938_v49  ;;  %2473 = vrot.lane.b32.xlu0 %v5490_v34, %s3201_s27  ;;  %2479 = vrot.lane.b32.xlu1 %v5493_v22, %s3201_s27 }
 0x25b   : > { %v1970_v18 = vpop.permute.xlu0 %1969  ;;  %v1976_v13 = vpop.permute.xlu1 %1975 }
 0x25c   : > { %v1977_v31 = vsel %vm681_vm9, %v1970_v18, %v1972_v5 }
 0x25d   : > { %v1981_v38 = vadd.f32 %v1977_v31, %v1959_v32  ;;  %2477 = vrot.lane.b32.xlu0 %v5503_v30, %s3201_s27  ;;  %2489 = vrot.lane.b32.xlu1 %v5440_v26, %s3202_s7 }
 0x25f   : > { %v1974_v3 = vpop.permute.xlu0 %1973  ;;  %v1994_v6 = vpop.permute.xlu1 %1993 }
 0x260   : > { %v1978_v21 = vsel %vm681_vm9, %v1974_v3, %v1976_v13 }
 0x261   : > { %v1982_v46 = vadd.f32 %v1978_v21, %v1960_v50  ;;  %2487 = vrot.lane.b32.xlu0 %v5447_v23, %s3202_s7  ;;  %2493 = vrot.lane.b32.xlu1 %v5450_v19, %s3202_s7  ;;  %v2515_v23 = vmul.f32 0.0010283804, %v5420_v1  ;;  %v2348_v1 = vmul.f32 0.0010283804, %v5405_v45 }
 0x263   : > { %v1992_v34 = vpop.permute.xlu0 %1991  ;;  %v1998_v22 = vpop.permute.xlu1 %1997 }
 0x264   : > { %v1999_v36 = vsel %vm704_vm10, %v1992_v34, %v1994_v6 }
 0x265   : > { %v2003_v53 = vadd.f32 %v1999_v36, %v1981_v38  ;;  %2491 = vrot.lane.b32.xlu0 %v5457_v52, %s3202_s7  ;;  %2503 = vrot.lane.b32.xlu1 %v5428_v4, %s3203_s10  ;;  %v2347_v4 = vmul.f32 0.0010283804, %v5387_v24 }
 0x267   : > { %v1996_v26 = vpop.permute.xlu0 %1995  ;;  %v2016_v30 = vpop.permute.xlu1 %2015 }
 0x268   : > { %v2000_v16 = vsel %vm704_vm10, %v1996_v26, %v1998_v22 }
 0x269   : > { %v2004_v44 = vadd.f32 %v2000_v16, %v1982_v46  ;;  %2501 = vrot.lane.b32.xlu0 %v5403_v48, %s3203_s10  ;;  %2507 = vrot.lane.b32.xlu1 %v5437_v17, %s3203_s10 }
 0x26b   : > { %v2014_v19 = vpop.permute.xlu0 %2013  ;;  %v2020_v57 = vpop.permute.xlu1 %2019 }
 0x26c   : > { %v2021_v52 = vsel %vm727_vm11, %v2014_v19, %v2016_v30 }
 0x26d   : > { %v2025_v37 = vadd.f32 %v2021_v52, %v2003_v53  ;;  %2505 = vrot.lane.b32.xlu0 %v5418_v0, %s3203_s10  ;;  %2523 = vrot.lane.b32.xlu1 %v2515_v23, %s3204_s28 }
 0x26f   : > { %v2018_v48 = vpop.permute.xlu0 %2017  ;;  %v2030_v14 = vpop.permute.xlu1 %2029 }
 0x270   : > { %v2022_v17 = vsel %vm727_vm11, %v2018_v48, %v2020_v57 }
 0x271   : > { %v2026_v33 = vadd.f32 %v2022_v17, %v2004_v44  ;;  %2521 = vrot.lane.b32.xlu0 %v2347_v4, %s3204_s28  ;;  %2527 = vrot.lane.b32.xlu1 %v2516_v2, %s3204_s28 }
 0x273   : > { %v2028_v63 = vpop.permute.xlu0 %2027  ;;  %v2034_v62 = vpop.permute.xlu1 %2033 }
 0x274   : > { %v2035_v0 = vsel %vm742_vm12, %v2028_v63, %v2030_v14 }
 0x275   : > { %v2039_v10 = vadd.f32 %v2035_v0, %v2025_v37  ;;  %2525 = vrot.lane.b32.xlu0 %v2348_v1, %s3204_s28 }
 0x277   : > { %v2032_v24 = vpop.permute.xlu0 %2031  ;;  %v2044_v35 = vpop.permute.xlu1 %2043 }
 0x278   : > { %v2036_v9 = vsel %vm742_vm12, %v2032_v24, %v2034_v62 }
 0x279   : > { %v2040_v60 = vadd.f32 %v2036_v9, %v2026_v33 }
 0x27b   : > { %v2042_v11 = vpop.permute.xlu0 %2041  ;;  %v2358_v40 = vpop.permute.xlu1 %2357 }
 0x27c   : > { %v2049_v42 = vsel %vm757_vm13, %v2042_v11, %v2044_v35 }
 0x27d   : > { %v2053_v59 = vadd.f32 %v2049_v42, %v2039_v10 }
 0x27f   : > { %v2046_v49 = vpop.permute.xlu0 %2045  ;;  %v2362_v29 = vpop.permute.xlu1 %2361 }
 0x283   : > { %v2360_v45 = vpop.permute.xlu0 %2359  ;;  %v2048_v15 = vpop.permute.xlu1 %2047 }
 0x284   : > { %v2365_v51 = vsel %vm635_vm7, %v2358_v40, %v2360_v45  ;;  %v2050_v32 = vsel %vm757_vm13, %v2046_v49, %v2048_v15  ;;  %v2539_v45 = vmul.f32 1.0083333, %v2537_v27 }
 0x285   : > { %v2369_v61 = vadd.f32 %v2365_v51, %v2347_v4  ;;  %v2054_v5 = vadd.f32 %v2050_v32, %v2040_v60  ;;  %v5623_v32 = vstv %s2812_s13 }
 0x287   : > { %v2364_v28 = vpop.permute.xlu0 %2363  ;;  %v2382_v50 = vpop.permute.xlu1 %2381 }
 0x288   : > { %v2366_v18 = vsel %vm635_vm7, %v2362_v29, %v2364_v28 }
 0x289   : > { %v2370_v13 = vadd.f32 %v2366_v18, %v2348_v1  ;;  %v5626_v18 = vstv %s372_s1 }
 0x28b   : > { %v2380_v31 = vpop.permute.xlu0 %2379  ;;  %v2386_v38 = vpop.permute.xlu1 %2385 }
 0x28c   : > { %v2387_v3 = vsel %vm658_vm8, %v2380_v31, %v2382_v50 }
 0x28d   : > { %v5608_v6 = vadd.f32 %v2387_v3, %v2369_v61 }
 0x28f   : > { %v2384_v21 = vpop.permute.xlu0 %2383  ;;  %v2058_v46 = vpop.permute.xlu1 %2057 }
 0x290   : > { %v2388_v34 = vsel %vm658_vm8, %v2384_v21, %v2386_v38 }
 0x291   : > { %v5611_v22 = vadd.f32 %v2388_v34, %v2370_v13  ;;  %v2567_v13 = vadd.f32 %v5345_v55, %v5626_v18 }
 0x293   : > { %v2056_v36 = vpop.permute.xlu0 %2055  ;;  %v2062_v53 = vpop.permute.xlu1 %2061 }
 0x294   : > { %v2063_v26 = vsel %vm772_vm14, %v2056_v36, %v2058_v46 }
 0x295   : > { %v2067_v30 = vadd.f32 %v2063_v26, %v2053_v59 }
 0x297   : > { %v2060_v16 = vpop.permute.xlu0 %2059  ;;  %v2404_v44 = vpop.permute.xlu1 %2403 }
 0x298   : > { %v2064_v23 = vsel %vm772_vm14, %v2060_v16, %v2062_v53 }
 0x299   : > { %v2068_v19 = vadd.f32 %v2064_v23, %v2054_v5 }
 0x29b   : > { %v2402_v57 = vpop.permute.xlu0 %2401  ;;  %v2408_v52 = vpop.permute.xlu1 %2407 }
 0x29c   : > { %v2409_v23 = vsel %vm681_vm9, %v2402_v57, %v2404_v44 }
 0x29f   : > { %v2406_v37 = vpop.permute.xlu0 %2405  ;;  %v2072_v4 = vpop.permute.xlu1 %2071 }
 0x2a3   : > { %v2070_v2 = vpop.permute.xlu0 %2069  ;;  %v2076_v48 = vpop.permute.xlu1 %2075 }
 0x2a4   : > { %v2077_v0 = vsel %vm787_vm15, %v2070_v2, %v2072_v4  ;;  %v2413_v4 = vadd.f32 %v2409_v23, %v5608_v6 }
 0x2a5   : > { %v2081_v10 = vadd.f32 %v2077_v0, %v2067_v30 }
 0x2a7   : > { %v2074_v14 = vpop.permute.xlu0 %2073  ;;  %v2426_v17 = vpop.permute.xlu1 %2425 }
 0x2a8   : > { %v2078_v9 = vsel %vm787_vm15, %v2074_v14, %v2076_v48  ;;  %v2410_v48 = vsel %vm681_vm9, %v2406_v37, %v2408_v52 }
 0x2a9   : > { %v2082_v40 = vadd.f32 %v2078_v9, %v2068_v19 }
 0x2ab   : > { %v2424_v33 = vpop.permute.xlu0 %2423  ;;  %v2430_v1 = vpop.permute.xlu1 %2429 }
 0x2ac   : > { %v2431_v19 = vsel %vm704_vm10, %v2424_v33, %v2426_v17 }
 0x2af   : > { %v2428_v63 = vpop.permute.xlu0 %2427  ;;  %v2092_v62 = vpop.permute.xlu1 %2091 }
 0x2b0   : > { %v2432_v0 = vsel %vm704_vm10, %v2428_v63, %v2430_v1 }
 0x2b3   : > { %v2090_v24 = vpop.permute.xlu0 %2089  ;;  %v2096_v35 = vpop.permute.xlu1 %2095 }
 0x2b4   : > { %v2097_v60 = vsel %vm808_vm0, %v2090_v24, %v2092_v62  ;;  %v2435_v62 = vadd.f32 %v2431_v19, %v2413_v4  ;;  %v2414_v24 = vadd.f32 %v2410_v48, %v5611_v22 }
 0x2b5   : > { %v2101_v11 = vadd.f32 %v2097_v60, %v2081_v10 }
 0x2b6   : > { %v2436_v17 = vadd.f32 %v2432_v0, %v2414_v24 }
 0x2b7   : > { %v2543_v42 = vsub.f32 %v2101_v11, %v5330_v8  ;;  %v2094_v59 = vpop.permute.xlu0 %2093  ;;  %v2448_v49 = vpop.permute.xlu1 %2447  ;;  %v2540_v8 = vmul.f32 1.0083333, %v2538_v47 }
 0x2b8   : > { %v2098_v29 = vsel %vm808_vm0, %v2094_v59, %v2096_v35 }
 0x2b9   : > { %v2545_v15 = vmul.f32 1.0083333, %v2543_v42  ;;  %v2102_v51 = vadd.f32 %v2098_v29, %v2082_v40 }
 0x2bb   : > { %v2569_v61 = vadd.f32 %v2545_v15, %v2539_v45  ;;  %v2544_v5 = vsub.f32 %v2102_v51, %v5360_v41  ;;  %v2446_v28 = vpop.permute.xlu0 %2445  ;;  %v2452_v50 = vpop.permute.xlu1 %2451  ;;  %v2568_v41 = vadd.f32 %v5378_v54, %v5626_v18 }
 0x2bc   : > { %v2453_v14 = vsel %vm727_vm11, %v2446_v28, %v2448_v49 }
 0x2bd   : > { %v2571_v25 = vadd.f32 %v2569_v61, %v5623_v32  ;;  %v2546_v7 = vmul.f32 1.0083333, %v2544_v5  ;;  %v2457_v35 = vadd.f32 %v2453_v14, %v2435_v62  ;;  %v2583_v5 = vlaneseq }
 0x2bf   : > { %v2575_v27 = vmul.f32 %v2571_v25, %v2567_v13  ;;  %v2570_v31 = vadd.f32 %v2546_v7, %v2540_v8  ;;  %v2450_v38 = vpop.permute.xlu0 %2449  ;;  %v2462_v3 = vpop.permute.xlu1 %2461 }
 0x2c0   : > { %v2454_v57 = vsel %vm727_vm11, %v2450_v38, %v2452_v50  ;;  %v2584_v38 = vshrl.u32 %v2583_v5, 7 }
 0x2c1   : > { %v2572_v21 = vadd.f32 %v2570_v31, %v5623_v32  ;;  %v2458_v60 = vadd.f32 %v2454_v57, %v2436_v17  ;;  %2925 = vrcp.f32 %v2575_v27  ;;  %v2558_v27 = vadd.f32 %v5626_v18, %v5326_v58 }
 0x2c2   : > { %vm2588_vm1 = vcmp.ge.s32.totalorder %v2584_v38, 5 }
 0x2c3   : > { %v2576_v46 = vmul.f32 %v2572_v21, %v2568_v41  ;;  %v2460_v34 = vpop.permute.xlu0 %2459  ;;  %v2466_v36 = vpop.permute.xlu1 %2465  ;;  %v2587_v21 = vand.u32 127, %v2583_v5 }
 0x2c4   : > { %v2467_v10 = vsel %vm742_vm12, %v2460_v34, %v2462_v3  ;;  %v2585_v34 = vadd.s32 8, %v2584_v38 }
 0x2c5   : > { %v2471_v33 = vadd.f32 %v2467_v10, %v2457_v35  ;;  %2927 = vrcp.f32 %v2576_v46  ;;  %vm2594_vm4 = vcmp.ge.s32.totalorder %v2587_v21, 5  ;;  %vm2597_vm6 = vcmp.lt.s32.totalorder %v2587_v21, 11 }
 0x2c6   : > { %vm2595_vm5 = vmand %vm2588_vm1, %vm2594_vm4  ;;  %v2559_v46 = vadd.f32 %v5626_v18, %v5352_v39 }
 0x2c7   : > { %v2464_v12 = vpop.permute.xlu0 %2463  ;;  %v2476_v56 = vpop.permute.xlu1 %2475  ;;  %vm5665_vm8 = vmand %vm2595_vm5, %vm2597_vm6 }
 0x2c8   : > { %v2468_v52 = vsel %vm742_vm12, %v2464_v12, %v2466_v36 }
 0x2c9   : > { %v2472_v42 = vadd.f32 %v2468_v52, %v2458_v60 }
 0x2cb   : > { %v2474_v47 = vpop.permute.xlu0 %2473  ;;  %v2480_v53 = vpop.permute.xlu1 %2479 }
 0x2cc   : > { %v2481_v6 = vsel %vm757_vm13, %v2474_v47, %v2476_v56 }
 0x2cd   : > { %v2485_v11 = vadd.f32 %v2481_v6, %v2471_v33 }
 0x2cf   : > { %v2478_v55 = vpop.permute.xlu0 %2477  ;;  %v2490_v26 = vpop.permute.xlu1 %2489 }
 0x2d0   : > { %v2482_v40 = vsel %vm757_vm13, %v2478_v55, %v2480_v53  ;;  %v2926_v55 = vpop.eup %2925 }
 0x2d1   : > { %v2486_v29 = vadd.f32 %v2482_v40, %v2472_v42 }
 0x2d3   : > { %v2488_v30 = vpop.permute.xlu0 %2487  ;;  %v2494_v16 = vpop.permute.xlu1 %2493 }
 0x2d4   : > { %v2495_v37 = vsel %vm772_vm14, %v2488_v30, %v2490_v26 }
 0x2d5   : > { %v2499_v59 = vadd.f32 %v2495_v37, %v2485_v11 }
 0x2d7   : > { %v2492_v54 = vpop.permute.xlu0 %2491  ;;  %v2504_v2 = vpop.permute.xlu1 %2503 }
 0x2d8   : > { %v2496_v49 = vsel %vm772_vm14, %v2492_v54, %v2494_v16  ;;  %v2928_v16 = vpop.eup %2927 }
 0x2d9   : > { %v2500_v28 = vadd.f32 %v2496_v49, %v2486_v29 }
 0x2db   : > { %v2502_v9 = vpop.permute.xlu0 %2501  ;;  %v2508_v44 = vpop.permute.xlu1 %2507 }
 0x2dc   : > { %v2509_v22 = vsel %vm787_vm15, %v2502_v9, %v2504_v2 }
 0x2dd   : > { %v2513_v45 = vadd.f32 %v2509_v22, %v2499_v59 }
 0x2df   : > { %v2506_v1 = vpop.permute.xlu0 %2505  ;;  %v2524_v63 = vpop.permute.xlu1 %2523 }
 0x2e0   : > { %v2510_v51 = vsel %vm787_vm15, %v2506_v1, %v2508_v44 }
 0x2e1   : > { %v2514_v13 = vadd.f32 %v2510_v51, %v2500_v28 }
 0x2e3   : > { %v2522_v15 = vpop.permute.xlu0 %2521  ;;  %v2528_v8 = vpop.permute.xlu1 %2527 }
 0x2e4   : > { %v2529_v61 = vsel %vm808_vm0, %v2522_v15, %v2524_v63 }
 0x2e5   : > { %v2533_v50 = vadd.f32 %v2529_v61, %v2513_v45 }
 0x2e7   : > { %v2549_v25 = vsub.f32 %v2533_v50, %v5332_v20  ;;  %v2526_v7 = vpop.permute.xlu0 %2525 }
 0x2e8   : > { %v2530_v31 = vsel %vm808_vm0, %v2526_v7, %v2528_v8  ;;  %vm2591_vm0 = vcmp.lt.s32.totalorder %v2585_v34, 11 }
 0x2e9   : > { %v2551_v3 = vmul.f32 1.0083333, %v2549_v25  ;;  %v2534_v41 = vadd.f32 %v2530_v31, %v2514_v13  ;;  %vm2596_vm7 = vmand %vm2591_vm0, %vm2594_vm4 }
 0x2ea   : > { %vm5676_vm9 = vmand %vm2596_vm7, %vm2597_vm6 }
 0x2eb   : > { %v2560_v36 = vmul.f32 2.0, %v2551_v3  ;;  %v2550_v12 = vsub.f32 %v2534_v41, %v5362_v43 }
 0x2ed   : > { %v2563_v56 = vadd.f32 %v5623_v32, %v2560_v36  ;;  %v2552_v47 = vmul.f32 1.0083333, %v2550_v12 }
 0x2ef   : > { %v2573_v20 = vmul.f32 %v2563_v56, %v2558_v27  ;;  %v2561_v53 = vmul.f32 2.0, %v2552_v47 }
 0x2f1   : > { %v2578_v43 = vmul.f32 %v2926_v55, %v2573_v20  ;;  %v2564_v26 = vadd.f32 %v5623_v32, %v2561_v53 }
 0x2f3   : > { %v2574_v58 = vmul.f32 %v2564_v26, %v2559_v46  ;;  %2581 = vst [vmem:[%s349_s3] sm:$0xff] %v2578_v43  ;;  %v2600_v18 = vsel %vm5665_vm8, %v2578_v43, 0.0 }
 0x2f5   : > { %v2580_v32 = vmul.f32 %v2928_v16, %v2574_v58 }
 0x2f7   : > { %2582 = vst [vmem:[%s349_s3 + $0x8] sm:$0xff] %v2580_v32  ;;  %v2601_v23 = vsel %vm5676_vm9, %v2580_v32, 0.0 }
 0x2f8   : > { %3087 = shalt.err (!%p3084_p9)
}
 0x2f9   : > { %s3088_s14 = scalar_lea.hbm %s5672_s16, 256  ;;  %s3092_s7 = scalar_lea.hbm %s5762_s5, 512 }
 0x2fa   : > { %p3089_p2 = scmp.ne.s32.totalorder %s5672_s16, %s3088_s14  ;;  %p3093_p10 = scmp.lt.u32.totalorder %s5672_s16, %s5762_s5 }
 0x2fb   : > { %p3094_p12 = scmp.lt.u32.totalorder %s3092_s7, %s3088_s14  ;;  %p3096_p4 = scmp.lt.u32.totalorder %s3088_s14, %s5672_s16 }
 0x2fc   : > { %p3090_p6 = pnand %p3089_p2, %p6152_p8 }
 0x2fd   : > { %p3095_p1 = por %p3094_p12, %p3093_p10 }
 0x2fe   : > { %p3091_p0 = pneg %p3090_p6 }
 0x2ff   : > { %p3097_p11 = por %p3096_p4, %p3095_p1 }
 0x301   : > { %p3098_p5 = pnand %p3097_p11, %p3091_p0 }
 0x303   : > { %3101 = shalt.err (!%p3098_p5)
}
 0x304   : > { %s3206_s13 = smov 128   ;;  %s3207_s1 = smov 8   ;;  %v2602_v19 = vadd.f32 %v2601_v23, %v2600_v18 }
 0x305   : > { %2838 = dma.vmem_to_hbm [thread:$0]  (%p6152_p8), %s5674_s11, 256, %s5672_s16, %s2611_s29, %s3206_s13, %s3206_s13, %s3207_s1  }
 0x306   : > { %v2603_v4 = vrot.slane %v2602_v19, 4  ;;  %s2816_s30 = sshll.u32 %s3265_s25, 4  ;;  %s355_s17 = scalar_lea.vmem [#allocation12], %s3489_s20 }
 0x307   : > { %s2644_s3 = sshll.u32 %s355_s17, 4  ;;  %s5713_s8 = scalar_lea.hbm %s5763_s6, %s2816_s30  ;;  %s5715_s3 = int_to_ptr.vmem [resolvable:$true] %s2644_s3 }
 0x308   : > { %v2604_v54 = vadd.f32 %v2603_v4, %v2602_v19  ;;  %s2616_s11 = scalar_lea.sflag [#allocation13], %s3489_s20  ;;  %s3102_s16 = scalar_lea.vmem %s5715_s3, 16 }
 0x309   : > { %p3103_p3 = scmp.ne.s32.totalorder %s5715_s3, %s3102_s16  ;;  %s3208_s25 = smov [#allocation12]  }
 0x30a   : > { %v2605_v2 = vrot.slane %v2604_v54, 2  ;;  %s3106_s29 = sshll.u32 %s3208_s25, 4  ;;  %s3107_s29 = int_to_ptr.vmem [resolvable:$false] %s3106_s29 }
 0x30b   : > { %p3104_p7 = pnand %p3103_p3, %p6152_p8  ;;  %s3108_s19 = scalar_lea.vmem %s3107_s29, 32 }
 0x30c   : > { %v2606_v48 = vadd.f32 %v2605_v2, %v2604_v54  ;;  %p3109_p9 = scmp.lt.s32.totalorder %s5715_s3, %s3107_s29  ;;  %p3110_p2 = scmp.lt.s32.totalorder %s3108_s19, %s3102_s16 }
 0x30d   : > { %p3105_p13 = pneg %p3104_p7 }
 0x30e   : > { %v2607_v14 = vrot.slane %v2606_v48, 1  ;;  %p3111_p6 = por %p3110_p2, %p3109_p9 }
 0x310   : > { %v2608_v62 = vadd.f32 %v2607_v14, %v2606_v48  ;;  %p3112_p0 = pnand %p3111_p6, %p3105_p13 }
 0x312   : > { %2609 = vst [vmem:[%s355_s17] sm:$0x1] %v2608_v62 }
 0x313   : > { %3115 = shalt.err (!%p3112_p0)
}
 0x314   : > { %s3116_s20 = scalar_lea.hbm %s5713_s8, 16  ;;  %s3120_s14 = scalar_lea.hbm %s5763_s6, 32 }
 0x315   : > { %p3117_p10 = scmp.ne.s32.totalorder %s5713_s8, %s3116_s20  ;;  %p3121_p4 = scmp.lt.u32.totalorder %s5713_s8, %s5763_s6 }
 0x316   : > { %p3122_p11 = scmp.lt.u32.totalorder %s3120_s14, %s3116_s20  ;;  %p3124_p3 = scmp.lt.u32.totalorder %s3116_s20, %s5713_s8 }
 0x317   : > { %p3118_p12 = pnand %p3117_p10, %p6152_p8 }
 0x318   : > { %p3123_p5 = por %p3122_p11, %p3121_p4 }
 0x319   : > { %p3119_p1 = pneg %p3118_p12 }
 0x31a   : > { %p3125_p7 = por %p3124_p3, %p3123_p5 }
 0x31c   : > { %p3126_p13 = pnand %p3125_p7, %p3119_p1 }
 0x31e   : > { %3129 = shalt.err (!%p3126_p13)
}
 0x31f   : > { %2839 = dma.vmem_to_hbm [thread:$0]  (%p6152_p8), %s5715_s3, 16, %s5713_s8, %s2616_s11  }
 0x320 PF: > { %s6153_s7 = sld [smem:[#allocation23_spill]]  ;;  %s2656_s10 = sand.u32 1, %s3172_s21  }
 0x321   : > { %p6155_p2 = scmp.ge.s32.totalorder %s3184_s24, 2  ;;  %s2657_s28 = scalar_lea.sflag [#allocation4], %s2656_s10 }
 0x326   : > { %p6154_p9 = scmp.ne.s32.totalorder %s6153_s7, 0 }
 0x328   : > { %p2860_p6 = pnand %p6155_p2, %p6154_p9 }
 0x32a   : > { %3163 = dma.done.wait (!%p2860_p6), %s2657_s28, 256  }
 0x32b   : > { %3165 = vsyncadd (!%p2860_p6), %s2657_s28, 4294967040  ;;  %s2666_s13 = scalar_lea.sflag [#allocation13], %s2656_s10 }
 0x32c   : > { %3167 = dma.done.wait (!%p2860_p6), %s2666_s13, 16  }
 0x32d   : > { %3169 = vsyncadd (!%p2860_p6), %s2666_s13, 4294967280  ;;  %s6156_s24 = sld [smem:[#allocation21_spill]]  ;;  %s6157_s9 = sld [smem:[#allocation20_spill]] }
 0x32e   : > { %s6158_s23 = sld [smem:[#allocation22_spill]]  ;;  %s6159_s21 = smov %s3176_s22 }
 0x333   : > { %p23_p8 = scmp.ge.s32.totalorder %s6156_s24, 4   ;;  %s6160_s22 = smov %s6157_s9 }
 0x335   :  { %25 = sbr.rel (!%p23_p8) target bundleno = 11 (0xb), region = 125 }
 0x33c   :  { %2670 = vsyncpa [#allocation3], 1 }
 0x33d   :  { %2672 = vsyncpa [#allocation3 + $0x1], 1 }
 0x33e   :  { %2673 = vsyncpa [#allocation8], 1 }
 0x33f   :  { %2674 = vsyncpa [#allocation4], 1 }
 0x340   :  { %2676 = vsyncpa [#allocation4 + $0x1], 1 }
 0x341   :  { %2677 = vsyncpa [#allocation13], 1 }
 0x342   :  { %2679 = vsyncpa [#allocation13 + $0x1], 1 }
 0x343   :  { %2680 = vsyncpa [#allocation5], 1 }
 0x344   :  { %2682 = vsyncpa [#allocation5 + $0x1], 1 }

</bundles_post_ra>
